<compile_context>
chip_gen: v7x
topology: tpu7x:2x2x1
jax: 0.10.0
libtpu: 0.0.40
codegen_flags: <defaults>
</compile_context>

<pallas_src>
import functools

import jax
import jax.numpy as jnp
from jax import lax
from jax.experimental import pallas as pl
from jax.experimental.pallas import tpu as pltpu

PAD = 128  # lane halo on each side of a flattened plane; must be >= W + 1


def fused_cnn_kernel(*refs, ww, pad):
    # refs = [x, (w, b) * n_conv, fc_w, fc_b, out, buf, slab, yflat]
    n_conv = (len(refs) - 7) // 2
    x_ref = refs[0]
    conv_refs = refs[1:1 + 2 * n_conv]
    wfc_ref, bfc_ref, o_ref, buf_ref, slab_ref, yflat_ref = refs[1 + 2 * n_conv:]

    cmax, buf_w = buf_ref.shape
    hw = buf_w - 2 * pad

    # Horizontal-boundary (W) lane masks, built once and shared by every tap of
    # every conv layer.  The vertical (H) boundary is handled by the zero halo
    # columns of buf_ref.
    lane = lax.broadcasted_iota(jnp.int32, (1, hw), 1)
    if ww & (ww - 1) == 0:
        col = jnp.bitwise_and(lane, ww - 1)
    else:
        col = lane % ww
    left_mask = (col > 0).astype(jnp.bfloat16)       # tap reads column j-1
    right_mask = (col < ww - 1).astype(jnp.bfloat16)  # tap reads column j+1

    # Zero ONLY the halo strips; plane interiors are always fully overwritten
    # before each read (exact per-layer cin -> no stale padded-channel rows).
    buf_ref[:, 0:pad] = jnp.zeros((cmax, pad), buf_ref.dtype)
    buf_ref[:, pad + hw:] = jnp.zeros((cmax, pad), buf_ref.dtype)

    def conv3x3_relu(inp, w_ref, b_ref):
        # inp: (cin, hw) f32, row-major flattened planes -> (cout, hw) f32.
        cin = inp.shape[0]
        buf_ref[0:cin, pad:pad + hw] = inp.astype(buf_ref.dtype)
        # Materialize the 9 shifted (masked) slabs once so the single fused
        # matmul reads aligned rows (no lane rotates interleaved with vmatmul).
        k = 0
        for dh in (-1, 0, 1):
            for dw in (-1, 0, 1):
                shift = dh * ww + dw
                s = buf_ref[0:cin, pad + shift:pad + shift + hw]   # (cin, hw)
                if dw == -1:
                    s = s * left_mask
                elif dw == 1:
                    s = s * right_mask
                slab_ref[k * cin:(k + 1) * cin, :] = s
                k += 1
        # One MXU pass per layer: (cout, 9*cin) @ (9*cin, hw), bf16 in, f32 acc.
        acc = jnp.dot(w_ref[...], slab_ref[0:9 * cin, :],
                      preferred_element_type=jnp.float32)
        return jnp.maximum(acc + b_ref[...], 0.0)

    y = x_ref[0]                                   # (cin0, hw) f32
    for l in range(n_conv):
        y = conv3x3_relu(y, conv_refs[2 * l], conv_refs[2 * l + 1])

    # NCHW flatten is just concatenating the channel rows along lanes; then one
    # long-K NT matmul against fc_w in its original (ncls, hidden*hw) layout.
    hidden = y.shape[0]
    for c in range(hidden):
        yflat_ref[:, c * hw:(c + 1) * hw] = y[c:c + 1, :].astype(yflat_ref.dtype)
    logits = lax.dot_general(
        yflat_ref[...], wfc_ref[...],
        dimension_numbers=(((1,), (1,)), ((), ())),
        preferred_element_type=jnp.float32) + bfc_ref[...]
    o_ref[0] = logits


def prepare_params(params):
    """One-time weight re-arrangement + bf16 cast (hoisted out of the forward)."""
    convs = []
    for w, b in params["convs"]:
        cout, cin = w.shape[0], w.shape[1]
        # (cout, cin, 3, 3) -> (cout, 9*cin); K index = (kh*3 + kw)*cin + ci,
        # matching the slab row layout built inside the kernel.
        wk = jnp.transpose(w, (0, 2, 3, 1)).reshape(cout, 9 * cin)
        convs.append((wk.astype(jnp.bfloat16),
                      b.reshape(cout, 1).astype(jnp.float32)))
    return {
        "convs": convs,
        "fc_w": params["fc_w"].astype(jnp.bfloat16),       # (ncls, hidden*hw)
        "fc_b": params["fc_b"].reshape(1, -1).astype(jnp.float32),
    }


def simple_cnn_forward(packed, x):
    bsz, cin0, hh, wwid = x.shape
    hw = hh * wwid
    hidden = packed["convs"][-1][0].shape[0]
    ncls = packed["fc_w"].shape[0]
    cmax = max(cin0, hidden)
    assert PAD >= wwid + 1, "halo must cover a full row shift (W+1 <= PAD)"
    assert packed["fc_w"].shape[1] == hidden * hw

    inputs = [x.reshape(bsz, cin0, hw)]
    in_specs = [pl.BlockSpec((1, cin0, hw), lambda b: (b, 0, 0))]
    for wk, bb in packed["convs"]:
        inputs += [wk, bb]
        in_specs += [pl.BlockSpec(wk.shape, lambda b: (0, 0)),
                     pl.BlockSpec(bb.shape, lambda b: (0, 0))]
    inputs += [packed["fc_w"], packed["fc_b"]]
    in_specs += [pl.BlockSpec(packed["fc_w"].shape, lambda b: (0, 0)),
                 pl.BlockSpec((1, ncls), lambda b: (0, 0))]

    kernel = functools.partial(fused_cnn_kernel, ww=wwid, pad=PAD)
    out = pl.pallas_call(
        kernel,
        out_shape=jax.ShapeDtypeStruct((bsz, 1, ncls), jnp.float32),
        grid=(bsz,),
        in_specs=in_specs,
        out_specs=pl.BlockSpec((1, 1, ncls), lambda b: (b, 0, 0)),
        scratch_shapes=[
            pltpu.VMEM((cmax, hw + 2 * PAD), jnp.bfloat16),   # haloed planes
            pltpu.VMEM((9 * cmax, hw), jnp.bfloat16),         # fused-tap slab
            pltpu.VMEM((1, hidden * hw), jnp.bfloat16),       # flattened features
        ],
        compiler_params=pltpu.CompilerParams(
            dimension_semantics=("parallel",)),
    )(*inputs)
    return out.reshape(bsz, ncls)


def init_params(key, input_channels, hidden_channels, num_hidden_layers,
                num_classes, ksize=3):
    convs = []
    cin = input_channels
    for _ in range(num_hidden_layers + 1):
        key, kw, kb = jax.random.split(key, 3)
        bound = 1.0 / (cin * ksize * ksize) ** 0.5
        w = jax.random.uniform(kw, (hidden_channels, cin, ksize, ksize),
                               jnp.float32, -bound, bound)
        b = jax.random.uniform(kb, (hidden_channels,), jnp.float32, -bound, bound)
        convs.append((w, b))
        cin = hidden_channels
    feat = hidden_channels * 64 * 64
    key, kw, kb = jax.random.split(key, 3)
    bound = 1.0 / feat ** 0.5
    fc_w = jax.random.uniform(kw, (num_classes, feat), jnp.float32, -bound, bound)
    fc_b = jax.random.uniform(kb, (num_classes,), jnp.float32, -bound, bound)
    return {"convs": convs, "fc_w": fc_w, "fc_b": fc_b}


def ref_forward(params, x):
    """Pure-JAX f32 reference of the PyTorch forward (correctness check)."""
    y = x
    for w, b in params["convs"]:
        y = lax.conv_general_dilated(
            y, w, (1, 1), "SAME",
            dimension_numbers=("NCHW", "OIHW", "NCHW"),
            precision=lax.Precision.HIGHEST)
        y = jax.nn.relu(y + b[None, :, None, None])
    y = y.reshape(y.shape[0], -1)
    return jnp.dot(y, params["fc_w"].T,
                   precision=lax.Precision.HIGHEST) + params["fc_b"][None, :]


if __name__ == "__main__":
    INPUT_CHANNELS = 3
    HIDDEN_CHANNELS = 8
    NUM_HIDDEN_LAYERS = 1
    NUM_CLASSES = 10
    B, H, W = 2, 64, 64  # Linear(hidden*64*64, ...) fixes spatial size to 64x64

    key = jax.random.PRNGKey(0)
    key_x, key_p = jax.random.split(key)
    x = jax.random.normal(key_x, (B, INPUT_CHANNELS, H, W), jnp.float32)
    params = init_params(key_p, INPUT_CHANNELS, HIDDEN_CHANNELS,
                         NUM_HIDDEN_LAYERS, NUM_CLASSES)

    packed = jax.block_until_ready(prepare_params(params))   # one-time prep

    fwd = jax.jit(simple_cnn_forward)
    out = jax.block_until_ready(fwd(packed, x))
    assert out.shape == (B, NUM_CLASSES), out.shape

    ref = jax.block_until_ready(ref_forward(params, x))
    max_err = float(jnp.max(jnp.abs(out - ref)))
    assert jnp.allclose(out, ref, rtol=3e-2, atol=3e-2), max_err

    print("KERNEL_OK")
</pallas_src>

<mosaic_0001>
module attributes {stable_mosaic.version = 11 : i64} {
  func.func @fused_cnn_kernel(%arg0: i32, %arg1: memref<1x3x4096xf32, #tpu.memory_space<vmem>>, %arg2: memref<8x27xbf16, #tpu.memory_space<vmem>>, %arg3: memref<8x1xf32, #tpu.memory_space<vmem>>, %arg4: memref<8x72xbf16, #tpu.memory_space<vmem>>, %arg5: memref<8x1xf32, #tpu.memory_space<vmem>>, %arg6: memref<10x32768xbf16, #tpu.memory_space<vmem>>, %arg7: memref<1x10xf32, #tpu.memory_space<vmem>>, %arg8: memref<1x1x10xf32, #tpu.memory_space<vmem>>, %arg9: memref<8x4352xbf16, #tpu.memory_space<vmem>>, %arg10: memref<72x4096xbf16, #tpu.memory_space<vmem>>, %arg11: memref<1x32768xbf16, #tpu.memory_space<vmem>>) attributes {dimension_semantics = [#tpu.dimension_semantics<parallel>], iteration_bounds = array<i64: 2>, scalar_prefetch = 0 : i64, scratch_operands = 3 : i64, tpu.core_type = #tpu.core_type<tc>, window_params = [{transform_indices = @transform_0, window_bounds = array<i64: 1, 3, 4096>}, {pipeline_mode = #tpu.pipeline_mode<synchronous>, transform_indices = @transform_1, window_bounds = array<i64: 8, 27>}, {pipeline_mode = #tpu.pipeline_mode<synchronous>, transform_indices = @transform_2, window_bounds = array<i64: 8, 1>}, {pipeline_mode = #tpu.pipeline_mode<synchronous>, transform_indices = @transform_3, window_bounds = array<i64: 8, 72>}, {pipeline_mode = #tpu.pipeline_mode<synchronous>, transform_indices = @transform_4, window_bounds = array<i64: 8, 1>}, {pipeline_mode = #tpu.pipeline_mode<synchronous>, transform_indices = @transform_5, window_bounds = array<i64: 10, 32768>}, {pipeline_mode = #tpu.pipeline_mode<synchronous>, transform_indices = @transform_6, window_bounds = array<i64: 1, 10>}, {transform_indices = @transform_7, window_bounds = array<i64: 1, 1, 10>}]} {
    %0 = tpu.iota {dimensions = array<i32: 1>} : vector<1x4096xi32>
    %c63_i32 = arith.constant 63 : i32
    %1 = vector.broadcast %c63_i32 : i32 to vector<1x4096xi32>
    %2 = arith.andi %0, %1 : vector<1x4096xi32>
    %c0_i32 = arith.constant 0 : i32
    %3 = vector.broadcast %c0_i32 : i32 to vector<1x4096xi32>
    %4 = arith.cmpi sgt, %2, %3 : vector<1x4096xi32>
    %5 = arith.extui %4 : vector<1x4096xi1> to vector<1x4096xi32>
    %6 = arith.sitofp %5 : vector<1x4096xi32> to vector<1x4096xf32>
    %7 = arith.truncf %6 : vector<1x4096xf32> to vector<1x4096xbf16>
    %c63_i32_0 = arith.constant 63 : i32
    %8 = vector.broadcast %c63_i32_0 : i32 to vector<1x4096xi32>
    %9 = arith.cmpi slt, %2, %8 : vector<1x4096xi32>
    %10 = arith.extui %9 : vector<1x4096xi1> to vector<1x4096xi32>
    %11 = arith.sitofp %10 : vector<1x4096xi32> to vector<1x4096xf32>
    %12 = arith.truncf %11 : vector<1x4096xf32> to vector<1x4096xbf16>
    %cst = arith.constant 0.000000e+00 : bf16
    %13 = vector.broadcast %cst : bf16 to vector<8x128xbf16>
    %c0 = arith.constant 0 : index
    %c0_1 = arith.constant 0 : index
    %14 = vector.load %arg9[%c0, %c0_1] : memref<8x4352xbf16, #tpu.memory_space<vmem>>, vector<8x128xbf16>
    tpu.vector_store %arg9[%c0, %c0_1], %13 {strides = array<i32>} : memref<8x4352xbf16, #tpu.memory_space<vmem>>, vector<8x128xbf16>,
    %cst_2 = arith.constant 0.000000e+00 : bf16
    %15 = vector.broadcast %cst_2 : bf16 to vector<8x128xbf16>
    %c0_3 = arith.constant 0 : index
    %c4224 = arith.constant 4224 : index
    %16 = vector.load %arg9[%c0_3, %c4224] : memref<8x4352xbf16, #tpu.memory_space<vmem>>, vector<8x128xbf16>
    tpu.vector_store %arg9[%c0_3, %c4224], %15 {strides = array<i32>} : memref<8x4352xbf16, #tpu.memory_space<vmem>>, vector<8x128xbf16>,
    %c0_4 = arith.constant 0 : index
    %c0_5 = arith.constant 0 : index
    %c0_6 = arith.constant 0 : index
    %17 = vector.load %arg1[%c0_4, %c0_5, %c0_6] : memref<1x3x4096xf32, #tpu.memory_space<vmem>>, vector<1x3x4096xf32>
    %18 = vector.shape_cast %17 : vector<1x3x4096xf32> to vector<3x4096xf32>
    %19 = arith.truncf %18 : vector<3x4096xf32> to vector<3x4096xbf16>
    %c0_7 = arith.constant 0 : index
    %c128 = arith.constant 128 : index
    %20 = vector.load %arg9[%c0_7, %c128] : memref<8x4352xbf16, #tpu.memory_space<vmem>>, vector<3x4096xbf16>
    tpu.vector_store %arg9[%c0_7, %c128], %19 {strides = array<i32>} : memref<8x4352xbf16, #tpu.memory_space<vmem>>, vector<3x4096xbf16>,
    %c0_8 = arith.constant 0 : index
    %c63 = arith.constant 63 : index
    %21 = vector.load %arg9[%c0_8, %c63] : memref<8x4352xbf16, #tpu.memory_space<vmem>>, vector<3x4096xbf16>
    %22 = vector.broadcast %7 : vector<1x4096xbf16> to vector<3x4096xbf16>
    %23 = arith.mulf %21, %22 : vector<3x4096xbf16>
    %c0_9 = arith.constant 0 : index
    %c0_10 = arith.constant 0 : index
    %24 = vector.load %arg10[%c0_9, %c0_10] : memref<72x4096xbf16, #tpu.memory_space<vmem>>, vector<3x4096xbf16>
    tpu.vector_store %arg10[%c0_9, %c0_10], %23 {strides = array<i32>} : memref<72x4096xbf16, #tpu.memory_space<vmem>>, vector<3x4096xbf16>,
    %c0_11 = arith.constant 0 : index
    %c64 = arith.constant 64 : index
    %25 = vector.load %arg9[%c0_11, %c64] : memref<8x4352xbf16, #tpu.memory_space<vmem>>, vector<3x4096xbf16>
    %c3 = arith.constant 3 : index
    %c0_12 = arith.constant 0 : index
    %26 = vector.load %arg10[%c3, %c0_12] : memref<72x4096xbf16, #tpu.memory_space<vmem>>, vector<3x4096xbf16>
    tpu.vector_store %arg10[%c3, %c0_12], %25 {strides = array<i32>} : memref<72x4096xbf16, #tpu.memory_space<vmem>>, vector<3x4096xbf16>,
    %c0_13 = arith.constant 0 : index
    %c65 = arith.constant 65 : index
    %27 = vector.load %arg9[%c0_13, %c65] : memref<8x4352xbf16, #tpu.memory_space<vmem>>, vector<3x4096xbf16>
    %28 = vector.broadcast %12 : vector<1x4096xbf16> to vector<3x4096xbf16>
    %29 = arith.mulf %27, %28 : vector<3x4096xbf16>
    %c6 = arith.constant 6 : index
    %c0_14 = arith.constant 0 : index
    %30 = vector.load %arg10[%c6, %c0_14] : memref<72x4096xbf16, #tpu.memory_space<vmem>>, vector<3x4096xbf16>
    tpu.vector_store %arg10[%c6, %c0_14], %29 {strides = array<i32>} : memref<72x4096xbf16, #tpu.memory_space<vmem>>, vector<3x4096xbf16>,
    %c0_15 = arith.constant 0 : index
    %c127 = arith.constant 127 : index
    %31 = vector.load %arg9[%c0_15, %c127] : memref<8x4352xbf16, #tpu.memory_space<vmem>>, vector<3x4096xbf16>
    %32 = vector.broadcast %7 : vector<1x4096xbf16> to vector<3x4096xbf16>
    %33 = arith.mulf %31, %32 : vector<3x4096xbf16>
    %c9 = arith.constant 9 : index
    %c0_16 = arith.constant 0 : index
    %34 = vector.load %arg10[%c9, %c0_16] : memref<72x4096xbf16, #tpu.memory_space<vmem>>, vector<3x4096xbf16>
    tpu.vector_store %arg10[%c9, %c0_16], %33 {strides = array<i32>} : memref<72x4096xbf16, #tpu.memory_space<vmem>>, vector<3x4096xbf16>,
    %c0_17 = arith.constant 0 : index
    %c128_18 = arith.constant 128 : index
    %35 = vector.load %arg9[%c0_17, %c128_18] : memref<8x4352xbf16, #tpu.memory_space<vmem>>, vector<3x4096xbf16>
    %c12 = arith.constant 12 : index
    %c0_19 = arith.constant 0 : index
    %36 = vector.load %arg10[%c12, %c0_19] : memref<72x4096xbf16, #tpu.memory_space<vmem>>, vector<3x4096xbf16>
    tpu.vector_store %arg10[%c12, %c0_19], %35 {strides = array<i32>} : memref<72x4096xbf16, #tpu.memory_space<vmem>>, vector<3x4096xbf16>,
    %c0_20 = arith.constant 0 : index
    %c129 = arith.constant 129 : index
    %37 = vector.load %arg9[%c0_20, %c129] : memref<8x4352xbf16, #tpu.memory_space<vmem>>, vector<3x4096xbf16>
    %38 = vector.broadcast %12 : vector<1x4096xbf16> to vector<3x4096xbf16>
    %39 = arith.mulf %37, %38 : vector<3x4096xbf16>
    %c15 = arith.constant 15 : index
    %c0_21 = arith.constant 0 : index
    %40 = vector.load %arg10[%c15, %c0_21] : memref<72x4096xbf16, #tpu.memory_space<vmem>>, vector<3x4096xbf16>
    tpu.vector_store %arg10[%c15, %c0_21], %39 {strides = array<i32>} : memref<72x4096xbf16, #tpu.memory_space<vmem>>, vector<3x4096xbf16>,
    %c0_22 = arith.constant 0 : index
    %c191 = arith.constant 191 : index
    %41 = vector.load %arg9[%c0_22, %c191] : memref<8x4352xbf16, #tpu.memory_space<vmem>>, vector<3x4096xbf16>
    %42 = vector.broadcast %7 : vector<1x4096xbf16> to vector<3x4096xbf16>
    %43 = arith.mulf %41, %42 : vector<3x4096xbf16>
    %c18 = arith.constant 18 : index
    %c0_23 = arith.constant 0 : index
    %44 = vector.load %arg10[%c18, %c0_23] : memref<72x4096xbf16, #tpu.memory_space<vmem>>, vector<3x4096xbf16>
    tpu.vector_store %arg10[%c18, %c0_23], %43 {strides = array<i32>} : memref<72x4096xbf16, #tpu.memory_space<vmem>>, vector<3x4096xbf16>,
    %c0_24 = arith.constant 0 : index
    %c192 = arith.constant 192 : index
    %45 = vector.load %arg9[%c0_24, %c192] : memref<8x4352xbf16, #tpu.memory_space<vmem>>, vector<3x4096xbf16>
    %c21 = arith.constant 21 : index
    %c0_25 = arith.constant 0 : index
    %46 = vector.load %arg10[%c21, %c0_25] : memref<72x4096xbf16, #tpu.memory_space<vmem>>, vector<3x4096xbf16>
    tpu.vector_store %arg10[%c21, %c0_25], %45 {strides = array<i32>} : memref<72x4096xbf16, #tpu.memory_space<vmem>>, vector<3x4096xbf16>,
    %c0_26 = arith.constant 0 : index
    %c193 = arith.constant 193 : index
    %47 = vector.load %arg9[%c0_26, %c193] : memref<8x4352xbf16, #tpu.memory_space<vmem>>, vector<3x4096xbf16>
    %48 = vector.broadcast %12 : vector<1x4096xbf16> to vector<3x4096xbf16>
    %49 = arith.mulf %47, %48 : vector<3x4096xbf16>
    %c24 = arith.constant 24 : index
    %c0_27 = arith.constant 0 : index
    %50 = vector.load %arg10[%c24, %c0_27] : memref<72x4096xbf16, #tpu.memory_space<vmem>>, vector<3x4096xbf16>
    tpu.vector_store %arg10[%c24, %c0_27], %49 {strides = array<i32>} : memref<72x4096xbf16, #tpu.memory_space<vmem>>, vector<3x4096xbf16>,
    %c0_28 = arith.constant 0 : index
    %c0_29 = arith.constant 0 : index
    %51 = vector.load %arg2[%c0_28, %c0_29] : memref<8x27xbf16, #tpu.memory_space<vmem>>, vector<8x27xbf16>
    %c0_30 = arith.constant 0 : index
    %c0_31 = arith.constant 0 : index
    %52 = vector.load %arg10[%c0_30, %c0_31] : memref<72x4096xbf16, #tpu.memory_space<vmem>>, vector<27x4096xbf16>
    %cst_32 = arith.constant dense<0.000000e+00> : vector<8x4096xf32>
    %53 = tpu.matmul %51, %52, %cst_32 {dimension_numbers = #tpu.dot_dimension_numbers<[1], [0], [0], [1], [0, 0, 1, 1], [], []>} : vector<8x27xbf16>, vector<27x4096xbf16>, vector<8x4096xf32> -> vector<8x4096xf32>
    %c0_33 = arith.constant 0 : index
    %c0_34 = arith.constant 0 : index
    %54 = vector.load %arg3[%c0_33, %c0_34] : memref<8x1xf32, #tpu.memory_space<vmem>>, vector<8x1xf32>
    %55 = vector.broadcast %54 : vector<8x1xf32> to vector<8x4096xf32>
    %56 = arith.addf %53, %55 : vector<8x4096xf32>
    %cst_35 = arith.constant 0.000000e+00 : f32
    %57 = vector.broadcast %cst_35 : f32 to vector<8x4096xf32>
    %58 = arith.maximumf %56, %57 : vector<8x4096xf32>
    %59 = arith.truncf %58 : vector<8x4096xf32> to vector<8x4096xbf16>
    %c0_36 = arith.constant 0 : index
    %c128_37 = arith.constant 128 : index
    %60 = vector.load %arg9[%c0_36, %c128_37] : memref<8x4352xbf16, #tpu.memory_space<vmem>>, vector<8x4096xbf16>
    tpu.vector_store %arg9[%c0_36, %c128_37], %59 {strides = array<i32>} : memref<8x4352xbf16, #tpu.memory_space<vmem>>, vector<8x4096xbf16>,
    %c0_38 = arith.constant 0 : index
    %c63_39 = arith.constant 63 : index
    %61 = vector.load %arg9[%c0_38, %c63_39] : memref<8x4352xbf16, #tpu.memory_space<vmem>>, vector<8x4096xbf16>
    %62 = vector.broadcast %7 : vector<1x4096xbf16> to vector<8x4096xbf16>
    %63 = arith.mulf %61, %62 : vector<8x4096xbf16>
    %c0_40 = arith.constant 0 : index
    %c0_41 = arith.constant 0 : index
    %64 = vector.load %arg10[%c0_40, %c0_41] : memref<72x4096xbf16, #tpu.memory_space<vmem>>, vector<8x4096xbf16>
    tpu.vector_store %arg10[%c0_40, %c0_41], %63 {strides = array<i32>} : memref<72x4096xbf16, #tpu.memory_space<vmem>>, vector<8x4096xbf16>,
    %c0_42 = arith.constant 0 : index
    %c64_43 = arith.constant 64 : index
    %65 = vector.load %arg9[%c0_42, %c64_43] : memref<8x4352xbf16, #tpu.memory_space<vmem>>, vector<8x4096xbf16>
    %c8 = arith.constant 8 : index
    %c0_44 = arith.constant 0 : index
    %66 = vector.load %arg10[%c8, %c0_44] : memref<72x4096xbf16, #tpu.memory_space<vmem>>, vector<8x4096xbf16>
    tpu.vector_store %arg10[%c8, %c0_44], %65 {strides = array<i32>} : memref<72x4096xbf16, #tpu.memory_space<vmem>>, vector<8x4096xbf16>,
    %c0_45 = arith.constant 0 : index
    %c65_46 = arith.constant 65 : index
    %67 = vector.load %arg9[%c0_45, %c65_46] : memref<8x4352xbf16, #tpu.memory_space<vmem>>, vector<8x4096xbf16>
    %68 = vector.broadcast %12 : vector<1x4096xbf16> to vector<8x4096xbf16>
    %69 = arith.mulf %67, %68 : vector<8x4096xbf16>
    %c16 = arith.constant 16 : index
    %c0_47 = arith.constant 0 : index
    %70 = vector.load %arg10[%c16, %c0_47] : memref<72x4096xbf16, #tpu.memory_space<vmem>>, vector<8x4096xbf16>
    tpu.vector_store %arg10[%c16, %c0_47], %69 {strides = array<i32>} : memref<72x4096xbf16, #tpu.memory_space<vmem>>, vector<8x4096xbf16>,
    %c0_48 = arith.constant 0 : index
    %c127_49 = arith.constant 127 : index
    %71 = vector.load %arg9[%c0_48, %c127_49] : memref<8x4352xbf16, #tpu.memory_space<vmem>>, vector<8x4096xbf16>
    %72 = vector.broadcast %7 : vector<1x4096xbf16> to vector<8x4096xbf16>
    %73 = arith.mulf %71, %72 : vector<8x4096xbf16>
    %c24_50 = arith.constant 24 : index
    %c0_51 = arith.constant 0 : index
    %74 = vector.load %arg10[%c24_50, %c0_51] : memref<72x4096xbf16, #tpu.memory_space<vmem>>, vector<8x4096xbf16>
    tpu.vector_store %arg10[%c24_50, %c0_51], %73 {strides = array<i32>} : memref<72x4096xbf16, #tpu.memory_space<vmem>>, vector<8x4096xbf16>,
    %c0_52 = arith.constant 0 : index
    %c128_53 = arith.constant 128 : index
    %75 = vector.load %arg9[%c0_52, %c128_53] : memref<8x4352xbf16, #tpu.memory_space<vmem>>, vector<8x4096xbf16>
    %c32 = arith.constant 32 : index
    %c0_54 = arith.constant 0 : index
    %76 = vector.load %arg10[%c32, %c0_54] : memref<72x4096xbf16, #tpu.memory_space<vmem>>, vector<8x4096xbf16>
    tpu.vector_store %arg10[%c32, %c0_54], %75 {strides = array<i32>} : memref<72x4096xbf16, #tpu.memory_space<vmem>>, vector<8x4096xbf16>,
    %c0_55 = arith.constant 0 : index
    %c129_56 = arith.constant 129 : index
    %77 = vector.load %arg9[%c0_55, %c129_56] : memref<8x4352xbf16, #tpu.memory_space<vmem>>, vector<8x4096xbf16>
    %78 = vector.broadcast %12 : vector<1x4096xbf16> to vector<8x4096xbf16>
    %79 = arith.mulf %77, %78 : vector<8x4096xbf16>
    %c40 = arith.constant 40 : index
    %c0_57 = arith.constant 0 : index
    %80 = vector.load %arg10[%c40, %c0_57] : memref<72x4096xbf16, #tpu.memory_space<vmem>>, vector<8x4096xbf16>
    tpu.vector_store %arg10[%c40, %c0_57], %79 {strides = array<i32>} : memref<72x4096xbf16, #tpu.memory_space<vmem>>, vector<8x4096xbf16>,
    %c0_58 = arith.constant 0 : index
    %c191_59 = arith.constant 191 : index
    %81 = vector.load %arg9[%c0_58, %c191_59] : memref<8x4352xbf16, #tpu.memory_space<vmem>>, vector<8x4096xbf16>
    %82 = vector.broadcast %7 : vector<1x4096xbf16> to vector<8x4096xbf16>
    %83 = arith.mulf %81, %82 : vector<8x4096xbf16>
    %c48 = arith.constant 48 : index
    %c0_60 = arith.constant 0 : index
    %84 = vector.load %arg10[%c48, %c0_60] : memref<72x4096xbf16, #tpu.memory_space<vmem>>, vector<8x4096xbf16>
    tpu.vector_store %arg10[%c48, %c0_60], %83 {strides = array<i32>} : memref<72x4096xbf16, #tpu.memory_space<vmem>>, vector<8x4096xbf16>,
    %c0_61 = arith.constant 0 : index
    %c192_62 = arith.constant 192 : index
    %85 = vector.load %arg9[%c0_61, %c192_62] : memref<8x4352xbf16, #tpu.memory_space<vmem>>, vector<8x4096xbf16>
    %c56 = arith.constant 56 : index
    %c0_63 = arith.constant 0 : index
    %86 = vector.load %arg10[%c56, %c0_63] : memref<72x4096xbf16, #tpu.memory_space<vmem>>, vector<8x4096xbf16>
    tpu.vector_store %arg10[%c56, %c0_63], %85 {strides = array<i32>} : memref<72x4096xbf16, #tpu.memory_space<vmem>>, vector<8x4096xbf16>,
    %c0_64 = arith.constant 0 : index
    %c193_65 = arith.constant 193 : index
    %87 = vector.load %arg9[%c0_64, %c193_65] : memref<8x4352xbf16, #tpu.memory_space<vmem>>, vector<8x4096xbf16>
    %88 = vector.broadcast %12 : vector<1x4096xbf16> to vector<8x4096xbf16>
    %89 = arith.mulf %87, %88 : vector<8x4096xbf16>
    %c64_66 = arith.constant 64 : index
    %c0_67 = arith.constant 0 : index
    %90 = vector.load %arg10[%c64_66, %c0_67] : memref<72x4096xbf16, #tpu.memory_space<vmem>>, vector<8x4096xbf16>
    tpu.vector_store %arg10[%c64_66, %c0_67], %89 {strides = array<i32>} : memref<72x4096xbf16, #tpu.memory_space<vmem>>, vector<8x4096xbf16>,
    %c0_68 = arith.constant 0 : index
    %c0_69 = arith.constant 0 : index
    %91 = vector.load %arg4[%c0_68, %c0_69] : memref<8x72xbf16, #tpu.memory_space<vmem>>, vector<8x72xbf16>
    %c0_70 = arith.constant 0 : index
    %c0_71 = arith.constant 0 : index
    %92 = vector.load %arg10[%c0_70, %c0_71] : memref<72x4096xbf16, #tpu.memory_space<vmem>>, vector<72x4096xbf16>
    %cst_72 = arith.constant dense<0.000000e+00> : vector<8x4096xf32>
    %93 = tpu.matmul %91, %92, %cst_72 {dimension_numbers = #tpu.dot_dimension_numbers<[1], [0], [0], [1], [0, 0, 1, 1], [], []>} : vector<8x72xbf16>, vector<72x4096xbf16>, vector<8x4096xf32> -> vector<8x4096xf32>
    %c0_73 = arith.constant 0 : index
    %c0_74 = arith.constant 0 : index
    %94 = vector.load %arg5[%c0_73, %c0_74] : memref<8x1xf32, #tpu.memory_space<vmem>>, vector<8x1xf32>
    %95 = vector.broadcast %94 : vector<8x1xf32> to vector<8x4096xf32>
    %96 = arith.addf %93, %95 : vector<8x4096xf32>
    %cst_75 = arith.constant 0.000000e+00 : f32
    %97 = vector.broadcast %cst_75 : f32 to vector<8x4096xf32>
    %98 = arith.maximumf %96, %97 : vector<8x4096xf32>
    %99 = vector.extract_strided_slice %98 {offsets = [0, 0], sizes = [1, 4096], strides = [1, 1]} : vector<8x4096xf32> to vector<1x4096xf32>
    %100 = arith.truncf %99 : vector<1x4096xf32> to vector<1x4096xbf16>
    %c0_76 = arith.constant 0 : index
    %c0_77 = arith.constant 0 : index
    %101 = vector.load %arg11[%c0_76, %c0_77] : memref<1x32768xbf16, #tpu.memory_space<vmem>>, vector<1x4096xbf16>
    tpu.vector_store %arg11[%c0_76, %c0_77], %100 {strides = array<i32>} : memref<1x32768xbf16, #tpu.memory_space<vmem>>, vector<1x4096xbf16>,
    %102 = vector.extract_strided_slice %98 {offsets = [1, 0], sizes = [1, 4096], strides = [1, 1]} : vector<8x4096xf32> to vector<1x4096xf32>
    %103 = arith.truncf %102 : vector<1x4096xf32> to vector<1x4096xbf16>
    %c0_78 = arith.constant 0 : index
    %c4096 = arith.constant 4096 : index
    %104 = vector.load %arg11[%c0_78, %c4096] : memref<1x32768xbf16, #tpu.memory_space<vmem>>, vector<1x4096xbf16>
    tpu.vector_store %arg11[%c0_78, %c4096], %103 {strides = array<i32>} : memref<1x32768xbf16, #tpu.memory_space<vmem>>, vector<1x4096xbf16>,
    %105 = vector.extract_strided_slice %98 {offsets = [2, 0], sizes = [1, 4096], strides = [1, 1]} : vector<8x4096xf32> to vector<1x4096xf32>
    %106 = arith.truncf %105 : vector<1x4096xf32> to vector<1x4096xbf16>
    %c0_79 = arith.constant 0 : index
    %c8192 = arith.constant 8192 : index
    %107 = vector.load %arg11[%c0_79, %c8192] : memref<1x32768xbf16, #tpu.memory_space<vmem>>, vector<1x4096xbf16>
    tpu.vector_store %arg11[%c0_79, %c8192], %106 {strides = array<i32>} : memref<1x32768xbf16, #tpu.memory_space<vmem>>, vector<1x4096xbf16>,
    %108 = vector.extract_strided_slice %98 {offsets = [3, 0], sizes = [1, 4096], strides = [1, 1]} : vector<8x4096xf32> to vector<1x4096xf32>
    %109 = arith.truncf %108 : vector<1x4096xf32> to vector<1x4096xbf16>
    %c0_80 = arith.constant 0 : index
    %c12288 = arith.constant 12288 : index
    %110 = vector.load %arg11[%c0_80, %c12288] : memref<1x32768xbf16, #tpu.memory_space<vmem>>, vector<1x4096xbf16>
    tpu.vector_store %arg11[%c0_80, %c12288], %109 {strides = array<i32>} : memref<1x32768xbf16, #tpu.memory_space<vmem>>, vector<1x4096xbf16>,
    %111 = vector.extract_strided_slice %98 {offsets = [4, 0], sizes = [1, 4096], strides = [1, 1]} : vector<8x4096xf32> to vector<1x4096xf32>
    %112 = arith.truncf %111 : vector<1x4096xf32> to vector<1x4096xbf16>
    %c0_81 = arith.constant 0 : index
    %c16384 = arith.constant 16384 : index
    %113 = vector.load %arg11[%c0_81, %c16384] : memref<1x32768xbf16, #tpu.memory_space<vmem>>, vector<1x4096xbf16>
    tpu.vector_store %arg11[%c0_81, %c16384], %112 {strides = array<i32>} : memref<1x32768xbf16, #tpu.memory_space<vmem>>, vector<1x4096xbf16>,
    %114 = vector.extract_strided_slice %98 {offsets = [5, 0], sizes = [1, 4096], strides = [1, 1]} : vector<8x4096xf32> to vector<1x4096xf32>
    %115 = arith.truncf %114 : vector<1x4096xf32> to vector<1x4096xbf16>
    %c0_82 = arith.constant 0 : index
    %c20480 = arith.constant 20480 : index
    %116 = vector.load %arg11[%c0_82, %c20480] : memref<1x32768xbf16, #tpu.memory_space<vmem>>, vector<1x4096xbf16>
    tpu.vector_store %arg11[%c0_82, %c20480], %115 {strides = array<i32>} : memref<1x32768xbf16, #tpu.memory_space<vmem>>, vector<1x4096xbf16>,
    %117 = vector.extract_strided_slice %98 {offsets = [6, 0], sizes = [1, 4096], strides = [1, 1]} : vector<8x4096xf32> to vector<1x4096xf32>
    %118 = arith.truncf %117 : vector<1x4096xf32> to vector<1x4096xbf16>
    %c0_83 = arith.constant 0 : index
    %c24576 = arith.constant 24576 : index
    %119 = vector.load %arg11[%c0_83, %c24576] : memref<1x32768xbf16, #tpu.memory_space<vmem>>, vector<1x4096xbf16>
    tpu.vector_store %arg11[%c0_83, %c24576], %118 {strides = array<i32>} : memref<1x32768xbf16, #tpu.memory_space<vmem>>, vector<1x4096xbf16>,
    %120 = vector.extract_strided_slice %98 {offsets = [7, 0], sizes = [1, 4096], strides = [1, 1]} : vector<8x4096xf32> to vector<1x4096xf32>
    %121 = arith.truncf %120 : vector<1x4096xf32> to vector<1x4096xbf16>
    %c0_84 = arith.constant 0 : index
    %c28672 = arith.constant 28672 : index
    %122 = vector.load %arg11[%c0_84, %c28672] : memref<1x32768xbf16, #tpu.memory_space<vmem>>, vector<1x4096xbf16>
    tpu.vector_store %arg11[%c0_84, %c28672], %121 {strides = array<i32>} : memref<1x32768xbf16, #tpu.memory_space<vmem>>, vector<1x4096xbf16>,
    %c0_85 = arith.constant 0 : index
    %c0_86 = arith.constant 0 : index
    %123 = vector.load %arg11[%c0_85, %c0_86] : memref<1x32768xbf16, #tpu.memory_space<vmem>>, vector<1x32768xbf16>
    %c0_87 = arith.constant 0 : index
    %c0_88 = arith.constant 0 : index
    %124 = vector.load %arg6[%c0_87, %c0_88] : memref<10x32768xbf16, #tpu.memory_space<vmem>>, vector<10x32768xbf16>
    %cst_89 = arith.constant dense<0.000000e+00> : vector<1x10xf32>
    %125 = tpu.matmul %123, %124, %cst_89 {dimension_numbers = #tpu.dot_dimension_numbers<[1], [1], [0], [0], [0, 0, 1, 0], [], []>} : vector<1x32768xbf16>, vector<10x32768xbf16>, vector<1x10xf32> -> vector<1x10xf32>
    %c0_90 = arith.constant 0 : index
    %c0_91 = arith.constant 0 : index
    %126 = vector.load %arg7[%c0_90, %c0_91] : memref<1x10xf32, #tpu.memory_space<vmem>>, vector<1x10xf32>
    %127 = arith.addf %125, %126 : vector<1x10xf32>
    %c0_92 = arith.constant 0 : index
    %c0_93 = arith.constant 0 : index
    %c0_94 = arith.constant 0 : index
    %128 = vector.load %arg8[%c0_92, %c0_93, %c0_94] : memref<1x1x10xf32, #tpu.memory_space<vmem>>, vector<1x1x10xf32>
    %129 = vector.shape_cast %128 : vector<1x1x10xf32> to vector<1x10xf32>
    %130 = vector.shape_cast %127 : vector<1x10xf32> to vector<1x1x10xf32>
    tpu.vector_store %arg8[%c0_92, %c0_93, %c0_94], %130 {strides = array<i32>} : memref<1x1x10xf32, #tpu.memory_space<vmem>>, vector<1x1x10xf32>,
    return
  }
  func.func @transform_0(%arg0: i32) -> (i32, i32, i32) {
    %c0_i32 = arith.constant 0 : i32
    %c0_i32_0 = arith.constant 0 : i32
    %c0_i32_1 = arith.constant 0 : i32
    return %arg0, %c0_i32, %c0_i32_0 : i32, i32, i32
  }
  func.func @transform_1(%arg0: i32) -> (i32, i32) {
    %c0_i32 = arith.constant 0 : i32
    %c0_i32_0 = arith.constant 0 : i32
    %c0_i32_1 = arith.constant 0 : i32
    return %c0_i32, %c0_i32_0 : i32, i32
  }
  func.func @transform_2(%arg0: i32) -> (i32, i32) {
    %c0_i32 = arith.constant 0 : i32
    %c0_i32_0 = arith.constant 0 : i32
    %c0_i32_1 = arith.constant 0 : i32
    return %c0_i32, %c0_i32_0 : i32, i32
  }
  func.func @transform_3(%arg0: i32) -> (i32, i32) {
    %c0_i32 = arith.constant 0 : i32
    %c0_i32_0 = arith.constant 0 : i32
    %c0_i32_1 = arith.constant 0 : i32
    return %c0_i32, %c0_i32_0 : i32, i32
  }
  func.func @transform_4(%arg0: i32) -> (i32, i32) {
    %c0_i32 = arith.constant 0 : i32
    %c0_i32_0 = arith.constant 0 : i32
    %c0_i32_1 = arith.constant 0 : i32
    return %c0_i32, %c0_i32_0 : i32, i32
  }
  func.func @transform_5(%arg0: i32) -> (i32, i32) {
    %c0_i32 = arith.constant 0 : i32
    %c0_i32_0 = arith.constant 0 : i32
    %c0_i32_1 = arith.constant 0 : i32
    return %c0_i32, %c0_i32_0 : i32, i32
  }
  func.func @transform_6(%arg0: i32) -> (i32, i32) {
    %c0_i32 = arith.constant 0 : i32
    %c0_i32_0 = arith.constant 0 : i32
    %c0_i32_1 = arith.constant 0 : i32
    return %c0_i32, %c0_i32_0 : i32, i32
  }
  func.func @transform_7(%arg0: i32) -> (i32, i32, i32) {
    %c0_i32 = arith.constant 0 : i32
    %c0_i32_0 = arith.constant 0 : i32
    %c0_i32_1 = arith.constant 0 : i32
    return %arg0, %c0_i32, %c0_i32_0 : i32, i32, i32
  }
}

</mosaic_0001>

<bundles_post_ra>
// kernel: simple_cnn_forward.1
= control target key start
LH: loop header
LB: loop body
LE: loop exit
PB: predicated region body
PF: predicated region fallthrough
CT: control target
= control target key end

     0   :  { %12 = vsyncpa [#allocation6], 0  ;;  %s25229_s0 = inlined_call_operand.vmem [shape: f32[2,3,4096], index: 0, kind: input, shape index: {}]   ;;  %s25230_s1 = inlined_call_operand.vmem [shape: bf16[8,27], index: 1, kind: input, shape index: {}]   ;;  %s25231_s2 = inlined_call_operand.vmem [shape: f32[8,1], index: 2, kind: input, shape index: {}]   ;;  %s25232_s3 = inlined_call_operand.vmem [shape: bf16[8,72], index: 3, kind: input, shape index: {}]   ;;  %s25233_s4 = inlined_call_operand.vmem [shape: f32[8,1], index: 4, kind: input, shape index: {}]   ;;  %s25234_s5 = inlined_call_operand.hbm [shape: bf16[10,32768], index: 5, kind: input, shape index: {}]   ;;  %s25235_s6 = inlined_call_operand.vmem [shape: f32[1,10], index: 6, kind: input, shape index: {}]   ;;  %s25236_s7 = inlined_call_operand.hbm [shape: f32[2,1,10], index: 7, kind: output, shape index: {}]  }
   0x1   :  { %13 = vsyncpa [#allocation7], 0 }
   0x2   :  { %15 = vsyncpa [#allocation7 + $0x1], 0  ;;  %s18905_s24 = smov 0   ;;  %s18907_s25 = smov 0  }
   0x3   :  { %s18909_s26 = smov 0   ;;  %s18911_s27 = smov 0  }
   0x4 LB: > { %s18926_s28 = sadd.s32 4294967295, %s18850_s27   ;;  %s17343_s29 = sadd.s32 4294967294, %s18850_s27   ;;  %s18850_s27 = sphi %s18911_s27, %s26542_s27   ;;  %s18846_s26 = sphi %s18909_s26, %s26541_s26   ;;  %s18842_s25 = sphi %s18907_s25, %s26540_s25   ;;  %s18838_s24 = sphi %s18905_s24, %s26539_s24  }
   0x5   : > { %s18930_s30 = sadd.s32 1, %s18850_s27   ;;  %s180_s8 = sadd.s32 1, %s18846_s26 }
   0x6   : > { %s177_s9 = ssub.s32 %s18850_s27, %s18930_s30  ;;  %p190_p0 = scmp.ne.s32.totalorder %s18846_s26, %s18842_s25 }
   0x7   : > { %p178_p1 = scmp.eq.s32.totalorder %s177_s9, 0  ;;  %p191_p2 = scmp.eq.s32.totalorder %s18926_s28, 1 }
   0x8   : > { %p196_p3 = scmp.ne.s32.totalorder %s18842_s25, %s18838_s24  ;;  %p197_p4 = scmp.eq.s32.totalorder %s17343_s29, 1 }
   0x9   : > { %s18941_s10 = scalar_select %p178_p1, %s18846_s26, %s180_s8  }
   0xa   : > { %p18943_p5 = por %p191_p2, %p190_p0  ;;  %p18947_p6 = por %p197_p4, %p196_p3 }
   0xb   : > { %p17344_p7 = scmp.ge.s32.totalorder %s18850_s27, 1  ;;  %p204_p8 = scmp.lt.s32.totalorder %s18850_s27, 3 }
   0xc   : > { %s25484_s11 = scalar_select %p18943_p5, 1, 0 }
   0xd   : > { %s25485_s12 = scalar_select %p18947_p6, 1, 0 }
   0xe   : > { %p25237_p9 = scmp.eq.s32.totalorder %s18926_s28, 0  ;;  %p18954_p10 = pnand %p17344_p7, %p204_p8 }
   0xf   : > { %s18852_s14 = smov [#allocation5]   ;;  %s18756_s19 = scalar_lea.hbm %s25234_s5, 32768 }
  0x10   : > { %s25486_s13 = scalar_select %p18954_p10, 1, 0 }
  0x11   : > { %s228_s15 = sshll.u32 %s18852_s14, 4  ;;  %p18619_p11 = pneg %p18954_p10  ;;  %s229_s15 = int_to_ptr.vmem [resolvable:$true] %s228_s15 }
  0x12   : > { %p18757_p13 = scmp.ne.s32.totalorder %s25234_s5, %s18756_s19  ;;  %p18763_p3 = scmp.lt.u32.totalorder %s18756_s19, %s25234_s5 }
  0x13   : > { %p18962_p12 = pnand %p25237_p9, %p18619_p11 }
  0x15   : > { %p18758_p0 = pneg %p18962_p12 }
  0x17   : > { %p18759_p1 = pnand %p18758_p0, %p18757_p13 }
  0x19   : > { %p18760_p2 = pneg %p18759_p1 }
  0x1b   : > { %p18765_p4 = pnand %p18763_p3, %p18760_p2 }
  0x1d   : > { %18768 = shalt.err (!%p18765_p4)
}
  0x1e   : > { %s18769_s29 = scalar_lea.vmem %s229_s15, 32768  ;;  %p18777_p9 = scmp.lt.s32.totalorder %s229_s15, %s229_s15 }
  0x1f   : > { %p18770_p7 = scmp.ne.s32.totalorder %s229_s15, %s18769_s29  ;;  %p18778_p6 = scmp.lt.s32.totalorder %s18769_s29, %s18769_s29 }
  0x21   : > { %p18772_p8 = pnand %p18770_p7, %p18758_p0  ;;  %p18779_p5 = por %p18778_p6, %p18777_p9 }
  0x23   : > { %p18773_p11 = pneg %p18772_p8 }
  0x25   : > { %p18780_p10 = pnand %p18779_p5, %p18773_p11 }
  0x27   : > { %18783 = shalt.err (!%p18780_p10)
}
  0x28   : > { %s18853_s8 = smov 16384   ;;  %s18854_s9 = smov 1024  }
  0x29   : > { %18622 = dma.hbm_to_vmem [thread:$0]  (!%p18962_p12), %s25234_s5, 32768, %s229_s15, [#allocation6], %s18853_s8, %s18853_s8, %s18854_s9  }
  0x2a   : > { %p25488_p13 = scmp.ne.s32.totalorder %s25486_s13, 0 }
  0x2c   : > { %255 = sbr.rel (%p25488_p13) target bundleno = 2730 (0xaaa), region = 48 }
  0x33   : > { %v25240_v0 = vlaneseq  ;;  %p25489_p0 = scmp.eq.s32.totalorder %s18926_s28, 0 }
  0x35   : > { %18829 = dma.done.wait (%p25489_p0), [#allocation6], 32768   ;;  %p25490_p1 = pmov %p25489_p0 }
  0x36   : > { %v25241_v1 = vmov 0   ;;  %v18991_v2 = vand.u32 127, %v25240_v0  ;;  %p286_p5 = scmp.lt.s32.totalorder %s18926_s28, 1  ;;  %v25254_v11 = vmov 0.0   ;;  %s18857_s16 = smov 65   ;;  %vm25244_vm10 = vcmask 1041408  }
  0x37   : > { %18831 = vsyncadd (%p25490_p1), [#allocation6], 4294934528  ;;  %4369 = vmatprep.mubr.bf16.mxu1 %v25241_v1  ;;  %18699 = vset.pattern.permute.xlu1 %v25241_v1  ;;  %613 = vst [vmem:[#allocation2] sm:$0xf] %v25241_v1  ;;  %s18858_s18 = smov 63   ;;  %vm25243_vm12 = vcmask 1045508  }
  0x38   : > { %614 = vst [vmem:[#allocation2 + $0x84] sm:$0xf] %v25241_v1  ;;  %18700 = vset.pattern.permute.xlu0 %v25241_v1  ;;  %v294_v3 = vadd.s32 128, %v18991_v2  ;;  %v325_v4 = vand.u32 63, %v18991_v2  ;;  %v295_v5 = vadd.s32 256, %v18991_v2  ;;  %v296_v6 = vadd.s32 384, %v18991_v2 }
  0x39   : > { %v297_v7 = vadd.s32 512, %v18991_v2  ;;  %v298_v8 = vadd.s32 640, %v18991_v2  ;;  %s19006_s13 = scalar_select %p286_p5, %s18926_s28, 1  ;;  %vm808_vm11 = vsmask.f32 1280  ;;  %v299_v31 = vadd.s32 768, %v18991_v2 }
  0x3a   : > { %v326_v9 = vand.u32 63, %v294_v3  ;;  %vm485_vm0 = vcmp.lt.s32.totalorder %v325_v4, 63  ;;  %vm357_vm1 = vcmp.gt.s32.totalorder %v325_v4, 0  ;;  %v327_v10 = vand.u32 63, %v295_v5  ;;  %s18859_s22 = smov 127   ;;  %s18860_s23 = smov 1  }
  0x3b   : > { %v17383_v12 = vsel %vm485_vm0, 1.0, %v25254_v11  ;;  %v17351_v13 = vsel %vm357_vm1, 1.0, %v25254_v11  ;;  %v328_v14 = vand.u32 63, %v296_v6  ;;  %v329_v15 = vand.u32 63, %v297_v7  ;;  %s18042_s15 = sshll.u32 %s19006_s13, 7  ;;  %vm809_vm0 = vmand %vm25244_vm10, %vm808_vm11  ;;  %s18861_s29 = smov 64  }
  0x3c   : > { %vm486_vm2 = vcmp.lt.s32.totalorder %v326_v9, 63  ;;  %vm358_vm3 = vcmp.gt.s32.totalorder %v326_v9, 0  ;;  %vm487_vm4 = vcmp.lt.s32.totalorder %v327_v10, 63  ;;  %vm359_vm5 = vcmp.gt.s32.totalorder %v327_v10, 0  ;;  %s19022_s21 = scalar_lea.vmem %s25229_s0, %s18042_s15  ;;  %v814_v43 = vld [vmem:[#allocation2 + $0x4] sm:$0x33] }
  0x3d   : > { %v17384_v16 = vsel %vm486_vm2, 1.0, %v25254_v11  ;;  %v17352_v17 = vsel %vm358_vm3, 1.0, %v25254_v11  ;;  %vm488_vm6 = vcmp.lt.s32.totalorder %v328_v14, 63  ;;  %v17385_v18 = vsel %vm487_vm4, 1.0, %v25254_v11  ;;  %v615_v27 = vld [vmem:[%s19022_s21] sm:$0x77] }
  0x3e   : > { %v18075_v19 = vpack.c.bf16 %v17384_v16, %v17383_v12  ;;  %v18059_v20 = vpack.c.bf16 %v17352_v17, %v17351_v13  ;;  %v17386_v21 = vsel %vm488_vm6, 1.0, %v25254_v11  ;;  %vm360_vm7 = vcmp.gt.s32.totalorder %v328_v14, 0  ;;  %v616_v28 = vld [vmem:[%s19022_s21 + $0x8] sm:$0x77]  ;;  %v617_v36 = vld [vmem:[%s19022_s21 + $0x10] sm:$0x77] }
  0x3f   : > { %v17353_v22 = vsel %vm359_vm5, 1.0, %v25254_v11  ;;  %v17354_v23 = vsel %vm360_vm7, 1.0, %v25254_v11  ;;  %v330_v24 = vand.u32 63, %v298_v8  ;;  %v18076_v25 = vpack.c.bf16 %v17386_v21, %v17385_v18  ;;  %v817_v45 = vld [vmem:[#allocation2 + $0xc] sm:$0x33]  ;;  %s18039_s20 = sshll.u32 %s18926_s28, 4 }
  0x40   : > { %1644 = vrot.lane.b32.xlu0 %v18075_v19, %s18857_s16  ;;  %959 = vrot.lane.b32.xlu1 %v18059_v20, %s18858_s18  ;;  %v18060_v26 = vpack.c.bf16 %v17354_v23, %v17353_v22  ;;  %vm489_vm8 = vcmp.lt.s32.totalorder %v329_v15, 63  ;;  %vm25249_vm13 = vsmask.f32 5376  ;;  %v300_v32 = vadd.s32 896, %v18991_v2  ;;  %v618_v50 = vld [vmem:[%s19022_s21 + $0x18] sm:$0x77]  ;;  %s25187_s17 = scalar_lea.hbm %s25236_s7, %s18039_s20 }
  0x41   : > { %vm490_vm9 = vcmp.lt.s32.totalorder %v330_v24, 63  ;;  %v17387_v29 = vsel %vm489_vm8, 1.0, %v25254_v11  ;;  %vm361_vm14 = vcmp.gt.s32.totalorder %v329_v15, 0  ;;  %vm362_vm15 = vcmp.gt.s32.totalorder %v330_v24, 0  ;;  %vm812_vm1 = vmand %vm25243_vm12, %vm25249_vm13  ;;  %v820_v53 = vld [vmem:[#allocation2 + $0x14] sm:$0x33] }
  0x42   : > { %v17388_v30 = vsel %vm490_vm9, 1.0, %v25254_v11  ;;  %v647_v33 = vcombine.high %v615_v27, %v615_v27  ;;  %v648_v34 = vcombine.high %v616_v28, %v616_v28  ;;  %v17355_v37 = vsel %vm361_vm14, 1.0, %v25254_v11  ;;  %vm19041_vm2 = vmor %vm812_vm1, %vm809_vm0  ;;  %v823_v60 = vld [vmem:[#allocation2 + $0x1c] sm:$0x33]  ;;  %v826_v22 = vld [vmem:[#allocation2 + $0x24] sm:$0x33] }
  0x43   : > { %v18077_v35 = vpack.c.bf16 %v17388_v30, %v17387_v29  ;;  %v17356_v38 = vsel %vm362_vm15, 1.0, %v25254_v11  ;;  %v331_v39 = vand.u32 63, %v299_v31  ;;  %v332_v40 = vand.u32 63, %v300_v32  ;;  %v619_v16 = vld [vmem:[%s19022_s21 + $0x20] sm:$0x77]  ;;  %p26537_p9 = scmp.ne.s32.totalorder %s25484_s11, 0 }
  0x44   : > { %1646 = vrot.lane.b32.xlu0 %v18076_v25, %s18857_s16  ;;  %961 = vrot.lane.b32.xlu1 %v18060_v26, %s18858_s18  ;;  %v18043_v41 = vpack.c.bf16 %v647_v33, %v615_v27  ;;  %v18044_v44 = vpack.c.bf16 %v648_v34, %v616_v28  ;;  %v649_v46 = vcombine.high %v617_v36, %v617_v36  ;;  %v301_v48 = vadd.s32 1024, %v18991_v2 }
  0x45   : > { %v18061_v47 = vpack.c.bf16 %v17356_v38, %v17355_v37  ;;  %v302_v49 = vadd.s32 1152, %v18991_v2  ;;  %vm491_vm3 = vcmp.lt.s32.totalorder %v331_v39, 63  ;;  %vm492_vm4 = vcmp.lt.s32.totalorder %v332_v40, 63 }
  0x46   : > { %vm363_vm5 = vcmp.gt.s32.totalorder %v331_v39, 0  ;;  %vm364_vm6 = vcmp.gt.s32.totalorder %v332_v40, 0  ;;  %v815_v51 = vsel %vm19041_vm2, %v18043_v41, %v814_v43  ;;  %v818_v52 = vsel %vm19041_vm2, %v18044_v44, %v817_v45  ;;  %v620_v43 = vld [vmem:[%s19022_s21 + $0x28] sm:$0x77] }
  0x47   : > { %816 = vst [vmem:[#allocation2 + $0x4] sm:$0x33] %v815_v51  ;;  %819 = vst [vmem:[#allocation2 + $0xc] sm:$0x33] %v818_v52  ;;  %v18045_v54 = vpack.c.bf16 %v649_v46, %v617_v36  ;;  %v650_v55 = vcombine.high %v618_v50, %v618_v50  ;;  %v17389_v56 = vsel %vm491_vm3, 1.0, %v25254_v11  ;;  %v17390_v57 = vsel %vm492_vm4, 1.0, %v25254_v11 }
  0x48   : > { %2094 = vrot.lane.b32.xlu0 %v18059_v20, %s18859_s22  ;;  %2096 = vrot.lane.b32.xlu1 %v18060_v26, %s18859_s22  ;;  %v17357_v58 = vsel %vm363_vm5, 1.0, %v25254_v11  ;;  %v17358_v59 = vsel %vm364_vm6, 1.0, %v25254_v11  ;;  %v333_v61 = vand.u32 63, %v301_v48  ;;  %v334_v62 = vand.u32 63, %v302_v49  ;;  %v829_v52 = vld [vmem:[#allocation2 + $0x2c] sm:$0x33] }
  0x49   : > { %v821_v63 = vsel %vm19041_vm2, %v18045_v54, %v820_v53  ;;  %v18046_v3 = vpack.c.bf16 %v650_v55, %v618_v50  ;;  %v18078_v5 = vpack.c.bf16 %v17390_v57, %v17389_v56  ;;  %v18062_v6 = vpack.c.bf16 %v17358_v59, %v17357_v58 }
  0x4a   : > { %822 = vst [vmem:[#allocation2 + $0x14] sm:$0x33] %v821_v63  ;;  %vm493_vm7 = vcmp.lt.s32.totalorder %v333_v61, 63  ;;  %vm494_vm8 = vcmp.lt.s32.totalorder %v334_v62, 63  ;;  %v303_v7 = vadd.s32 1280, %v18991_v2  ;;  %v304_v8 = vadd.s32 1408, %v18991_v2 }
  0x4b   : > { %v824_v4 = vsel %vm19041_vm2, %v18046_v3, %v823_v60  ;;  %vm365_vm9 = vcmp.gt.s32.totalorder %v333_v61, 0  ;;  %vm366_vm14 = vcmp.gt.s32.totalorder %v334_v62, 0  ;;  %v17391_v9 = vsel %vm493_vm7, 1.0, %v25254_v11 }
  0x4c   : > { %1648 = vrot.lane.b32.xlu0 %v18077_v35, %s18857_s16  ;;  %2616 = vrot.lane.b32.xlu1 %v18075_v19, %s18860_s23  ;;  %825 = vst [vmem:[#allocation2 + $0x1c] sm:$0x33] %v824_v4  ;;  %v17392_v10 = vsel %vm494_vm8, 1.0, %v25254_v11  ;;  %v17359_v12 = vsel %vm365_vm9, 1.0, %v25254_v11  ;;  %v17360_v13 = vsel %vm366_vm14, 1.0, %v25254_v11  ;;  %v335_v14 = vand.u32 63, %v303_v7 }
  0x4d   : > { %v336_v15 = vand.u32 63, %v304_v8  ;;  %v18079_v17 = vpack.c.bf16 %v17392_v10, %v17391_v9  ;;  %v18063_v18 = vpack.c.bf16 %v17360_v13, %v17359_v12  ;;  %v651_v19 = vcombine.high %v619_v16, %v619_v16 }
  0x4e   : > { %vm367_vm15 = vcmp.gt.s32.totalorder %v335_v14, 0  ;;  %vm495_vm1 = vcmp.lt.s32.totalorder %v335_v14, 63  ;;  %v1239_v23 = vld [vmem:[#allocation2] sm:$0x33]  ;;  %v1240_v24 = vld [vmem:[#allocation2 + $0x8] sm:$0x33] }
  0x4f   : > { %vm368_vm0 = vcmp.gt.s32.totalorder %v336_v15, 0  ;;  %v17361_v20 = vsel %vm367_vm15, 1.0, %v25254_v11  ;;  %vm496_vm3 = vcmp.lt.s32.totalorder %v336_v15, 63  ;;  %v19082_v26 = vadd.s32 1536, %v18991_v2  ;;  %v3371_v31 = vld [vmem:[#allocation2 + $0x4] sm:$0x33] }
  0x50   : > { %2618 = vrot.lane.b32.xlu0 %v18076_v25, %s18860_s23  ;;  %963 = vrot.lane.b32.xlu1 %v18061_v47, %s18858_s18  ;;  %v17362_v21 = vsel %vm368_vm0, 1.0, %v25254_v11  ;;  %v18047_v25 = vpack.c.bf16 %v651_v19, %v619_v16  ;;  %v19085_v27 = vadd.s32 1664, %v18991_v2  ;;  %v17393_v29 = vsel %vm495_vm1, 1.0, %v25254_v11  ;;  %v3372_v37 = vld [vmem:[#allocation2 + $0xc] sm:$0x33] }
  0x51   : > { %v18064_v28 = vpack.c.bf16 %v17362_v21, %v17361_v20  ;;  %v17394_v30 = vsel %vm496_vm3, 1.0, %v25254_v11  ;;  %v1257_v33 = vshrl.u32 %v1239_v23, 16  ;;  %v1260_v34 = vshll.u32 %v1239_v23, 16  ;;  %v1241_v53 = vld [vmem:[#allocation2 + $0x10] sm:$0x33] }
  0x52   : > { %v827_v32 = vsel %vm19041_vm2, %v18047_v25, %v826_v22  ;;  %v1268_v36 = vshll.u32 %v1240_v24, 16  ;;  %v18080_v38 = vpack.c.bf16 %v17394_v30, %v17393_v29  ;;  %v3389_v39 = vshrl.u32 %v3371_v31, 16  ;;  %v3373_v3 = vld [vmem:[#allocation2 + $0x14] sm:$0x33] }
  0x53   : > { %828 = vst [vmem:[#allocation2 + $0x24] sm:$0x33] %v827_v32  ;;  %v337_v40 = vand.u32 63, %v19082_v26  ;;  %v338_v41 = vand.u32 63, %v19085_v27  ;;  %v3392_v44 = vshll.u32 %v3371_v31, 16  ;;  %v3397_v45 = vshrl.u32 %v3372_v37, 16 }
  0x54   : > { %2098 = vrot.lane.b32.xlu0 %v18061_v47, %s18859_s22  ;;  %2620 = vrot.lane.b32.xlu1 %v18077_v35, %s18860_s23  ;;  %v1265_v35 = vshrl.u32 %v1240_v24, 16  ;;  %v3400_v46 = vshll.u32 %v3372_v37, 16  ;;  %v652_v47 = vcombine.high %v620_v43, %v620_v43  ;;  %v1259_v48 = vrot.slane %v1257_v33, 6  ;;  %v3374_v4 = vld [vmem:[#allocation2 + $0x1c] sm:$0x33] }
  0x55   : > { %v1262_v49 = vrot.slane %v1260_v34, 7  ;;  %v1270_v51 = vrot.slane %v1268_v36, 7  ;;  %v3391_v55 = vrot.slane %v3389_v39, 5  ;;  %vm369_vm4 = vcmp.gt.s32.totalorder %v337_v40, 0  ;;  %v1242_v36 = vld [vmem:[#allocation2 + $0x18] sm:$0x33] }
  0x56   : > { %v1267_v50 = vrot.slane %v1265_v35, 6  ;;  %v18048_v54 = vpack.c.bf16 %v652_v47, %v620_v43  ;;  %vm370_vm5 = vcmp.gt.s32.totalorder %v338_v41, 0  ;;  %v3394_v56 = vrot.slane %v3392_v44, 6  ;;  %v621_v43 = vld [vmem:[%s19022_s21 + $0x30] sm:$0x77] }
  0x57   : > { %v3399_v57 = vrot.slane %v3397_v45, 5  ;;  %v3402_v58 = vrot.slane %v3400_v46, 6  ;;  %v1263_v60 = vor.u32 %v1262_v49, %v1259_v48  ;;  %v1273_v62 = vshrl.u32 %v1241_v53, 16  ;;  %v832_v45 = vld [vmem:[#allocation2 + $0x34] sm:$0x33] }
  0x58   : > { %1650 = vrot.lane.b32.xlu0 %v18078_v5, %s18857_s16  ;;  %965 = vrot.lane.b32.xlu1 %v18062_v6, %s18858_s18  ;;  %v830_v59 = vsel %vm19041_vm2, %v18048_v54, %v829_v52  ;;  %v1271_v61 = vor.u32 %v1270_v51, %v1267_v50  ;;  %v1276_v63 = vshll.u32 %v1241_v53, 16  ;;  %v307_v7 = vadd.s32 1792, %v18991_v2  ;;  %v622_v49 = vld [vmem:[%s19022_s21 + $0x38] sm:$0x77] }
  0x59   : > { %831 = vst [vmem:[#allocation2 + $0x2c] sm:$0x33] %v830_v59  ;;  %v308_v8 = vadd.s32 1920, %v18991_v2  ;;  %v3395_v9 = vor.u32 %v3394_v56, %v3391_v55  ;;  %v3403_v10 = vor.u32 %v3402_v58, %v3399_v57  ;;  %v3405_v12 = vshrl.u32 %v3373_v3, 16  ;;  %v835_v51 = vld [vmem:[#allocation2 + $0x3c] sm:$0x33] }
  0x5a   : > { %v3408_v13 = vshll.u32 %v3373_v3, 16  ;;  %v1275_v14 = vrot.slane %v1273_v62, 6  ;;  %v1278_v15 = vrot.slane %v1276_v63, 7  ;;  %v3413_v16 = vshrl.u32 %v3374_v4, 16  ;;  %v862_v58 = vld [vmem:[#allocation2] sm:$0x33] }
  0x5b   : > { %v340_v19 = vand.u32 63, %v308_v8  ;;  %v3407_v21 = vrot.slane %v3405_v12, 5  ;;  %vm497_vm6 = vcmp.lt.s32.totalorder %v337_v40, 63  ;;  %vm498_vm7 = vcmp.lt.s32.totalorder %v338_v41, 63  ;;  %v2603_v1 = vld [vmem:[#allocation2 + $0x24] sm:$0x33] }
  0x5c   : > { %2100 = vrot.lane.b32.xlu0 %v18062_v6, %s18859_s22  ;;  %2622 = vrot.lane.b32.xlu1 %v18078_v5, %s18860_s23  ;;  %v17363_v5 = vsel %vm369_vm4, 1.0, %v25254_v11  ;;  %v17364_v6 = vsel %vm370_vm5, 1.0, %v25254_v11  ;;  %v1279_v22 = vor.u32 %v1278_v15, %v1275_v14  ;;  %v3410_v23 = vrot.slane %v3408_v13, 6 }
  0x5d   : > { %v18065_v20 = vpack.c.bf16 %v17364_v6, %v17363_v5  ;;  %v3415_v24 = vrot.slane %v3413_v16, 5  ;;  %vm500_vm9 = vcmp.lt.s32.totalorder %v340_v19, 63  ;;  %v17396_v29 = vsel %vm498_vm7, 1.0, %v25254_v11  ;;  %v863_v5 = vld [vmem:[#allocation2 + $0x8] sm:$0x33] }
  0x5e   : > { %v3411_v26 = vor.u32 %v3410_v23, %v3407_v21  ;;  %v17398_v31 = vsel %vm500_vm9, 1.0, %v25254_v11  ;;  %vm372_vm15 = vcmp.gt.s32.totalorder %v340_v19, 0  ;;  %v1284_v39 = vshll.u32 %v1242_v36, 16  ;;  %v864_v19 = vld [vmem:[#allocation2 + $0x10] sm:$0x33] }
  0x5f   : > { %v17366_v35 = vsel %vm372_vm15, 1.0, %v25254_v11  ;;  %v653_v44 = vcombine.high %v621_v43, %v621_v43  ;;  %v654_v50 = vcombine.high %v622_v49, %v622_v49  ;;  %vm25245_vm0 = vcmask 515072  }
  0x60   : > { %1652 = vrot.lane.b32.xlu0 %v18079_v17, %s18857_s16  ;;  %967 = vrot.lane.b32.xlu1 %v18063_v18, %s18858_s18  ;;  %v1286_v41 = vrot.slane %v1284_v39, 7  ;;  %vm25248_vm1 = vcmask 531456   ;;  %vm25250_vm3 = vcmask 1043456   ;;  %vm25247_vm4 = vcmask 7168  }
  0x61   : > { %v18049_v47 = vpack.c.bf16 %v653_v44, %v621_v43  ;;  %v18050_v52 = vpack.c.bf16 %v654_v50, %v622_v49  ;;  %vm25246_vm5 = vcmask 1039360   ;;  %vm3623_vm7 = vsmask.f32 7946 }
  0x62   : > { %vm3625_vm9 = vsmask.f32 7962  ;;  %vm2548_vm12 = vsmask.f32 7424  ;;  %vm2022_vm10 = vcmask 1040384  }
  0x63   : > { %v833_v48 = vsel %vm19041_vm2, %v18049_v47, %v832_v45  ;;  %v836_v53 = vsel %vm19041_vm2, %v18050_v52, %v835_v51  ;;  %v3152_v47 = vld [vmem:[#allocation2 + $0xc] sm:$0x33]  ;;  %v3151_v52 = vld [vmem:[#allocation2 + $0x4] sm:$0x33]  ;;  %vm2026_vm13 = vsmask.f32 4352 }
  0x64   : > { %2624 = vrot.lane.b32.xlu1 %v18079_v17, %s18860_s23  ;;  %2102 = vrot.lane.b32.xlu0 %v18063_v18, %s18859_s22  ;;  %v3416_v17 = vshll.u32 %v3374_v4, 16  ;;  %v339_v18 = vand.u32 63, %v307_v7  ;;  %834 = vst [vmem:[#allocation2 + $0x34] sm:$0x33] %v833_v48  ;;  %837 = vst [vmem:[#allocation2 + $0x3c] sm:$0x33] %v836_v53 }
  0x65   : > { %v3676_v4 = vld [vmem:[#allocation2 + $0x4] sm:$0x33] }
  0x66   : > { %v3418_v25 = vrot.slane %v3416_v17, 6  ;;  %vm499_vm8 = vcmp.lt.s32.totalorder %v339_v18, 63  ;;  %vm371_vm14 = vcmp.gt.s32.totalorder %v339_v18, 0  ;;  %v866_v53 = vld [vmem:[#allocation2 + $0x20] sm:$0x33] }
  0x67   : > { %v17397_v30 = vsel %vm499_vm8, 1.0, %v25254_v11  ;;  %v17365_v34 = vsel %vm371_vm14, 1.0, %v25254_v11  ;;  %vm2547_vm8 = vcmask 1047558  }
  0x68   : > { %969 = vrot.lane.b32.xlu1 %v18064_v28, %s18858_s18  ;;  %1654 = vrot.lane.b32.xlu0 %v18080_v38, %s18857_s16  ;;  %v3419_v27 = vor.u32 %v3418_v25, %v3415_v24  ;;  %v18082_v33 = vpack.c.bf16 %v17398_v31, %v17397_v30  ;;  %v18066_v37 = vpack.c.bf16 %v17366_v35, %v17365_v34  ;;  %vm3626_vm15 = vmand %vm2547_vm8, %vm3625_vm9  ;;  %vm25251_vm9 = vsmask.f32 3328 }
  0x6c   : > { %2626 = vrot.lane.b32.xlu1 %v18080_v38, %s18860_s23  ;;  %2104 = vrot.lane.b32.xlu0 %v18064_v28, %s18859_s22  ;;  %v17395_v28 = vsel %vm497_vm6, 1.0, %v25254_v11  ;;  %v1281_v38 = vshrl.u32 %v1242_v36, 16  ;;  %v3678_v36 = vld [vmem:[#allocation2 + $0x14] sm:$0x33]  ;;  %vm2544_vm6 = vcmask 1043458  }
  0x6d   : > { %v18081_v32 = vpack.c.bf16 %v17396_v29, %v17395_v28  ;;  %v3677_v28 = vld [vmem:[#allocation2 + $0xc] sm:$0x33]  ;;  %vm3624_vm14 = vmand %vm2544_vm6, %vm3623_vm7 }
  0x6e   : > { %v1283_v40 = vrot.slane %v1281_v38, 6  ;;  %vm19378_vm7 = vmor %vm3626_vm15, %vm3624_vm14  ;;  %vm8422_vm15 = vcmask 1042434  }
  0x6f   : > { %vm19409_vm14 = vmand %vm2544_vm6, %vm25251_vm9  ;;  %vm8431_vm6 = vcmask 1046534  }
  0x70   : > { %1392 = vrot.lane.b32.xlu0 %v1263_v60, %s18861_s29  ;;  %1394 = vrot.lane.b32.xlu1 %v1271_v61, %s18861_s29  ;;  %v1287_v46 = vor.u32 %v1286_v41, %v1283_v40 }
  0x74   : > { %3524 = vrot.lane.b32.xlu0 %v3395_v9, %s18861_s29  ;;  %3526 = vrot.lane.b32.xlu1 %v3403_v10, %s18861_s29 }
  0x78   : > { %1396 = vrot.lane.b32.xlu0 %v1279_v22, %s18861_s29  ;;  %2106 = vrot.lane.b32.xlu1 %v18065_v20, %s18859_s22 }
  0x7c   : > { %3528 = vrot.lane.b32.xlu0 %v3411_v26, %s18861_s29  ;;  %3530 = vrot.lane.b32.xlu1 %v3419_v27, %s18861_s29 }
  0x80   : > { %1656 = vrot.lane.b32.xlu0 %v18081_v32, %s18857_s16  ;;  %1658 = vrot.lane.b32.xlu1 %v18082_v33, %s18857_s16 }
  0x84   : > { %973 = vrot.lane.b32.xlu1 %v18066_v37, %s18858_s18  ;;  %971 = vrot.lane.b32.xlu0 %v18065_v20, %s18858_s18 }
  0x88   : > { %2630 = vrot.lane.b32.xlu1 %v18082_v33, %s18860_s23  ;;  %2628 = vrot.lane.b32.xlu0 %v18081_v32, %s18860_s23 }
  0x8c   : > { %1398 = vrot.lane.b32.xlu0 %v1287_v46, %s18861_s29  ;;  %v3679_v46 = vld [vmem:[#allocation2 + $0x1c] sm:$0x33] }
  0x90   : > { %2108 = vrot.lane.b32.xlu0 %v18066_v37, %s18859_s22  ;;  %v865_v37 = vld [vmem:[#allocation2 + $0x18] sm:$0x33] }
  0xb2   : > { %v1645_v54 = vpop.permute.xlu0 %1644  ;;  %v960_v55 = vpop.permute.xlu1 %959 }
  0xb3   : > { %v1676_v56 = vrot.slane %v1645_v54, 4  ;;  %v991_v57 = vrot.slane %v960_v55, 4 }
  0xb5   : > { %v19135_v59 = vsel %vm25245_vm0, %v991_v57, %v960_v55  ;;  %v19139_v63 = vsel %vm25248_vm1, %v1676_v56, %v1645_v54  ;;  %v1548_v54 = vld [vmem:[#allocation2 + $0x8] sm:$0x33] }
  0xb6   : > { %25493 = vst [vmem:[#allocation11_spill] sm:$0xff] %v19135_v59  ;;  %v1647_v60 = vpop.permute.xlu0 %1646  ;;  %v962_v61 = vpop.permute.xlu1 %961  ;;  %v1057_v62 = vmul.bf16 %v19135_v59, %v862_v58  ;;  %25494 = vst [vmem:[#allocation12_spill] sm:$0xff] %v19139_v63  ;;  %v3693_v10 = vmul.bf16 %v3676_v4, %v19139_v63  ;;  %v3168_v58 = vmul.bf16 %v3151_v52, %v19135_v59  ;;  %v2601_v52 = vld [vmem:[#allocation2 + $0x14] sm:$0x33] }
  0xb7   : > { %v992_v3 = vrot.slane %v962_v61, 4  ;;  %v1677_v15 = vrot.slane %v1647_v60, 4 }
  0xb8   : > { %1091 = vrot.lane.b32.xlu0 %v1057_v62, %s18857_s16 }
  0xb9   : > { %v1010_v6 = vsel %vm25250_vm3, %v991_v57, %v992_v3  ;;  %v1693_v20 = vsel %vm25250_vm3, %v1676_v56, %v1677_v15 }
  0xba   : > { %v19144_v7 = vsel %vm25245_vm0, %v1010_v6, %v962_v61  ;;  %v19146_v8 = vpop.permute.xlu0 %2094  ;;  %v19148_v9 = vpop.permute.xlu1 %2096  ;;  %v19169_v27 = vsel %vm25248_vm1, %v1693_v20, %v1647_v60  ;;  %v1547_v60 = vld [vmem:[#allocation2] sm:$0x33]  ;;  %v1550_v6 = vld [vmem:[#allocation2 + $0x18] sm:$0x33]  ;;  %v1549_v20 = vld [vmem:[#allocation2 + $0x10] sm:$0x33] }
  0xbb   : > { %25495 = vst [vmem:[#allocation13_spill] sm:$0xff] %v19144_v7  ;;  %v1058_v12 = vmul.bf16 %v19144_v7, %v863_v5  ;;  %25497 = vst [vmem:[#allocation15_spill] sm:$0xff] %v19169_v27  ;;  %v3694_v34 = vmul.bf16 %v3677_v28, %v19169_v27  ;;  %v3169_v51 = vmul.bf16 %v3152_v47, %v19144_v7 }
  0xbc   : > { %3727 = vrot.lane.b32.xlu0 %v3693_v10, %s18858_s18  ;;  %v1741_v4 = vmul.bf16 %v19169_v27, %v1548_v54 }
  0xbd   : > { %1093 = vrot.lane.b32.xlu1 %v1058_v12, %s18857_s16 }
  0xbe   : > { %v1649_v13 = vpop.permute.xlu0 %1648  ;;  %v19154_v14 = vpop.permute.xlu1 %2616 }
  0xbf   : > { %v1678_v21 = vrot.slane %v1649_v13, 4  ;;  %v2648_v61 = vrot.slane %v19154_v14, 4 }
  0xc1   : > { %v1695_v29 = vsel %vm25250_vm3, %v1677_v15, %v1678_v21 }
  0xc2   : > { %v19156_v16 = vpop.permute.xlu0 %2618  ;;  %v964_v17 = vpop.permute.xlu1 %963  ;;  %v19178_v35 = vsel %vm25248_vm1, %v1695_v29, %v1649_v13  ;;  %v1740_v13 = vmul.bf16 %v19139_v63, %v1547_v60 }
  0xc3   : > { %v993_v18 = vrot.slane %v964_v17, 4  ;;  %25498 = vst [vmem:[#allocation16_spill] sm:$0xff] %v19178_v35  ;;  %v3695_v43 = vmul.bf16 %v3678_v36, %v19178_v35  ;;  %v2649_v55 = vrot.slane %v19156_v16, 4 }
  0xc4   : > { %v19234_v29 = vrot.slane %v1740_v13, 5 }
  0xc5   : > { %v1012_v22 = vsel %vm25250_vm3, %v992_v3, %v993_v18  ;;  %v3203_v3 = vrot.slane %v3169_v51, 7  ;;  %v2665_v10 = vsel %vm25250_vm3, %v2648_v61, %v2649_v55 }
  0xc6   : > { %v19161_v23 = vsel %vm25245_vm0, %v1012_v22, %v964_v17  ;;  %v19163_v24 = vpop.permute.xlu0 %2098  ;;  %v19165_v25 = vpop.permute.xlu1 %2620  ;;  %v3202_v17 = vrot.slane %v3168_v58, 7  ;;  %v19227_v22 = vsel %vm25247_vm4, %v2665_v10, %v19156_v16  ;;  %v19240_v16 = vsel %vm25247_vm4, %v2648_v61, %v19154_v14 }
  0xc7   : > { %25496 = vst [vmem:[#allocation14_spill] sm:$0xff] %v19161_v23  ;;  %v1059_v26 = vmul.bf16 %v19161_v23, %v864_v19  ;;  %v2650_v15 = vrot.slane %v19165_v25, 4  ;;  %25502 = vst [vmem:[#allocation20_spill] sm:$0xff] %v19227_v22 }
  0xc8   : > { %25503 = vst [vmem:[#allocation21_spill] sm:$0xff] %v19240_v16 }
  0xc9   : > { %1095 = vrot.lane.b32.xlu1 %v1059_v26, %s18857_s16  ;;  %v3153_v26 = vld [vmem:[#allocation2 + $0x14] sm:$0x33] }
  0xca   : > { %v19173_v30 = vpop.permute.xlu0 %1650  ;;  %v966_v31 = vpop.permute.xlu1 %965 }
  0xcb   : > { %v1679_v32 = vrot.slane %v19173_v30, 4  ;;  %v994_v33 = vrot.slane %v966_v31, 4 }
  0xcd   : > { %v1697_v38 = vsel %vm25250_vm3, %v1678_v21, %v1679_v32  ;;  %v1014_v39 = vsel %vm25250_vm3, %v993_v18, %v994_v33  ;;  %3729 = vrot.lane.b32.xlu1 %v3694_v34, %s18858_s18  ;;  %v1775_v18 = vrot.slane %v1741_v4, 5  ;;  %v2600_v21 = vld [vmem:[#allocation2 + $0xc] sm:$0x33]  ;;  %v2599_v34 = vld [vmem:[#allocation2 + $0x4] sm:$0x33] }
  0xce   : > { %v19186_v40 = vsel %vm25245_vm0, %v1014_v39, %v966_v31  ;;  %v19188_v41 = vpop.permute.xlu1 %2622  ;;  %v19194_v45 = vsel %vm25248_vm1, %v1697_v38, %v19173_v30  ;;  %v19216_v5 = vpop.permute.xlu0 %2100  ;;  %v2126_v31 = vrot.slane %v19146_v8, 4  ;;  %v19246_v38 = vmul.bf16 %v19227_v22, %v2600_v21  ;;  %v1551_v21 = vld [vmem:[#allocation2 + $0x20] sm:$0x33]  ;;  %v3826_v22 = vld [vmem:[#allocation3 + $0x180] sm:$0x33] }
  0xcf   : > { %25499 = vst [vmem:[#allocation17_spill] sm:$0xff] %v19186_v40  ;;  %v1060_v44 = vmul.bf16 %v19186_v40, %v865_v37  ;;  %25500 = vst [vmem:[#allocation18_spill] sm:$0xff] %v19194_v45  ;;  %v3696_v50 = vmul.bf16 %v3679_v46, %v19194_v45  ;;  %v2651_v12 = vrot.slane %v19188_v41, 4  ;;  %v1743_v19 = vmul.bf16 %v19194_v45, %v1550_v6  ;;  %v2602_v46 = vld [vmem:[#allocation2 + $0x1c] sm:$0x33] }
  0xd0   : > { %v1742_v37 = vmul.bf16 %v19178_v35, %v1549_v20  ;;  %v2667_v39 = vsel %vm25250_vm3, %v2649_v55, %v2650_v15  ;;  %v19257_v14 = vmul.bf16 %v19240_v16, %v2599_v34  ;;  %v1792_v54 = vrot.slane %v1775_v18, 4 }
  0xd1   : > { %3731 = vrot.lane.b32.xlu1 %v3695_v43, %s18858_s18  ;;  %1097 = vrot.lane.b32.xlu0 %v1060_v44, %s18857_s16  ;;  %v2669_v28 = vsel %vm25250_vm3, %v2650_v15, %v2651_v12  ;;  %v19249_v43 = vrot.slane %v1743_v19, 5  ;;  %v3170_v44 = vmul.bf16 %v3153_v26, %v19161_v23  ;;  %v2734_v61 = vshll.u32 %v19246_v38, 16  ;;  %v2077_v15 = vld [vmem:[#allocation2] sm:$0x33] }
  0xd2   : > { %v19198_v48 = vpop.permute.xlu1 %967  ;;  %v19242_v36 = vpop.permute.xlu0 %1652  ;;  %v19254_v47 = vsel %vm25247_vm4, %v2669_v28, %v19188_v41  ;;  %v1776_v55 = vrot.slane %v1742_v37, 5  ;;  %v2730_v4 = vshll.u32 %v19257_v14, 16  ;;  %v19287_v6 = vsel %vm25246_vm5, %v2126_v31, %v19146_v8  ;;  %v2079_v37 = vld [vmem:[#allocation2 + $0x10] sm:$0x33] }
  0xd3   : > { %v25253_v49 = vrot.slane %v19198_v48, 4  ;;  %25504 = vst [vmem:[#allocation22_spill] sm:$0xff] %v19254_v47  ;;  %v19271_v58 = vmul.bf16 %v19254_v47, %v2602_v46  ;;  %v3204_v60 = vrot.slane %v3170_v44, 7  ;;  %25506 = vst [vmem:[#allocation24_spill] sm:$0xff] %v19287_v6  ;;  %v2129_v20 = vrot.slane %v19216_v5, 4 }
  0xd4   : > { %v1793_v13 = vrot.slane %v1776_v55, 4  ;;  %v2191_v28 = vmul.bf16 %v19287_v6, %v2077_v15 }
  0xd5   : > { %v1016_v56 = vsel %vm25250_vm3, %v994_v33, %v25253_v49  ;;  %3733 = vrot.lane.b32.xlu0 %v3696_v50, %s18858_s18  ;;  %v2127_v33 = vrot.slane %v19148_v9, 4  ;;  %v25257_v50 = vrot.slane %v19242_v36, 4  ;;  %v2742_v19 = vshll.u32 %v19271_v58, 16 }
  0xd6   : > { %v19210_v57 = vsel %vm25245_vm0, %v1016_v56, %v19198_v48  ;;  %v2128_v56 = vrot.slane %v19163_v24, 4  ;;  %v19314_v34 = vpop.permute.xlu1 %2624  ;;  %vm2023_vm0 = vsmask.f32 256 }
  0xd7   : > { %25501 = vst [vmem:[#allocation19_spill] sm:$0xff] %v19210_v57  ;;  %v1061_v62 = vmul.bf16 %v19210_v57, %v866_v53  ;;  %v2144_v51 = vsel %vm25250_vm3, %v2126_v31, %v2127_v33  ;;  %v19267_v53 = vsel %vm25247_vm4, %v2667_v39, %v19165_v25  ;;  %v1699_v25 = vsel %vm25250_vm3, %v1679_v32, %v25257_v50  ;;  %v19316_v39 = vpop.permute.xlu0 %2102 }
  0xd8   : > { %25505 = vst [vmem:[#allocation23_spill] sm:$0xff] %v19267_v53  ;;  %v19291_v10 = vsel %vm25246_vm5, %v2144_v51, %v19148_v9  ;;  %v2146_v30 = vsel %vm25250_vm3, %v2127_v33, %v2128_v56  ;;  %v19301_v8 = vsel %vm25248_vm1, %v1699_v25, %v19242_v36  ;;  %v19305_v9 = vrot.slane %v2730_v4, 5  ;;  %v2080_v25 = vld [vmem:[#allocation2 + $0x18] sm:$0x33] }
  0xd9   : > { %1099 = vrot.lane.b32.xlu1 %v1061_v62, %s18857_s16  ;;  %3221 = vrot.lane.b32.xlu0 %v3203_v3, %s18857_s16  ;;  %v3154_v62 = vld [vmem:[#allocation2 + $0x1c] sm:$0x33]  ;;  %v19275_v3 = vmul.bf16 %v19267_v53, %v2601_v52  ;;  %25507 = vst [vmem:[#allocation25_spill] sm:$0xff] %v19291_v10  ;;  %25508 = vst [vmem:[#allocation26_spill] sm:$0xff] %v19301_v8  ;;  %v19312_v33 = vsel %vm25246_vm5, %v2146_v30, %v19163_v24  ;;  %v19320_v51 = vrot.slane %v2742_v19, 5  ;;  %vm2025_vm1 = vcmask 1044484  }
  0xda   : > { %v3171_v32 = vmul.bf16 %v3154_v62, %v19186_v40  ;;  %25509 = vst [vmem:[#allocation27_spill] sm:$0xff] %v19312_v33  ;;  %v1744_v52 = vmul.bf16 %v19301_v8, %v1551_v21  ;;  %v2209_v62 = vshrl.u32 %v2191_v28, 16  ;;  %v25256_v30 = vrot.slane %v19316_v39, 4  ;;  %v624_v40 = vld [vmem:[%s19022_s21 + $0x48] sm:$0x77] }
  0xdb   : > { %v2738_v26 = vshll.u32 %v19275_v3, 16  ;;  %v656_v53 = vcombine.high %v624_v40, %v624_v40 }
  0xdc   : > { %v3205_v44 = vrot.slane %v3171_v32, 7  ;;  %v2211_v21 = vrot.slane %v2209_v62, 7 }
  0xdd   : > { %3219 = vrot.lane.b32.xlu1 %v3202_v17, %s18857_s16  ;;  %1810 = vrot.lane.b32.xlu0 %v1775_v18, %s18858_s18  ;;  %v2078_v17 = vld [vmem:[#allocation2 + $0x8] sm:$0x33]  ;;  %v19295_v18 = vrot.slane %v2734_v61, 5  ;;  %v19327_v24 = vrot.slane %v2738_v26, 5  ;;  %v1791_v61 = vrot.slane %v19234_v29, 4 }
  0xde   : > { %v2192_v31 = vmul.bf16 %v19291_v10, %v2078_v17  ;;  %v19341_v17 = vpop.permute.xlu1 %969 }
  0xdf   : > { %v18674_v46 = vpack.i.bf16 %v19295_v18, %v19305_v9 }
  0xe0   : > { %v2216_v15 = vshrl.u32 %v2192_v31, 16 }
  0xe1   : > { %1808 = vrot.lane.b32.xlu1 %v19234_v29, %s18858_s18  ;;  %1814 = vrot.lane.b32.xlu0 %v19249_v43, %s18858_s18  ;;  %v2212_v29 = vshll.u32 %v2191_v28, 16 }
  0xe5   : > { %3223 = vrot.lane.b32.xlu1 %v3204_v60, %s18857_s16  ;;  %1844 = vrot.lane.b32.xlu0 %v1792_v54, %s18858_s18  ;;  %v2148_v54 = vsel %vm25250_vm3, %v2128_v56, %v2129_v20  ;;  %v2193_v60 = vmul.bf16 %v19312_v33, %v2079_v37  ;;  %v19339_v56 = vrot.slane %v1744_v52, 5  ;;  %v2812_v37 = vshrl.u32 %v19271_v58, 16  ;;  %v1194_v33 = vld [vmem:[#allocation3 + $0x8] sm:$0x33] }
  0xe6   : > { %v19333_v4 = vsel %vm25246_vm5, %v2148_v54, %v19216_v5  ;;  %v2802_v5 = vshrl.u32 %v19246_v38, 16  ;;  %v2218_v52 = vrot.slane %v2216_v15, 7  ;;  %v2150_v38 = vsel %vm25250_vm3, %v2129_v20, %v25256_v30 }
  0xe7   : > { %25510 = vst [vmem:[#allocation28_spill] sm:$0xff] %v19333_v4  ;;  %v2194_v19 = vmul.bf16 %v19333_v4, %v2080_v25  ;;  %v2223_v26 = vshrl.u32 %v2193_v60, 16  ;;  %v2652_v25 = vrot.slane %v19314_v34, 4  ;;  %v2214_v15 = vor.u32 %v2212_v29, %v2211_v21 }
  0xe8   : > { %v2804_v62 = vrot.slane %v2802_v5, 4  ;;  %v2814_v20 = vrot.slane %v2812_v37, 4 }
  0xe9   : > { %1812 = vrot.lane.b32.xlu1 %v1776_v55, %s18858_s18  ;;  %1846 = vrot.lane.b32.xlu0 %v1793_v13, %s18858_s18  ;;  %v2797_v55 = vshrl.u32 %v19257_v14, 16  ;;  %v19335_v13 = vpop.permute.xlu0 %1654  ;;  %v18679_v14 = vpack.i.bf16 %v19320_v51, %v19327_v24  ;;  %v2225_v28 = vrot.slane %v2223_v26, 7  ;;  %v2233_v41 = vshll.u32 %v2194_v19, 16 }
  0xeb   : > { %v2799_v32 = vrot.slane %v2797_v55, 4  ;;  %v2230_v55 = vshrl.u32 %v2194_v19, 16  ;;  %v309_v19 = vadd.s32 2048, %v18991_v2 }
  0xed   : > { %3225 = vrot.lane.b32.xlu1 %v3205_v44, %s18857_s16  ;;  %18675 = vrot.lane.b32.xlu0 %v18674_v46, %s18859_s22  ;;  %v1794_v44 = vrot.slane %v19249_v43, 4  ;;  %v1795_v46 = vrot.slane %v19339_v56, 4  ;;  %v19351_v54 = vpop.permute.xlu0 %2104  ;;  %v2800_v58 = vor.u32 %v2799_v32, %v19305_v9  ;;  %v19359_v43 = vpop.permute.xlu1 %2626  ;;  %v19368_v9 = vsel %vm25246_vm5, %v2150_v38, %v19316_v39  ;;  %vm2549_vm5 = vmand %vm2547_vm8, %vm2548_vm12 }
  0xee   : > { %25511 = vst [vmem:[#allocation29_spill] sm:$0xff] %v19368_v9  ;;  %v2226_v32 = vshll.u32 %v2193_v60, 16  ;;  %v25252_v5 = vrot.slane %v19359_v43, 4  ;;  %v2807_v60 = vshrl.u32 %v19275_v3, 16  ;;  %v2805_v38 = vor.u32 %v2804_v62, %v19295_v18  ;;  %v2480_v18 = vld [vmem:[#allocation2 + $0x4] sm:$0x33] }
  0xef   : > { %v2801_v29 = vrot.slane %v2800_v58, 4  ;;  %vm25260_vm8 = vsmask.f32 6400 }
  0xf0   : > { %v2673_v3 = vsel %vm25250_vm3, %v2652_v25, %v25252_v5  ;;  %v2809_v62 = vrot.slane %v2807_v60, 4  ;;  %v2481_v60 = vld [vmem:[#allocation2 + $0xc] sm:$0x33] }
  0xf1   : > { %1842 = vrot.lane.b32.xlu1 %v1791_v61, %s18858_s18  ;;  %18680 = vrot.lane.b32.xlu0 %v18679_v14, %s18859_s22  ;;  %v2219_v61 = vshll.u32 %v2192_v31, 16  ;;  %v19361_v31 = vld [vmem:[#allocation2 + $0x20] sm:$0x33]  ;;  %v19375_v21 = vpop.permute.xlu0 %1392 }
  0xf2   : > { %v1289_v26 = vshrl.u32 %v19361_v31, 16 }
  0xf3   : > { %v2221_v14 = vor.u32 %v2219_v61, %v2218_v52  ;;  %v2228_v52 = vor.u32 %v2226_v32, %v2225_v28  ;;  %v2232_v61 = vrot.slane %v2230_v55, 7  ;;  %v2806_v55 = vrot.slane %v2805_v38, 4 }
  0xf4   : > { %v2810_v38 = vor.u32 %v2809_v62, %v19327_v24  ;;  %v25265_v62 = vrot.slane %v19341_v17, 4 }
  0xf5   : > { %1848 = vrot.lane.b32.xlu1 %v1794_v44, %s18858_s18  ;;  %1850 = vrot.lane.b32.xlu0 %v1795_v46, %s18858_s18  ;;  %v2081_v44 = vld [vmem:[#allocation2 + $0x20] sm:$0x33] }
  0xf6   : > { %v3155_v46 = vld [vmem:[#allocation2 + $0x24] sm:$0x33]  ;;  %v19388_v58 = vmul.bf16 %v19368_v9, %v2081_v44  ;;  %v2235_v44 = vor.u32 %v2233_v41, %v2232_v61  ;;  %v19424_v61 = vpop.permute.xlu1 %1394  ;;  %v2554_v41 = vld [vmem:[#allocation3 + $0x88] sm:$0xcc] }
  0xf7   : > { %v3172_v0 = vmul.bf16 %v3155_v46, %v19210_v57  ;;  %v25596_v23 = vrot.slane %v19424_v61, 4 }
  0xf9   : > { %2329 = vrot.lane.b32.xlu1 %v2221_v14, %s18860_s23  ;;  %2327 = vrot.lane.b32.xlu0 %v2214_v15, %s18860_s23  ;;  %v2671_v14 = vsel %vm25250_vm3, %v2651_v12, %v2652_v25  ;;  %v2815_v15 = vor.u32 %v2814_v20, %v19320_v51  ;;  %v1292_v12 = vshll.u32 %v19361_v31, 16  ;;  %v2604_v51 = vld [vmem:[#allocation2 + $0x2c] sm:$0x33]  ;;  %v19402_v20 = vrot.slane %v1289_v26, 6  ;;  %v19404_v25 = vpop.permute.xlu0 %3524  ;;  %vm19429_vm3 = vmor %vm2549_vm5, %vm19409_vm14 }
  0xfa   : > { %v19400_v28 = vsel %vm25247_vm4, %v2671_v14, %v19314_v34  ;;  %v3206_v46 = vrot.slane %v3172_v0, 7  ;;  %v2551_v34 = vld [vmem:[#allocation3 + $0x80] sm:$0xcc]  ;;  %v19415_v31 = vsel %vm25247_vm4, %v2673_v3, %v19359_v43  ;;  %v2512_v26 = vrot.slane %v2480_v18, 6  ;;  %v2482_v0 = vld [vmem:[#allocation2 + $0x14] sm:$0x33]  ;;  %vm19445_vm5 = vmand %vm8431_vm6, %vm25260_vm8  ;;  %v19488_v50 = vpop.permute.xlu1 %3526 }
  0xfb   : > { %25514 = vst [vmem:[#allocation30_spill] sm:$0xff] %v19400_v28  ;;  %v2816_v32 = vrot.slane %v2815_v15, 4  ;;  %25517 = vst [vmem:[#allocation31_spill] sm:$0xff] %v19415_v31  ;;  %vm25263_vm4 = vsmask.f32 2304  ;;  %v19434_v14 = vmul.bf16 %v19415_v31, %v2604_v51  ;;  %v2240_v3 = vshll.u32 %v19388_v58, 16 }
  0xfc   : > { %vm19439_vm9 = vmand %vm8422_vm15, %vm25263_vm4  ;;  %v1294_v18 = vrot.slane %v1292_v12, 7  ;;  %vm8419_vm15 = vcmask 1041409  }
  0xfd   : > { %2331 = vrot.lane.b32.xlu1 %v2228_v52, %s18860_s23  ;;  %2916 = vrot.lane.b32.xlu0 %v2801_v29, %s18859_s22  ;;  %v2237_v29 = vshrl.u32 %v19388_v58, 16  ;;  %v19418_v52 = vmul.bf16 %v19400_v28, %v2603_v1  ;;  %v25518_v1 = vmov 0  ;;  %vm19451_vm14 = vmand %vm2022_vm10, %vm2023_vm0  ;;  %v2552_v58 = vsel %vm19429_vm3, %v2512_v26, %v2551_v34  ;;  %v19459_v12 = vpop.permute.xlu0 %1396 }
  0xfe   : > { %v25519_v1 = vsel %vm19429_vm3, 4294967295, %v25518_v1  ;;  %vm19464_vm10 = vmand %vm2025_vm1, %vm2026_vm13  ;;  %2553 = vst [vmem:[#allocation3 + $0x80] sm:$0xcc] %v2552_v58  ;;  %vm25259_vm0 = vcmask 1047559   ;;  %v2514_v34 = vrot.slane %v2482_v0, 6  ;;  %v2750_v58 = vshll.u32 %v19434_v14, 16  ;;  %v19534_v28 = vpop.permute.xlu1 %2106 }
  0xff   : > { %v2239_v15 = vrot.slane %v2237_v29, 7  ;;  %v3375_v29 = vld [vmem:[#allocation2 + $0x24] sm:$0x33]  ;;  %v2817_v26 = vshrl.u32 %v19418_v52, 16  ;;  %vm19472_vm6 = vmand %vm25259_vm0, %vm2548_vm12  ;;  %v2746_v30 = vshll.u32 %v19418_v52, 16  ;;  %v1295_v31 = vor.u32 %v1294_v18, %v19402_v20 }
 0x100   : > { %vm19482_vm13 = vmand %vm8419_vm15, %vm808_vm11  ;;  %v2483_v52 = vld [vmem:[#allocation2 + $0x1c] sm:$0x33]  ;;  %vm25262_vm11 = vcmask 1043459   ;;  %vm25534_vm15 = vsmask.f32 3328  ;;  %vm8428_vm0 = vcmask 1045509  }
 0x101   : > { %2333 = vrot.lane.b32.xlu1 %v2235_v44, %s18860_s23  ;;  %2922 = vrot.lane.b32.xlu0 %v2816_v32, %s18859_s22  ;;  %v2513_v44 = vrot.slane %v2481_v60, 6  ;;  %v2557_v32 = vld [vmem:[#allocation3 + $0x90] sm:$0xcc]  ;;  %v2811_v60 = vrot.slane %v2810_v38, 4  ;;  %v2242_v11 = vor.u32 %v2240_v3, %v2239_v15  ;;  %vm8421_vm12 = vmor %vm19482_vm13, %vm19451_vm14  ;;  %v2484_v15 = vld [vmem:[#allocation2 + $0x24] sm:$0x33] }
 0x102   : > { %v2558_v38 = vsel %vm19429_vm3, %v2514_v34, %v2557_v32  ;;  %v25264_v3 = vrot.slane %v19335_v13, 4  ;;  %vm19500_vm1 = vmor %vm19439_vm9, %vm8421_vm12  ;;  %v2819_v18 = vrot.slane %v2817_v26, 4  ;;  %v19506_v34 = vpop.permute.xlu0 %3528  ;;  %v19508_v0 = vrot.slane %v2750_v58, 5  ;;  %v1552_v26 = vld [vmem:[#allocation2 + $0x28] sm:$0x33] }
 0x103   : > { %v2555_v49 = vsel %vm19429_vm3, %v2513_v44, %v2554_v41  ;;  %v3421_v41 = vshrl.u32 %v3375_v29, 16  ;;  %2559 = vst [vmem:[#allocation3 + $0x90] sm:$0xcc] %v2558_v38  ;;  %v341_v44 = vand.u32 63, %v309_v19  ;;  %vm8425_vm13 = vmand %vm25262_vm11, %vm25534_vm15  ;;  %v2516_v24 = vrot.slane %v2484_v15, 6 }
 0x104   : > { %2556 = vst [vmem:[#allocation3 + $0x88] sm:$0xcc] %v2555_v49  ;;  %v3424_v49 = vshll.u32 %v3375_v29, 16  ;;  %vm8426_vm8 = vmor %vm8425_vm13, %vm19500_vm1  ;;  %v2560_v29 = vld [vmem:[#allocation3 + $0x98] sm:$0xcc]  ;;  %vm25538_vm12 = vcmask 1043456  }
 0x105   : > { %2918 = vrot.lane.b32.xlu1 %v2806_v55, %s18859_s22  ;;  %3227 = vrot.lane.b32.xlu0 %v3206_v46, %s18857_s16  ;;  %v310_v55 = vadd.s32 2176, %v18991_v2  ;;  %v3680_v19 = vld [vmem:[#allocation2 + $0x24] sm:$0x33]  ;;  %v3423_v38 = vrot.slane %v3421_v41, 5  ;;  %vm19514_vm9 = vmor %vm19464_vm10, %vm8426_vm8  ;;  %vm19527_vm1 = vcmp.lt.s32.totalorder %v341_v44, 63  ;;  %v25595_v35 = vrot.slane %v19459_v12, 4 }
 0x106   : > { %v3426_v41 = vrot.slane %v3424_v49, 6  ;;  %vm25541_vm8 = vsmask.f32 5376  ;;  %v623_v15 = vld [vmem:[%s19022_s21 + $0x40] sm:$0x77] }
 0x107   : > { %v342_v32 = vand.u32 63, %v310_v55  ;;  %v2563_v55 = vld [vmem:[#allocation3 + $0xa0] sm:$0xcc]  ;;  %vm8429_vm15 = vmand %vm8428_vm0, %vm25541_vm8  ;;  %vm25548_vm8 = vcmask 531456  }
 0x108   : > { %vm8430_vm4 = vmor %vm8429_vm15, %vm19514_vm9  ;;  %v3427_v46 = vor.u32 %v3426_v41, %v3423_v38  ;;  %v2082_v41 = vld [vmem:[#allocation2 + $0x28] sm:$0x33] }
 0x109   : > { %2920 = vrot.lane.b32.xlu1 %v2811_v60, %s18859_s22  ;;  %2335 = vrot.lane.b32.xlu0 %v2242_v11, %s18860_s23  ;;  %v2748_v60 = vrot.slane %v2746_v30, 5  ;;  %v2515_v11 = vrot.slane %v2483_v52, 6  ;;  %v25537_v30 = vrot.slane %v19242_v36, 4  ;;  %vm19536_vm13 = vcmp.lt.s32.totalorder %v342_v32, 63  ;;  %vm8433_vm0 = vmor %vm19445_vm5, %vm8430_vm4 }
 0x10a   : > { %vm19544_vm11 = vcmp.gt.s32.totalorder %v342_v32, 0  ;;  %vm19564_vm9 = vmor %vm19472_vm6, %vm8433_vm0  ;;  %vm25555_vm4 = vcmask 1043456   ;;  %vm25557_vm5 = vcmask 1039360  }
 0x10b   : > { %v1701_v58 = vsel %vm25538_vm12, %v25537_v30, %v25264_v3  ;;  %vm19540_vm12 = vcmp.gt.s32.totalorder %v341_v44, 0  ;;  %v2561_v49 = vsel %vm19429_vm3, %v2515_v11, %v2560_v29  ;;  %v18684_v30 = vpack.i.bf16 %v19508_v0, %v2748_v60  ;;  %vm25560_vm6 = vmmov %vm25555_vm4 }
 0x10c   : > { %v3697_v3 = vmul.bf16 %v3680_v19, %v19301_v8  ;;  %v2820_v20 = vor.u32 %v2819_v18, %v2748_v60  ;;  %2562 = vst [vmem:[#allocation3 + $0x98] sm:$0xcc] %v2561_v49  ;;  %v2564_v44 = vsel %vm19429_vm3, %v2516_v24, %v2563_v55  ;;  %v19560_v32 = vsel %vm25548_vm8, %v1701_v58, %v19335_v13  ;;  %v19574_v19 = vpop.permute.xlu0 %1656  ;;  %v838_v49 = vld [vmem:[#allocation2 + $0x44] sm:$0x33]  ;;  %vm25564_vm0 = vmmov %vm25555_vm4 }
 0x10d   : > { %1400 = vrot.lane.b32.xlu1 %v1295_v31, %s18861_s29  ;;  %1816 = vrot.lane.b32.xlu0 %v19339_v56, %s18858_s18  ;;  %25549 = vst [vmem:[#allocation32_spill] sm:$0xff] %v19560_v32  ;;  %v25550_v11 = vmov 0  ;;  %2565 = vst [vmem:[#allocation3 + $0xa0] sm:$0xcc] %v2564_v44  ;;  %v655_v18 = vcombine.high %v623_v15, %v623_v15  ;;  %v25553_v60 = vrot.slane %v19351_v54, 4  ;;  %v25554_v29 = vrot.slane %v19316_v39, 4 }
 0x10e   : > { %v25551_v11 = vsel %vm19564_vm9, 4294967295, %v25550_v11  ;;  %v25556_v55 = vmov 0.0   ;;  %v1745_v38 = vmul.bf16 %v19560_v32, %v1552_v26  ;;  %v25559_v31 = vrot.slane %v19198_v48, 4  ;;  %v3156_v48 = vld [vmem:[#allocation2 + $0x2c] sm:$0x33]  ;;  %vm25566_vm8 = vmmov %vm25564_vm0 }
 0x10f   : > { %25552 = vst [vmem:[#allocation33_spill] sm:$0xff] %v25551_v11  ;;  %v2152_v24 = vsel %vm25555_vm4, %v25554_v29, %v25553_v60  ;;  %v17399_v58 = vsel %vm19527_vm1, 1.0, %v25556_v55  ;;  %v17400_v44 = vsel %vm19536_vm13, 1.0, %v25556_v55  ;;  %v17367_v39 = vsel %vm19540_vm12, 1.0, %v25556_v55  ;;  %v19595_v29 = vpop.permute.xlu1 %3530  ;;  %vm25568_vm4 = vmmov %vm25564_vm0 }
 0x110   : > { %v18051_v60 = vpack.c.bf16 %v655_v18, %v623_v15  ;;  %v19593_v52 = vsel %vm25557_vm5, %v2152_v24, %v19351_v54  ;;  %v1018_v56 = vsel %vm25560_vm6, %v25559_v31, %v25265_v62  ;;  %v19607_v18 = vpop.permute.xlu0 %971  ;;  %v19609_v24 = vrot.slane %v1745_v38, 5  ;;  %vm25569_vm5 = vmmov %vm25564_vm0 }
 0x111   : > { %18685 = vrot.lane.b32.xlu1 %v18684_v30, %s18859_s22  ;;  %3735 = vrot.lane.b32.xlu0 %v3697_v3, %s18858_s18  ;;  %v17368_v30 = vsel %vm19544_vm11, 1.0, %v25556_v55  ;;  %v2821_v3 = vrot.slane %v2820_v20, 4  ;;  %25558 = vst [vmem:[#allocation34_spill] sm:$0xff] %v19593_v52  ;;  %v18083_v20 = vpack.c.bf16 %v17400_v44, %v17399_v58  ;;  %v2196_v26 = vmul.bf16 %v19593_v52, %v2082_v41  ;;  %v1244_v58 = vld [vmem:[#allocation2 + $0x28] sm:$0x33] }
 0x112   : > { %v839_v36 = vsel %vm19041_vm2, %v18051_v60, %v838_v49  ;;  %v18067_v15 = vpack.c.bf16 %v17368_v30, %v17367_v39  ;;  %vm25561_vm11 = vcmask 515072   ;;  %v3376_v44 = vld [vmem:[#allocation2 + $0x2c] sm:$0x33]  ;;  %v311_v39 = vadd.s32 2304, %v18991_v2 }
 0x113   : > { %840 = vst [vmem:[#allocation2 + $0x44] sm:$0x33] %v839_v36  ;;  %v19613_v49 = vsel %vm25561_vm11, %v1018_v56, %v19341_v17  ;;  %v312_v30 = vadd.s32 2432, %v18991_v2  ;;  %v1796_v60 = vrot.slane %v19609_v24, 4  ;;  %v2244_v38 = vshrl.u32 %v2196_v26, 16 }
 0x114   : > { %25562 = vst [vmem:[#allocation35_spill] sm:$0xff] %v19613_v49  ;;  %v867_v41 = vld [vmem:[#allocation2 + $0x28] sm:$0x33]  ;;  %v19623_v36 = vpop.permute.xlu0 %2628  ;;  %v1297_v31 = vshrl.u32 %v1244_v58, 16  ;;  %v1300_v56 = vshll.u32 %v1244_v58, 16  ;;  %v3429_v62 = vshrl.u32 %v3376_v44, 16 }
 0x115   : > { %3532 = vrot.lane.b32.xlu1 %v3427_v46, %s18861_s29  ;;  %2924 = vrot.lane.b32.xlu0 %v2821_v3, %s18859_s22  ;;  %v19617_v46 = vpop.permute.xlu1 %1658  ;;  %v3173_v3 = vmul.bf16 %v3156_v48, %v19613_v49  ;;  %v3432_v11 = vshll.u32 %v3376_v44, 16  ;;  %v343_v52 = vand.u32 63, %v311_v39  ;;  %v344_v9 = vand.u32 63, %v312_v30 }
 0x116   : > { %v1062_v8 = vmul.bf16 %v19613_v49, %v867_v41  ;;  %v2246_v47 = vrot.slane %v2244_v38, 7  ;;  %v2247_v48 = vshll.u32 %v2196_v26, 16  ;;  %v3431_v45 = vrot.slane %v3429_v62, 5 }
 0x117   : > { %v3207_v57 = vrot.slane %v3173_v3, 7  ;;  %v3434_v58 = vrot.slane %v3432_v11, 6  ;;  %vm503_vm1 = vcmp.lt.s32.totalorder %v343_v52, 63  ;;  %vm504_vm15 = vcmp.lt.s32.totalorder %v344_v9, 63  ;;  %v841_v3 = vld [vmem:[#allocation2 + $0x4c] sm:$0x33] }
 0x118   : > { %v19633_v44 = vpop.permute.xlu0 %1398  ;;  %v2249_v39 = vor.u32 %v2247_v48, %v2246_v47  ;;  %v18052_v30 = vpack.c.bf16 %v656_v53, %v624_v40  ;;  %v17401_v11 = vsel %vm503_vm1, 1.0, %v25556_v55  ;;  %v17402_v62 = vsel %vm504_vm15, 1.0, %v25556_v55  ;;  %vm25571_vm1 = vmmov %vm25564_vm0 }
 0x119   : > { %1660 = vrot.lane.b32.xlu1 %v18083_v20, %s18857_s16  ;;  %2110 = vrot.lane.b32.xlu0 %v18067_v15, %s18859_s22  ;;  %v19628_v4 = vpop.permute.xlu1 %973  ;;  %v3435_v26 = vor.u32 %v3434_v58, %v3431_v45  ;;  %vm375_vm13 = vcmp.gt.s32.totalorder %v343_v52, 0  ;;  %vm376_vm12 = vcmp.gt.s32.totalorder %v344_v9, 0  ;;  %v25284_v40 = vrot.slane %v19574_v19, 4 }
 0x11a   : > { %v842_v47 = vsel %vm19041_vm2, %v18052_v30, %v841_v3  ;;  %v25283_v45 = vrot.slane %v19607_v18, 4  ;;  %v17370_v52 = vsel %vm376_vm12, 1.0, %v25556_v55  ;;  %v25282_v48 = vrot.slane %v19534_v28, 4  ;;  %v3681_v30 = vld [vmem:[#allocation2 + $0x2c] sm:$0x33] }
 0x11b   : > { %843 = vst [vmem:[#allocation2 + $0x4c] sm:$0x33] %v842_v47  ;;  %v25565_v58 = vrot.slane %v19341_v17, 4  ;;  %v25567_v3 = vrot.slane %v19359_v43, 4  ;;  %vm1492_vm6 = vcmask 1042433   ;;  %vm25572_vm15 = vcmask 531456  }
 0x11c   : > { %v19644_v41 = vpop.permute.xlu0 %2108  ;;  %vm1493_vm11 = vsmask.f32 7942  ;;  %vm25576_vm12 = vcmask 7168   ;;  %vm25655_vm9 = vcmask 1043459  }
 0x11d   : > { %975 = vrot.lane.b32.xlu1 %v18067_v15, %s18858_s18  ;;  %1852 = vrot.lane.b32.xlu0 %v1796_v60, %s18858_s18  ;;  %v1299_v15 = vrot.slane %v1297_v31, 6  ;;  %v1302_v60 = vrot.slane %v1300_v56, 7  ;;  %v19638_v38 = vpop.permute.xlu1 %2630  ;;  %v17369_v31 = vsel %vm375_vm13, 1.0, %v25556_v55  ;;  %v1245_v56 = vld [vmem:[#allocation2 + $0x30] sm:$0x33]  ;;  %vm25574_vm13 = vcmask 515072  }
 0x11e   : > { %v25281_v53 = vrot.slane %v19638_v38, 4  ;;  %v1305_v17 = vshrl.u32 %v1245_v56, 16  ;;  %v1308_v43 = vshll.u32 %v1245_v56, 16 }
 0x121   : > { %1101 = vrot.lane.b32.xlu1 %v1062_v8, %s18857_s16  ;;  %3229 = vrot.lane.b32.xlu0 %v3207_v57, %s18857_s16  ;;  %v1303_v8 = vor.u32 %v1302_v60, %v1299_v15  ;;  %v2822_v57 = vshrl.u32 %v19434_v14, 16  ;;  %v2654_v14 = vrot.slane %v19623_v36, 4  ;;  %v25563_v15 = vrot.slane %v19335_v13, 4 }
 0x122   : > { %v18068_v13 = vpack.c.bf16 %v17370_v52, %v17369_v31  ;;  %v2605_v31 = vld [vmem:[#allocation2 + $0x34] sm:$0x33]  ;;  %v2606_v52 = vld [vmem:[#allocation2 + $0x3c] sm:$0x33] }
 0x123   : > { %v2824_v9 = vrot.slane %v2822_v57, 4  ;;  %v1703_v60 = vsel %vm25564_vm0, %v25563_v15, %v25284_v40  ;;  %vm25578_vm0 = vmmov %vm25576_vm12 }
 0x125   : > { %2632 = vrot.lane.b32.xlu1 %v18083_v20, %s18860_s23  ;;  %2337 = vrot.lane.b32.xlu0 %v2249_v39, %s18860_s23  ;;  %v19652_v20 = vpack.c.bf16 %v17402_v62, %v17401_v11  ;;  %v1020_v39 = vsel %vm25566_vm8, %v25565_v58, %v25283_v45  ;;  %v2825_v11 = vor.u32 %v2824_v9, %v19508_v0  ;;  %v25570_v62 = vrot.slane %v19351_v54, 4  ;;  %v1553_v9 = vld [vmem:[#allocation2 + $0x30] sm:$0x33]  ;;  %v1191_v58 = vld [vmem:[#allocation3] sm:$0x33] }
 0x126   : > { %v3698_v0 = vmul.bf16 %v3681_v30, %v19560_v32  ;;  %vm1495_vm8 = vcmask 1046533   ;;  %v1307_v30 = vrot.slane %v1305_v17, 6  ;;  %v1310_v32 = vrot.slane %v1308_v43, 7 }
 0x127   : > { %v2154_v47 = vsel %vm25571_vm1, %v25570_v62, %v25282_v48  ;;  %v3377_v62 = vld [vmem:[#allocation2 + $0x34] sm:$0x33] }
 0x128   : > { %v3437_v49 = vshrl.u32 %v3377_v62, 16 }
 0x129   : > { %1402 = vrot.lane.b32.xlu1 %v1303_v8, %s18861_s29  ;;  %3534 = vrot.lane.b32.xlu0 %v3435_v26, %s18861_s29  ;;  %v2675_v8 = vsel %vm25568_vm4, %v25567_v3, %v2654_v14  ;;  %v2677_v26 = vsel %vm25569_vm5, %v2654_v14, %v25281_v53  ;;  %v19685_v14 = vsel %vm25572_vm15, %v1703_v60, %v19574_v19  ;;  %v868_v3 = vld [vmem:[#allocation2 + $0x30] sm:$0x33]  ;;  %vm1496_vm4 = vsmask.f32 7958 }
 0x12a   : > { %v1092_v57 = vpop.permute.xlu0 %1091  ;;  %25573 = vst [vmem:[#allocation36_spill] sm:$0xff] %v19685_v14  ;;  %v19696_v54 = vsel %vm25576_vm12, %v2675_v8, %v19623_v36  ;;  %v19700_v56 = vsel %vm25578_vm0, %v2677_v26, %v19638_v38  ;;  %v2083_v53 = vld [vmem:[#allocation2 + $0x30] sm:$0x33]  ;;  %vm25580_vm5 = vcmask 1039360   ;;  %v2826_v26 = vrot.slane %v2825_v11, 4  ;;  %vm19745_vm12 = vmand %vm1495_vm8, %vm1496_vm4 }
 0x12b   : > { %25577 = vst [vmem:[#allocation38_spill] sm:$0xff] %v19696_v54  ;;  %25579 = vst [vmem:[#allocation39_spill] sm:$0xff] %v19700_v56  ;;  %v1125_v60 = vrot.slane %v1092_v57, 4  ;;  %v19707_v36 = vsel %vm25580_vm5, %v2154_v47, %v19534_v28  ;;  %v1746_v48 = vmul.bf16 %v19685_v14, %v1553_v9  ;;  %v19714_v45 = vmul.bf16 %v19696_v54, %v2605_v31  ;;  %v2485_v54 = vld [vmem:[#allocation2 + $0x2c] sm:$0x33] }
 0x12c   : > { %25581 = vst [vmem:[#allocation40_spill] sm:$0xff] %v19707_v36  ;;  %v1426_v11 = vrot.slane %v19375_v21, 4  ;;  %v25292_v31 = vrot.slane %v19424_v61, 4  ;;  %v19729_v9 = vmul.bf16 %v19707_v36, %v2083_v53  ;;  %vm25308_vm0 = vcmask 523264  }
 0x12d   : > { %1818 = vrot.lane.b32.xlu1 %v19609_v24, %s18858_s18  ;;  %1662 = vrot.lane.b32.xlu0 %v19652_v20, %s18857_s16  ;;  %v19689_v24 = vsel %vm25574_vm13, %v1020_v39, %v19607_v18  ;;  %vm19738_vm13 = vmand %vm1492_vm6, %vm1493_vm11 }
 0x12e   : > { %25575 = vst [vmem:[#allocation37_spill] sm:$0xff] %v19689_v24  ;;  %v1063_v40 = vmul.bf16 %v19689_v24, %v868_v3  ;;  %v3157_v3 = vld [vmem:[#allocation2 + $0x34] sm:$0x33]  ;;  %vm25586_vm11 = vmmov %vm25571_vm1 }
 0x12f   : > { %v19691_v15 = vpop.permute.xlu1 %1093  ;;  %vm19767_vm4 = vmor %vm19745_vm12, %vm19738_vm13  ;;  %v3174_v36 = vmul.bf16 %v3157_v3, %v19689_v24  ;;  %v3728_v24 = vpop.permute.xlu0 %3727  ;;  %vm25594_vm13 = vcmask 531456  }
 0x130   : > { %v25289_v39 = vrot.slane %v19691_v15, 4  ;;  %vm25597_vm12 = vmmov %vm25571_vm1 }
 0x131   : > { %3737 = vrot.lane.b32.xlu1 %v3698_v0, %s18858_s18  ;;  %977 = vrot.lane.b32.xlu0 %v18068_v13, %s18858_s18  ;;  %v19717_v0 = vmul.bf16 %v19700_v56, %v2606_v52  ;;  %v2754_v52 = vshll.u32 %v19714_v45, 16 }
 0x132   : > { %v1142_v8 = vsel %vm25571_vm1, %v1125_v60, %v25289_v39  ;;  %v19724_v60 = vadd.s32 2560, %v18991_v2  ;;  %v2251_v39 = vshrl.u32 %v19729_v9, 16 }
 0x133   : > { %v1144_v17 = vsel %vm25572_vm15, %v1092_v57, %v1142_v8  ;;  %v19734_v57 = vadd.s32 2688, %v18991_v2  ;;  %v19752_v8 = vrot.slane %v3437_v49, 5  ;;  %v2486_v49 = vld [vmem:[#allocation2 + $0x34] sm:$0x33] }
 0x134   : > { %v1192_v47 = vsel %vm19041_vm2, %v1144_v17, %v1191_v58  ;;  %v19749_v58 = vrot.slane %v1746_v48, 5  ;;  %v345_v17 = vand.u32 63, %v19724_v60  ;;  %v1311_v48 = vor.u32 %v1310_v32, %v1307_v30 }
 0x135   : > { %1193 = vst [vmem:[#allocation3] sm:$0x33] %v1192_v47  ;;  %2926 = vrot.lane.b32.xlu1 %v2826_v26, %s18859_s22  ;;  %1103 = vrot.lane.b32.xlu0 %v1063_v40, %s18857_s16  ;;  %v2758_v40 = vshll.u32 %v19717_v0, 16  ;;  %v3440_v26 = vshll.u32 %v3377_v62, 16  ;;  %v1443_v47 = vsel %vm25586_vm11, %v1426_v11, %v25292_v31  ;;  %v346_v56 = vand.u32 63, %v19734_v57 }
 0x136   : > { %v2517_v60 = vrot.slane %v2485_v54, 6  ;;  %v2518_v11 = vrot.slane %v2486_v49, 6  ;;  %v2566_v31 = vld [vmem:[#allocation3 + $0xa8] sm:$0xcc]  ;;  %v1797_v30 = vrot.slane %v19749_v58, 4  ;;  %v1445_v43 = vsel %vm25308_vm0, %v19375_v21, %v1443_v47 }
 0x137   : > { %v19777_v57 = vrot.slane %v2758_v40, 5  ;;  %v3442_v21 = vrot.slane %v3440_v26, 6  ;;  %vm19791_vm5 = vcmp.lt.s32.totalorder %v345_v17, 63  ;;  %vm19800_vm15 = vcmp.lt.s32.totalorder %v346_v56, 63 }
 0x138   : > { %v2567_v49 = vsel %vm19429_vm3, %v2517_v60, %v2566_v31  ;;  %v625_v31 = vld [vmem:[%s19022_s21 + $0x50] sm:$0x77]  ;;  %v2254_v60 = vshll.u32 %v19729_v9, 16  ;;  %v2253_v26 = vrot.slane %v2251_v39, 7  ;;  %v3761_v9 = vrot.slane %v3728_v24, 4 }
 0x139   : > { %2112 = vrot.lane.b32.xlu1 %v18068_v13, %s18859_s22  ;;  %2634 = vrot.lane.b32.xlu0 %v19652_v20, %s18860_s23  ;;  %v2569_v13 = vld [vmem:[#allocation3 + $0xb0] sm:$0xcc]  ;;  %v19772_v20 = vrot.slane %v2754_v52, 5  ;;  %2568 = vst [vmem:[#allocation3 + $0xa8] sm:$0xcc] %v2567_v49  ;;  %v3208_v49 = vrot.slane %v3174_v36, 7  ;;  %v1446_v39 = vsel %vm25597_vm12, %v25596_v23, %v25595_v35  ;;  %vm25604_vm12 = vmmov %vm25571_vm1 }
 0x13a   : > { %v2570_v52 = vsel %vm19429_vm3, %v2518_v11, %v2569_v13  ;;  %v25591_v11 = vrot.slane %v19691_v15, 4  ;;  %vm19821_vm11 = vcmp.gt.s32.totalorder %v345_v17, 0  ;;  %v17404_v23 = vsel %vm19800_vm15, 1.0, %v25556_v55  ;;  %vm25603_vm15 = vmmov %vm25571_vm1 }
 0x13b   : > { %v19774_v32 = vpop.permute.xlu1 %1095  ;;  %2571 = vst [vmem:[#allocation3 + $0xb0] sm:$0xcc] %v2570_v52  ;;  %v18689_v52 = vpack.i.bf16 %v19777_v57, %v19772_v20  ;;  %v2827_v17 = vshrl.u32 %v19714_v45, 16  ;;  %v3829_v45 = vld [vmem:[#allocation3 + $0x188] sm:$0x33]  ;;  %v25313_v36 = vrot.slane %v19633_v44, 4 }
 0x13c   : > { %v1499_v53 = vld [vmem:[#allocation3] sm:$0x66]  ;;  %v1127_v54 = vrot.slane %v19774_v32, 4 }
 0x13d   : > { %v1500_v40 = vsel %vm19767_vm4, %v1445_v43, %v1499_v53  ;;  %1854 = vrot.lane.b32.xlu1 %v1797_v30, %s18858_s18  ;;  %1404 = vrot.lane.b32.xlu0 %v1311_v48, %s18861_s29  ;;  %v657_v48 = vcombine.high %v625_v31, %v625_v31 }
 0x13e   : > { %1501 = vst [vmem:[#allocation3] sm:$0x66] %v1500_v40  ;;  %v1145_v13 = vsel %vm25571_vm1, %v25591_v11, %v1127_v54 }
 0x13f   : > { %v1146_v30 = vsel %vm25594_vm13, %v19691_v15, %v1145_v13  ;;  %v3730_v53 = vpop.permute.xlu1 %3729  ;;  %v18053_v11 = vpack.c.bf16 %v657_v48, %v625_v31  ;;  %v3443_v15 = vor.u32 %v3442_v21, %v19752_v8  ;;  %v844_v31 = vld [vmem:[#allocation2 + $0x54] sm:$0x33]  ;;  %vm19829_vm13 = vcmp.gt.s32.totalorder %v346_v56, 0 }
 0x140   : > { %v1195_v40 = vsel %vm19041_vm2, %v1146_v30, %v1194_v33  ;;  %v3762_v3 = vrot.slane %v3730_v53, 4  ;;  %v17403_v33 = vsel %vm19791_vm5, 1.0, %v25556_v55  ;;  %v25305_v21 = vrot.slane %v19617_v46, 4 }
 0x141   : > { %1196 = vst [vmem:[#allocation3 + $0x8] sm:$0x33] %v1195_v40  ;;  %3231 = vrot.lane.b32.xlu1 %v3208_v49, %s18857_s16  ;;  %18690 = vrot.lane.b32.xlu0 %v18689_v52, %s18859_s22  ;;  %v845_v8 = vsel %vm19041_vm2, %v18053_v11, %v844_v31  ;;  %vm25602_vm5 = vcmask 515072   ;;  %v2256_v49 = vor.u32 %v2254_v60, %v2253_v26  ;;  %v25303_v40 = vrot.slane %v19628_v4, 4  ;;  %v1197_v11 = vld [vmem:[#allocation3 + $0x10] sm:$0x33] }
 0x142   : > { %v3778_v13 = vsel %vm25571_vm1, %v3761_v9, %v3762_v3  ;;  %846 = vst [vmem:[#allocation2 + $0x54] sm:$0x33] %v845_v8  ;;  %v1447_v9 = vsel %vm25308_vm0, %v19424_v61, %v1446_v39  ;;  %v17371_v26 = vsel %vm19821_vm11, 1.0, %v25556_v55  ;;  %v17372_v61 = vsel %vm19829_vm13, 1.0, %v25556_v55  ;;  %v3682_v8 = vld [vmem:[#allocation2 + $0x34] sm:$0x33]  ;;  %vm25608_vm11 = vmmov %vm25571_vm1 }
 0x143   : > { %v3779_v47 = vsel %vm25602_vm5, %v3728_v24, %v3778_v13  ;;  %v3732_v48 = vpop.permute.xlu1 %3731  ;;  %v19838_v30 = vpop.permute.xlu0 %1097  ;;  %v19848_v24 = vpack.c.bf16 %v17404_v23, %v17403_v33  ;;  %v25605_v39 = vrot.slane %v19574_v19, 4  ;;  %v2829_v33 = vrot.slane %v2827_v17, 4  ;;  %vm25609_vm13 = vmmov %vm25571_vm1 }
 0x144   : > { %v3827_v56 = vsel %vm19041_vm2, %v3779_v47, %v3826_v22  ;;  %v3763_v43 = vrot.slane %v3732_v48, 4  ;;  %v1128_v52 = vrot.slane %v19838_v30, 4  ;;  %v25304_v17 = vrot.slane %v19644_v41, 4 }
 0x145   : > { %3828 = vst [vmem:[#allocation3 + $0x180] sm:$0x33] %v3827_v56  ;;  %2339 = vrot.lane.b32.xlu1 %v2256_v49, %s18860_s23  ;;  %3536 = vrot.lane.b32.xlu0 %v3443_v15, %s18861_s29  ;;  %v1705_v15 = vsel %vm25571_vm1, %v25605_v39, %v25305_v21  ;;  %v3832_v49 = vld [vmem:[#allocation3 + $0x190] sm:$0x33]  ;;  %v19886_v56 = vpack.c.bf16 %v17372_v61, %v17371_v26  ;;  %vm25612_vm1 = vmmov %vm25602_vm5 }
 0x146   : > { %v3780_v60 = vsel %vm25603_vm15, %v3762_v3, %v3763_v43  ;;  %v1147_v22 = vsel %vm25604_vm12, %v1127_v54, %v1128_v52  ;;  %vm25606_vm15 = vcmask 531456   ;;  %v3699_v61 = vmul.bf16 %v3682_v8, %v19685_v14 }
 0x147   : > { %v3781_v31 = vsel %vm25602_vm5, %v3730_v53, %v3780_v60  ;;  %v1148_v54 = vsel %vm25606_vm15, %v19774_v32, %v1147_v22  ;;  %v19866_v3 = vpop.permute.xlu0 %3733  ;;  %v25607_v53 = vrot.slane %v19607_v18, 4  ;;  %v3558_v18 = vrot.slane %v19404_v25, 4  ;;  %v1554_v60 = vld [vmem:[#allocation2 + $0x38] sm:$0x33]  ;;  %vm25610_vm12 = vmmov %vm25606_vm15 }
 0x148   : > { %v1502_v13 = vld [vmem:[#allocation3 + $0x8] sm:$0x66]  ;;  %v3830_v23 = vsel %vm19041_vm2, %v3781_v31, %v3829_v45  ;;  %v1198_v35 = vsel %vm19041_vm2, %v1148_v54, %v1197_v11  ;;  %v25307_v19 = vrot.slane %v19866_v3, 4  ;;  %v3559_v45 = vrot.slane %v19488_v50, 4  ;;  %v1246_v11 = vld [vmem:[#allocation2 + $0x38] sm:$0x33]  ;;  %vm25613_vm5 = vmmov %vm25612_vm1 }
 0x149   : > { %v1022_v32 = vsel %vm25608_vm11, %v25607_v53, %v25303_v40  ;;  %v1503_v47 = vsel %vm19767_vm4, %v1447_v9, %v1502_v13  ;;  %3831 = vst [vmem:[#allocation3 + $0x188] sm:$0x33] %v3830_v23  ;;  %1199 = vst [vmem:[#allocation3 + $0x10] sm:$0x33] %v1198_v35  ;;  %1820 = vrot.lane.b32.xlu1 %v19749_v58, %s18858_s18  ;;  %1664 = vrot.lane.b32.xlu0 %v19848_v24, %s18857_s16  ;;  %v869_v23 = vld [vmem:[#allocation2 + $0x38] sm:$0x33] }
 0x14a   : > { %1504 = vst [vmem:[#allocation3 + $0x8] sm:$0x66] %v1503_v47  ;;  %v3782_v9 = vsel %vm25609_vm13, %v3763_v43, %v25307_v19  ;;  %v19895_v22 = vsel %vm25610_vm12, %v1705_v15, %v19617_v46  ;;  %v2830_v31 = vor.u32 %v2829_v33, %v19772_v20  ;;  %v19906_v54 = vsel %vm25613_vm5, %v1022_v32, %v19628_v4  ;;  %vm25616_vm15 = vmmov %vm25608_vm11  ;;  %v1200_v35 = vld [vmem:[#allocation3 + $0x18] sm:$0x33] }
 0x14b   : > { %25611 = vst [vmem:[#allocation41_spill] sm:$0xff] %v19895_v22  ;;  %v3783_v58 = vsel %vm25612_vm1, %v3732_v48, %v3782_v9  ;;  %v19898_v39 = vpop.permute.xlu1 %1099  ;;  %v19900_v26 = vpop.permute.xlu0 %3221  ;;  %25614 = vst [vmem:[#allocation42_spill] sm:$0xff] %v19906_v54  ;;  %v25615_v43 = vrot.slane %v19459_v12, 4  ;;  %v25617_v20 = vrot.slane %v19534_v28, 4  ;;  %vm25618_vm13 = vsmask.f32 2304 }
 0x14c   : > { %v3833_v48 = vsel %vm19041_vm2, %v3783_v58, %v3832_v49  ;;  %v25302_v13 = vrot.slane %v19898_v39, 4  ;;  %vm19926_vm12 = vmand %vm1492_vm6, %vm25618_vm13  ;;  %v1313_v53 = vshrl.u32 %v1246_v11, 16  ;;  %v1316_v32 = vshll.u32 %v1246_v11, 16 }
 0x14d   : > { %v1448_v15 = vsel %vm25616_vm15, %v25615_v43, %v25313_v36  ;;  %v2156_v33 = vsel %vm25608_vm11, %v25617_v20, %v25304_v17  ;;  %3834 = vst [vmem:[#allocation3 + $0x190] sm:$0x33] %v3833_v48  ;;  %3739 = vrot.lane.b32.xlu1 %v3699_v61, %s18858_s18  ;;  %979 = vrot.lane.b32.xlu0 %v19886_v56, %s18858_s18  ;;  %vm25621_vm1 = vmmov %vm25608_vm11  ;;  %vm25623_vm15 = vsmask.f32 6400  ;;  %vm25626_vm6 = vcmask 531456  }
 0x14e   : > { %v3575_v28 = vsel %vm25621_vm1, %v3558_v18, %v3559_v45  ;;  %v1747_v47 = vmul.bf16 %v19895_v22, %v1554_v60  ;;  %vm25622_vm5 = vmmov %vm25621_vm1  ;;  %v1449_v58 = vsel %vm25308_vm0, %v19459_v12, %v1448_v15  ;;  %v2831_v60 = vrot.slane %v2830_v31, 4  ;;  %v2084_v48 = vld [vmem:[#allocation2 + $0x38] sm:$0x33] }
 0x14f   : > { %v1149_v49 = vsel %vm25622_vm5, %v1128_v52, %v25302_v13  ;;  %vm19939_vm11 = vmand %vm1495_vm8, %vm25623_vm15  ;;  %v3220_v61 = vpop.permute.xlu1 %3219  ;;  %v19947_v18 = vpop.permute.xlu0 %1810  ;;  %v1064_v43 = vmul.bf16 %v19906_v54, %v869_v23  ;;  %vm25627_vm13 = vcmask 1039360   ;;  %v3254_v12 = vrot.slane %v19900_v26, 4  ;;  %v3323_v23 = vld [vmem:[#allocation3 + $0x100] sm:$0x66] }
 0x150   : > { %v1150_v11 = vsel %vm25626_vm6, %v19838_v30, %v1149_v49  ;;  %v19952_v52 = vsel %vm25627_vm13, %v2156_v33, %v19644_v41  ;;  %v1505_v20 = vld [vmem:[#allocation3 + $0x10] sm:$0x66]  ;;  %v3253_v15 = vrot.slane %v3220_v61, 4  ;;  %vm19963_vm8 = vmor %vm19939_vm11, %vm19926_vm12  ;;  %v1315_v33 = vrot.slane %v1313_v53, 6 }
 0x151   : > { %25628 = vst [vmem:[#allocation43_spill] sm:$0xff] %v19952_v52  ;;  %v1201_v13 = vsel %vm19041_vm2, %v1150_v11, %v1200_v35  ;;  %v1506_v30 = vsel %vm19767_vm4, %v1449_v58, %v1505_v20  ;;  %2928 = vrot.lane.b32.xlu1 %v2831_v60, %s18859_s22  ;;  %1105 = vrot.lane.b32.xlu0 %v1064_v43, %s18857_s16  ;;  %v1318_v35 = vrot.slane %v1316_v32, 7  ;;  %v3158_v49 = vld [vmem:[#allocation2 + $0x3c] sm:$0x33]  ;;  %v25306_v8 = vrot.slane %v19595_v29, 4  ;;  %vm25631_vm12 = vmmov %vm25621_vm1 }
 0x152   : > { %1202 = vst [vmem:[#allocation3 + $0x18] sm:$0x33] %v1201_v13  ;;  %v19971_v58 = vsel %vm25308_vm0, %v19404_v25, %v3575_v28  ;;  %v3560_v13 = vrot.slane %v19506_v34, 4  ;;  %1507 = vst [vmem:[#allocation3 + $0x10] sm:$0x66] %v1506_v30  ;;  %v3270_v9 = vsel %vm25631_vm12, %v3253_v15, %v3254_v12  ;;  %v1781_v11 = vrot.slane %v1747_v47, 5 }
 0x153   : > { %v19977_v20 = vmul.bf16 %v19952_v52, %v2084_v48  ;;  %vm25632_vm1 = vmmov %vm25626_vm6  ;;  %v1809_v53 = vpop.permute.xlu1 %1808  ;;  %v19980_v32 = vpop.permute.xlu0 %1814  ;;  %v3378_v43 = vld [vmem:[#allocation2 + $0x3c] sm:$0x33]  ;;  %v2832_v25 = vshrl.u32 %v19717_v0, 16  ;;  %v1877_v40 = vrot.slane %v19947_v18, 4  ;;  %v3175_v15 = vmul.bf16 %v3158_v49, %v19906_v54 }
 0x154   : > { %v3271_v60 = vsel %vm25632_vm1, %v3220_v61, %v3270_v9  ;;  %v1876_v30 = vrot.slane %v1809_v53, 4  ;;  %v3577_v47 = vsel %vm25622_vm5, %v3559_v45, %v3560_v13  ;;  %v1319_v0 = vor.u32 %v1318_v35, %v1315_v33  ;;  %vm25633_vm15 = vmmov %vm25622_vm5  ;;  %v20002_v45 = vld [vmem:[#allocation2 + $0x3c] sm:$0x33] }
 0x155   : > { %v3324_v28 = vsel %vm19963_vm8, %v3271_v60, %v3323_v23  ;;  %2114 = vrot.lane.b32.xlu1 %v19886_v56, %s18859_s22  ;;  %2636 = vrot.lane.b32.xlu0 %v19848_v24, %s18860_s23  ;;  %v315_v61 = vadd.s32 2816, %v18991_v2  ;;  %v316_v48 = vadd.s32 2944, %v18991_v2  ;;  %v19999_v23 = vsel %vm25633_vm15, %v3560_v13, %v25306_v8  ;;  %vm25634_vm11 = vmmov %vm25622_vm5 }
 0x156   : > { %3325 = vst [vmem:[#allocation3 + $0x100] sm:$0x66] %v3324_v28  ;;  %v1910_v49 = vsel %vm25634_vm11, %v1876_v30, %v1877_v40  ;;  %v3445_v9 = vshrl.u32 %v3378_v43, 16  ;;  %v3448_v60 = vshll.u32 %v3378_v43, 16  ;;  %v2258_v56 = vshrl.u32 %v19977_v20, 16  ;;  %vm25636_vm1 = vmmov %vm25622_vm5 }
 0x157   : > { %vm25635_vm6 = vcmask 515072   ;;  %v20006_v33 = vpop.permute.xlu1 %3223  ;;  %v20008_v35 = vpop.permute.xlu0 %1844  ;;  %v1798_v28 = vrot.slane %v1781_v11, 4  ;;  %v20010_v17 = vrot.slane %v2832_v25, 4  ;;  %v20014_v13 = vsel %vm25308_vm0, %v19488_v50, %v3577_v47  ;;  %v3326_v43 = vld [vmem:[#allocation3 + $0x108] sm:$0x66]  ;;  %vm20047_vm15 = vmor %vm19464_vm10, %vm19451_vm14 }
 0x158   : > { %v1911_v24 = vsel %vm25635_vm6, %v1809_v53, %v1910_v49  ;;  %v3255_v30 = vrot.slane %v20006_v33, 4  ;;  %v3209_v21 = vrot.slane %v3175_v15, 7  ;;  %v3700_v53 = vmul.bf16 %v20002_v45, %v19895_v22  ;;  %vm25646_vm14 = vmmov %vm25631_vm12 }
 0x159   : > { %2006 = vst [vmem:[#allocation3] sm:$0x88] %v1911_v24  ;;  %1856 = vrot.lane.b32.xlu1 %v1798_v28, %s18858_s18  ;;  %1406 = vrot.lane.b32.xlu0 %v1319_v0, %s18861_s29  ;;  %v347_v25 = vand.u32 63, %v315_v61  ;;  %v348_v49 = vand.u32 63, %v316_v48  ;;  %v2261_v8 = vshll.u32 %v19977_v20, 16  ;;  %v20025_v47 = vrot.slane %v3445_v9, 5  ;;  %vm25647_vm10 = vmmov %vm25631_vm12 }
 0x15a   : > { %v3272_v50 = vsel %vm25636_vm1, %v3254_v12, %v3255_v30  ;;  %v20027_v15 = vrot.slane %v3448_v60, 6  ;;  %v2260_v24 = vrot.slane %v2258_v56, 7  ;;  %v25312_v28 = vrot.slane %v19980_v32, 4 }
 0x15b   : > { %vm25637_vm5 = vcmask 531456   ;;  %v1813_v19 = vpop.permute.xlu1 %1812  ;;  %v20032_v45 = vpop.permute.xlu0 %1846  ;;  %v2835_v20 = vor.u32 %v20010_v17, %v19777_v57  ;;  %v1894_v48 = vrot.slane %v20008_v35, 4  ;;  %v2032_v17 = vld [vmem:[#allocation3 + $0x88] sm:$0x11]  ;;  %vm20053_vm11 = vcmp.lt.s32.totalorder %v347_v25, 63 }
 0x15c   : > { %v3273_v0 = vsel %vm25637_vm5, %v19900_v26, %v3272_v50  ;;  %v1878_v9 = vrot.slane %v1813_v19, 4  ;;  %v25315_v60 = vrot.slane %v20032_v45, 4  ;;  %vm20057_vm6 = vcmp.lt.s32.totalorder %v348_v49, 63  ;;  %vm25648_vm5 = vmmov %vm25647_vm10 }
 0x15d   : > { %v3628_v61 = vld [vmem:[#allocation3 + $0x100] sm:$0xcc]  ;;  %v3327_v12 = vsel %vm19963_vm8, %v3273_v0, %v3326_v43  ;;  %3233 = vrot.lane.b32.xlu1 %v3209_v21, %s18857_s16  ;;  %1822 = vrot.lane.b32.xlu0 %v1781_v11, %s18858_s18  ;;  %vm20061_vm1 = vcmp.gt.s32.totalorder %v347_v25, 0  ;;  %vm20074_vm0 = vcmp.gt.s32.totalorder %v348_v49, 0  ;;  %vm25651_vm12 = vcmask 515072  }
 0x15e   : > { %v3629_v56 = vsel %vm19378_vm7, %v19971_v58, %v3628_v61  ;;  %3328 = vst [vmem:[#allocation3 + $0x108] sm:$0x66] %v3327_v12  ;;  %v1912_v51 = vsel %vm25646_vm14, %v1877_v40, %v1878_v9  ;;  %v1914_v21 = vsel %vm25647_vm10, %v1878_v9, %v25312_v28  ;;  %v1944_v11 = vsel %vm25648_vm5, %v1894_v48, %v25315_v60  ;;  %vm25652_vm13 = vmmov %vm25651_vm12  ;;  %v626_v9 = vld [vmem:[%s19022_s21 + $0x58] sm:$0x77]  ;;  %v2029_v43 = vld [vmem:[#allocation3 + $0x80] sm:$0x11] }
 0x15f   : > { %3630 = vst [vmem:[#allocation3 + $0x100] sm:$0xcc] %v3629_v56  ;;  %v1913_v25 = vsel %vm25651_vm12, %v19947_v18, %v1912_v51  ;;  %v1915_v50 = vsel %vm25652_vm13, %v1813_v19, %v1914_v21  ;;  %vm25653_vm14 = vmmov %vm25651_vm12  ;;  %v20083_v0 = vpop.permute.xlu1 %3225  ;;  %vm25654_vm10 = vsmask.f32 7950  ;;  %v20091_v49 = vpop.permute.xlu0 %18675  ;;  %v2263_v12 = vor.u32 %v2261_v8, %v2260_v24  ;;  %v3329_v8 = vld [vmem:[#allocation3 + $0x110] sm:$0x66] }
 0x160   : > { %v1945_v40 = vsel %vm25653_vm14, %v20008_v35, %v1944_v11  ;;  %vm20087_vm3 = vmand %vm25655_vm9, %vm25654_vm10  ;;  %vm2427_vm5 = vsmask.f32 7938  ;;  %2007 = vst [vmem:[#allocation3 + $0x8] sm:$0x88] %v1913_v25  ;;  %v25314_v18 = vrot.slane %v20083_v0, 4  ;;  %vm25659_vm12 = vcmask 1047559  }
 0x161   : > { %2008 = vst [vmem:[#allocation3 + $0x10] sm:$0x88] %v1915_v50  ;;  %v2033_v19 = vsel %vm20047_vm15, %v1945_v40, %v2032_v17  ;;  %vm25658_vm13 = vsmask.f32 7966  ;;  %v18678_v51 = vunpack.i.h.bf16 %v20091_v49  ;;  %v18677_v21 = vunpack.i.l.bf16 %v20091_v49  ;;  %2341 = vrot.lane.b32.xlu1 %v2263_v12, %s18860_s23  ;;  %3741 = vrot.lane.b32.xlu0 %v3700_v53, %s18858_s18  ;;  %v847_v61 = vld [vmem:[#allocation2 + $0x5c] sm:$0x33] }
 0x162   : > { %vm20099_vm14 = vmand %vm25659_vm12, %vm25658_vm13  ;;  %2034 = vst [vmem:[#allocation3 + $0x88] sm:$0x11] %v2033_v19  ;;  %v3451_v24 = vor.u32 %v20027_v15, %v20025_v47  ;;  %v2836_v17 = vrot.slane %v2835_v20, 4  ;;  %v17405_v11 = vsel %vm20053_vm11, 1.0, %v25556_v55  ;;  %v658_v25 = vcombine.high %v626_v9, %v626_v9  ;;  %v3090_v35 = vld [vmem:[#allocation3 + $0x88] sm:$0x88] }
 0x163   : > { %vm25662_vm9 = vcmask 1043456   ;;  %v2951_v40 = vrot.slane %v18678_v51, 4  ;;  %v2950_v12 = vrot.slane %v18677_v21, 4  ;;  %v17406_v53 = vsel %vm20057_vm6, 1.0, %v25556_v55  ;;  %vm20128_vm11 = vmor %vm20099_vm14, %vm20087_vm3  ;;  %v1843_v20 = vpop.permute.xlu1 %1842  ;;  %v20132_v26 = vpop.permute.xlu0 %18680 }
 0x164   : > { %v3274_v50 = vsel %vm25662_vm9, %v3255_v30, %v25314_v18  ;;  %vm25663_vm10 = vcmask 531456   ;;  %v3087_v30 = vld [vmem:[#allocation3 + $0x80] sm:$0x88]  ;;  %v17373_v58 = vsel %vm20061_vm1, 1.0, %v25556_v55  ;;  %v18054_v19 = vpack.c.bf16 %v658_v25, %v626_v9  ;;  %vm25666_vm3 = vmmov %vm25662_vm9 }
 0x165   : > { %v3275_v47 = vsel %vm25663_vm10, %v20006_v33, %v3274_v50  ;;  %v17374_v33 = vsel %vm20074_vm0, 1.0, %v25556_v55  ;;  %v3631_v50 = vld [vmem:[#allocation3 + $0x108] sm:$0xcc]  ;;  %v2984_v28 = vsel %vm25666_vm3, %v2950_v12, %v2951_v40  ;;  %v1893_v36 = vrot.slane %v1843_v20, 4  ;;  %3538 = vrot.lane.b32.xlu1 %v3451_v24, %s18861_s29  ;;  %2930 = vrot.lane.b32.xlu0 %v2836_v17, %s18859_s22  ;;  %vm25668_vm0 = vmmov %vm25666_vm3 }
 0x166   : > { %v3330_v56 = vsel %vm19963_vm8, %v3275_v47, %v3329_v8  ;;  %v18683_v18 = vunpack.i.h.bf16 %v20132_v26  ;;  %v3632_v5 = vsel %vm19378_vm7, %v20014_v13, %v3631_v50  ;;  %vm25667_vm6 = vcmask 1039360   ;;  %vm25671_vm14 = vmmov %vm25668_vm0 }
 0x167   : > { %3331 = vst [vmem:[#allocation3 + $0x110] sm:$0x66] %v3330_v56  ;;  %v2985_v60 = vsel %vm25667_vm6, %v18677_v21, %v2984_v28  ;;  %v18682_v9 = vunpack.i.l.bf16 %v20132_v26  ;;  %v20151_v8 = vpack.c.bf16 %v17406_v53, %v17405_v11  ;;  %3633 = vst [vmem:[#allocation3 + $0x108] sm:$0xcc] %v3632_v5  ;;  %v1942_v13 = vsel %vm25668_vm0, %v1893_v36, %v1894_v48  ;;  %v1849_v11 = vpop.permute.xlu1 %1848  ;;  %v20165_v12 = vpop.permute.xlu0 %1850  ;;  %v3093_v48 = vld [vmem:[#allocation3 + $0x90] sm:$0x88] }
 0x168   : > { %v3088_v25 = vsel %vm20128_vm11, %v2985_v60, %v3087_v30  ;;  %v20160_v28 = vrot.slane %v18683_v18, 4  ;;  %v848_v21 = vsel %vm19041_vm2, %v18054_v19, %v847_v61  ;;  %vm25669_vm1 = vcmask 515072   ;;  %vm25672_vm9 = vmmov %vm25668_vm0 }
 0x169   : > { %3089 = vst [vmem:[#allocation3 + $0x80] sm:$0x88] %v3088_v25  ;;  %v1943_v24 = vsel %vm25669_vm1, %v1843_v20, %v1942_v13  ;;  %v2952_v17 = vrot.slane %v18682_v9, 4  ;;  %vm2429_vm13 = vsmask.f32 7954  ;;  %v18070_v60 = vpack.c.bf16 %v17374_v33, %v17373_v58  ;;  %1666 = vrot.lane.b32.xlu1 %v20151_v8, %s18857_s16  ;;  %vm25673_vm10 = vmmov %vm25667_vm6 }
 0x16a   : > { %849 = vst [vmem:[#allocation2 + $0x5c] sm:$0x33] %v848_v21  ;;  %v2030_v36 = vsel %vm20047_vm15, %v1943_v24, %v2029_v43  ;;  %v1896_v53 = vrot.slane %v1849_v11, 4  ;;  %v25322_v47 = vrot.slane %v20165_v12, 4  ;;  %vm25670_vm12 = vcmask 523264   ;;  %vm25674_vm3 = vmmov %vm25667_vm6 }
 0x16b   : > { %v3580_v30 = vsel %vm25670_vm12, %v19506_v34, %v19999_v23  ;;  %2031 = vst [vmem:[#allocation3 + $0x80] sm:$0x11] %v2030_v36  ;;  %v2986_v20 = vsel %vm25671_vm14, %v2951_v40, %v2952_v17  ;;  %v2988_v19 = vsel %vm25672_vm9, %v2952_v17, %v20160_v28  ;;  %v2035_v58 = vld [vmem:[#allocation3 + $0x90] sm:$0x11]  ;;  %v2038_v33 = vld [vmem:[#allocation3 + $0x98] sm:$0x11]  ;;  %2116 = vrot.lane.b32.xlu0 %v18070_v60, %s18859_s22  ;;  %vm25676_vm6 = vmmov %vm25668_vm0  ;;  %v2328_v25 = vpop.permute.xlu0 %2327 }
 0x16c   : > { %v2987_v61 = vsel %vm25673_vm10, %v18678_v51, %v2986_v20  ;;  %v2989_v50 = vsel %vm25674_vm3, %v18682_v9, %v2988_v19  ;;  %v25675_v34 = vrot.slane %v20032_v45, 4  ;;  %v1948_v40 = vsel %vm25668_vm0, %v1896_v53, %v25322_v47  ;;  %v2330_v9 = vpop.permute.xlu1 %2329 }
 0x16d   : > { %vm25677_vm1 = vcmask 1041408   ;;  %v3091_v49 = vsel %vm20128_vm11, %v2987_v61, %v3090_v35  ;;  %v3094_v51 = vsel %vm20128_vm11, %v2989_v50, %v3093_v48  ;;  %vm25680_vm14 = vcmask 515072   ;;  %981 = vrot.lane.b32.xlu1 %v18070_v60, %s18858_s18  ;;  %v2435_v61 = vld [vmem:[#allocation3 + $0x88] sm:$0x33] }
 0x16e   : > { %v1946_v23 = vsel %vm25676_vm6, %v25675_v34, %v1896_v53  ;;  %vm20191_vm12 = vmand %vm25677_vm1, %vm2427_vm5  ;;  %vm25682_vm10 = vcmask 1045508   ;;  %v3634_v13 = vld [vmem:[#allocation3 + $0x110] sm:$0xcc]  ;;  %3092 = vst [vmem:[#allocation3 + $0x88] sm:$0x88] %v3091_v49  ;;  %v2362_v17 = vrot.slane %v2330_v9, 4 }
 0x16f   : > { %v1947_v5 = vsel %vm25680_vm14, %v20032_v45, %v1946_v23  ;;  %vm25681_vm9 = vmmov %vm25680_vm14  ;;  %3095 = vst [vmem:[#allocation3 + $0x90] sm:$0x88] %v3094_v51  ;;  %v2361_v36 = vrot.slane %v2328_v25, 4  ;;  %v3635_v45 = vsel %vm19378_vm7, %v3580_v30, %v3634_v13  ;;  %vm25686_vm6 = vcmask 7168   ;;  %v2917_v20 = vpop.permute.xlu0 %2916 }
 0x170   : > { %v1949_v43 = vsel %vm25681_vm9, %v1849_v11, %v1948_v40  ;;  %vm2430_vm3 = vmand %vm25682_vm10, %vm2429_vm13  ;;  %v2036_v21 = vsel %vm20047_vm15, %v1947_v5, %v2035_v58  ;;  %3636 = vst [vmem:[#allocation3 + $0x110] sm:$0xcc] %v3635_v45  ;;  %v2332_v53 = vpop.permute.xlu1 %2331 }
 0x171   : > { %v2039_v24 = vsel %vm20047_vm15, %v1949_v43, %v2038_v33  ;;  %2037 = vst [vmem:[#allocation3 + $0x90] sm:$0x11] %v2036_v21  ;;  %vm20213_vm5 = vmor %vm2430_vm3, %vm20191_vm12  ;;  %v2363_v58 = vrot.slane %v2332_v53, 4  ;;  %vm25693_vm3 = vcmask 1039360  }
 0x172   : > { %2040 = vst [vmem:[#allocation3 + $0x98] sm:$0x11] %v2039_v24  ;;  %vm25685_vm13 = vmmov %vm25668_vm0  ;;  %v2432_v19 = vld [vmem:[#allocation3 + $0x80] sm:$0x33]  ;;  %v3332_v24 = vld [vmem:[#allocation3 + $0x118] sm:$0x66] }
 0x173   : > { %v2378_v35 = vsel %vm25685_vm13, %v2361_v36, %v2362_v17  ;;  %v2381_v60 = vsel %vm25668_vm0, %v2362_v17, %v2363_v58  ;;  %vm25687_vm1 = vmmov %vm25686_vm6  ;;  %v20223_v34 = vpop.permute.xlu0 %2922  ;;  %v3875_v17 = vld [vmem:[#allocation3] sm:$0xff]  ;;  %vm25694_vm13 = vcmask 531456  }
 0x174   : > { %v2380_v48 = vsel %vm25686_vm6, %v2328_v25, %v2378_v35  ;;  %v2382_v33 = vsel %vm25687_vm1, %v2330_v9, %v2381_v60  ;;  %v2334_v50 = vpop.permute.xlu1 %2333  ;;  %vm25688_vm12 = vmmov %vm25668_vm0  ;;  %v2967_v25 = vrot.slane %v2917_v20, 4  ;;  %v25691_v35 = vrot.slane %v20083_v0, 4 }
 0x175   : > { %v2433_v30 = vsel %vm20213_vm5, %v2380_v48, %v2432_v19  ;;  %v2436_v23 = vsel %vm20213_vm5, %v2382_v33, %v2435_v61  ;;  %v2364_v40 = vrot.slane %v2334_v50, 4  ;;  %vm25689_vm14 = vmmov %vm25687_vm1  ;;  %v2970_v61 = vrot.slane %v20223_v34, 4 }
 0x176   : > { %2434 = vst [vmem:[#allocation3 + $0x80] sm:$0x33] %v2433_v30  ;;  %2437 = vst [vmem:[#allocation3 + $0x88] sm:$0x33] %v2436_v23  ;;  %vm4237_vm6 = vcmask 1044480  }
 0x177   : > { %v2383_v56 = vsel %vm25688_vm12, %v2363_v58, %v2364_v40  ;;  %v20229_v43 = vpop.permute.xlu0 %3227  ;;  %vm25690_vm9 = vmmov %vm25668_vm0 }
 0x178   : > { %v2384_v49 = vsel %vm25689_vm14, %v2332_v53, %v2383_v56  ;;  %v2438_v51 = vld [vmem:[#allocation3 + $0x90] sm:$0x33]  ;;  %v2919_v5 = vpop.permute.xlu1 %2918  ;;  %v25320_v21 = vrot.slane %v20229_v43, 4  ;;  %vm25692_vm10 = vmmov %vm25668_vm0 }
 0x179   : > { %v2439_v9 = vsel %vm20213_vm5, %v2384_v49, %v2438_v51  ;;  %v2968_v13 = vrot.slane %v2919_v5, 4  ;;  %vm25695_vm1 = vmmov %vm25668_vm0 }
 0x17a   : > { %2440 = vst [vmem:[#allocation3 + $0x90] sm:$0x33] %v2439_v9  ;;  %v3276_v48 = vsel %vm25692_vm10, %v25691_v35, %v25320_v21  ;;  %vm25696_vm12 = vmmov %vm25668_vm0  ;;  %vm25699_vm10 = vcmask 7168  }
 0x17b   : > { %v3016_v45 = vsel %vm25690_vm9, %v2967_v25, %v2968_v13  ;;  %v3277_v30 = vsel %vm25694_vm13, %v20083_v0, %v3276_v48  ;;  %v20243_v33 = vpop.permute.xlu0 %2335  ;;  %vm25697_vm14 = vmmov %vm25693_vm3 }
 0x17c   : > { %v3017_v58 = vsel %vm25693_vm3, %v2917_v20, %v3016_v45  ;;  %v2921_v60 = vpop.permute.xlu1 %2920  ;;  %v3333_v23 = vsel %vm19963_vm8, %v3277_v30, %v3332_v24  ;;  %v25319_v49 = vrot.slane %v20243_v33, 4  ;;  %vm25698_vm9 = vmmov %vm25693_vm3  ;;  %v2441_v24 = vld [vmem:[#allocation3 + $0x98] sm:$0x33]  ;;  %vm4238_vm3 = vcmask 1045504  }
 0x17d   : > { %v3891_v36 = vld [vmem:[#allocation3 + $0x80] sm:$0xff]  ;;  %3135 = vst [vmem:[#allocation3 + $0x100] sm:$0x11] %v3017_v58  ;;  %v2969_v56 = vrot.slane %v2921_v60, 4  ;;  %3334 = vst [vmem:[#allocation3 + $0x118] sm:$0x66] %v3333_v23 }
 0x17e   : > { %v17464_v53 = vcombine.high %v3875_v17, %v3891_v36  ;;  %v17463_v19 = vcombine.low %v3875_v17, %v3891_v36  ;;  %v2385_v51 = vsel %vm25696_vm12, %v2364_v40, %v25319_v49  ;;  %vm25701_vm13 = vmmov %vm25668_vm0  ;;  %vm25704_vm12 = vcmask 515072  }
 0x17f   : > { %v3018_v20 = vsel %vm25668_vm0, %v2968_v13, %v2969_v56  ;;  %v3020_v0 = vsel %vm25695_vm1, %v2969_v56, %v2970_v61  ;;  %v2386_v17 = vsel %vm25699_vm10, %v2334_v50, %v2385_v51  ;;  %v20261_v45 = vpop.permute.xlu0 %1816  ;;  %v25700_v50 = vrot.slane %v19633_v44, 4  ;;  %vm25709_vm10 = vmmov %vm25668_vm0 }
 0x180   : > { %4337 = vmatprep.subr.bf16.mxu1 %v17464_v53  ;;  %v3019_v25 = vsel %vm25697_vm14, %v2919_v5, %v3018_v20  ;;  %v3021_v9 = vsel %vm25698_vm9, %v2921_v60, %v3020_v0  ;;  %v20259_v36 = vpop.permute.xlu1 %1400  ;;  %v2442_v13 = vsel %vm20213_vm5, %v2386_v17, %v2441_v24  ;;  %v25316_v40 = vrot.slane %v20261_v45, 4  ;;  %v1508_v60 = vld [vmem:[#allocation3 + $0x18] sm:$0x66]  ;;  %v3923_v17 = vld [vmem:[#allocation3 + $0x180] sm:$0x33]  ;;  %vm25707_vm14 = vmmov %vm25704_vm12 }
 0x181   : > { %4338 = vmatpush1.bf16.msra.mxu1 %v17463_v19  ;;  %3136 = vst [vmem:[#allocation3 + $0x108] sm:$0x11] %v3019_v25  ;;  %3137 = vst [vmem:[#allocation3 + $0x110] sm:$0x11] %v3021_v9  ;;  %v25318_v35 = vrot.slane %v20259_v36, 4  ;;  %v18862_v5 = vmov 65535  }
 0x182   : > { %v4239_v48 = vsel %vm4237_vm6, 4294967295, %v18862_v5  ;;  %2443 = vst [vmem:[#allocation3 + $0x98] sm:$0x33] %v2442_v13  ;;  %v25702_v19 = vrot.slane %v19980_v32, 4  ;;  %vm25703_vm1 = vcmask 523264   ;;  %vm25706_vm6 = vmmov %vm25668_vm0 }
 0x183   : > { %v1450_v53 = vsel %vm25701_vm13, %v25700_v50, %v25318_v35  ;;  %v20284_v20 = vpop.permute.xlu0 %3735  ;;  %v20287_v51 = vsel %vm4238_vm3, %v4239_v48, 0  ;;  %v3835_v13 = vld [vmem:[#allocation3 + $0x198] sm:$0x33]  ;;  %vm25708_vm9 = vmmov %vm25668_vm0  ;;  %vm25710_vm3 = vcmask 1039360  }
 0x184   : > { %v1916_v58 = vsel %vm25668_vm0, %v25702_v19, %v25316_v40  ;;  %v1451_v30 = vsel %vm25703_vm1, %v19633_v44, %v1450_v53  ;;  %v20282_v56 = vpop.permute.xlu1 %18685  ;;  %v3907_v0 = vld [vmem:[#allocation3 + $0x100] sm:$0xff]  ;;  %v25321_v24 = vrot.slane %v20284_v20, 4  ;;  %v25705_v19 = vrot.slane %v19866_v3, 4  ;;  %vm25711_vm13 = vmmov %vm25710_vm3 }
 0x185   : > { %v1917_v23 = vsel %vm25704_vm12, %v19980_v32, %v1916_v58  ;;  %v1509_v25 = vsel %vm19767_vm4, %v1451_v30, %v1508_v60  ;;  %v25317_v9 = vunpack.i.h.bf16 %v20282_v56  ;;  %v18687_v44 = vunpack.i.l.bf16 %v20282_v56  ;;  %v3892_v32 = vld [vmem:[#allocation3 + $0x88] sm:$0xff]  ;;  %v3096_v60 = vld [vmem:[#allocation3 + $0x98] sm:$0x88] }
 0x186   : > { %2009 = vst [vmem:[#allocation3 + $0x18] sm:$0x88] %v1917_v23  ;;  %1510 = vst [vmem:[#allocation3 + $0x18] sm:$0x66] %v1509_v25  ;;  %v17496_v5 = vcombine.high %v3907_v0, %v3923_v17  ;;  %v17495_v50 = vcombine.low %v3907_v0, %v3923_v17  ;;  %v3784_v58 = vsel %vm25706_vm6, %v25705_v19, %v25321_v24  ;;  %v3876_v30 = vld [vmem:[#allocation3 + $0x8] sm:$0xff]  ;;  %vm25389_vm1 = vcmask 220160  }
 0x187   : > { %v20296_v48 = vrot.slane %v25317_v9, 4  ;;  %v2954_v53 = vrot.slane %v18687_v44, 4  ;;  %v3099_v23 = vld [vmem:[#allocation3 + $0xa0] sm:$0x88]  ;;  %v3785_v25 = vsel %vm25707_vm14, %v19866_v3, %v3784_v58  ;;  %v20307_v0 = vpop.permute.xlu0 %2924  ;;  %v17466_v35 = vcombine.high %v3876_v30, %v3892_v32  ;;  %v3924_v58 = vld [vmem:[#allocation3 + $0x188] sm:$0x33]  ;;  %vm25714_vm6 = vmmov %vm25668_vm0 }
 0x188   : > { %v20305_v40 = vpop.permute.xlu1 %3532  ;;  %v4245_v17 = vand.u32 %v17496_v5, %v20287_v51  ;;  %v4242_v9 = vand.u32 %v17495_v50, %v20287_v51  ;;  %v3908_v49 = vld [vmem:[#allocation3 + $0x108] sm:$0xff]  ;;  %v3836_v24 = vsel %vm19041_vm2, %v3785_v25, %v3835_v13  ;;  %v25324_v47 = vrot.slane %v20307_v0, 4  ;;  %vm25715_vm14 = vmmov %vm25710_vm3 }
 0x189   : > { %v2990_v21 = vsel %vm25708_vm9, %v20160_v28, %v2954_v53  ;;  %v2992_v19 = vsel %vm25709_vm10, %v2954_v53, %v20296_v48  ;;  %v25326_v3 = vrot.slane %v20305_v40, 4  ;;  %3837 = vst [vmem:[#allocation3 + $0x198] sm:$0x33] %v3836_v24  ;;  %v17498_v28 = vcombine.high %v3908_v49, %v3924_v58  ;;  %v3637_v24 = vld [vmem:[#allocation3 + $0x118] sm:$0xcc]  ;;  %vm25717_vm9 = vmmov %vm25668_vm0 }
 0x18a   : > { %v2991_v5 = vsel %vm25710_vm3, %v18683_v18, %v2990_v21  ;;  %v2993_v50 = vsel %vm25711_vm13, %v18687_v44, %v2992_v19  ;;  %4339 = vmatprep.subr.bf16.mxu1 %v4245_v17  ;;  %v25712_v25 = vrot.slane %v19595_v29, 4  ;;  %v20335_v18 = vld [vmem:[%s25230_s1] sm:$0xf]  ;;  %vm25713_vm12 = vcmask 523264   ;;  %vm25719_vm10 = vmmov %vm25668_vm0 }
 0x18b   : > { %v3097_v53 = vsel %vm20128_vm11, %v2991_v5, %v3096_v60  ;;  %v3100_v13 = vsel %vm20128_vm11, %v2993_v50, %v3099_v23  ;;  %4340 = vmatpush1.bf16.msra.mxu1 %v4242_v9  ;;  %v1247_v21 = vld [vmem:[#allocation2 + $0x40] sm:$0x33]  ;;  %v3022_v60 = vsel %vm25714_vm6, %v2970_v61, %v25324_v47  ;;  %v20346_v23 = vpop.permute.xlu0 %2110  ;;  %v17465_v17 = vcombine.low %v3876_v30, %v3892_v32  ;;  %vm25729_vm6 = vmmov %vm25668_vm0 }
 0x18c   : > { %v3581_v26 = vsel %vm25668_vm0, %v25712_v25, %v25326_v3  ;;  %3098 = vst [vmem:[#allocation3 + $0x98] sm:$0x88] %v3097_v53  ;;  %3101 = vst [vmem:[#allocation3 + $0xa0] sm:$0x88] %v3100_v13  ;;  %4378 = vmatprep.subr.bf16.mxu1 %v17466_v35  ;;  %v20344_v9 = vpop.permute.xlu1 %1660  ;;  %v17497_v19 = vcombine.low %v3908_v49, %v3924_v58  ;;  %v25323_v53 = vrot.slane %v20346_v23, 4  ;;  %v1321_v49 = vshrl.u32 %v1247_v21, 16 }
 0x18d   : > { %v3582_v44 = vsel %vm25713_vm12, %v19595_v29, %v3581_v26  ;;  %v3023_v29 = vsel %vm25715_vm14, %v20223_v34, %v3022_v60  ;;  %v25325_v50 = vrot.slane %v20344_v9, 4  ;;  %v1555_v61 = vld [vmem:[#allocation2 + $0x40] sm:$0x33]  ;;  %v4251_v32 = vand.u32 %v17498_v28, %v20287_v51  ;;  %v3893_v26 = vld [vmem:[#allocation3 + $0x90] sm:$0xff] }
 0x18e   : > { %v3638_v5 = vsel %vm19378_vm7, %v3582_v44, %v3637_v24  ;;  %3138 = vst [vmem:[#allocation3 + $0x118] sm:$0x11] %v3023_v29  ;;  %v2085_v35 = vld [vmem:[#allocation2 + $0x40] sm:$0x33]  ;;  %17527 = vmatmul.mubr.msk.bf16.vlgmr.msra.gmra.mrb[0].mxu1 %vm25389_vm1, %v20335_v18  ;;  %v1324_v30 = vshll.u32 %v1247_v21, 16  ;;  %v25716_v58 = vrot.slane %v19617_v46, 4 }
 0x18f   : > { %3639 = vst [vmem:[#allocation3 + $0x118] sm:$0xcc] %v3638_v5  ;;  %v25718_v13 = vrot.slane %v19644_v41, 4  ;;  %4379 = vmatpush1.bf16.msra.mxu1 %v17465_v17  ;;  %v25720_v44 = vmov 0   ;;  %vm25721_vm3 = vcmask 531456   ;;  %v20378_v24 = vpop.permute.xlu0 %1852  ;;  %v4248_v41 = vand.u32 %v17497_v19, %v20287_v51  ;;  %v3909_v60 = vld [vmem:[#allocation3 + $0x110] sm:$0xff] }
 0x190   : > { %v1707_v34 = vsel %vm25717_vm9, %v25716_v58, %v25325_v50  ;;  %4410 = vmatprep.mubr.bf16.mxu1 %v25720_v44  ;;  %4380 = vmatprep.subr.bf16.mxu1 %v4251_v32  ;;  %v20376_v46 = vpop.permute.xlu1 %975  ;;  %v3925_v32 = vld [vmem:[#allocation3 + $0x190] sm:$0x33]  ;;  %v20389_v47 = vrot.slane %v1324_v30, 7  ;;  %v25724_v19 = vrot.slane %v19628_v4, 4  ;;  %v870_v3 = vld [vmem:[#allocation2 + $0x40] sm:$0x33]  ;;  %vm25732_vm9 = vmmov %vm25668_vm0 }
 0x191   : > { %v2158_v25 = vsel %vm25719_vm10, %v25718_v13, %v25323_v53  ;;  %v20370_v28 = vsel %vm25721_vm3, %v1707_v34, %v20344_v9  ;;  %v25329_v29 = vrot.slane %v20376_v46, 4  ;;  %v3877_v34 = vld [vmem:[#allocation3 + $0x10] sm:$0xff]  ;;  %v3159_v13 = vld [vmem:[#allocation2 + $0x44] sm:$0x33]  ;;  %v20387_v53 = vrot.slane %v1321_v49, 6  ;;  %vm25733_vm10 = vmmov %vm25721_vm3 }
 0x192   : > { %25722 = vst [vmem:[#allocation44_spill] sm:$0xff] %v20370_v28  ;;  %v20374_v21 = vsel %vm25711_vm13, %v2158_v25, %v20346_v23  ;;  %v1748_v17 = vmul.bf16 %v20370_v28, %v1555_v61  ;;  %v17468_v25 = vcombine.high %v3877_v34, %v3893_v26  ;;  %v17500_v58 = vcombine.high %v3909_v60, %v3925_v32  ;;  %vm25735_vm3 = vmmov %vm25668_vm0 }
 0x193   : > { %25723 = vst [vmem:[#allocation45_spill] sm:$0xff] %v20374_v21  ;;  %v20383_v5 = vmul.bf16 %v20374_v21, %v2085_v35  ;;  %v1024_v61 = vsel %vm25668_vm0, %v25724_v19, %v25329_v29  ;;  %v2041_v35 = vld [vmem:[#allocation3 + $0xa0] sm:$0x11]  ;;  %4381 = vmatpush1.bf16.msra.mxu1 %v4248_v41  ;;  %v20399_v21 = vadd.s32 3072, %v18991_v2  ;;  %vm25725_vm12 = vcmask 515072   ;;  %v20412_v19 = vpop.permute.xlu0 %3229  ;;  %vm25736_vm13 = vmmov %vm25733_vm10 }
 0x194   : > { %v20391_v50 = vrot.slane %v1748_v17, 5  ;;  %v20403_v49 = vsel %vm25725_vm12, %v1024_v61, %v20376_v46  ;;  %v25727_v30 = vrot.slane %v20378_v24, 4  ;;  %v25728_v17 = vrot.slane %v20165_v12, 4  ;;  %4419 = vmatprep.subr.bf16.mxu1 %v17468_v25  ;;  %v20410_v4 = vpop.permute.xlu1 %1101  ;;  %vm25730_vm14 = vmmov %vm25725_vm12 }
 0x195   : > { %25726 = vst [vmem:[#allocation46_spill] sm:$0xff] %v20403_v49  ;;  %v17467_v41 = vcombine.low %v3877_v34, %v3893_v26  ;;  %v17499_v29 = vcombine.low %v3909_v60, %v3925_v32  ;;  %v2265_v22 = vshrl.u32 %v20383_v5, 16  ;;  %v3176_v54 = vmul.bf16 %v3159_v13, %v20403_v49  ;;  %v3335_v34 = vld [vmem:[#allocation3 + $0x120] sm:$0x66]  ;;  %vm25739_vm12 = vmmov %vm25668_vm0 }
 0x196   : > { %v1950_v52 = vsel %vm25729_vm6, %v25728_v17, %v25727_v30  ;;  %v25338_v14 = vrot.slane %v20410_v4, 4  ;;  %v1203_v30 = vld [vmem:[#allocation3 + $0x20] sm:$0x33]  ;;  %v25337_v25 = vrot.slane %v20412_v19, 4  ;;  %17528 = vmatmul.mubr.msk.bf16.vlgmr.msra.gmra.mrb[4].mxu1 %vm25389_vm1, %v20335_v18  ;;  %v1065_v26 = vmul.bf16 %v20403_v49, %v870_v3 }
 0x197   : > { %v1951_v61 = vsel %vm25730_vm14, %v20165_v12, %v1950_v52  ;;  %v1799_v60 = vrot.slane %v20391_v50, 4  ;;  %v25731_v52 = vrot.slane %v19898_v39, 4  ;;  %4420 = vmatpush1.bf16.msra.mxu1 %v17467_v41  ;;  %v4257_v13 = vand.u32 %v17500_v58, %v20287_v51  ;;  %4451 = vmatprep.mubr.bf16.mxu1 %v25720_v44 }
 0x198   : > { %v2042_v16 = vsel %vm20047_vm15, %v1951_v61, %v2041_v35  ;;  %v1327_v32 = vor.u32 %v20389_v47, %v20387_v53  ;;  %v20435_v35 = vld [vmem:[#allocation3 + $0x118] sm:$0xff]  ;;  %v20438_v3 = vadd.s32 3200, %v18991_v2  ;;  %v25734_v17 = vrot.slane %v20229_v43, 4  ;;  %1107 = vrot.lane.b32.xlu1 %v1065_v26, %s18857_s16  ;;  %v20449_v58 = vpop.permute.xlu1 %2632  ;;  %v20451_v47 = vpop.permute.xlu0 %2337 }
 0x199   : > { %2043 = vst [vmem:[#allocation3 + $0xa0] sm:$0x11] %v2042_v16  ;;  %v1151_v12 = vsel %vm25732_vm9, %v25731_v52, %v25338_v14  ;;  %1858 = vrot.lane.b32.xlu0 %v1799_v60, %s18858_s18  ;;  %v4254_v53 = vand.u32 %v17499_v29, %v20287_v51  ;;  %v3894_v61 = vld [vmem:[#allocation3 + $0x98] sm:$0xff]  ;;  %4421 = vmatprep.subr.bf16.mxu1 %v4257_v13  ;;  %v25343_v26 = vrot.slane %v20449_v58, 4  ;;  %v25342_v60 = vrot.slane %v20451_v47, 4  ;;  %vm25744_vm9 = vmmov %vm25668_vm0 }
 0x19a   : > { %v1152_v16 = vsel %vm25733_vm10, %v19898_v39, %v1151_v12  ;;  %v3278_v41 = vsel %vm25735_vm3, %v25734_v17, %v25337_v25  ;;  %v3926_v17 = vld [vmem:[#allocation3 + $0x198] sm:$0x33]  ;;  %v2267_v25 = vrot.slane %v2265_v22, 7  ;;  %v3210_v49 = vrot.slane %v3176_v54, 7  ;;  %vm25747_vm3 = vmmov %vm25668_vm0 }
 0x19b   : > { %v1204_v39 = vsel %vm19041_vm2, %v1152_v16, %v1203_v30  ;;  %v3279_v12 = vsel %vm25736_vm13, %v20229_v43, %v3278_v41  ;;  %v2607_v14 = vld [vmem:[#allocation2 + $0x44] sm:$0x33]  ;;  %v17502_v10 = vcombine.high %v20435_v35, %v3926_v17  ;;  %v25737_v43 = vrot.slane %v19638_v38, 4  ;;  %4422 = vmatpush1.bf16.msra.mxu1 %v4254_v53 }
 0x19c   : > { %1205 = vst [vmem:[#allocation3 + $0x20] sm:$0x33] %v1204_v39  ;;  %v3336_v29 = vsel %vm19963_vm8, %v3279_v12, %v3335_v34  ;;  %v3878_v52 = vld [vmem:[#allocation3 + $0x18] sm:$0xff]  ;;  %v25738_v22 = vrot.slane %v20243_v33, 4  ;;  %v350_v54 = vand.u32 63, %v20438_v3  ;;  %v2268_v41 = vshll.u32 %v20383_v5, 16  ;;  %2638 = vrot.lane.b32.xlu1 %v20151_v8, %s18860_s23  ;;  %v20485_v12 = vpop.permute.xlu1 %1402  ;;  %v20487_v53 = vpop.permute.xlu0 %3534 }
 0x19d   : > { %3337 = vst [vmem:[#allocation3 + $0x120] sm:$0x66] %v3336_v29  ;;  %v2679_v30 = vsel %vm25668_vm0, %v25737_v43, %v25343_v26  ;;  %v17470_v34 = vcombine.high %v3878_v52, %v3894_v61  ;;  %v3379_v16 = vld [vmem:[#allocation2 + $0x44] sm:$0x33]  ;;  %vm25740_vm6 = vcmask 7168   ;;  %3235 = vrot.lane.b32.xlu0 %v3210_v49, %s18857_s16  ;;  %v17469_v29 = vcombine.low %v3878_v52, %v3894_v61 }
 0x19e   : > { %v2387_v13 = vsel %vm25739_vm12, %v25738_v22, %v25342_v60  ;;  %v20478_v39 = vsel %vm25740_vm6, %v2679_v30, %v20449_v58  ;;  %vm25742_vm14 = vmmov %vm25740_vm6  ;;  %v25351_v5 = vrot.slane %v20485_v12, 4  ;;  %v25347_v30 = vrot.slane %v20487_v53, 4  ;;  %17529 = vmatmul.mubr.msk.bf16.vlgmr.msra.gmra.mrb[8].mxu1 %vm25389_vm1, %v20335_v18 }
 0x19f   : > { %25741 = vst [vmem:[#allocation47_spill] sm:$0xff] %v20478_v39  ;;  %v2388_v38 = vsel %vm25742_vm14, %v20243_v33, %v2387_v13  ;;  %v2720_v43 = vmul.bf16 %v20478_v39, %v2607_v14  ;;  %4460 = vmatprep.subr.bf16.mxu1 %v17470_v34  ;;  %v17501_v22 = vcombine.low %v20435_v35, %v3926_v17  ;;  %v3453_v13 = vshrl.u32 %v3379_v16, 16  ;;  %vm25755_vm6 = vmmov %vm25747_vm3  ;;  %v2608_v39 = vld [vmem:[#allocation2 + $0x4c] sm:$0x33] }
 0x1a0   : > { %v2444_v33 = vld [vmem:[#allocation3 + $0xa0] sm:$0x33]  ;;  %v2270_v8 = vor.u32 %v2268_v41, %v2267_v25  ;;  %v4263_v49 = vand.u32 %v17502_v10, %v20287_v51  ;;  %v25743_v61 = vrot.slane %v20259_v36, 4  ;;  %4461 = vmatpush1.bf16.msra.mxu1 %v17469_v29  ;;  %4492 = vmatprep.mubr.bf16.mxu1 %v25720_v44  ;;  %vm25745_vm10 = vcmask 523264   ;;  %v20513_v17 = vpop.permute.xlu1 %1818  ;;  %v20515_v34 = vpop.permute.xlu0 %1662 }
 0x1a1   : > { %v2762_v60 = vshll.u32 %v2720_v43, 16  ;;  %v2837_v26 = vshrl.u32 %v2720_v43, 16  ;;  %v2445_v14 = vsel %vm20213_vm5, %v2388_v38, %v2444_v33  ;;  %v25746_v10 = vrot.slane %v20305_v40, 4  ;;  %1408 = vrot.lane.b32.xlu1 %v1327_v32, %s18861_s29  ;;  %vm25751_vm0 = vmmov %vm25745_vm10 }
 0x1a2   : > { %v1452_v52 = vsel %vm25744_vm9, %v25743_v61, %v25351_v5  ;;  %2446 = vst [vmem:[#allocation3 + $0xa0] sm:$0x33] %v2445_v14  ;;  %2343 = vrot.lane.b32.xlu0 %v2270_v8, %s18860_s23  ;;  %v25748_v41 = vand.u32 63, %v20399_v21  ;;  %4462 = vmatprep.subr.bf16.mxu1 %v4263_v49  ;;  %v25346_v32 = vrot.slane %v20513_v17, 4  ;;  %v4260_v33 = vand.u32 %v17501_v22, %v20287_v51  ;;  %v20533_v14 = vld [vmem:[#allocation2 + $0x4c] sm:$0x33]  ;;  %vm25758_vm9 = vmmov %vm25747_vm3 }
 0x1a3   : > { %v1453_v25 = vsel %vm25745_vm10, %v20259_v36, %v1452_v52  ;;  %v3583_v35 = vsel %vm25747_vm3, %v25746_v10, %v25347_v30  ;;  %v3456_v36 = vshll.u32 %v3379_v16, 16  ;;  %v1511_v29 = vld [vmem:[#allocation3 + $0x20] sm:$0x66]  ;;  %vm20529_vm12 = vcmp.gt.s32.totalorder %v350_v54, 0 }
 0x1a4   : > { %vm20519_vm13 = vcmp.gt.s32.totalorder %v25748_v41, 0  ;;  %v3584_v43 = vsel %vm25751_vm0, %v20305_v40, %v3583_v35  ;;  %v20535_v61 = vrot.slane %v2762_v60, 5  ;;  %v2839_v16 = vrot.slane %v2837_v26, 4  ;;  %v3640_v40 = vld [vmem:[#allocation3 + $0x120] sm:$0xcc]  ;;  %4463 = vmatpush1.bf16.msra.mxu1 %v4260_v33 }
 0x1a5   : > { %v1512_v52 = vsel %vm19767_vm4, %v1453_v25, %v1511_v29  ;;  %v25344_v49 = vrot.slane %v20515_v34, 4  ;;  %v3641_v22 = vsel %vm19378_vm7, %v3584_v43, %v3640_v40  ;;  %v25754_v10 = vrot.slane %v20261_v45, 4  ;;  %v3684_v60 = vld [vmem:[#allocation2 + $0x44] sm:$0x33]  ;;  %v20558_v43 = vpop.permute.xlu1 %3737  ;;  %v3160_v5 = vld [vmem:[#allocation2 + $0x4c] sm:$0x33] }
 0x1a6   : > { %1513 = vst [vmem:[#allocation3 + $0x20] sm:$0x66] %v1512_v52  ;;  %v20547_v41 = vrot.slane %v3453_v13, 5  ;;  %3642 = vst [vmem:[#allocation3 + $0x120] sm:$0xcc] %v3641_v22  ;;  %vm25756_vm14 = vcmask 515072   ;;  %1824 = vrot.lane.b32.xlu0 %v20391_v50, %s18858_s18  ;;  %v20560_v52 = vpop.permute.xlu0 %977 }
 0x1a7   : > { %v1918_v35 = vsel %vm25755_vm6, %v25754_v10, %v25346_v32  ;;  %v25757_v25 = vrot.slane %v20344_v9, 4  ;;  %v20562_v33 = vrot.slane %v3456_v36, 6  ;;  %v3461_v13 = vshrl.u32 %v20533_v14, 16  ;;  %v3838_v22 = vld [vmem:[#allocation3 + $0x1a0] sm:$0x33]  ;;  %17530 = vmatmul.mubr.msk.bf16.vlgmr.msra.gmra.mrb[12].mxu1 %vm25389_vm1, %v20335_v18  ;;  %vm25769_vm6 = vmmov %vm25747_vm3 }
 0x1a8   : > { %v1919_v26 = vsel %vm25756_vm14, %v20261_v45, %v1918_v35  ;;  %v25345_v45 = vrot.slane %v20558_v43, 4  ;;  %v25349_v40 = vrot.slane %v20560_v52, 4  ;;  %v17375_v9 = vsel %vm20519_vm13, 1.0, %v25556_v55  ;;  %v1556_v35 = vld [vmem:[#allocation2 + $0x48] sm:$0x33]  ;;  %4533 = vmatprep.mubr.bf16.mxu1 %v25720_v44 }
 0x1a9   : > { %v1709_v29 = vsel %vm25758_vm9, %v25757_v25, %v25344_v49  ;;  %2010 = vst [vmem:[#allocation3 + $0x20] sm:$0x88] %v1919_v26  ;;  %v17376_v50 = vsel %vm20529_vm12, 1.0, %v25556_v55  ;;  %v3701_v10 = vmul.bf16 %v3684_v60, %v20370_v28  ;;  %v2840_v36 = vor.u32 %v2839_v16, %v20535_v61  ;;  %vm25767_vm12 = vmmov %vm25756_vm14  ;;  %v627_v49 = vld [vmem:[%s19022_s21 + $0x60] sm:$0x77] }
 0x1aa   : > { %vm25759_vm10 = vcmask 531456   ;;  %v25761_v38 = vrot.slane %v20284_v20, 4  ;;  %v25762_v25 = vand.u32 63, %v20399_v21  ;;  %vm20594_vm0 = vcmp.lt.s32.totalorder %v350_v54, 63  ;;  %v20604_v21 = vpop.permute.xlu0 %1103  ;;  %v1206_v32 = vld [vmem:[#allocation3 + $0x28] sm:$0x33]  ;;  %vm25771_vm14 = vmmov %vm25747_vm3 }
 0x1ab   : > { %v20579_v26 = vsel %vm25759_vm10, %v1709_v29, %v20515_v34  ;;  %3743 = vrot.lane.b32.xlu0 %v3701_v10, %s18858_s18  ;;  %v20610_v54 = vrot.slane %v3461_v13, 5  ;;  %v2841_v13 = vrot.slane %v2840_v36, 4  ;;  %vm25773_vm9 = vmmov %vm25747_vm3  ;;  %v659_v60 = vcombine.high %v627_v49, %v627_v49 }
 0x1ac   : > { %25760 = vst [vmem:[#allocation48_spill] sm:$0xff] %v20579_v26  ;;  %v3786_v8 = vsel %vm25747_vm3, %v25761_v38, %v25345_v45  ;;  %vm20588_vm13 = vcmp.lt.s32.totalorder %v25762_v25, 63  ;;  %v20602_v38 = vpop.permute.xlu1 %2926  ;;  %v20606_v25 = vpack.c.bf16 %v17376_v50, %v17375_v9  ;;  %v25350_v9 = vrot.slane %v20604_v21, 4  ;;  %vm25774_vm10 = vmmov %vm25767_vm12 }
 0x1ad   : > { %v3787_v29 = vsel %vm25767_vm12, %v20284_v20, %v3786_v8  ;;  %v25768_v20 = vrot.slane %v20376_v46, 4  ;;  %v25348_v8 = vrot.slane %v20602_v38, 4  ;;  %v1749_v50 = vmul.bf16 %v20579_v26, %v1556_v35 }
 0x1ae   : > { %v3839_v45 = vsel %vm19041_vm2, %v3787_v29, %v3838_v22  ;;  %v17407_v30 = vsel %vm20588_vm13, 1.0, %v25556_v55  ;;  %v17408_v22 = vsel %vm20594_vm0, 1.0, %v25556_v55  ;;  %v25770_v46 = vrot.slane %v20307_v0, 4  ;;  %vm25780_vm0 = vmmov %vm25769_vm6 }
 0x1af   : > { %v1026_v10 = vsel %vm25769_vm6, %v25768_v20, %v25349_v40  ;;  %3840 = vst [vmem:[#allocation3 + $0x1a0] sm:$0x33] %v3839_v45  ;;  %v25772_v45 = vrot.slane %v20410_v4, 4  ;;  %v20640_v35 = vadd.s32 3328, %v18991_v2  ;;  %vm25775_vm3 = vcmask 1039360   ;;  %2932 = vrot.lane.b32.xlu0 %v2841_v13, %s18859_s22  ;;  %v20653_v40 = vpop.permute.xlu0 %2634  ;;  %vm25782_vm12 = vmmov %vm25780_vm0 }
 0x1b0   : > { %v3024_v29 = vsel %vm25771_vm14, %v25770_v46, %v25348_v8  ;;  %v20644_v16 = vsel %vm25774_vm10, %v1026_v10, %v20560_v52  ;;  %vm25776_vm13 = vcmask 531456   ;;  %v20651_v8 = vpop.permute.xlu1 %2112  ;;  %v3464_v3 = vshll.u32 %v20533_v14, 16  ;;  %v2086_v13 = vld [vmem:[#allocation2 + $0x48] sm:$0x33]  ;;  %vm25783_vm6 = vmmov %vm25775_vm3 }
 0x1b1   : > { %v1153_v36 = vsel %vm25773_vm9, %v25772_v45, %v25350_v9  ;;  %v3025_v20 = vsel %vm25775_vm3, %v20307_v0, %v3024_v29  ;;  %25777 = vst [vmem:[#allocation49_spill] sm:$0xff] %v20651_v8  ;;  %v3879_v45 = vld [vmem:[#allocation3 + $0x20] sm:$0xff]  ;;  %v25356_v0 = vrot.slane %v20651_v8, 4  ;;  %v25357_v29 = vrot.slane %v20653_v40, 4  ;;  %vm25792_vm10 = vmmov %vm25780_vm0 }
 0x1b2   : > { %v1154_v46 = vsel %vm25776_vm13, %v20410_v4, %v1153_v36  ;;  %v3895_v9 = vld [vmem:[#allocation3 + $0xa0] sm:$0xff]  ;;  %3139 = vst [vmem:[#allocation3 + $0x120] sm:$0x11] %v3025_v20  ;;  %v20660_v36 = vrot.slane %v1749_v50, 5  ;;  %v20662_v6 = vpack.c.bf16 %v17408_v22, %v17407_v30  ;;  %v20665_v14 = vadd.s32 3456, %v18991_v2  ;;  %vm25795_vm3 = vmmov %vm25780_vm0 }
 0x1b3   : > { %v1207_v10 = vsel %vm19041_vm2, %v1154_v46, %v1206_v32  ;;  %v17472_v4 = vcombine.high %v3879_v45, %v3895_v9  ;;  %v17471_v28 = vcombine.low %v3879_v45, %v3895_v9  ;;  %v25779_v32 = vrot.slane %v20346_v23, 4  ;;  %v850_v22 = vld [vmem:[#allocation2 + $0x64] sm:$0x33]  ;;  %2118 = vrot.lane.b32.xlu0 %v20606_v25, %s18859_s22 }
 0x1b4   : > { %25778 = vst [vmem:[#allocation50_spill] sm:$0xff] %v20660_v36  ;;  %1208 = vst [vmem:[#allocation3 + $0x28] sm:$0x33] %v1207_v10  ;;  %v25781_v50 = vrot.slane %v20449_v58, 4  ;;  %v18055_v30 = vpack.c.bf16 %v659_v60, %v627_v49  ;;  %v3177_v45 = vmul.bf16 %v3160_v5, %v20644_v16  ;;  %vm25785_vm14 = vcmask 7168   ;;  %v20689_v58 = vpop.permute.xlu1 %1854 }
 0x1b5   : > { %v2160_v20 = vsel %vm25780_vm0, %v25779_v32, %v25356_v0  ;;  %4501 = vmatprep.subr.bf16.mxu1 %v17472_v4  ;;  %v20691_v4 = vpop.permute.xlu0 %1404  ;;  %v20693_v49 = vrot.slane %v3464_v3, 6  ;;  %v2487_v60 = vld [vmem:[#allocation2 + $0x3c] sm:$0x33]  ;;  %v2488_v5 = vld [vmem:[#allocation2 + $0x44] sm:$0x33]  ;;  %v1800_v9 = vrot.slane %v20660_v36, 4  ;;  %vm25796_vm13 = vnez %v25519_v1 }
 0x1b6   : > { %v2681_v46 = vsel %vm25782_vm12, %v25781_v50, %v25357_v29  ;;  %v20681_v10 = vsel %vm25783_vm6, %v2160_v20, %v20651_v8  ;;  %4502 = vmatpush1.bf16.msra.mxu1 %v17471_v28  ;;  %v2572_v0 = vld [vmem:[#allocation3 + $0xb8] sm:$0xcc]  ;;  %v2575_v29 = vld [vmem:[#allocation3 + $0xc0] sm:$0xcc]  ;;  %v851_v28 = vsel %vm19041_vm2, %v18055_v30, %v850_v22  ;;  %v2519_v3 = vrot.slane %v2487_v60, 6  ;;  %vm25800_vm6 = vmmov %vm25795_vm3 }
 0x1b7   : > { %25784 = vst [vmem:[#allocation51_spill] sm:$0xff] %v20681_v10  ;;  %v20685_v23 = vsel %vm25785_vm14, %v2681_v46, %v20653_v40  ;;  %v2200_v32 = vmul.bf16 %v20681_v10, %v2086_v13  ;;  %v2520_v27 = vrot.slane %v2488_v5, 6  ;;  %v2044_v13 = vld [vmem:[#allocation3 + $0xa8] sm:$0x11]  ;;  %852 = vst [vmem:[#allocation2 + $0x64] sm:$0x33] %v851_v28  ;;  %1860 = vrot.lane.b32.xlu0 %v1800_v9, %s18858_s18 }
 0x1b8   : > { %25786 = vst [vmem:[#allocation52_spill] sm:$0xff] %v20685_v23  ;;  %v20697_v20 = vmul.bf16 %v20685_v23, %v2608_v39  ;;  %v25787_v23 = vand.u32 63, %v20640_v35  ;;  %v25790_v46 = vrot.slane %v20689_v58, 4  ;;  %v25791_v10 = vrot.slane %v20378_v24, 4  ;;  %v20723_v39 = vpop.permute.xlu1 %3231 }
 0x1b9   : > { %v2272_v63 = vshrl.u32 %v2200_v32, 16  ;;  %v25793_v22 = vrot.slane %v20691_v4, 4  ;;  %v25794_v60 = vrot.slane %v20485_v12, 4  ;;  %v3911_v59 = vld [vmem:[#allocation3 + $0x120] sm:$0xff]  ;;  %v2573_v28 = vsel %vm25796_vm13, %v2519_v3, %v2572_v0 }
 0x1ba   : > { %v2766_v7 = vshll.u32 %v20697_v20, 16  ;;  %vm20708_vm9 = vcmp.lt.s32.totalorder %v25787_v23, 63  ;;  %v1952_v30 = vsel %vm25792_vm10, %v25791_v10, %v25790_v46  ;;  %v20725_v23 = vpop.permute.xlu0 %18690  ;;  %v2576_v8 = vsel %vm25796_vm13, %v2520_v27, %v2575_v29  ;;  %2574 = vst [vmem:[#allocation3 + $0xb8] sm:$0xcc] %v2573_v28 }
 0x1bb   : > { %v1454_v5 = vsel %vm25795_vm3, %v25794_v60, %v25793_v22  ;;  %v2274_v10 = vrot.slane %v2272_v63, 7  ;;  %vm25797_vm0 = vcmask 515072   ;;  %v1514_v22 = vld [vmem:[#allocation3 + $0x28] sm:$0x66]  ;;  %v3211_v60 = vrot.slane %v3177_v45, 7 }
 0x1bc   : > { %v20731_v46 = vrot.slane %v2766_v7, 5  ;;  %v1953_v26 = vsel %vm25797_vm0, %v20378_v24, %v1952_v30  ;;  %2577 = vst [vmem:[#allocation3 + $0xc0] sm:$0xcc] %v2576_v8  ;;  %vm25798_vm12 = vcmask 523264   ;;  %v3259_v0 = vrot.slane %v20723_v39, 4  ;;  %vm25805_vm0 = vmmov %vm25795_vm3 }
 0x1bd   : > { %v2045_v9 = vsel %vm20047_vm15, %v1953_v26, %v2044_v13  ;;  %v1455_v36 = vsel %vm25798_vm12, %v20485_v12, %v1454_v5  ;;  %v25372_v27 = vunpack.i.h.bf16 %v20725_v23  ;;  %v3927_v63 = vld [vmem:[#allocation3 + $0x1a0] sm:$0x33]  ;;  %v3338_v24 = vld [vmem:[#allocation3 + $0x128] sm:$0x66]  ;;  %v18692_v29 = vunpack.i.l.bf16 %v20725_v23  ;;  %3237 = vrot.lane.b32.xlu0 %v3211_v60, %s18857_s16  ;;  %vm25807_vm12 = vmmov %vm25805_vm0 }
 0x1be   : > { %2046 = vst [vmem:[#allocation3 + $0xa8] sm:$0x11] %v2045_v9  ;;  %v1515_v7 = vsel %vm19767_vm4, %v1455_v36, %v1514_v22  ;;  %v18694_v8 = vpack.i.bf16 %v20731_v46, %v20535_v61  ;;  %v17504_v45 = vcombine.high %v3911_v59, %v3927_v63  ;;  %v2275_v26 = vshll.u32 %v2200_v32, 16  ;;  %v20756_v36 = vpop.permute.xlu1 %2339  ;;  %v20758_v30 = vpop.permute.xlu0 %3536  ;;  %v853_v9 = vld [vmem:[#allocation2 + $0x6c] sm:$0x33] }
 0x1bf   : > { %1516 = vst [vmem:[#allocation3 + $0x28] sm:$0x66] %v1515_v7  ;;  %v25799_v12 = vrot.slane %v20412_v19, 4  ;;  %v20753_v13 = vrot.slane %v25372_v27, 4  ;;  %v17503_v61 = vcombine.low %v3911_v59, %v3927_v63  ;;  %vm25801_vm14 = vcmask 531456  }
 0x1c0   : > { %v2956_v5 = vrot.slane %v18692_v29, 4  ;;  %v2367_v28 = vrot.slane %v20756_v36, 4  ;;  %18695 = vrot.lane.b32.xlu1 %v18694_v8, %s18859_s22  ;;  %v25802_v22 = vand.u32 63, %v20665_v14  ;;  %v3102_v7 = vld [vmem:[#allocation3 + $0xa8] sm:$0x88]  ;;  %v4269_v63 = vand.u32 %v17504_v45, %v20287_v51 }
 0x1c1   : > { %v3280_v3 = vsel %vm25800_vm6, %v25799_v12, %v3259_v0  ;;  %v3105_v59 = vld [vmem:[#allocation3 + $0xb0] sm:$0x88]  ;;  %v2277_v12 = vor.u32 %v2275_v26, %v2274_v10  ;;  %v628_v27 = vld [vmem:[%s19022_s21 + $0x68] sm:$0x77]  ;;  %v25808_v45 = vunpack.i.h.bf16 %v20282_v56  ;;  %vm25809_vm6 = vcmask 1039360  }
 0x1c2   : > { %v3281_v32 = vsel %vm25801_vm14, %v20412_v19, %v3280_v3  ;;  %vm20766_vm10 = vcmp.lt.s32.totalorder %v25802_v22, 63  ;;  %v4266_v19 = vand.u32 %v17503_v61, %v20287_v51  ;;  %v2994_v8 = vsel %vm25795_vm3, %v20296_v48, %v2956_v5  ;;  %vm25810_vm14 = vmmov %vm25809_vm6  ;;  %4503 = vmatprep.subr.bf16.mxu1 %v4269_v63  ;;  %v20791_v61 = vpop.permute.xlu1 %1820 }
 0x1c3   : > { %v3339_v60 = vsel %vm19963_vm8, %v3281_v32, %v3338_v24  ;;  %v2996_v3 = vsel %vm25805_vm0, %v2956_v5, %v20753_v13  ;;  %v25806_v22 = vrot.slane %v20451_v47, 4  ;;  %v25377_v32 = vrot.slane %v20758_v30, 4  ;;  %v20793_v5 = vpop.permute.xlu0 %1664  ;;  %2345 = vrot.lane.b32.xlu0 %v2277_v12, %s18860_s23 }
 0x1c4   : > { %3340 = vst [vmem:[#allocation3 + $0x128] sm:$0x66] %v3339_v60  ;;  %v2995_v10 = vsel %vm25809_vm6, %v25808_v45, %v2994_v8  ;;  %v2997_v26 = vsel %vm25810_vm14, %v18692_v29, %v2996_v3  ;;  %vm25811_vm3 = vcmask 7168   ;;  %v3467_v60 = vor.u32 %v20693_v49, %v20610_v54  ;;  %4504 = vmatpush1.bf16.msra.mxu1 %v4266_v19  ;;  %v1248_v8 = vld [vmem:[#allocation2 + $0x48] sm:$0x33] }
 0x1c5   : > { %v2389_v24 = vsel %vm25807_vm12, %v25806_v22, %v2367_v28  ;;  %v3103_v22 = vsel %vm20128_vm11, %v2995_v10, %v3102_v7  ;;  %v3106_v56 = vsel %vm20128_vm11, %v2997_v26, %v3105_v59  ;;  %v1882_v29 = vrot.slane %v20791_v61, 4  ;;  %v2447_v54 = vld [vmem:[#allocation3 + $0xa8] sm:$0x33] }
 0x1c6   : > { %v2390_v48 = vsel %vm25811_vm3, %v20451_v47, %v2389_v24  ;;  %v25812_v47 = vand.u32 63, %v20640_v35  ;;  %3104 = vst [vmem:[#allocation3 + $0xa8] sm:$0x88] %v3103_v22  ;;  %3107 = vst [vmem:[#allocation3 + $0xb0] sm:$0x88] %v3106_v56  ;;  %v25815_v49 = vor.u32 %v20562_v33, %v20547_v41  ;;  %v17409_v7 = vsel %vm20708_vm9, 1.0, %v25556_v55  ;;  %v20839_v45 = vpop.permute.xlu1 %3739 }
 0x1c7   : > { %v17410_v35 = vsel %vm20766_vm10, 1.0, %v25556_v55  ;;  %v25816_v59 = vand.u32 63, %v20665_v14  ;;  %v660_v12 = vcombine.high %v628_v27, %v628_v27  ;;  %v2448_v3 = vsel %vm20213_vm5, %v2390_v48, %v2447_v54  ;;  %v20841_v10 = vpop.permute.xlu0 %979  ;;  %17531 = vmatmul.mubr.msk.bf16.vlgmr.msra.gmra.mrb[16].mxu1 %vm25389_vm1, %v20335_v18  ;;  %3542 = vrot.lane.b32.xlu0 %v3467_v60, %s18861_s29  ;;  %v1249_v19 = vld [vmem:[#allocation2 + $0x50] sm:$0x33] }
 0x1c8   : > { %vm20805_vm0 = vcmp.gt.s32.totalorder %v25812_v47, 0  ;;  %3540 = vrot.lane.b32.xlu1 %v25815_v49, %s18861_s29  ;;  %v25819_v41 = vrot.slane %v20487_v53, 4  ;;  %vm25820_vm6 = vcmask 1043456   ;;  %v25821_v50 = vrot.slane %v20513_v17, 4  ;;  %2449 = vst [vmem:[#allocation3 + $0xa8] sm:$0x33] %v2448_v3  ;;  %4574 = vmatprep.mubr.bf16.mxu1 %v25720_v44 }
 0x1c9   : > { %vm20821_vm12 = vcmp.gt.s32.totalorder %v25816_v59, 0  ;;  %vm25822_vm9 = vmmov %vm25820_vm6  ;;  %vm25823_vm10 = vcmask 515072   ;;  %v17377_v26 = vsel %vm20805_vm0, 1.0, %v25556_v55  ;;  %v1329_v48 = vshrl.u32 %v1248_v8, 16 }
 0x1ca   : > { %v3585_v33 = vsel %vm25820_vm6, %v25819_v41, %v25377_v32  ;;  %v1920_v14 = vsel %vm25822_vm9, %v25821_v50, %v1882_v29  ;;  %v18056_v22 = vpack.c.bf16 %v660_v12, %v628_v27  ;;  %v25378_v56 = vrot.slane %v20839_v45, 4  ;;  %v3841_v27 = vld [vmem:[#allocation3 + $0x1a8] sm:$0x33]  ;;  %vm25826_vm3 = vmmov %vm25820_vm6  ;;  %v20872_v12 = vpop.permute.xlu1 %2928 }
 0x1cb   : > { %v1921_v24 = vsel %vm25823_vm10, %v20513_v17, %v1920_v14  ;;  %v25374_v17 = vrot.slane %v20841_v10, 4  ;;  %v20851_v47 = vpack.c.bf16 %v17410_v35, %v17409_v7  ;;  %v17378_v54 = vsel %vm20821_vm12, 1.0, %v25556_v55  ;;  %v3643_v63 = vld [vmem:[#allocation3 + $0x128] sm:$0xcc]  ;;  %vm25827_vm0 = vmmov %vm25823_vm10 }
 0x1cc   : > { %2011 = vst [vmem:[#allocation3 + $0x28] sm:$0x88] %v1921_v24  ;;  %vm25824_vm14 = vcmask 523264   ;;  %1668 = vrot.lane.b32.xlu1 %v20662_v6, %s18857_s16  ;;  %v1332_v60 = vshll.u32 %v1248_v8, 16  ;;  %v854_v49 = vsel %vm19041_vm2, %v18056_v22, %v853_v9  ;;  %v25825_v35 = vrot.slane %v20558_v43, 4  ;;  %v20874_v8 = vpop.permute.xlu0 %1105  ;;  %vm25829_vm12 = vmmov %vm25826_vm3 }
 0x1cd   : > { %v3586_v18 = vsel %vm25824_vm14, %v20487_v53, %v3585_v33  ;;  %855 = vst [vmem:[#allocation2 + $0x6c] sm:$0x33] %v854_v49  ;;  %v20876_v3 = vpack.c.bf16 %v17378_v54, %v17377_v26  ;;  %v20878_v41 = vrot.slane %v1329_v48, 6  ;;  %v3381_v33 = vld [vmem:[#allocation2 + $0x54] sm:$0x33]  ;;  %v25828_v14 = vrot.slane %v20560_v52, 4  ;;  %1670 = vrot.lane.b32.xlu0 %v20851_v47, %s18857_s16  ;;  %vm25831_vm6 = vmmov %vm25826_vm3 }
 0x1ce   : > { %v3644_v7 = vsel %vm19378_vm7, %v3586_v18, %v3643_v63  ;;  %v3788_v59 = vsel %vm25826_vm3, %v25825_v35, %v25378_v56  ;;  %v25373_v24 = vrot.slane %v20874_v8, 4  ;;  %v871_v26 = vld [vmem:[#allocation2 + $0x48] sm:$0x33]  ;;  %v1209_v48 = vld [vmem:[#allocation3 + $0x30] sm:$0x33]  ;;  %v20893_v22 = vrot.slane %v1332_v60, 7  ;;  %vm25833_vm9 = vmmov %vm25826_vm3 }
 0x1cf   : > { %3645 = vst [vmem:[#allocation3 + $0x128] sm:$0xcc] %v3644_v7  ;;  %v3789_v53 = vsel %vm25827_vm0, %v20558_v43, %v3788_v59  ;;  %v1028_v9 = vsel %vm25829_vm12, %v25828_v14, %v25374_v17  ;;  %v25375_v43 = vrot.slane %v20872_v12, 4  ;;  %v1337_v54 = vshrl.u32 %v1249_v19, 16  ;;  %vm25834_vm10 = vmmov %vm25827_vm0 }
 0x1d0   : > { %v3842_v50 = vsel %vm19041_vm2, %v3789_v53, %v3841_v27  ;;  %983 = vrot.lane.b32.xlu1 %v20606_v25, %s18858_s18  ;;  %v1340_v63 = vshll.u32 %v1249_v19, 16  ;;  %v20896_v52 = vadd.s32 3584, %v18991_v2  ;;  %v25830_v18 = vrot.slane %v20602_v38, 4  ;;  %v20916_v53 = vpop.permute.xlu1 %2114  ;;  %vm25838_vm0 = vmmov %vm25831_vm6 }
 0x1d1   : > { %3843 = vst [vmem:[#allocation3 + $0x1a8] sm:$0x33] %v3842_v50  ;;  %v25832_v49 = vrot.slane %v20604_v21, 4  ;;  %v3469_v25 = vshrl.u32 %v3381_v33, 16  ;;  %v3472_v60 = vshll.u32 %v3381_v33, 16  ;;  %v20910_v35 = vsel %vm25834_vm10, %v1028_v9, %v20841_v10  ;;  %v20918_v50 = vpop.permute.xlu0 %2636  ;;  %985 = vrot.lane.b32.xlu0 %v20876_v3, %s18858_s18  ;;  %vm25846_vm10 = vmmov %vm25838_vm0 }
 0x1d2   : > { %v3026_v27 = vsel %vm25831_vm6, %v25830_v18, %v25375_v43  ;;  %vm25835_vm14 = vcmask 1039360   ;;  %vm25836_vm3 = vcmask 531456   ;;  %v1066_v14 = vmul.bf16 %v20644_v16, %v871_v26  ;;  %v872_v18 = vld [vmem:[#allocation2 + $0x50] sm:$0x33] }
 0x1d3   : > { %v1155_v7 = vsel %vm25833_vm9, %v25832_v49, %v25373_v24  ;;  %v3027_v59 = vsel %vm25835_vm14, %v20602_v38, %v3026_v27  ;;  %v3880_v49 = vld [vmem:[#allocation3 + $0x28] sm:$0xff]  ;;  %v25376_v38 = vrot.slane %v20918_v50, 4  ;;  %v20930_v27 = vrot.slane %v1337_v54, 6  ;;  %vm25844_vm9 = vmmov %vm25838_vm0 }
 0x1d4   : > { %v1156_v19 = vsel %vm25836_vm3, %v20604_v21, %v1155_v7  ;;  %v3896_v24 = vld [vmem:[#allocation3 + $0xa8] sm:$0xff]  ;;  %3140 = vst [vmem:[#allocation3 + $0x128] sm:$0x11] %v3027_v59  ;;  %v20927_v21 = vadd.s32 3712, %v18991_v2  ;;  %1109 = vrot.lane.b32.xlu1 %v1066_v14, %s18857_s16  ;;  %v20932_v7 = vrot.slane %v1340_v63, 7  ;;  %v353_v59 = vand.u32 63, %v20896_v52  ;;  %v20950_v52 = vpop.permute.xlu1 %1856 }
 0x1d5   : > { %v1210_v33 = vsel %vm19041_vm2, %v1156_v19, %v1209_v48  ;;  %v17474_v9 = vcombine.high %v3880_v49, %v3896_v24  ;;  %v17473_v26 = vcombine.low %v3880_v49, %v3896_v24  ;;  %v25837_v48 = vrot.slane %v20653_v40, 4  ;;  %v2609_v54 = vld [vmem:[#allocation2 + $0x54] sm:$0x33]  ;;  %v20952_v14 = vpop.permute.xlu0 %1406 }
 0x1d6   : > { %1211 = vst [vmem:[#allocation3 + $0x30] sm:$0x33] %v1210_v33  ;;  %v1067_v17 = vmul.bf16 %v20910_v35, %v872_v18  ;;  %v20941_v43 = vrot.slane %v3469_v25, 5  ;;  %v20943_v33 = vrot.slane %v3472_v60, 6  ;;  %v2842_v24 = vshrl.u32 %v20697_v20, 16 }
 0x1d7   : > { %v2683_v19 = vsel %vm25838_vm0, %v25837_v48, %v25376_v38  ;;  %4542 = vmatprep.subr.bf16.mxu1 %v17474_v9  ;;  %vm25839_vm12 = vcmask 7168   ;;  %v25380_v40 = vrot.slane %v20950_v52, 4  ;;  %v25379_v25 = vrot.slane %v20952_v14, 4  ;;  %v2489_v18 = vld [vmem:[#allocation2 + $0x4c] sm:$0x33] }
 0x1d8   : > { %v20948_v63 = vsel %vm25839_vm12, %v2683_v19, %v20918_v50  ;;  %4543 = vmatpush1.bf16.msra.mxu1 %v17473_v26  ;;  %1111 = vrot.lane.b32.xlu0 %v1067_v17, %s18857_s16  ;;  %v25381_v60 = vand.u32 63, %v20927_v21  ;;  %v1335_v20 = vor.u32 %v20893_v22, %v20878_v41  ;;  %vm20962_vm6 = vcmp.lt.s32.totalorder %v353_v59, 63  ;;  %v2578_v26 = vld [vmem:[#allocation3 + $0xc8] sm:$0xcc]  ;;  %v2047_v48 = vld [vmem:[#allocation3 + $0xb0] sm:$0x11]  ;;  %v20985_v32 = vpop.permute.xlu1 %3233 }
 0x1d9   : > { %25840 = vst [vmem:[#allocation53_spill] sm:$0xff] %v20948_v63  ;;  %2640 = vrot.lane.b32.xlu1 %v20662_v6, %s18860_s23  ;;  %v2521_v9 = vrot.slane %v2489_v18, 6  ;;  %v20967_v17 = vmul.bf16 %v20948_v63, %v2609_v54  ;;  %v1343_v19 = vor.u32 %v20932_v7, %v20930_v27  ;;  %v20973_v6 = vrot.slane %v2842_v24, 4  ;;  %v20987_v27 = vpop.permute.xlu0 %1822 }
 0x1da   : > { %v25843_v41 = vrot.slane %v20689_v58, 4  ;;  %v25845_v54 = vrot.slane %v20691_v4, 4  ;;  %v1686_v38 = vrot.slane %v20793_v5, 4  ;;  %vm25847_vm14 = vcmask 515072  }
 0x1db   : > { %v3912_v7 = vld [vmem:[#allocation3 + $0x128] sm:$0xff]  ;;  %v2579_v24 = vsel %vm25796_vm13, %v2521_v9, %v2578_v26  ;;  %vm20998_vm3 = vcmp.lt.s32.totalorder %v25381_v60, 63  ;;  %vm25850_vm0 = vcmask 523264   ;;  %v25382_v26 = vrot.slane %v20987_v27, 4 }
 0x1dc   : > { %v1954_v22 = vsel %vm25844_vm9, %v25843_v41, %v25380_v40  ;;  %v1456_v18 = vsel %vm25846_vm10, %v25845_v54, %v25379_v25  ;;  %2642 = vrot.lane.b32.xlu0 %v20851_v47, %s18860_s23  ;;  %v21005_v25 = vsel %vm20962_vm6, 1.0, %v25556_v55  ;;  %2580 = vst [vmem:[#allocation3 + $0xc8] sm:$0xcc] %v2579_v24  ;;  %v25383_v47 = vrot.slane %v20985_v32, 4  ;;  %v3341_v24 = vld [vmem:[#allocation3 + $0x130] sm:$0x66]  ;;  %vm25853_vm6 = vmmov %vm25844_vm9 }
 0x1dd   : > { %v1955_v56 = vsel %vm25847_vm14, %v20689_v58, %v1954_v22  ;;  %v1517_v41 = vld [vmem:[#allocation3 + $0x30] sm:$0x66]  ;;  %v1457_v58 = vsel %vm25850_vm0, %v20691_v4, %v1456_v18  ;;  %1410 = vrot.lane.b32.xlu1 %v1335_v20, %s18861_s29  ;;  %v3928_v22 = vld [vmem:[#allocation3 + $0x1a8] sm:$0x33]  ;;  %v2770_v40 = vshll.u32 %v20967_v17, 16  ;;  %vm21017_vm12 = vcmp.gt.s32.totalorder %v353_v59, 0  ;;  %vm25854_vm9 = vmmov %vm25853_vm6  ;;  %v21034_v59 = vpop.permute.xlu0 %3741 }
 0x1de   : > { %v2048_v9 = vsel %vm20047_vm15, %v1955_v56, %v2047_v48  ;;  %v1518_v49 = vsel %vm19767_vm4, %v1457_v58, %v1517_v41  ;;  %v17506_v60 = vcombine.high %v3912_v7, %v3928_v22  ;;  %v17505_v56 = vcombine.low %v3912_v7, %v3928_v22  ;;  %v21032_v7 = vpop.permute.xlu1 %2341  ;;  %v3685_v41 = vld [vmem:[#allocation2 + $0x4c] sm:$0x33]  ;;  %vm25857_vm0 = vmmov %vm25853_vm6 }
 0x1df   : > { %2049 = vst [vmem:[#allocation3 + $0xb0] sm:$0x11] %v2048_v9  ;;  %v2136_v4 = vrot.slane %v20916_v53, 4  ;;  %1519 = vst [vmem:[#allocation3 + $0x30] sm:$0x66] %v1518_v49  ;;  %v3282_v20 = vsel %vm25853_vm6, %v3259_v0, %v25383_v47  ;;  %v1922_v18 = vsel %vm25854_vm9, %v1882_v29, %v25382_v26  ;;  %v2845_v9 = vor.u32 %v20973_v6, %v20731_v46 }
 0x1e0   : > { %vm25855_vm10 = vcmask 531456   ;;  %v1923_v0 = vsel %vm25847_vm14, %v20791_v61, %v1922_v18  ;;  %1412 = vrot.lane.b32.xlu0 %v1343_v19, %s18861_s29  ;;  %v25385_v22 = vrot.slane %v21032_v7, 4  ;;  %v25384_v29 = vrot.slane %v21034_v59, 4  ;;  %v629_v49 = vld [vmem:[%s19022_s21 + $0x70] sm:$0x77]  ;;  %v25858_v61 = vld [vmem:[#allocation50_spill] sm:$0xff]  ;;  %vm25859_vm6 = vmmov %vm25857_vm0 }
 0x1e1   : > { %v3283_v58 = vsel %vm25855_vm10, %v20723_v39, %v3282_v20  ;;  %v25856_v26 = vrot.slane %v20515_v34, 4  ;;  %2012 = vst [vmem:[#allocation3 + $0x30] sm:$0x88] %v1923_v0  ;;  %v3844_v39 = vld [vmem:[#allocation3 + $0x1b0] sm:$0x33]  ;;  %1826 = vrot.lane.b32.xlu1 %v25858_v61, %s18858_s18  ;;  %v4275_v19 = vand.u32 %v17506_v60, %v20287_v51  ;;  %v4272_v6 = vand.u32 %v17505_v56, %v20287_v51  ;;  %vm25861_vm9 = vmmov %vm25857_vm0  ;;  %v21081_v61 = vpop.permute.xlu0 %2930 }
 0x1e2   : > { %v3342_v46 = vsel %vm19963_vm8, %v3283_v58, %v3341_v24  ;;  %v21057_v20 = vrot.slane %v2770_v40, 5  ;;  %v2391_v34 = vsel %vm25859_vm6, %v2367_v28, %v25385_v22  ;;  %v25862_v18 = vld [vmem:[#allocation48_spill] sm:$0xff]  ;;  %v25863_v60 = vld [vmem:[#allocation49_spill] sm:$0xff]  ;;  %vm25865_vm10 = vmmov %vm25857_vm0  ;;  %vm25866_vm14 = vcmask 7168  }
 0x1e3   : > { %v1711_v47 = vsel %vm25857_vm0, %v25856_v26, %v1686_v38  ;;  %3343 = vst [vmem:[#allocation3 + $0x130] sm:$0x66] %v3342_v46  ;;  %v25860_v26 = vrot.slane %v20839_v45, 4  ;;  %v3702_v58 = vmul.bf16 %v3685_v41, %v25862_v18  ;;  %v25864_v40 = vrot.slane %v25863_v60, 4  ;;  %4544 = vmatprep.subr.bf16.mxu1 %v4275_v19  ;;  %v21079_v46 = vpop.permute.xlu1 %3538  ;;  %v856_v19 = vld [vmem:[#allocation2 + $0x74] sm:$0x33] }
 0x1e4   : > { %v2392_v0 = vsel %vm25866_vm14, %v20756_v36, %v2391_v34  ;;  %vm25867_vm0 = vcmask 515072   ;;  %vm25868_vm6 = vcmask 531456   ;;  %4545 = vmatpush1.bf16.msra.mxu1 %v4272_v6  ;;  %2902 = vrot.lane.b32.xlu0 %v21057_v20, %s18859_s22  ;;  %v25387_v36 = vrot.slane %v21079_v46, 4  ;;  %v873_v6 = vld [vmem:[#allocation2 + $0x58] sm:$0x33] }
 0x1e5   : > { %v3790_v24 = vsel %vm25861_vm9, %v25860_v26, %v25384_v29  ;;  %v2162_v56 = vsel %vm25865_vm10, %v25864_v40, %v2136_v4  ;;  %v661_v26 = vcombine.high %v629_v49, %v629_v49  ;;  %v1557_v29 = vld [vmem:[#allocation2 + $0x50] sm:$0x33]  ;;  %v21085_v41 = vsel %vm25868_vm6, %v1711_v47, %v20793_v5  ;;  %3745 = vrot.lane.b32.xlu1 %v3702_v58, %s18858_s18 }
 0x1e6   : > { %v3791_v28 = vsel %vm25867_vm0, %v20839_v45, %v3790_v24  ;;  %25869 = vst [vmem:[#allocation50_spill] sm:$0xff] %v21085_v41  ;;  %v2974_v45 = vrot.slane %v21081_v61, 4  ;;  %v2450_v34 = vld [vmem:[#allocation3 + $0xb0] sm:$0x33]  ;;  %v2846_v24 = vrot.slane %v2845_v9, 4  ;;  %v17412_v47 = vsel %vm20998_vm3, 1.0, %v25556_v55 }
 0x1e7   : > { %v3845_v60 = vsel %vm19041_vm2, %v3791_v28, %v3844_v39  ;;  %v25870_v39 = vand.u32 63, %v20927_v21  ;;  %v18057_v40 = vpack.c.bf16 %v661_v26, %v629_v49  ;;  %v2087_v28 = vld [vmem:[#allocation2 + $0x50] sm:$0x33]  ;;  %vm25873_vm10 = vcmask 1039360  }
 0x1e8   : > { %3846 = vst [vmem:[#allocation3 + $0x1b0] sm:$0x33] %v3845_v60  ;;  %v21105_v22 = vsel %vm25873_vm10, %v2162_v56, %v20916_v53  ;;  %v2451_v58 = vsel %vm20213_vm5, %v2392_v0, %v2450_v34  ;;  %v25875_v54 = vrot.slane %v20758_v30, 4  ;;  %vm25876_vm3 = vcmask 1043456   ;;  %vm25880_vm6 = vmmov %vm25873_vm10  ;;  %v21124_v60 = vpop.permute.xlu1 %1666  ;;  %v21129_v34 = vld [vmem:[%s25230_s1] sm:$0xf] }
 0x1e9   : > { %vm21099_vm9 = vcmp.gt.s32.totalorder %v25870_v39, 0  ;;  %25874 = vst [vmem:[#allocation48_spill] sm:$0xff] %v21105_v22  ;;  %v25877_v21 = vrot.slane %v20872_v12, 4  ;;  %vm25878_vm14 = vmmov %vm25876_vm3  ;;  %v1750_v26 = vmul.bf16 %v21085_v41, %v1557_v29  ;;  %vm25879_vm0 = vcmask 523264   ;;  %17532 = vmatmul.mubr.msk.bf16.vlgmr.msra.gmra.mrb[20].mxu1 %vm25389_vm1, %v21129_v34  ;;  %2934 = vrot.lane.b32.xlu1 %v2846_v24, %s18859_s22 }
 0x1ea   : > { %v3587_v9 = vsel %vm25876_vm3, %v25875_v54, %v25387_v36  ;;  %2452 = vst [vmem:[#allocation3 + $0xb0] sm:$0x33] %v2451_v58  ;;  %v857_v29 = vsel %vm19041_vm2, %v18057_v40, %v856_v19  ;;  %4615 = vmatprep.mubr.bf16.mxu1 %v25720_v44  ;;  %v2201_v39 = vmul.bf16 %v21105_v22, %v2087_v28  ;;  %v3646_v58 = vld [vmem:[#allocation3 + $0x130] sm:$0xcc]  ;;  %v17379_v19 = vsel %vm21017_vm12, 1.0, %v25556_v55  ;;  %vm25883_vm12 = vmmov %vm25876_vm3 }
 0x1eb   : > { %v3028_v49 = vsel %vm25878_vm14, %v25877_v21, %v2974_v45  ;;  %v3588_v56 = vsel %vm25879_vm0, %v20758_v30, %v3587_v9  ;;  %v25881_v30 = vor.u32 %v20943_v33, %v20941_v43  ;;  %858 = vst [vmem:[#allocation2 + $0x74] sm:$0x33] %v857_v29  ;;  %v17380_v40 = vsel %vm21099_vm9, 1.0, %v25556_v55  ;;  %v1250_v54 = vld [vmem:[#allocation2 + $0x58] sm:$0x33]  ;;  %vm25886_vm10 = vmmov %vm25876_vm3 }
 0x1ec   : > { %v3029_v0 = vsel %vm25880_vm6, %v20872_v12, %v3028_v49  ;;  %v18089_v12 = vpack.c.bf16 %v17412_v47, %v21005_v25  ;;  %v3647_v43 = vsel %vm19378_vm7, %v3588_v56, %v3646_v58  ;;  %v1784_v33 = vrot.slane %v1750_v26, 5  ;;  %v3161_v25 = vld [vmem:[#allocation2 + $0x54] sm:$0x33]  ;;  %v21151_v47 = vpop.permute.xlu1 %981  ;;  %vm25889_vm14 = vmmov %vm25886_vm10 }
 0x1ed   : > { %3141 = vst [vmem:[#allocation3 + $0x130] sm:$0x11] %v3029_v0  ;;  %3544 = vrot.lane.b32.xlu0 %v25881_v30, %s18861_s29  ;;  %3648 = vst [vmem:[#allocation3 + $0x130] sm:$0xcc] %v3647_v43  ;;  %v25386_v24 = vrot.slane %v21151_v47, 4  ;;  %v21155_v28 = vpack.c.bf16 %v17380_v40, %v17379_v19  ;;  %v2279_v48 = vshrl.u32 %v2201_v39, 16  ;;  %2120 = vrot.lane.b32.xlu1 %v20876_v3, %s18859_s22 }
 0x1ee   : > { %v3178_v9 = vmul.bf16 %v3161_v25, %v20910_v35  ;;  %v25882_v21 = vrot.slane %v20841_v10, 4  ;;  %v3881_v26 = vld [vmem:[#allocation3 + $0x30] sm:$0xff]  ;;  %vm25884_vm9 = vcmask 515072   ;;  %v1801_v29 = vrot.slane %v1784_v33, 4  ;;  %vm25890_vm0 = vmmov %vm25880_vm6 }
 0x1ef   : > { %v1345_v19 = vshrl.u32 %v1250_v54, 16  ;;  %v1348_v40 = vshll.u32 %v1250_v54, 16  ;;  %v2281_v43 = vrot.slane %v2279_v48, 7  ;;  %v2282_v10 = vshll.u32 %v2201_v39, 16  ;;  %vm25893_vm6 = vmmov %vm25886_vm10 }
 0x1f0   : > { %v1030_v49 = vsel %vm25883_vm12, %v25882_v21, %v25386_v24  ;;  %v3929_v21 = vld [vmem:[#allocation3 + $0x1b0] sm:$0x33]  ;;  %v2847_v54 = vshrl.u32 %v20967_v17, 16  ;;  %vm25887_vm3 = vcmask 531456   ;;  %vm25895_vm12 = vmmov %vm25893_vm6 }
 0x1f1   : > { %1672 = vrot.lane.b32.xlu0 %v18089_v12, %s18857_s16  ;;  %v3897_v56 = vld [vmem:[#allocation3 + $0xb0] sm:$0xff]  ;;  %v21167_v0 = vsel %vm25884_vm9, %v1030_v49, %v21151_v47  ;;  %1862 = vrot.lane.b32.xlu1 %v1801_v29, %s18858_s18  ;;  %v3212_v49 = vrot.slane %v3178_v9, 7  ;;  %v2284_v39 = vor.u32 %v2282_v10, %v2281_v43  ;;  %v25392_v29 = vrot.slane %v21124_v60, 4  ;;  %vm25896_vm9 = vmmov %vm25887_vm3 }
 0x1f2   : > { %25885 = vst [vmem:[#allocation49_spill] sm:$0xff] %v21167_v0  ;;  %v17476_v30 = vcombine.high %v3881_v26, %v3897_v56  ;;  %v17475_v58 = vcombine.low %v3881_v26, %v3897_v56  ;;  %v1068_v3 = vmul.bf16 %v21167_v0, %v873_v6  ;;  %v1347_v26 = vrot.slane %v1345_v19, 6 }
 0x1f3   : > { %v1350_v56 = vrot.slane %v1348_v40, 7 }
 0x1f4   : > { %4583 = vmatprep.subr.bf16.mxu1 %v17476_v30  ;;  %v3913_v25 = vld [vmem:[#allocation3 + $0x130] sm:$0xff]  ;;  %v21180_v30 = vpop.permute.xlu0 %2116 }
 0x1f5   : > { %987 = vrot.lane.b32.xlu0 %v21155_v28, %s18858_s18  ;;  %4584 = vmatpush1.bf16.msra.mxu1 %v17475_v58  ;;  %v17508_v24 = vcombine.high %v3913_v25, %v3929_v21  ;;  %v17507_v36 = vcombine.low %v3913_v25, %v3929_v21  ;;  %v1351_v9 = vor.u32 %v1350_v56, %v1347_v26  ;;  %v2849_v58 = vrot.slane %v2847_v54, 4  ;;  %v3162_v21 = vld [vmem:[#allocation2 + $0x5c] sm:$0x33] }
 0x1f6   : > { %3239 = vrot.lane.b32.xlu1 %v3212_v49, %s18857_s16  ;;  %v25393_v17 = vrot.slane %v21180_v30, 4  ;;  %v3179_v53 = vmul.bf16 %v3162_v21, %v21167_v0  ;;  %v2584_v0 = vld [vmem:[#allocation3 + $0xd8] sm:$0xcc] }
 0x1f7   : > { %v4281_v6 = vand.u32 %v17508_v24, %v20287_v51  ;;  %v4278_v48 = vand.u32 %v17507_v36, %v20287_v51  ;;  %v1713_v36 = vsel %vm25886_vm10, %v1686_v38, %v25392_v29  ;;  %v1558_v24 = vld [vmem:[#allocation2 + $0x58] sm:$0x33]  ;;  %v2850_v38 = vor.u32 %v2849_v58, %v21057_v20 }
 0x1f8   : > { %v2164_v19 = vsel %vm25889_vm14, %v2136_v4, %v25393_v17  ;;  %v2490_v58 = vld [vmem:[#allocation2 + $0x54] sm:$0x33]  ;;  %vm25897_vm10 = vcmask 515072  }
 0x1f9   : > { %1113 = vrot.lane.b32.xlu0 %v1068_v3, %s18857_s16  ;;  %4585 = vmatprep.subr.bf16.mxu1 %v4281_v6  ;;  %v21196_v3 = vsel %vm25887_vm3, %v1713_v36, %v21124_v60  ;;  %v21209_v43 = vsel %vm25890_vm0, %v2164_v19, %v21180_v30  ;;  %v2851_v10 = vrot.slane %v2850_v38, 4  ;;  %v3213_v6 = vrot.slane %v3179_v53, 7  ;;  %v3687_v53 = vld [vmem:[#allocation2 + $0x5c] sm:$0x33]  ;;  %vm25899_vm3 = vmmov %vm25893_vm6 }
 0x1fa   : > { %4586 = vmatpush1.bf16.msra.mxu1 %v4278_v48  ;;  %2347 = vrot.lane.b32.xlu1 %v2284_v39, %s18860_s23  ;;  %25888 = vst [vmem:[#allocation54_spill] sm:$0xff] %v21196_v3  ;;  %v1751_v40 = vmul.bf16 %v21196_v3, %v1558_v24  ;;  %25891 = vst [vmem:[#allocation55_spill] sm:$0xff] %v21209_v43  ;;  %v1212_v39 = vld [vmem:[#allocation3 + $0x38] sm:$0x33]  ;;  %v2581_v24 = vld [vmem:[#allocation3 + $0xd0] sm:$0xcc] }
 0x1fb   : > { %v323_v38 = vadd.s32 3840, %v18991_v2  ;;  %v324_v19 = vadd.s32 3968, %v18991_v2  ;;  %vm25901_vm14 = vmmov %vm25899_vm3  ;;  %vm25902_vm0 = vcmask 7168  }
 0x1fc   : > { %v1785_v25 = vrot.slane %v1751_v40, 5  ;;  %v2522_v40 = vrot.slane %v2490_v58, 6 }
 0x1fd   : > { %2644 = vrot.lane.b32.xlu0 %v18089_v12, %s18860_s23  ;;  %17533 = vmatmul.mubr.msk.bf16.vlgmr.msra.gmra.mrb[24].mxu1 %vm25389_vm1, %v21129_v34  ;;  %v3686_v12 = vld [vmem:[#allocation2 + $0x54] sm:$0x33] }
 0x1fe   : > { %4656 = vmatprep.mubr.bf16.mxu1 %v25720_v44  ;;  %1828 = vrot.lane.b32.xlu1 %v1784_v33, %s18858_s18  ;;  %v3703_v5 = vmul.bf16 %v3686_v12, %v21085_v41  ;;  %v2088_v33 = vld [vmem:[#allocation2 + $0x58] sm:$0x33]  ;;  %v1802_v4 = vrot.slane %v1785_v25, 4 }
 0x1ff   : > { %v2202_v20 = vmul.bf16 %v21209_v43, %v2088_v33  ;;  %v3382_v12 = vld [vmem:[#allocation2 + $0x5c] sm:$0x33]  ;;  %v25892_v33 = vrot.slane %v20874_v8, 4 }
 0x201   : > { %1414 = vrot.lane.b32.xlu0 %v1351_v9, %s18861_s29  ;;  %v2286_v49 = vshrl.u32 %v2202_v20, 16  ;;  %v2289_v56 = vshll.u32 %v2202_v20, 16  ;;  %v25894_v20 = vrot.slane %v20950_v52, 4 }
 0x202   : > { %3747 = vrot.lane.b32.xlu1 %v3703_v5, %s18858_s18  ;;  %v2050_v5 = vld [vmem:[#allocation3 + $0xb8] sm:$0x11] }
 0x203   : > { %v2288_v26 = vrot.slane %v2286_v49, 7 }
 0x205   : > { %v2291_v48 = vor.u32 %v2289_v56, %v2288_v26  ;;  %v3477_v56 = vshrl.u32 %v3382_v12, 16 }
 0x206   : > { %2936 = vrot.lane.b32.xlu1 %v2851_v10, %s18859_s22 }
 0x20a   : > { %2122 = vrot.lane.b32.xlu1 %v21155_v28, %s18859_s22  ;;  %v21218_v54 = vpop.permute.xlu1 %1107 }
 0x20b   : > { %v21221_v9 = vpop.permute.xlu0 %1858  ;;  %v25390_v36 = vrot.slane %v21218_v54, 4 }
 0x20c   : > { %v1901_v28 = vrot.slane %v21221_v9, 4 }
 0x20d   : > { %v1157_v10 = vsel %vm25893_vm6, %v25892_v33, %v25390_v36  ;;  %vm25904_vm6 = vmmov %vm25896_vm9 }
 0x20e   : > { %1864 = vrot.lane.b32.xlu1 %v1802_v4, %s18858_s18  ;;  %v1956_v21 = vsel %vm25895_vm12, %v25894_v20, %v1901_v28  ;;  %v1158_v49 = vsel %vm25896_vm9, %v20874_v8, %v1157_v10  ;;  %v21241_v4 = vpop.permute.xlu1 %2638  ;;  %v2610_v8 = vld [vmem:[#allocation2 + $0x5c] sm:$0x33]  ;;  %v3704_v10 = vmul.bf16 %v3687_v53, %v21196_v3  ;;  %v3480_v20 = vshll.u32 %v3382_v12, 16  ;;  %v1218_v3 = vld [vmem:[#allocation3 + $0x48] sm:$0x33] }
 0x20f   : > { %v1957_v2 = vsel %vm25897_vm10, %v20950_v52, %v1956_v21  ;;  %v21244_v26 = vpop.permute.xlu0 %3235  ;;  %v25388_v33 = vrot.slane %v21241_v4, 4  ;;  %v355_v21 = vand.u32 63, %v323_v38 }
 0x210   : > { %v2051_v58 = vsel %vm20047_vm15, %v1957_v2, %v2050_v5  ;;  %v25394_v52 = vrot.slane %v21244_v26, 4 }
 0x211   : > { %2052 = vst [vmem:[#allocation3 + $0xb8] sm:$0x11] %v2051_v58  ;;  %vm21281_vm12 = vcmp.lt.s32.totalorder %v355_v21, 63  ;;  %vm21289_vm10 = vcmp.gt.s32.totalorder %v355_v21, 0 }
 0x212   : > { %3241 = vrot.lane.b32.xlu1 %v3213_v6, %s18857_s16  ;;  %v2582_v6 = vsel %vm25796_vm13, %v2522_v40, %v2581_v24  ;;  %v356_v24 = vand.u32 63, %v324_v19  ;;  %v25900_v40 = vrot.slane %v20985_v32, 4  ;;  %v3479_v19 = vrot.slane %v3477_v56, 5 }
 0x213   : > { %2583 = vst [vmem:[#allocation3 + $0xd0] sm:$0xcc] %v2582_v6  ;;  %v21271_v38 = vpop.permute.xlu1 %1408  ;;  %v25920_v56 = vrot.slane %v21034_v59, 4 }
 0x214   : > { %vm21285_vm9 = vcmp.lt.s32.totalorder %v356_v24, 63  ;;  %vm21310_vm1 = vcmp.gt.s32.totalorder %v356_v24, 0 }
 0x216   : > { %2349 = vrot.lane.b32.xlu1 %v2291_v48, %s18860_s23  ;;  %v1213_v48 = vsel %vm19041_vm2, %v1158_v49, %v1212_v39  ;;  %v25898_v39 = vrot.slane %v20918_v50, 4  ;;  %v3284_v49 = vsel %vm25901_vm14, %v25900_v40, %v25394_v52  ;;  %v21274_v50 = vpop.permute.xlu0 %2343  ;;  %v25911_v40 = vrot.slane %v20952_v14, 4  ;;  %vm25913_vm14 = vmmov %vm25899_vm3 }
 0x217   : > { %1214 = vst [vmem:[#allocation3 + $0x38] sm:$0x33] %v1213_v48  ;;  %v3285_v12 = vsel %vm25904_vm6, %v20985_v32, %v3284_v49  ;;  %v25391_v48 = vrot.slane %v21271_v38, 4  ;;  %v2369_v58 = vrot.slane %v21274_v50, 4  ;;  %v25912_v49 = vrot.slane %v21032_v7, 4 }
 0x218   : > { %v2685_v5 = vsel %vm25899_vm3, %v25898_v39, %v25388_v33  ;;  %v3482_v39 = vrot.slane %v3480_v20, 6  ;;  %vm25915_vm6 = vcmask 7168   ;;  %v2453_v52 = vld [vmem:[#allocation3 + $0xb8] sm:$0x33] }
 0x219   : > { %v21267_v2 = vsel %vm25902_vm0, %v2685_v5, %v21241_v4  ;;  %v1458_v20 = vsel %vm25899_vm3, %v25911_v40, %v25391_v48  ;;  %vm25914_vm0 = vcmask 523264   ;;  %v859_v40 = vld [vmem:[#allocation2 + $0x7c] sm:$0x33] }
 0x21a   : > { %1830 = vrot.lane.b32.xlu1 %v1785_v25, %s18858_s18  ;;  %v3344_v25 = vld [vmem:[#allocation3 + $0x138] sm:$0x66]  ;;  %25903 = vst [vmem:[#allocation56_spill] sm:$0xff] %v21267_v2  ;;  %v2723_v53 = vmul.bf16 %v21267_v2, %v2610_v8  ;;  %v630_v8 = vld [vmem:[%s19022_s21 + $0x78] sm:$0x77]  ;;  %v1459_v21 = vsel %vm25914_vm0, %v20952_v14, %v1458_v20  ;;  %v21308_v33 = vpop.permute.xlu0 %1824  ;;  %v3483_v24 = vor.u32 %v3482_v39, %v3479_v19  ;;  %v17382_v19 = vsel %vm21310_vm1, 1.0, %v25556_v55  ;;  %vm25925_vm0 = vmmov %vm25899_vm3 }
 0x21b   : > { %v3345_v6 = vsel %vm19963_vm8, %v3285_v12, %v3344_v25  ;;  %v2393_v12 = vsel %vm25913_vm14, %v25912_v49, %v2369_v58  ;;  %v662_v36 = vcombine.high %v630_v8, %v630_v8  ;;  %vm25924_vm14 = vcmask 1039360  }
 0x21c   : > { %3346 = vst [vmem:[#allocation3 + $0x138] sm:$0x66] %v3345_v6  ;;  %v2774_v25 = vshll.u32 %v2723_v53, 16  ;;  %v2852_v5 = vshrl.u32 %v2723_v53, 16  ;;  %v2394_v6 = vsel %vm25915_vm6, %v21032_v7, %v2393_v12  ;;  %v25404_v7 = vrot.slane %v21308_v33, 4 }
 0x21d   : > { %v2454_v14 = vsel %vm20213_vm5, %v2394_v6, %v2453_v52  ;;  %v18058_v20 = vpack.c.bf16 %v662_v36, %v630_v8  ;;  %v25918_v52 = vrot.slane %v20987_v27, 4 }
 0x21e   : > { %3749 = vrot.lane.b32.xlu1 %v3704_v10, %s18858_s18  ;;  %v2776_v48 = vrot.slane %v2774_v25, 5  ;;  %v2854_v29 = vrot.slane %v2852_v5, 4  ;;  %v1520_v17 = vld [vmem:[#allocation3 + $0x38] sm:$0x66]  ;;  %2455 = vst [vmem:[#allocation3 + $0xb8] sm:$0x33] %v2454_v14  ;;  %v21331_v8 = vpop.permute.xlu0 %3743 }
 0x21f   : > { %v1521_v49 = vsel %vm19767_vm4, %v1459_v21, %v1520_v17  ;;  %v17413_v25 = vsel %vm21281_vm12, 1.0, %v25556_v55  ;;  %v17414_v17 = vsel %vm21285_vm9, 1.0, %v25556_v55  ;;  %v1924_v36 = vsel %vm25899_vm3, %v25918_v52, %v25404_v7  ;;  %v3847_v5 = vld [vmem:[#allocation3 + $0x1b8] sm:$0x33]  ;;  %vm25921_vm9 = vmmov %vm25899_vm3 }
 0x220   : > { %1522 = vst [vmem:[#allocation3 + $0x38] sm:$0x66] %v1521_v49  ;;  %2904 = vrot.lane.b32.xlu0 %v2776_v48, %s18859_s22  ;;  %v2855_v12 = vor.u32 %v2854_v29, %v2776_v48  ;;  %v17381_v29 = vsel %vm21289_vm10, 1.0, %v25556_v55  ;;  %v860_v48 = vsel %vm19041_vm2, %v18058_v20, %v859_v40  ;;  %vm25919_vm12 = vcmask 515072   ;;  %vm25923_vm10 = vmmov %vm25899_vm3 }
 0x221   : > { %v1925_v39 = vsel %vm25919_vm12, %v20987_v27, %v1924_v36  ;;  %v25401_v32 = vrot.slane %v21331_v8, 4  ;;  %861 = vst [vmem:[#allocation2 + $0x7c] sm:$0x33] %v860_v48  ;;  %v21351_v55 = vpack.c.bf16 %v17414_v17, %v17413_v25  ;;  %v18074_v6 = vpack.c.bf16 %v17382_v19, %v17381_v29  ;;  %vm25922_vm1 = vmmov %vm25919_vm12  ;;  %v2053_v25 = vld [vmem:[#allocation3 + $0xc0] sm:$0x11] }
 0x222   : > { %v2856_v10 = vrot.slane %v2855_v12, 4  ;;  %2013 = vst [vmem:[#allocation3 + $0x38] sm:$0x88] %v1925_v39  ;;  %v21355_v53 = vpop.permute.xlu0 %2932  ;;  %vm25926_vm6 = vmmov %vm25922_vm1  ;;  %v3347_v19 = vld [vmem:[#allocation3 + $0x140] sm:$0x66]  ;;  %vm25929_vm12 = vcmask 531456  }
 0x223   : > { %v3792_v21 = vsel %vm25921_vm9, %v25920_v56, %v25401_v32  ;;  %v25400_v49 = vrot.slane %v21355_v53, 4  ;;  %vm25928_vm3 = vmmov %vm25925_vm0 }
 0x224   : > { %3546 = vrot.lane.b32.xlu0 %v3483_v24, %s18861_s29  ;;  %2938 = vrot.lane.b32.xlu1 %v2856_v10, %s18859_s22  ;;  %v3793_v27 = vsel %vm25922_vm1, %v21034_v59, %v3792_v21  ;;  %vm25930_vm9 = vmmov %vm25925_vm0 }
 0x225   : > { %v3848_v40 = vsel %vm19041_vm2, %v3793_v27, %v3847_v5  ;;  %v3030_v14 = vsel %vm25923_vm10, %v2974_v45, %v25400_v49  ;;  %v3111_v27 = vld [vmem:[#allocation3 + $0xc0] sm:$0x88]  ;;  %vm25931_vm1 = vmmov %vm25925_vm0  ;;  %v3383_v49 = vld [vmem:[#allocation2 + $0x64] sm:$0x33] }
 0x226   : > { %3849 = vst [vmem:[#allocation3 + $0x1b8] sm:$0x33] %v3848_v40  ;;  %v3031_v59 = vsel %vm25924_vm14, %v21081_v61, %v3030_v14  ;;  %v21370_v20 = vpop.permute.xlu0 %2118  ;;  %vm25933_vm10 = vmmov %vm25924_vm14 }
 0x227   : > { %3142 = vst [vmem:[#allocation3 + $0x138] sm:$0x11] %v3031_v59  ;;  %v25399_v14 = vrot.slane %v21370_v20, 4  ;;  %vm25934_vm14 = vmmov %vm25933_vm10 }
 0x228   : > { %1674 = vrot.lane.b32.xlu0 %v21351_v55, %s18857_s16  ;;  %2124 = vrot.lane.b32.xlu1 %v18074_v6, %s18859_s22  ;;  %v2495_v22 = vld [vmem:[#allocation2 + $0x7c] sm:$0x33] }
 0x22a   : > { %v21373_v24 = vpop.permute.xlu0 %1860 }
 0x22b   : > { %v25398_v12 = vrot.slane %v21373_v24, 4 }
 0x22c   : > { %989 = vrot.lane.b32.xlu0 %v18074_v6, %s18858_s18  ;;  %v3108_v6 = vld [vmem:[#allocation3 + $0xb8] sm:$0x88] }
 0x22d   : > { %v1958_v45 = vsel %vm25925_vm0, %v1901_v28, %v25398_v12  ;;  %v25927_v28 = vrot.slane %v21244_v26, 4 }
 0x22e   : > { %v1959_v17 = vsel %vm25926_vm6, %v21221_v9, %v1958_v45  ;;  %vm25935_vm6 = vcmask 7168  }
 0x22f   : > { %v21383_v61 = vpop.permute.xlu0 %3237  ;;  %v2054_v52 = vsel %vm20047_vm15, %v1959_v17, %v2053_v25  ;;  %v25932_v17 = vunpack.i.h.bf16 %v20725_v23 }
 0x230   : > { %v25397_v36 = vrot.slane %v21383_v61, 4  ;;  %2055 = vst [vmem:[#allocation3 + $0xc0] sm:$0x11] %v2054_v52 }
 0x232   : > { %v21388_v29 = vpop.permute.xlu1 %18695  ;;  %v3286_v9 = vsel %vm25928_vm3, %v25927_v28, %v25397_v36  ;;  %vm25937_vm3 = vmmov %vm25925_vm0 }
 0x233   : > { %v25402_v48 = vunpack.i.h.bf16 %v21388_v29  ;;  %v18697_v39 = vunpack.i.l.bf16 %v21388_v29  ;;  %v3287_v10 = vsel %vm25929_vm12, %v21244_v26, %v3286_v9  ;;  %vm25939_vm12 = vmmov %vm25925_vm0 }
 0x234   : > { %v3348_v21 = vsel %vm19963_vm8, %v3287_v10, %v3347_v19 }
 0x235   : > { %v21401_v5 = vrot.slane %v25402_v48, 4  ;;  %v2958_v56 = vrot.slane %v18697_v39, 4  ;;  %v21405_v40 = vpop.permute.xlu0 %2345  ;;  %3349 = vst [vmem:[#allocation3 + $0x140] sm:$0x66] %v3348_v21 }
 0x236   : > { %v25395_v25 = vrot.slane %v21405_v40, 4 }
 0x237   : > { %v2998_v59 = vsel %vm25930_vm9, %v20753_v13, %v2958_v56  ;;  %v3000_v26 = vsel %vm25931_vm1, %v2958_v56, %v21401_v5  ;;  %v2456_v23 = vld [vmem:[#allocation3 + $0xc0] sm:$0x33]  ;;  %vm25940_vm9 = vcmask 523264   ;;  %vm25941_vm1 = vmmov %vm25925_vm0 }
 0x238   : > { %v2999_v52 = vsel %vm25933_vm10, %v25932_v17, %v2998_v59  ;;  %v3001_v19 = vsel %vm25934_vm14, %v18697_v39, %v3000_v26  ;;  %v2395_v13 = vsel %vm25925_vm0, %v2369_v58, %v25395_v25  ;;  %v25936_v39 = vrot.slane %v21079_v46, 4  ;;  %v3649_v17 = vld [vmem:[#allocation3 + $0x138] sm:$0xcc]  ;;  %vm25943_vm14 = vmmov %vm25940_vm9  ;;  %v874_v25 = vld [vmem:[#allocation2 + $0x60] sm:$0x33] }
 0x239   : > { %v3109_v9 = vsel %vm20128_vm11, %v2999_v52, %v3108_v6  ;;  %v3112_v10 = vsel %vm20128_vm11, %v3001_v19, %v3111_v27  ;;  %v2396_v56 = vsel %vm25935_vm6, %v21274_v50, %v2395_v13  ;;  %v21431_v6 = vpop.permute.xlu0 %3542  ;;  %v25938_v27 = vrot.slane %v21180_v30, 4  ;;  %v2089_v13 = vld [vmem:[#allocation2 + $0x60] sm:$0x33] }
 0x23a   : > { %v3541_v45 = vpop.permute.xlu1 %3540  ;;  %3110 = vst [vmem:[#allocation3 + $0xb8] sm:$0x88] %v3109_v9  ;;  %3113 = vst [vmem:[#allocation3 + $0xc0] sm:$0x88] %v3112_v10  ;;  %v2457_v58 = vsel %vm20213_vm5, %v2396_v56, %v2456_v23  ;;  %v25396_v50 = vrot.slane %v21431_v6, 4  ;;  %vm25945_vm6 = vcmask 531456  }
 0x23b   : > { %v3566_v28 = vrot.slane %v3541_v45, 4  ;;  %v2166_v59 = vsel %vm25939_vm12, %v25938_v27, %v25399_v14  ;;  %2458 = vst [vmem:[#allocation3 + $0xc0] sm:$0x33] %v2457_v58  ;;  %v1559_v10 = vld [vmem:[#allocation2 + $0x60] sm:$0x33]  ;;  %vm25949_vm12 = vcmask 515072  }
 0x23c   : > { %v3652_v23 = vld [vmem:[#allocation3 + $0x140] sm:$0xcc]  ;;  %v1251_v58 = vld [vmem:[#allocation2 + $0x60] sm:$0x33] }
 0x23d   : > { %v3589_v21 = vsel %vm25937_vm3, %v25936_v39, %v3566_v28  ;;  %v3591_v30 = vsel %vm25941_vm1, %v3566_v28, %v25396_v50  ;;  %v25944_v39 = vrot.slane %v21124_v60, 4  ;;  %v1353_v50 = vshrl.u32 %v1251_v58, 16  ;;  %vm25948_vm3 = vmmov %vm25925_vm0 }
 0x23e   : > { %v3590_v26 = vsel %vm25940_vm9, %v21079_v46, %v3589_v21  ;;  %v21443_v52 = vpop.permute.xlu1 %1668  ;;  %v21453_v46 = vsel %vm25933_vm10, %v2166_v59, %v21370_v20  ;;  %v3592_v56 = vsel %vm25943_vm14, %v3541_v45, %v3591_v30  ;;  %v3882_v30 = vld [vmem:[#allocation3 + $0x38] sm:$0xff]  ;;  %v1356_v36 = vshll.u32 %v1251_v58, 16  ;;  %v1215_v58 = vld [vmem:[#allocation3 + $0x40] sm:$0x33]  ;;  %vm25952_vm9 = vmmov %vm25925_vm0 }
 0x23f   : > { %v3650_v19 = vsel %vm19378_vm7, %v3590_v26, %v3649_v17  ;;  %v25405_v9 = vrot.slane %v21443_v52, 4  ;;  %25942 = vst [vmem:[#allocation57_spill] sm:$0xff] %v21453_v46  ;;  %v21461_v27 = vpop.permute.xlu0 %1670  ;;  %v3653_v28 = vsel %vm19378_vm7, %v3592_v56, %v3652_v23  ;;  %v3163_v17 = vld [vmem:[#allocation2 + $0x64] sm:$0x33]  ;;  %v25947_v56 = vrot.slane %v21151_v47, 4  ;;  %vm25953_vm1 = vmmov %vm25945_vm6 }
 0x240   : > { %3651 = vst [vmem:[#allocation3 + $0x138] sm:$0xcc] %v3650_v19  ;;  %3654 = vst [vmem:[#allocation3 + $0x140] sm:$0xcc] %v3653_v28  ;;  %v21474_v19 = vmul.bf16 %v21453_v46, %v2089_v13  ;;  %v1355_v46 = vrot.slane %v1353_v50, 6 }
 0x241   : > { %v1715_v21 = vsel %vm25925_vm0, %v25944_v39, %v25405_v9  ;;  %v3898_v39 = vld [vmem:[#allocation3 + $0xb8] sm:$0xff]  ;;  %vm25954_vm10 = vmmov %vm25925_vm0 }
 0x242   : > { %v21467_v26 = vsel %vm25945_vm6, %v1715_v21, %v21443_v52  ;;  %v21469_v59 = vpop.permute.xlu1 %983  ;;  %v17477_v14 = vcombine.low %v3882_v30, %v3898_v39  ;;  %v2293_v7 = vshrl.u32 %v21474_v19, 16  ;;  %vm25955_vm14 = vmmov %vm25953_vm1 }
 0x243   : > { %25946 = vst [vmem:[#allocation58_spill] sm:$0xff] %v21467_v26  ;;  %v1752_v45 = vmul.bf16 %v21467_v26, %v1559_v10  ;;  %v25403_v60 = vrot.slane %v21469_v59, 4  ;;  %v21483_v28 = vpop.permute.xlu0 %985  ;;  %v17478_v10 = vcombine.high %v3882_v30, %v3898_v39  ;;  %v25951_v30 = vrot.slane %v21218_v54, 4  ;;  %vm25959_vm6 = vmmov %vm25925_vm0 }
 0x244   : > { %v2295_v43 = vrot.slane %v2293_v7, 7 }
 0x245   : > { %v21476_v23 = vrot.slane %v1752_v45, 5  ;;  %v1032_v21 = vsel %vm25948_vm3, %v25947_v56, %v25403_v60  ;;  %4624 = vmatprep.subr.bf16.mxu1 %v17478_v10  ;;  %v3930_v60 = vld [vmem:[#allocation3 + $0x1b8] sm:$0x33]  ;;  %v3485_v10 = vshrl.u32 %v3383_v49, 16  ;;  %vm25960_vm3 = vcmask 7168  }
 0x246   : > { %v21487_v13 = vsel %vm25949_vm12, %v1032_v21, %v21469_v59  ;;  %v1110_v12 = vpop.permute.xlu1 %1109  ;;  %4625 = vmatpush1.bf16.msra.mxu1 %v17477_v14  ;;  %vm25962_vm12 = vmmov %vm25953_vm1 }
 0x247   : > { %25950 = vst [vmem:[#allocation59_spill] sm:$0xff] %v21487_v13  ;;  %v3180_v45 = vmul.bf16 %v3163_v17, %v21487_v13  ;;  %v1134_v32 = vrot.slane %v1110_v12, 4  ;;  %v1069_v48 = vmul.bf16 %v21487_v13, %v874_v25  ;;  %v1803_v47 = vrot.slane %v21476_v23, 4  ;;  %v3914_v56 = vld [vmem:[#allocation3 + $0x138] sm:$0xff] }
 0x248   : > { %v17510_v9 = vcombine.high %v3914_v56, %v3930_v60  ;;  %v17509_v21 = vcombine.low %v3914_v56, %v3930_v60  ;;  %v1358_v25 = vrot.slane %v1356_v36, 7  ;;  %v3488_v13 = vshll.u32 %v3383_v49, 16 }
 0x249   : > { %v1159_v39 = vsel %vm25952_vm9, %v25951_v30, %v1134_v32  ;;  %1115 = vrot.lane.b32.xlu0 %v1069_v48, %s18857_s16  ;;  %1866 = vrot.lane.b32.xlu1 %v1803_v47, %s18858_s18  ;;  %v2491_v30 = vld [vmem:[#allocation2 + $0x5c] sm:$0x33]  ;;  %v2611_v47 = vld [vmem:[#allocation2 + $0x64] sm:$0x33]  ;;  %v3214_v49 = vrot.slane %v3180_v45, 7  ;;  %vm25965_vm9 = vmmov %vm25925_vm0 }
 0x24a   : > { %v21496_v17 = vpop.permute.xlu0 %1111  ;;  %v1160_v14 = vsel %vm25953_vm1, %v21218_v54, %v1159_v39  ;;  %v4287_v56 = vand.u32 %v17510_v9, %v20287_v51  ;;  %v4284_v2 = vand.u32 %v17509_v21, %v20287_v51  ;;  %v2296_v54 = vshll.u32 %v21474_v19, 16 }
 0x24b   : > { %v1135_v50 = vrot.slane %v21496_v17, 4  ;;  %v21504_v60 = vpop.permute.xlu1 %2640  ;;  %v1216_v48 = vsel %vm19041_vm2, %v1160_v14, %v1215_v58  ;;  %v2523_v9 = vrot.slane %v2491_v30, 6  ;;  %v25956_v14 = vrot.slane %v21241_v4, 4 }
 0x24c   : > { %v2660_v36 = vrot.slane %v21504_v60, 4  ;;  %1217 = vst [vmem:[#allocation3 + $0x40] sm:$0x33] %v1216_v48  ;;  %4626 = vmatprep.subr.bf16.mxu1 %v4287_v56  ;;  %v1359_v7 = vor.u32 %v1358_v25, %v1355_v46  ;;  %v25957_v19 = vrot.slane %v21461_v27, 4  ;;  %v3487_v30 = vrot.slane %v3485_v10, 5 }
 0x24d   : > { %v1161_v39 = vsel %vm25954_vm10, %v1134_v32, %v1135_v50  ;;  %2646 = vrot.lane.b32.xlu0 %v21351_v55, %s18860_s23  ;;  %3243 = vrot.lane.b32.xlu1 %v3214_v49, %s18857_s16  ;;  %v25958_v32 = vrot.slane %v21443_v52, 4  ;;  %v2585_v55 = vsel %vm25796_vm13, %v2523_v9, %v2584_v0  ;;  %v2298_v52 = vor.u32 %v2296_v54, %v2295_v43  ;;  %v1560_v0 = vld [vmem:[#allocation2 + $0x68] sm:$0x33] }
 0x24e   : > { %v1162_v58 = vsel %vm25955_vm14, %v1110_v12, %v1161_v39  ;;  %v2687_v63 = vsel %vm25925_vm0, %v25956_v14, %v2660_v36  ;;  %v21519_v45 = vpop.permute.xlu0 %2642  ;;  %4627 = vmatpush1.bf16.msra.mxu1 %v4284_v2  ;;  %2586 = vst [vmem:[#allocation3 + $0xd8] sm:$0xcc] %v2585_v55  ;;  %v3490_v48 = vrot.slane %v3488_v13, 6  ;;  %v25964_v2 = vrot.slane %v21271_v38, 4  ;;  %vm25968_vm14 = vmmov %vm25925_vm0 }
 0x24f   : > { %v1717_v21 = vsel %vm25959_vm6, %v25958_v32, %v25957_v19  ;;  %v1219_v12 = vsel %vm19041_vm2, %v1162_v58, %v1218_v3  ;;  %v21533_v4 = vsel %vm25960_vm3, %v2687_v63, %v21504_v60  ;;  %v1411_v56 = vpop.permute.xlu1 %1410  ;;  %vm25966_vm1 = vcmask 220160   ;;  %v1252_v19 = vld [vmem:[#allocation2 + $0x68] sm:$0x33]  ;;  %vm25972_vm3 = vmmov %vm25959_vm6 }
 0x250   : > { %25961 = vst [vmem:[#allocation60_spill] sm:$0xff] %v21533_v4  ;;  %1220 = vst [vmem:[#allocation3 + $0x48] sm:$0x33] %v1219_v12  ;;  %v2724_v46 = vmul.bf16 %v21533_v4, %v2611_v47  ;;  %v1435_v25 = vrot.slane %v1411_v56, 4  ;;  %v21540_v3 = vsel %vm25962_vm12, %v1717_v21, %v21461_v27  ;;  %v1004_v43 = vrot.slane %v21483_v28, 4 }
 0x251   : > { %25963 = vst [vmem:[#allocation61_spill] sm:$0xff] %v21540_v3  ;;  %17534 = vmatmul.mubr.msk.bf16.vlgmr.msra.gmra.mrb[28].mxu1 %vm25966_vm1, %v21129_v34  ;;  %1416 = vrot.lane.b32.xlu0 %v1359_v7, %s18861_s29  ;;  %v25420_v13 = vrot.slane %v21519_v45, 4  ;;  %vm25967_vm10 = vcmask 523264   ;;  %v1753_v32 = vmul.bf16 %v21540_v3, %v1560_v0  ;;  %v25970_v12 = vrot.slane %v21308_v33, 4  ;;  %vm25973_vm12 = vmmov %vm25972_vm3 }
 0x252   : > { %v2778_v49 = vshll.u32 %v2724_v46, 16  ;;  %v2857_v63 = vshrl.u32 %v2724_v46, 16  ;;  %v1460_v60 = vsel %vm25965_vm9, %v25964_v2, %v1435_v25  ;;  %v21545_v39 = vpop.permute.xlu0 %1412  ;;  %2351 = vrot.lane.b32.xlu1 %v2298_v52, %s18860_s23  ;;  %4697 = vmatprep.mubr.bf16.mxu1 %v25720_v44  ;;  %vm25969_vm0 = vmmov %vm25967_vm10  ;;  %v3491_v52 = vor.u32 %v3490_v48, %v3487_v30  ;;  %v3114_v48 = vld [vmem:[#allocation3 + $0xc8] sm:$0x88] }
 0x253   : > { %v1461_v10 = vsel %vm25967_vm10, %v21271_v38, %v1460_v60  ;;  %v25421_v47 = vrot.slane %v21545_v39, 4  ;;  %v21556_v54 = vpop.permute.xlu1 %1826  ;;  %v1523_v58 = vld [vmem:[#allocation3 + $0x40] sm:$0x66]  ;;  %vm25974_vm9 = vcmask 515072   ;;  %vm25975_vm1 = vmmov %vm25972_vm3 }
 0x254   : > { %v2780_v9 = vrot.slane %v2778_v49, 5  ;;  %v2859_v34 = vrot.slane %v2857_v63, 4  ;;  %v25419_v14 = vrot.slane %v21556_v54, 4  ;;  %v1524_v7 = vsel %vm19767_vm4, %v1461_v10, %v1523_v58  ;;  %v3688_v49 = vld [vmem:[#allocation2 + $0x64] sm:$0x33]  ;;  %vm25976_vm10 = vmmov %vm25974_vm9 }
 0x255   : > { %v1462_v38 = vsel %vm25968_vm14, %v1435_v25, %v25421_v47  ;;  %1525 = vst [vmem:[#allocation3 + $0x40] sm:$0x66] %v1524_v7  ;;  %v25971_v25 = vrot.slane %v21469_v59, 4  ;;  %v3850_v7 = vld [vmem:[#allocation3 + $0x1c0] sm:$0x33]  ;;  %vm25978_vm14 = vcmask 7168  }
 0x256   : > { %v1463_v21 = vsel %vm25969_vm0, %v1411_v56, %v1462_v38  ;;  %v1926_v55 = vsel %vm25959_vm6, %v25970_v12, %v25419_v14  ;;  %v21572_v46 = vpop.permute.xlu0 %2902  ;;  %2906 = vrot.lane.b32.xlu0 %v2780_v9, %s18859_s22  ;;  %v2689_v56 = vsel %vm25973_vm12, %v2660_v36, %v25420_v13  ;;  %1832 = vrot.lane.b32.xlu1 %v21476_v23, %s18858_s18  ;;  %v1361_v36 = vshrl.u32 %v1252_v19, 16  ;;  %v3164_v12 = vld [vmem:[#allocation2 + $0x6c] sm:$0x33]  ;;  %vm25983_vm6 = vmmov %vm25975_vm1 }
 0x257   : > { %v1034_v63 = vsel %vm25972_vm3, %v25971_v25, %v1004_v43  ;;  %v1526_v2 = vld [vmem:[#allocation3 + $0x48] sm:$0x66]  ;;  %v1927_v60 = vsel %vm25974_vm9, %v21308_v33, %v1926_v55  ;;  %v25416_v0 = vrot.slane %v21572_v46, 4  ;;  %v21588_v30 = vpop.permute.xlu1 %3745  ;;  %v2860_v58 = vor.u32 %v2859_v34, %v2780_v9  ;;  %vm25984_vm3 = vmmov %vm25974_vm9  ;;  %v2090_v14 = vld [vmem:[#allocation2 + $0x68] sm:$0x33] }
 0x258   : > { %v1527_v59 = vsel %vm19767_vm4, %v1463_v21, %v1526_v2  ;;  %2014 = vst [vmem:[#allocation3 + $0x40] sm:$0x88] %v1927_v60  ;;  %v25418_v10 = vrot.slane %v21588_v30, 4  ;;  %v3705_v23 = vmul.bf16 %v3688_v49, %v21467_v26  ;;  %v1364_v38 = vshll.u32 %v1252_v19, 16  ;;  %v2612_v55 = vld [vmem:[#allocation2 + $0x6c] sm:$0x33]  ;;  %vm25986_vm12 = vmmov %vm25975_vm1 }
 0x259   : > { %1528 = vst [vmem:[#allocation3 + $0x48] sm:$0x66] %v1527_v59  ;;  %v3002_v33 = vsel %vm25975_vm1, %v21401_v5, %v25416_v0  ;;  %v21600_v21 = vsel %vm25976_vm10, %v1034_v63, %v21483_v28  ;;  %v21604_v9 = vsel %vm25978_vm14, %v2689_v56, %v21519_v45  ;;  %v25980_v34 = vunpack.i.h.bf16 %v21388_v29  ;;  %v875_v63 = vld [vmem:[#allocation2 + $0x68] sm:$0x33]  ;;  %vm25992_vm14 = vmmov %vm25975_vm1 }
 0x25a   : > { %25977 = vst [vmem:[#allocation62_spill] sm:$0xff] %v21600_v21  ;;  %25979 = vst [vmem:[#allocation63_spill] sm:$0xff] %v21604_v9  ;;  %vm25981_vm0 = vcmask 1039360   ;;  %v25982_v5 = vrot.slane %v21331_v8, 4  ;;  %3548 = vrot.lane.b32.xlu0 %v3491_v52, %s18861_s29  ;;  %v21617_v2 = vrot.slane %v1753_v32, 5  ;;  %3751 = vrot.lane.b32.xlu1 %v3705_v23, %s18858_s18  ;;  %v1363_v32 = vrot.slane %v1361_v36, 6 }
 0x25b   : > { %v3003_v25 = vsel %vm25981_vm0, %v25980_v34, %v3002_v33  ;;  %v21624_v60 = vpop.permute.xlu1 %2934  ;;  %v3384_v59 = vld [vmem:[#allocation2 + $0x6c] sm:$0x33]  ;;  %v2861_v34 = vrot.slane %v2860_v58, 4  ;;  %v25985_v23 = vrot.slane %v21355_v53, 4  ;;  %vm25987_vm9 = vmmov %vm25981_vm0 }
 0x25c   : > { %v3794_v19 = vsel %vm25983_vm6, %v25982_v5, %v25418_v10  ;;  %v3115_v56 = vsel %vm20128_vm11, %v3003_v25, %v3114_v48  ;;  %v25417_v52 = vrot.slane %v21624_v60, 4  ;;  %v3181_v5 = vmul.bf16 %v3164_v12, %v21600_v21  ;;  %vm25989_vm10 = vmmov %vm25981_vm0  ;;  %v3689_v28 = vld [vmem:[#allocation2 + $0x6c] sm:$0x33] }
 0x25d   : > { %v3795_v29 = vsel %vm25984_vm3, %v21331_v8, %v3794_v19  ;;  %3116 = vst [vmem:[#allocation3 + $0xc8] sm:$0x88] %v3115_v56  ;;  %v2725_v48 = vmul.bf16 %v21604_v9, %v2612_v55  ;;  %v1070_v8 = vmul.bf16 %v21600_v21, %v875_v63  ;;  %v1366_v25 = vrot.slane %v1364_v38, 7  ;;  %vm25993_vm0 = vmmov %vm25984_vm3  ;;  %v2493_v21 = vld [vmem:[#allocation2 + $0x6c] sm:$0x33] }
 0x25e   : > { %v3851_v33 = vsel %vm19041_vm2, %v3795_v29, %v3850_v7  ;;  %v3032_v19 = vsel %vm25986_vm12, %v25985_v23, %v25417_v52  ;;  %2940 = vrot.lane.b32.xlu0 %v2861_v34, %s18859_s22  ;;  %v3493_v58 = vshrl.u32 %v3384_v59, 16  ;;  %v3496_v36 = vshll.u32 %v3384_v59, 16  ;;  %v3899_v29 = vld [vmem:[#allocation3 + $0xc0] sm:$0xff]  ;;  %vm25995_vm6 = vmmov %vm25975_vm1 }
 0x25f   : > { %v21614_v49 = vpop.permute.xlu0 %3544  ;;  %3852 = vst [vmem:[#allocation3 + $0x1c0] sm:$0x33] %v3851_v33  ;;  %v2862_v7 = vshrl.u32 %v2725_v48, 16  ;;  %v3033_v12 = vsel %vm25987_vm9, %v21355_v53, %v3032_v19  ;;  %1117 = vrot.lane.b32.xlu1 %v1070_v8, %s18857_s16  ;;  %v21643_v55 = vpop.permute.xlu1 %2120  ;;  %v1804_v38 = vrot.slane %v21617_v2, 4  ;;  %v3883_v63 = vld [vmem:[#allocation3 + $0x40] sm:$0xff]  ;;  %v2782_v10 = vshll.u32 %v2725_v48, 16  ;;  %vm25996_vm3 = vmmov %vm25975_vm1 }
 0x260   : > { %v2492_v33 = vld [vmem:[#allocation2 + $0x64] sm:$0x33]  ;;  %3143 = vst [vmem:[#allocation3 + $0x140] sm:$0x11] %v3033_v12  ;;  %v25423_v23 = vrot.slane %v21643_v55, 4  ;;  %v17480_v0 = vcombine.high %v3883_v63, %v3899_v29  ;;  %v17479_v34 = vcombine.low %v3883_v63, %v3899_v29  ;;  %v3215_v13 = vrot.slane %v3181_v5, 7  ;;  %vm25999_vm9 = vmmov %vm25975_vm1 }
 0x261   : > { %v2524_v52 = vrot.slane %v2492_v33, 6  ;;  %v2587_v59 = vld [vmem:[#allocation3 + $0xe0] sm:$0xcc]  ;;  %v1367_v53 = vor.u32 %v1366_v25, %v1363_v32  ;;  %v25988_v8 = vrot.slane %v21370_v20, 4  ;;  %v21655_v12 = vrot.slane %v3493_v58, 5 }
 0x262   : > { %1868 = vrot.lane.b32.xlu0 %v1804_v38, %s18858_s18  ;;  %4665 = vmatprep.subr.bf16.mxu1 %v17480_v0  ;;  %v21657_v63 = vrot.slane %v3496_v36, 6  ;;  %v21661_v5 = vrot.slane %v2862_v7, 4  ;;  %v2784_v58 = vrot.slane %v2782_v10, 5  ;;  %v25991_v29 = vrot.slane %v21373_v24, 4 }
 0x263   : > { %v21637_v56 = vpop.permute.xlu0 %1672  ;;  %v2168_v19 = vsel %vm25975_vm1, %v25988_v8, %v25423_v23  ;;  %v2588_v48 = vsel %vm25796_vm13, %v2524_v52, %v2587_v59  ;;  %3245 = vrot.lane.b32.xlu1 %v3215_v13, %s18857_s16  ;;  %v21668_v20 = vpop.permute.xlu1 %1862  ;;  %4666 = vmatpush1.bf16.msra.mxu1 %v17479_v34  ;;  %v2056_v52 = vld [vmem:[#allocation3 + $0xc8] sm:$0x11]  ;;  %vm25997_vm12 = vcmask 531456   ;;  %v25998_v23 = vrot.slane %v21383_v61, 4 }
 0x264   : > { %v21665_v32 = vsel %vm25989_vm10, %v2168_v19, %v21643_v55  ;;  %2589 = vst [vmem:[#allocation3 + $0xe0] sm:$0xcc] %v2588_v48  ;;  %v25422_v25 = vrot.slane %v21668_v20, 4  ;;  %v25424_v36 = vrot.slane %v21637_v56, 4  ;;  %vm26000_vm1 = vmmov %vm25997_vm12 }
 0x265   : > { %25990 = vst [vmem:[#allocation64_spill] sm:$0xff] %v21665_v32  ;;  %v2204_v0 = vmul.bf16 %v21665_v32, %v2090_v14  ;;  %v3499_v14 = vor.u32 %v21657_v63, %v21655_v12  ;;  %vm26001_vm10 = vmmov %vm25996_vm3 }
 0x266   : > { %v1960_v13 = vsel %vm25992_vm14, %v25991_v29, %v25422_v25  ;;  %1418 = vrot.lane.b32.xlu0 %v1367_v53, %s18861_s29  ;;  %v3931_v48 = vld [vmem:[#allocation3 + $0x1c0] sm:$0x33]  ;;  %v1221_v25 = vld [vmem:[#allocation3 + $0x50] sm:$0x33]  ;;  %vm26002_vm14 = vmmov %vm26000_vm1 }
 0x267   : > { %v21652_v47 = vpop.permute.xlu0 %987  ;;  %v2300_v7 = vshrl.u32 %v2204_v0, 16  ;;  %v2303_v38 = vshll.u32 %v2204_v0, 16  ;;  %v1961_v34 = vsel %vm25993_vm0, %v21373_v24, %v1960_v13  ;;  %v3915_v19 = vld [vmem:[#allocation3 + $0x140] sm:$0xff]  ;;  %v2865_v0 = vor.u32 %v21661_v5, %v2784_v58  ;;  %vm26006_vm0 = vmmov %vm25996_vm3 }
 0x268   : > { %v25426_v10 = vrot.slane %v21652_v47, 4  ;;  %v21687_v8 = vpop.permute.xlu1 %3239  ;;  %v2057_v53 = vsel %vm20047_vm15, %v1961_v34, %v2056_v52  ;;  %v17512_v63 = vcombine.high %v3915_v19, %v3931_v48  ;;  %v25994_v24 = vrot.slane %v21461_v27, 4  ;;  %v3350_v52 = vld [vmem:[#allocation3 + $0x148] sm:$0x66] }
 0x269   : > { %v2302_v29 = vrot.slane %v2300_v7, 7  ;;  %v25431_v12 = vrot.slane %v21687_v8, 4  ;;  %2058 = vst [vmem:[#allocation3 + $0xc8] sm:$0x11] %v2057_v53  ;;  %v17511_v7 = vcombine.low %v3915_v19, %v3931_v48 }
 0x26a   : > { %v1719_v13 = vsel %vm25995_vm6, %v25994_v24, %v25424_v36  ;;  %2908 = vrot.lane.b32.xlu0 %v2784_v58, %s18859_s22  ;;  %v4293_v36 = vand.u32 %v17512_v63, %v20287_v51  ;;  %v26004_v63 = vrot.slane %v21614_v49, 4  ;;  %vm26008_vm6 = vmmov %vm26006_vm0 }
 0x26b   : > { %v21678_v33 = vpop.permute.xlu0 %1113  ;;  %v3288_v27 = vsel %vm25999_vm9, %v25998_v23, %v25431_v12  ;;  %v2305_v24 = vor.u32 %v2303_v38, %v2302_v29  ;;  %v4290_v48 = vand.u32 %v17511_v7, %v20287_v51  ;;  %v1036_v23 = vsel %vm26001_vm10, %v1004_v43, %v25426_v10  ;;  %v3165_v7 = vld [vmem:[#allocation2 + $0x74] sm:$0x33]  ;;  %vm26015_vm10 = vmmov %vm26006_vm0 }
 0x26c   : > { %v25425_v59 = vrot.slane %v21678_v33, 4  ;;  %v3289_v19 = vsel %vm26000_vm1, %v21383_v61, %v3288_v27  ;;  %4667 = vmatprep.subr.bf16.mxu1 %v4293_v36  ;;  %v21731_v61 = vpop.f32.mrb[0].mxu1  ;;  %v21735_v29 = vsel %vm26002_vm14, %v1719_v13, %v21637_v56  ;;  %vm26012_vm9 = vcmask 220160   ;;  %vm26017_vm14 = vmmov %vm26006_vm0 }
 0x26d   : > { %v3351_v58 = vsel %vm19963_vm8, %v3289_v19, %v3350_v52  ;;  %2353 = vrot.lane.b32.xlu1 %v2305_v24, %s18860_s23  ;;  %26003 = vst [vmem:[#allocation65_spill] sm:$0xff] %v21735_v29  ;;  %4668 = vmatpush1.bf16.msra.mxu1 %v4290_v48  ;;  %v21737_v43 = vpop.f32.mrb[1].mxu1  ;;  %v2866_v24 = vrot.slane %v2865_v0, 4  ;;  %v21769_v0 = vld [vmem:[%s25230_s1] sm:$0xf]  ;;  %vm26013_vm1 = vcmask 523264  }
 0x26e   : > { %v1163_v5 = vsel %vm25996_vm3, %v1135_v50, %v25425_v59  ;;  %3352 = vst [vmem:[#allocation3 + $0x148] sm:$0x66] %v3351_v58  ;;  %3550 = vrot.lane.b32.xlu0 %v3499_v14, %s18861_s29  ;;  %vm26009_vm3 = vcmask 515072  }
 0x26f   : > { %v1164_v34 = vsel %vm25997_vm12, %v21496_v17, %v1163_v5  ;;  %v21712_v53 = vpop.permute.xlu0 %2644  ;;  %v21719_v17 = vpop.permute.xlu1 %2347  ;;  %v26005_v5 = vrot.slane %v21431_v6, 4  ;;  %v21755_v19 = vsel %vm26009_vm3, %v1036_v23, %v21652_v47  ;;  %vm26011_vm12 = vcmask 7168   ;;  %v1253_v23 = vld [vmem:[#allocation2 + $0x70] sm:$0x33] }
 0x270   : > { %v1222_v50 = vsel %vm19041_vm2, %v1164_v34, %v1221_v25  ;;  %v25427_v38 = vrot.slane %v21719_v17, 4  ;;  %v1561_v25 = vld [vmem:[#allocation2 + $0x70] sm:$0x33]  ;;  %v25429_v36 = vrot.slane %v21712_v53, 4  ;;  %v26007_v34 = vrot.slane %v21405_v40, 4  ;;  %26010 = vst [vmem:[#allocation66_spill] sm:$0xff] %v21755_v19  ;;  %17535 = vmatmul.mubr.msk.bf16.vlgmr.msra.gmra.mrb[32].mxu1 %vm26012_vm9, %v21769_v0  ;;  %vm26022_vm9 = vmmov %vm26008_vm6 }
 0x271   : > { %1223 = vst [vmem:[#allocation3 + $0x50] sm:$0x33] %v1222_v50  ;;  %v3593_v52 = vsel %vm26006_vm0, %v26005_v5, %v26004_v63  ;;  %v4375_v50 = vpop.f32.mrb[2].mxu1  ;;  %v876_v5 = vld [vmem:[#allocation2 + $0x70] sm:$0x33]  ;;  %1834 = vrot.lane.b32.xlu1 %v21617_v2, %s18858_s18  ;;  %v26014_v2 = vrot.slane %v21545_v39, 4  ;;  %4738 = vmatprep.mubr.bf16.mxu1 %v25720_v44  ;;  %vm26018_vm0 = vmmov %vm26013_vm1 }
 0x272   : > { %v2397_v13 = vsel %vm26008_vm6, %v26007_v34, %v25427_v38  ;;  %v4376_v59 = vpop.f32.mrb[3].mxu1  ;;  %v1754_v34 = vmul.bf16 %v21735_v29, %v1561_v25  ;;  %v2459_v14 = vld [vmem:[#allocation3 + $0xc8] sm:$0x33]  ;;  %v3182_v25 = vmul.bf16 %v3165_v7, %v21755_v19  ;;  %2942 = vrot.lane.b32.xlu0 %v2866_v24, %s18859_s22 }
 0x273   : > { %v21751_v27 = vpop.permute.xlu0 %1414  ;;  %v2398_v48 = vsel %vm26011_vm12, %v21405_v40, %v2397_v13  ;;  %v21760_v63 = vpop.permute.xlu1 %1828  ;;  %v3706_v40 = vmul.bf16 %v3689_v28, %v21540_v3  ;;  %v3594_v59 = vsel %vm26013_vm1, %v21431_v6, %v3593_v52  ;;  %v26016_v28 = vrot.slane %v21519_v45, 4  ;;  %vm26023_vm1 = vmmov %vm26009_vm3 }
 0x274   : > { %v25428_v58 = vrot.slane %v21751_v27, 4  ;;  %v25430_v10 = vrot.slane %v21760_v63, 4  ;;  %v2460_v13 = vsel %vm20213_vm5, %v2398_v48, %v2459_v14  ;;  %v26019_v52 = vrot.slane %v21556_v54, 4  ;;  %v21809_v24 = vpop.f32.mrb[4].mxu1 }
 0x275   : > { %v2691_v38 = vsel %vm26017_vm14, %v26016_v28, %v25429_v36  ;;  %2461 = vst [vmem:[#allocation3 + $0xc8] sm:$0x33] %v2460_v13  ;;  %v1071_v48 = vmul.bf16 %v21755_v19, %v876_v5  ;;  %v1369_v13 = vshrl.u32 %v1253_v23, 16  ;;  %v1372_v28 = vshll.u32 %v1253_v23, 16  ;;  %3753 = vrot.lane.b32.xlu1 %v3706_v40, %s18858_s18  ;;  %v2613_v5 = vld [vmem:[#allocation2 + $0x74] sm:$0x33] }
 0x276   : > { %v1464_v50 = vsel %vm26015_vm10, %v26014_v2, %v25428_v58  ;;  %v1928_v7 = vsel %vm26008_vm6, %v26019_v52, %v25430_v10  ;;  %v21803_v58 = vrot.slane %v1754_v34, 5  ;;  %v21815_v23 = vsel %vm26011_vm12, %v2691_v38, %v21712_v53  ;;  %v3853_v34 = vld [vmem:[#allocation3 + $0x1c8] sm:$0x33]  ;;  %vm26025_vm10 = vmmov %vm26008_vm6 }
 0x277   : > { %v1465_v6 = vsel %vm26018_vm0, %v21545_v39, %v1464_v50  ;;  %v1929_v45 = vsel %vm26009_vm3, %v21556_v54, %v1928_v7  ;;  %v21801_v2 = vpop.permute.xlu1 %3747  ;;  %v3655_v39 = vld [vmem:[#allocation3 + $0x148] sm:$0xcc]  ;;  %26020 = vst [vmem:[#allocation67_spill] sm:$0xff] %v21815_v23  ;;  %v21820_v7 = vpop.f32.mrb[5].mxu1  ;;  %v26021_v40 = vrot.slane %v21588_v30, 4  ;;  %1119 = vrot.lane.b32.xlu0 %v1071_v48, %s18857_s16  ;;  %v1374_v36 = vrot.slane %v1372_v28, 7  ;;  %vm26028_vm0 = vmmov %vm26008_vm6 }
 0x278   : > { %v1529_v14 = vld [vmem:[#allocation3 + $0x50] sm:$0x66]  ;;  %2015 = vst [vmem:[#allocation3 + $0x48] sm:$0x88] %v1929_v45  ;;  %v25435_v52 = vrot.slane %v21801_v2, 4  ;;  %v3656_v54 = vsel %vm19378_vm7, %v3594_v59, %v3655_v39  ;;  %v4416_v38 = vpop.f32.mrb[6].mxu1  ;;  %vm26032_vm3 = vmmov %vm26028_vm0 }
 0x279   : > { %v1530_v50 = vsel %vm19767_vm4, %v1465_v6, %v1529_v14  ;;  %v3939_v6 = vld [vmem:[%s25231_s2] sm:$0xff]  ;;  %3657 = vst [vmem:[#allocation3 + $0x148] sm:$0xcc] %v3656_v54  ;;  %v3216_v14 = vrot.slane %v3182_v25, 7  ;;  %v4417_v10 = vpop.f32.mrb[7].mxu1  ;;  %v2726_v54 = vmul.bf16 %v21815_v23, %v2613_v5  ;;  %v1805_v48 = vrot.slane %v21803_v58, 4  ;;  %vm26033_vm12 = vmmov %vm26023_vm1 }
 0x27a   : > { %1531 = vst [vmem:[#allocation3 + $0x50] sm:$0x66] %v1530_v50  ;;  %v3796_v59 = vsel %vm26022_vm9, %v26021_v40, %v25435_v52  ;;  %v1371_v50 = vrot.slane %v1369_v13, 6  ;;  %3942 = vperm.xlu1 %18699, %v3939_v6   ;;  %v3385_v10 = vld [vmem:[#allocation2 + $0x74] sm:$0x33]  ;;  %vm26026_vm14 = vcmask 1039360   ;;  %vm26035_vm9 = vmmov %vm26028_vm0 }
 0x27b   : > { %v3797_v45 = vsel %vm26023_vm1, %v21588_v30, %v3796_v59  ;;  %v21830_v39 = vpop.permute.xlu1 %2936  ;;  %v26024_v30 = vrot.slane %v21624_v60, 4  ;;  %3247 = vrot.lane.b32.xlu0 %v3216_v14, %s18857_s16  ;;  %v2786_v40 = vshll.u32 %v2726_v54, 16  ;;  %v2867_v14 = vshrl.u32 %v2726_v54, 16  ;;  %vm26029_vm6 = vmmov %vm26026_vm14  ;;  %v2059_v23 = vld [vmem:[#allocation3 + $0xd0] sm:$0x11] }
 0x27c   : > { %v3854_v12 = vsel %vm19041_vm2, %v3797_v45, %v3853_v34  ;;  %v25434_v19 = vrot.slane %v21830_v39, 4  ;;  %v3900_v34 = vld [vmem:[#allocation3 + $0xc8] sm:$0xff]  ;;  %v1375_v6 = vor.u32 %v1374_v36, %v1371_v50  ;;  %v21849_v45 = vpop.f32.mrb[8].mxu1  ;;  %v3504_v52 = vshll.u32 %v3385_v10, 16 }
 0x27d   : > { %3855 = vst [vmem:[#allocation3 + $0x1c8] sm:$0x33] %v3854_v12  ;;  %v26027_v36 = vrot.slane %v21643_v55, 4  ;;  %v2869_v55 = vrot.slane %v2867_v14, 4  ;;  %vm26036_vm1 = vcmask 531456  }
 0x27e   : > { %v3034_v25 = vsel %vm26025_vm10, %v26024_v30, %v25434_v19  ;;  %1870 = vrot.lane.b32.xlu1 %v1805_v48, %s18858_s18  ;;  %v2091_v30 = vld [vmem:[#allocation2 + $0x70] sm:$0x33]  ;;  %v3501_v19 = vshrl.u32 %v3385_v10, 16  ;;  %vm26038_vm10 = vmmov %vm26028_vm0 }
 0x27f   : > { %v3035_v13 = vsel %vm26026_vm14, %v21624_v60, %v3034_v25  ;;  %v21845_v28 = vpop.permute.xlu1 %2122  ;;  %v3884_v5 = vld [vmem:[#allocation3 + $0x48] sm:$0xff]  ;;  %v21851_v60 = vpop.f32.mrb[9].mxu1  ;;  %vm26039_vm14 = vcmask 7168  }
 0x280   : > { %3144 = vst [vmem:[#allocation3 + $0x148] sm:$0x11] %v3035_v13  ;;  %v25437_v12 = vrot.slane %v21845_v28, 4  ;;  %v17482_v59 = vcombine.high %v3884_v5, %v3900_v34  ;;  %v17481_v38 = vcombine.low %v3884_v5, %v3900_v34  ;;  %v4457_v25 = vpop.f32.mrb[10].mxu1  ;;  %v2788_v5 = vrot.slane %v2786_v40, 5 }
 0x281   : > { %v4458_v54 = vpop.f32.mrb[11].mxu1 }
 0x282   : > { %v2170_v50 = vsel %vm26028_vm0, %v26027_v36, %v25437_v12  ;;  %4706 = vmatprep.subr.bf16.mxu1 %v17482_v59  ;;  %1420 = vrot.lane.b32.xlu1 %v1375_v6, %s18861_s29  ;;  %v3503_v36 = vrot.slane %v3501_v19, 5  ;;  %v3506_v59 = vrot.slane %v3504_v52, 6  ;;  %vm26040_vm0 = vcmask 220160  }
 0x283   : > { %v21860_v13 = vsel %vm26029_vm6, %v2170_v50, %v21845_v28  ;;  %v21862_v48 = vpop.permute.xlu1 %1864  ;;  %4707 = vmatpush1.bf16.msra.mxu1 %v17481_v38  ;;  %v26031_v50 = vrot.slane %v21668_v20, 4  ;;  %vm26042_vm6 = vmmov %vm26032_vm3 }
 0x284   : > { %26030 = vst [vmem:[#allocation68_spill] sm:$0xff] %v21860_v13  ;;  %v2205_v10 = vmul.bf16 %v21860_v13, %v2091_v30  ;;  %v25439_v34 = vrot.slane %v21862_v48, 4  ;;  %v3932_v13 = vld [vmem:[#allocation3 + $0x1c8] sm:$0x33]  ;;  %v3507_v9 = vor.u32 %v3506_v59, %v3503_v36 }
 0x286   : > { %v2307_v25 = vshrl.u32 %v2205_v10, 16  ;;  %v2310_v12 = vshll.u32 %v2205_v10, 16  ;;  %v1962_v38 = vsel %vm26032_vm3, %v26031_v50, %v25439_v34  ;;  %2910 = vrot.lane.b32.xlu1 %v2788_v5, %s18859_s22  ;;  %v21880_v10 = vpop.f32.mrb[12].mxu1  ;;  %v3353_v50 = vld [vmem:[#allocation3 + $0x150] sm:$0x66]  ;;  %vm26043_vm3 = vmmov %vm26033_vm12 }
 0x287   : > { %v1963_v40 = vsel %vm26033_vm12, %v21668_v20, %v1962_v38  ;;  %v21874_v30 = vpop.permute.xlu1 %3241  ;;  %v3916_v54 = vld [vmem:[#allocation3 + $0x148] sm:$0xff]  ;;  %v2870_v20 = vor.u32 %v2869_v55, %v2788_v5  ;;  %v21882_v38 = vpop.f32.mrb[13].mxu1  ;;  %v2525_v55 = vrot.slane %v2493_v21, 6  ;;  %v26037_v21 = vrot.slane %v21719_v17, 4  ;;  %vm26045_vm12 = vmmov %vm26042_vm6 }
 0x288   : > { %v2309_v6 = vrot.slane %v2307_v25, 7  ;;  %v2060_v19 = vsel %vm20047_vm15, %v1963_v40, %v2059_v23  ;;  %v25453_v52 = vrot.slane %v21874_v30, 4  ;;  %v17514_v14 = vcombine.high %v3916_v54, %v3932_v13  ;;  %v4498_v32 = vpop.f32.mrb[14].mxu1 }
 0x289   : > { %2061 = vst [vmem:[#allocation3 + $0xd0] sm:$0x11] %v2060_v19  ;;  %v17513_v34 = vcombine.low %v3916_v54, %v3932_v13  ;;  %v26034_v25 = vrot.slane %v21687_v8, 4  ;;  %v4499_v5 = vpop.f32.mrb[15].mxu1  ;;  %v2871_v32 = vrot.slane %v2870_v20, 4 }
 0x28a   : > { %v2312_v40 = vor.u32 %v2310_v12, %v2309_v6  ;;  %v4299_v3 = vand.u32 %v17514_v14, %v20287_v51  ;;  %v2590_v12 = vld [vmem:[#allocation3 + $0xe8] sm:$0xcc]  ;;  %3552 = vrot.lane.b32.xlu1 %v3507_v9, %s18861_s29  ;;  %v3690_v6 = vld [vmem:[#allocation2 + $0x74] sm:$0x33] }
 0x28b   : > { %v3290_v23 = vsel %vm26035_vm9, %v26034_v25, %v25453_v52  ;;  %v21892_v4 = vpop.permute.xlu1 %2349  ;;  %v4296_v13 = vand.u32 %v17513_v34, %v20287_v51  ;;  %v3707_v25 = vmul.bf16 %v3690_v6, %v21735_v29  ;;  %vm26046_vm9 = vmmov %vm26043_vm3 }
 0x28c   : > { %v3291_v19 = vsel %vm26036_vm1, %v21687_v8, %v3290_v23  ;;  %v25452_v59 = vrot.slane %v21892_v4, 4  ;;  %2355 = vrot.lane.b32.xlu0 %v2312_v40, %s18860_s23  ;;  %4708 = vmatprep.subr.bf16.mxu1 %v4299_v3  ;;  %v2591_v8 = vsel %vm25796_vm13, %v2525_v55, %v2590_v12  ;;  %vm26048_vm1 = vmmov %vm26042_vm6 }
 0x28d   : > { %v3354_v36 = vsel %vm19963_vm8, %v3291_v19, %v3353_v50  ;;  %4709 = vmatpush1.bf16.msra.mxu1 %v4296_v13  ;;  %2592 = vst [vmem:[#allocation3 + $0xe8] sm:$0xcc] %v2591_v8  ;;  %v3856_v19 = vld [vmem:[#allocation3 + $0x1d0] sm:$0x33]  ;;  %v26044_v13 = vrot.slane %v21801_v2, 4  ;;  %v26047_v8 = vrot.slane %v21572_v46, 4 }
 0x28e   : > { %3355 = vst [vmem:[#allocation3 + $0x150] sm:$0x66] %v3354_v36  ;;  %v2399_v34 = vsel %vm26038_vm10, %v26037_v21, %v25452_v59  ;;  %2944 = vrot.lane.b32.xlu1 %v2871_v32, %s18859_s22  ;;  %v3117_v32 = vld [vmem:[#allocation3 + $0xd0] sm:$0x88]  ;;  %vm26049_vm10 = vcmask 1039360  }
 0x28f   : > { %v2400_v54 = vsel %vm26039_vm14, %v21719_v17, %v2399_v34  ;;  %v21909_v3 = vpop.permute.xlu1 %1830  ;;  %v26041_v17 = vrot.slane %v21760_v63, 4  ;;  %vm26051_vm14 = vmmov %vm26048_vm1 }
 0x290   : > { %v2462_v14 = vld [vmem:[#allocation3 + $0xd0] sm:$0x33]  ;;  %v25451_v9 = vrot.slane %v21909_v3, 4  ;;  %1836 = vrot.lane.b32.xlu0 %v21803_v58, %s18858_s18  ;;  %17536 = vmatmul.mubr.msk.bf16.vlgmr.msra.gmra.mrb[36].mxu1 %vm26040_vm0, %v21769_v0  ;;  %vm26053_vm0 = vmmov %vm26048_vm1 }
 0x291   : > { %v2463_v50 = vsel %vm20213_vm5, %v2400_v54, %v2462_v14  ;;  %4779 = vmatprep.mubr.bf16.mxu1 %v25720_v44 }
 0x292   : > { %2464 = vst [vmem:[#allocation3 + $0xd0] sm:$0x33] %v2463_v50  ;;  %v1930_v20 = vsel %vm26042_vm6, %v26041_v17, %v25451_v9  ;;  %v21941_v36 = vpop.permute.xlu0 %2904  ;;  %v26050_v17 = vrot.slane %v21830_v39, 4  ;;  %vm26054_vm6 = vmmov %vm26049_vm10 }
 0x293   : > { %v1931_v58 = vsel %vm26043_vm3, %v21760_v63, %v1930_v20  ;;  %v21928_v23 = vpop.permute.xlu1 %3749  ;;  %v25450_v12 = vrot.slane %v21941_v36, 4  ;;  %vm26055_vm3 = vcmask 523264  }
 0x294   : > { %2016 = vst [vmem:[#allocation3 + $0x50] sm:$0x88] %v1931_v58  ;;  %v25448_v40 = vrot.slane %v21928_v23, 4  ;;  %3755 = vrot.lane.b32.xlu0 %v3707_v25, %s18858_s18 }
 0x295   : > { %v3004_v21 = vsel %vm26048_vm1, %v26047_v8, %v25450_v12  ;;  %vm26062_vm1 = vcmask 531456  }
 0x296   : > { %v3798_v5 = vsel %vm26045_vm12, %v26044_v13, %v25448_v40  ;;  %v3005_v34 = vsel %vm26049_vm10, %v21572_v46, %v3004_v21  ;;  %v26052_v46 = vrot.slane %v21614_v49, 4  ;;  %v1254_v21 = vld [vmem:[#allocation2 + $0x78] sm:$0x33]  ;;  %vm26059_vm12 = vmmov %vm26053_vm0 }
 0x297   : > { %v3799_v55 = vsel %vm26046_vm9, %v21801_v2, %v3798_v5  ;;  %v21951_v54 = vpop.permute.xlu1 %2938  ;;  %v21953_v2 = vpop.permute.xlu0 %3546  ;;  %v3118_v6 = vsel %vm20128_vm11, %v3005_v34, %v3117_v32  ;;  %vm26061_vm9 = vmmov %vm26053_vm0  ;;  %v1380_v40 = vshll.u32 %v1254_v21, 16 }
 0x298   : > { %v3857_v63 = vsel %vm19041_vm2, %v3799_v55, %v3856_v19  ;;  %v25447_v14 = vrot.slane %v21951_v54, 4  ;;  %v25449_v50 = vrot.slane %v21953_v2, 4  ;;  %3119 = vst [vmem:[#allocation3 + $0xd0] sm:$0x88] %v3118_v6  ;;  %v3658_v19 = vld [vmem:[#allocation3 + $0x150] sm:$0xcc]  ;;  %vm26064_vm10 = vmmov %vm26054_vm6 }
 0x299   : > { %3858 = vst [vmem:[#allocation3 + $0x1d0] sm:$0x33] %v3857_v63  ;;  %v1562_v6 = vld [vmem:[#allocation2 + $0x78] sm:$0x33] }
 0x29a   : > { %v3036_v20 = vsel %vm26051_vm14, %v26050_v17, %v25447_v14  ;;  %v3595_v25 = vsel %vm26053_vm0, %v26052_v46, %v25449_v50  ;;  %v21979_v34 = vpop.f32.mrb[16].mxu1  ;;  %v26060_v46 = vrot.slane %v21845_v28, 4  ;;  %v1377_v14 = vshrl.u32 %v1254_v21, 16  ;;  %vm26068_vm14 = vmmov %vm26053_vm0 }
 0x29b   : > { %v3037_v58 = vsel %vm26054_vm6, %v21830_v39, %v3036_v20  ;;  %v3596_v13 = vsel %vm26055_vm3, %v21614_v49, %v3595_v25  ;;  %v1675_v5 = vpop.permute.xlu0 %1674  ;;  %v2125_v55 = vpop.permute.xlu1 %2124  ;;  %v2092_v39 = vld [vmem:[#allocation2 + $0x78] sm:$0x33]  ;;  %v26058_v49 = vrot.slane %v21637_v56, 4  ;;  %vm26069_vm0 = vcmask 515072   ;;  %vm26073_vm3 = vmmov %vm26061_vm9 }
 0x29c   : > { %3145 = vst [vmem:[#allocation3 + $0x150] sm:$0x11] %v3037_v58  ;;  %v3659_v63 = vsel %vm19378_vm7, %v3596_v13, %v3658_v19  ;;  %v21975_v32 = vrot.slane %v1675_v5, 4  ;;  %v21977_v8 = vrot.slane %v2125_v55, 4  ;;  %v21981_v17 = vpop.f32.mrb[17].mxu1  ;;  %v3885_v28 = vld [vmem:[#allocation3 + $0x50] sm:$0xff] }
 0x29d   : > { %3660 = vst [vmem:[#allocation3 + $0x150] sm:$0xcc] %v3659_v63  ;;  %v4539_v58 = vpop.f32.mrb[18].mxu1  ;;  %v1379_v21 = vrot.slane %v1377_v14, 6  ;;  %vm26071_vm6 = vcmask 220160  }
 0x29e   : > { %26056 = vst [vmem:[#allocation69_spill] sm:$0xff] %v21975_v32  ;;  %26057 = vst [vmem:[#allocation70_spill] sm:$0xff] %v21977_v8  ;;  %v1721_v20 = vsel %vm26059_vm12, %v26058_v49, %v21975_v32  ;;  %v2172_v25 = vsel %vm26061_vm9, %v26060_v46, %v21977_v8  ;;  %v4540_v50 = vpop.f32.mrb[19].mxu1  ;;  %v3166_v46 = vld [vmem:[#allocation2 + $0x7c] sm:$0x33] }
 0x29f   : > { %v21992_v19 = vsel %vm26062_vm1, %v1721_v20, %v1675_v5  ;;  %v21995_v13 = vsel %vm26064_vm10, %v2172_v25, %v2125_v55  ;;  %v990_v63 = vpop.permute.xlu0 %989  ;;  %v3901_v9 = vld [vmem:[#allocation3 + $0xd0] sm:$0xff]  ;;  %v26067_v55 = vrot.slane %v21652_v47, 4  ;;  %vm26075_vm12 = vmmov %vm26073_vm3 }
 0x2a0   : > { %26063 = vst [vmem:[#allocation71_spill] sm:$0xff] %v21992_v19  ;;  %26065 = vst [vmem:[#allocation72_spill] sm:$0xff] %v21995_v13  ;;  %v1755_v56 = vmul.bf16 %v21992_v19, %v1562_v6  ;;  %v2206_v49 = vmul.bf16 %v21995_v13, %v2092_v39  ;;  %v21999_v12 = vrot.slane %v990_v63, 4  ;;  %v17484_v58 = vcombine.high %v3885_v28, %v3901_v9  ;;  %v877_v5 = vld [vmem:[#allocation2 + $0x78] sm:$0x33] }
 0x2a1   : > { %v17483_v59 = vcombine.low %v3885_v28, %v3901_v9  ;;  %v1382_v6 = vrot.slane %v1380_v40, 7  ;;  %vm26076_vm9 = vmmov %vm26069_vm0 }
 0x2a2   : > { %26066 = vst [vmem:[#allocation73_spill] sm:$0xff] %v21999_v12  ;;  %v1789_v20 = vrot.slane %v1755_v56, 5  ;;  %v1038_v25 = vsel %vm26068_vm14, %v26067_v55, %v21999_v12  ;;  %4747 = vmatprep.subr.bf16.mxu1 %v17484_v58  ;;  %v2314_v39 = vshrl.u32 %v2206_v49, 16  ;;  %v3933_v56 = vld [vmem:[#allocation3 + $0x1d0] sm:$0x33]  ;;  %v2317_v58 = vshll.u32 %v2206_v49, 16  ;;  %vm26079_vm10 = vmmov %vm26073_vm3 }
 0x2a3   : > { %v22006_v50 = vsel %vm26069_vm0, %v1038_v25, %v990_v63  ;;  %4748 = vmatpush1.bf16.msra.mxu1 %v17483_v59  ;;  %v1383_v40 = vor.u32 %v1382_v6, %v1379_v21  ;;  %vm26081_vm14 = vmmov %vm26073_vm3 }
 0x2a4   : > { %26070 = vst [vmem:[#allocation74_spill] sm:$0xff] %v22006_v50  ;;  %v3183_v52 = vmul.bf16 %v3166_v46, %v22006_v50  ;;  %v1806_v13 = vrot.slane %v1789_v20, 4  ;;  %v1072_v9 = vmul.bf16 %v22006_v50, %v877_v5  ;;  %v3917_v28 = vld [vmem:[#allocation3 + $0x150] sm:$0xff]  ;;  %v2316_v63 = vrot.slane %v2314_v39, 7  ;;  %v3167_v5 = vld [vmem:[#allocation2 + $0x84] sm:$0x3]  ;;  %vm26082_vm0 = vmmov %vm26062_vm1 }
 0x2a5   : > { %v17516_v29 = vcombine.high %v3917_v28, %v3933_v56  ;;  %v17515_v26 = vcombine.low %v3917_v28, %v3933_v56  ;;  %v3184_v6 = vmul.bf16 %v3167_v5, %v21999_v12 }
 0x2a6   : > { %1872 = vrot.lane.b32.xlu1 %v1806_v13, %s18858_s18  ;;  %1121 = vrot.lane.b32.xlu0 %v1072_v9, %s18857_s16  ;;  %v3217_v46 = vrot.slane %v3183_v52, 7  ;;  %v2319_v59 = vor.u32 %v2317_v58, %v2316_v63  ;;  %v2093_v13 = vld [vmem:[#allocation2 + $0x80] sm:$0x3] }
 0x2a7   : > { %v4305_v47 = vand.u32 %v17516_v29, %v20287_v51  ;;  %v4302_v14 = vand.u32 %v17515_v26, %v20287_v51  ;;  %v2207_v26 = vmul.bf16 %v21977_v8, %v2093_v13  ;;  %v3691_v29 = vld [vmem:[#allocation2 + $0x7c] sm:$0x33] }
 0x2a8   : > { %v878_v52 = vld [vmem:[#allocation2 + $0x80] sm:$0x3]  ;;  %v3708_v49 = vmul.bf16 %v3691_v29, %v21992_v19 }
 0x2a9   : > { %4749 = vmatprep.subr.bf16.mxu1 %v4305_v47  ;;  %v2321_v55 = vshrl.u32 %v2207_v26, 16  ;;  %v1073_v25 = vmul.bf16 %v21999_v12, %v878_v52  ;;  %v2324_v56 = vshll.u32 %v2207_v26, 16  ;;  %v2062_v63 = vld [vmem:[#allocation3 + $0xd8] sm:$0x11]  ;;  %v26074_v26 = vrot.slane %v21678_v33, 4 }
 0x2aa   : > { %3249 = vrot.lane.b32.xlu0 %v3217_v46, %s18857_s16  ;;  %4750 = vmatpush1.bf16.msra.mxu1 %v4302_v14  ;;  %v1224_v58 = vld [vmem:[#allocation3 + $0x58] sm:$0x33]  ;;  %v3218_v52 = vrot.slane %v3184_v6, 7 }
 0x2ab   : > { %1422 = vrot.lane.b32.xlu1 %v1383_v40, %s18861_s29  ;;  %v1563_v8 = vld [vmem:[#allocation2 + $0x80] sm:$0x3] }
 0x2ac   : > { %v3356_v6 = vld [vmem:[#allocation3 + $0x158] sm:$0x66] }
 0x2ad   : > { %17537 = vmatmul.mubr.msk.bf16.vlgmr.msra.gmra.mrb[40].mxu1 %vm26071_vm6, %v21769_v0  ;;  %vm26083_vm6 = vcmask 7168  }
 0x2ae   : > { %2357 = vrot.lane.b32.xlu0 %v2319_v59, %s18860_s23  ;;  %4820 = vmatprep.mubr.bf16.mxu1 %v25720_v44  ;;  %v26072_v59 = vrot.slane %v21862_v48, 4 }
 0x2b2   : > { %1838 = vrot.lane.b32.xlu0 %v1789_v20, %s18858_s18  ;;  %v2323_v20 = vrot.slane %v2321_v55, 7 }
 0x2b6   : > { %3757 = vrot.lane.b32.xlu0 %v3708_v49, %s18858_s18  ;;  %v3386_v49 = vld [vmem:[#allocation2 + $0x7c] sm:$0x33] }
 0x2ba   : > { %1123 = vrot.lane.b32.xlu0 %v1073_v25, %s18857_s16 }
 0x2bb   : > { %v22030_v9 = vpop.permute.xlu1 %1866  ;;  %v22032_v28 = vpop.permute.xlu0 %1115 }
 0x2bc   : > { %v22025_v21 = vpop.f32.mrb[20].mxu1  ;;  %v25460_v47 = vrot.slane %v22030_v9, 4  ;;  %v25461_v14 = vrot.slane %v22032_v28, 4 }
 0x2bd   : > { %v22028_v39 = vpop.f32.mrb[21].mxu1 }
 0x2be   : > { %v4580_v40 = vpop.f32.mrb[22].mxu1  ;;  %v1964_v13 = vsel %vm26073_vm3, %v26072_v59, %v25460_v47  ;;  %v1165_v29 = vsel %vm26075_vm12, %v26074_v26, %v25461_v14  ;;  %v2494_v59 = vld [vmem:[#allocation2 + $0x74] sm:$0x33]  ;;  %3251 = vrot.lane.b32.xlu0 %v3218_v52, %s18857_s16  ;;  %v1756_v52 = vmul.bf16 %v21975_v32, %v1563_v8  ;;  %vm26087_vm12 = vmmov %vm26073_vm3 }
 0x2bf   : > { %v4581_v46 = vpop.f32.mrb[23].mxu1  ;;  %v1965_v5 = vsel %vm26076_vm9, %v21862_v48, %v1964_v13  ;;  %v1166_v55 = vsel %vm26062_vm1, %v21678_v33, %v1165_v29  ;;  %v22051_v25 = vpop.permute.xlu1 %3243  ;;  %v2593_v33 = vld [vmem:[#allocation3 + $0xf0] sm:$0xcc]  ;;  %v2614_v48 = vld [vmem:[#allocation2 + $0x7c] sm:$0x33]  ;;  %v2526_v13 = vrot.slane %v2494_v59, 6  ;;  %vm26089_vm1 = vmmov %vm26083_vm6 }
 0x2c0   : > { %v2647_v40 = vpop.permute.xlu0 %2646  ;;  %v2326_v46 = vor.u32 %v2324_v56, %v2323_v20  ;;  %v2063_v47 = vsel %vm20047_vm15, %v1965_v5, %v2062_v63  ;;  %v1225_v26 = vsel %vm19041_vm2, %v1166_v55, %v1224_v58  ;;  %v25468_v14 = vrot.slane %v22051_v25, 4 }
 0x2c1   : > { %v22058_v12 = vrot.slane %v2647_v40, 4  ;;  %2064 = vst [vmem:[#allocation3 + $0xd8] sm:$0x11] %v2063_v47  ;;  %1226 = vst [vmem:[#allocation3 + $0x58] sm:$0x33] %v1225_v26  ;;  %v3509_v20 = vshrl.u32 %v3386_v49, 16  ;;  %v2594_v59 = vsel %vm25796_vm13, %v2526_v13, %v2593_v33 }
 0x2c2   : > { %v3512_v56 = vshll.u32 %v3386_v49, 16  ;;  %v26078_v63 = vrot.slane %v21874_v30, 4  ;;  %v26080_v29 = vrot.slane %v21712_v53, 4  ;;  %2359 = vrot.lane.b32.xlu0 %v2326_v46, %s18860_s23  ;;  %2595 = vst [vmem:[#allocation3 + $0xf0] sm:$0xcc] %v2594_v59  ;;  %v26086_v46 = vrot.slane %v21892_v4, 4 }
 0x2c3   : > { %26077 = vst [vmem:[#allocation75_spill] sm:$0xff] %v22058_v12  ;;  %vm26088_vm9 = vcmask 523264  }
 0x2c4   : > { %v3292_v58 = vsel %vm26079_vm10, %v26078_v63, %v25468_v14  ;;  %v2693_v5 = vsel %vm26081_vm14, %v26080_v29, %v22058_v12  ;;  %v22076_v49 = vpop.permute.xlu0 %1416  ;;  %v22083_v63 = vpop.permute.xlu1 %2351  ;;  %vm26091_vm10 = vmmov %vm26073_vm3 }
 0x2c5   : > { %v3293_v47 = vsel %vm26082_vm0, %v21874_v30, %v3292_v58  ;;  %v22074_v55 = vsel %vm26083_vm6, %v2693_v5, %v2647_v40  ;;  %v25464_v8 = vrot.slane %v22076_v49, 4  ;;  %v25465_v30 = vrot.slane %v22083_v63, 4  ;;  %vm26093_vm14 = vmmov %vm26073_vm3 }
 0x2c6   : > { %26084 = vst [vmem:[#allocation76_spill] sm:$0xff] %v22074_v55  ;;  %v3357_v26 = vsel %vm19963_vm8, %v3293_v47, %v3356_v6  ;;  %v2727_v53 = vmul.bf16 %v22074_v55, %v2614_v48  ;;  %v3511_v40 = vrot.slane %v3509_v20, 5  ;;  %v3514_v58 = vrot.slane %v3512_v56, 6  ;;  %v3692_v47 = vld [vmem:[#allocation2 + $0x84] sm:$0x3] }
 0x2c7   : > { %3358 = vst [vmem:[#allocation3 + $0x158] sm:$0x66] %v3357_v26  ;;  %v26085_v6 = vrot.slane %v21751_v27, 4  ;;  %v22093_v48 = vrot.slane %v1756_v52, 5  ;;  %v2401_v13 = vsel %vm26087_vm12, %v26086_v46, %v25465_v30  ;;  %v26090_v30 = vrot.slane %v21909_v3, 4  ;;  %vm26098_vm12 = vmmov %vm26073_vm3 }
 0x2c8   : > { %v2790_v29 = vshll.u32 %v2727_v53, 16  ;;  %v2872_v5 = vshrl.u32 %v2727_v53, 16  ;;  %v22102_v56 = vpop.permute.xlu0 %2906  ;;  %v2465_v53 = vld [vmem:[#allocation3 + $0xd8] sm:$0x33]  ;;  %vm26094_vm0 = vcmask 515072   ;;  %vm26095_vm6 = vcmask 1039360  }
 0x2c9   : > { %v1466_v33 = vsel %vm26073_vm3, %v26085_v6, %v25464_v8  ;;  %v2402_v6 = vsel %vm26089_vm1, %v21892_v4, %v2401_v13  ;;  %v1532_v52 = vld [vmem:[#allocation3 + $0x58] sm:$0x66]  ;;  %v22106_v8 = vpop.permute.xlu1 %1832  ;;  %1840 = vrot.lane.b32.xlu0 %v22093_v48, %s18858_s18  ;;  %v3709_v4 = vmul.bf16 %v3692_v47, %v21975_v32  ;;  %v3515_v13 = vor.u32 %v3514_v58, %v3511_v40  ;;  %vm26099_vm1 = vmmov %vm26094_vm0 }
 0x2ca   : > { %v1467_v20 = vsel %vm26088_vm9, %v21751_v27, %v1466_v33  ;;  %v2792_v59 = vrot.slane %v2790_v29, 5  ;;  %v2874_v26 = vrot.slane %v2872_v5, 4  ;;  %v2466_v46 = vsel %vm20213_vm5, %v2402_v6, %v2465_v53  ;;  %v3120_v5 = vld [vmem:[#allocation3 + $0xd8] sm:$0x88] }
 0x2cb   : > { %v1533_v27 = vsel %vm19767_vm4, %v1467_v20, %v1532_v52  ;;  %v25466_v33 = vrot.slane %v22106_v8, 4  ;;  %v25467_v29 = vrot.slane %v22102_v56, 4  ;;  %2467 = vst [vmem:[#allocation3 + $0xd8] sm:$0x33] %v2466_v46  ;;  %v26092_v20 = vrot.slane %v21941_v36, 4 }
 0x2cc   : > { %1534 = vst [vmem:[#allocation3 + $0x58] sm:$0x66] %v1533_v27  ;;  %2912 = vrot.lane.b32.xlu1 %v2792_v59, %s18859_s22  ;;  %v22128_v52 = vpop.permute.xlu0 %3548  ;;  %v1255_v46 = vld [vmem:[#allocation2 + $0x80] sm:$0x3] }
 0x2cd   : > { %v1932_v53 = vsel %vm26091_vm10, %v26090_v30, %v25466_v33  ;;  %v3006_v6 = vsel %vm26093_vm14, %v26092_v20, %v25467_v29  ;;  %v22134_v58 = vpop.permute.xlu1 %3751  ;;  %v25469_v47 = vrot.slane %v22128_v52, 4  ;;  %3759 = vrot.lane.b32.xlu0 %v3709_v4, %s18858_s18  ;;  %v2875_v30 = vor.u32 %v2874_v26, %v2792_v59  ;;  %vm26101_vm10 = vmmov %vm26073_vm3 }
 0x2ce   : > { %v1933_v27 = vsel %vm26094_vm0, %v21909_v3, %v1932_v53  ;;  %v3007_v40 = vsel %vm26095_vm6, %v21941_v36, %v3006_v6  ;;  %v25473_v33 = vrot.slane %v22134_v58, 4  ;;  %v3859_v3 = vld [vmem:[#allocation3 + $0x1d8] sm:$0x33]  ;;  %v26096_v36 = vrot.slane %v21953_v2, 4  ;;  %vm26103_vm14 = vmmov %vm26073_vm3 }
 0x2cf   : > { %2017 = vst [vmem:[#allocation3 + $0x58] sm:$0x88] %v1933_v27  ;;  %v3121_v20 = vsel %vm20128_vm11, %v3007_v40, %v3120_v5  ;;  %v1385_v4 = vshrl.u32 %v1255_v46, 16  ;;  %v1388_v59 = vshll.u32 %v1255_v46, 16  ;;  %v26097_v5 = vrot.slane %v21928_v23, 4  ;;  %vm26104_vm0 = vmmov %vm26095_vm6 }
 0x2d0   : > { %v22141_v29 = vpop.f32.mrb[24].mxu1  ;;  %3122 = vst [vmem:[#allocation3 + $0xd8] sm:$0x88] %v3121_v20  ;;  %v3597_v53 = vsel %vm26073_vm3, %v26096_v36, %v25469_v47  ;;  %3554 = vrot.lane.b32.xlu1 %v3515_v13, %s18861_s29  ;;  %v3661_v27 = vld [vmem:[#allocation3 + $0x158] sm:$0xcc]  ;;  %v22158_v20 = vpop.permute.xlu0 %2940  ;;  %v2876_v55 = vrot.slane %v2875_v30, 4 }
 0x2d1   : > { %v22149_v26 = vpop.f32.mrb[25].mxu1  ;;  %v3800_v6 = vsel %vm26098_vm12, %v26097_v5, %v25473_v33  ;;  %v3598_v40 = vsel %vm26088_vm9, %v21953_v2, %v3597_v53  ;;  %v2615_v36 = vld [vmem:[#allocation2 + $0x84] sm:$0x3]  ;;  %v22164_v47 = vpop.permute.xlu1 %1117  ;;  %v25475_v32 = vrot.slane %v22158_v20, 4  ;;  %vm26105_vm6 = vcmask 531456   ;;  %vm26108_vm12 = vmmov %vm26073_vm3 }
 0x2d2   : > { %v4621_v14 = vpop.f32.mrb[26].mxu1  ;;  %v3801_v13 = vsel %vm26099_vm1, %v21928_v23, %v3800_v6  ;;  %v3662_v46 = vsel %vm19378_vm7, %v3598_v40, %v3661_v27  ;;  %v25474_v2 = vrot.slane %v22164_v47, 4  ;;  %v26100_v23 = vrot.slane %v21951_v54, 4  ;;  %v3387_v30 = vld [vmem:[#allocation2 + $0x84] sm:$0x3]  ;;  %vm26109_vm9 = vmmov %vm26099_vm1 }
 0x2d3   : > { %v4622_v5 = vpop.f32.mrb[27].mxu1  ;;  %v3860_v33 = vsel %vm19041_vm2, %v3801_v13, %v3859_v3  ;;  %3663 = vst [vmem:[#allocation3 + $0x158] sm:$0xcc] %v3662_v46  ;;  %v1227_v14 = vld [vmem:[#allocation3 + $0x60] sm:$0x33]  ;;  %v1387_v6 = vrot.slane %v1385_v4, 6  ;;  %v2728_v40 = vmul.bf16 %v22058_v12, %v2615_v36  ;;  %vm26110_vm1 = vmmov %vm26105_vm6 }
 0x2d4   : > { %3861 = vst [vmem:[#allocation3 + $0x1d8] sm:$0x33] %v3860_v33  ;;  %v3038_v53 = vsel %vm26101_vm10, %v26100_v23, %v25475_v32  ;;  %2946 = vrot.lane.b32.xlu1 %v2876_v55, %s18859_s22  ;;  %v1390_v27 = vrot.slane %v1388_v59, 7  ;;  %v26102_v3 = vrot.slane %v22032_v28, 4  ;;  %v22184_v46 = vpop.permute.xlu0 %1868  ;;  %v1807_v59 = vrot.slane %v22093_v48, 4  ;;  %vm26112_vm10 = vmmov %vm26073_vm3 }
 0x2d5   : > { %v3039_v13 = vsel %vm26104_vm0, %v21951_v54, %v3038_v53  ;;  %v22188_v55 = vpop.permute.xlu1 %3245  ;;  %v1906_v4 = vrot.slane %v22184_v46, 4  ;;  %v3517_v53 = vshrl.u32 %v3387_v30, 16  ;;  %v3520_v32 = vshll.u32 %v3387_v30, 16  ;;  %v3359_v12 = vld [vmem:[#allocation3 + $0x160] sm:$0x66] }
 0x2d6   : > { %v1167_v33 = vsel %vm26103_vm14, %v26102_v3, %v25474_v2  ;;  %3146 = vst [vmem:[#allocation3 + $0x158] sm:$0x11] %v3039_v13  ;;  %v3886_v36 = vld [vmem:[#allocation3 + $0x58] sm:$0xff]  ;;  %v3266_v3 = vrot.slane %v22188_v55, 4  ;;  %v2065_v2 = vld [vmem:[#allocation3 + $0xe0] sm:$0x11]  ;;  %v1391_v19 = vor.u32 %v1390_v27, %v1387_v6 }
 0x2d7   : > { %v1168_v5 = vsel %vm26105_vm6, %v22032_v28, %v1167_v33  ;;  %v3902_v54 = vld [vmem:[#allocation3 + $0xd8] sm:$0xff]  ;;  %v26106_v28 = vrot.slane %v22030_v9, 4  ;;  %v2794_v41 = vshll.u32 %v2728_v40, 16  ;;  %vm26113_vm14 = vcmask 523264   ;;  %vm26117_vm6 = vmmov %vm26073_vm3 }
 0x2d8   : > { %v1228_v23 = vsel %vm19041_vm2, %v1168_v5, %v1227_v14  ;;  %1874 = vrot.lane.b32.xlu1 %v1807_v59, %s18858_s18  ;;  %v17486_v48 = vcombine.high %v3886_v36, %v3902_v54  ;;  %v17485_v13 = vcombine.low %v3886_v36, %v3902_v54  ;;  %v2877_v14 = vshrl.u32 %v2728_v40, 16  ;;  %v22208_v50 = vpop.permute.xlu0 %1418 }
 0x2d9   : > { %1229 = vst [vmem:[#allocation3 + $0x60] sm:$0x33] %v1228_v23  ;;  %v1966_v33 = vsel %vm26073_vm3, %v26106_v28, %v1906_v4  ;;  %v26107_v5 = vrot.slane %v22051_v25, 4  ;;  %v2596_v28 = vld [vmem:[#allocation3 + $0xf8] sm:$0xcc]  ;;  %v1439_v27 = vrot.slane %v22208_v50, 4 }
 0x2da   : > { %v1967_v23 = vsel %vm26109_vm9, %v22030_v9, %v1966_v33  ;;  %4788 = vmatprep.subr.bf16.mxu1 %v17486_v48  ;;  %v2527_v36 = vrot.slane %v2495_v22, 6  ;;  %v3519_v9 = vrot.slane %v3517_v53, 5  ;;  %v3522_v33 = vrot.slane %v3520_v32, 6  ;;  %vm26121_vm9 = vmmov %vm26113_vm14 }
 0x2db   : > { %v3294_v30 = vsel %vm26108_vm12, %v26107_v5, %v3266_v3  ;;  %v2066_v6 = vsel %vm20047_vm15, %v1967_v23, %v2065_v2  ;;  %4789 = vmatpush1.bf16.msra.mxu1 %v17485_v13  ;;  %v26111_v40 = vrot.slane %v22076_v49, 4  ;;  %v3934_v53 = vld [vmem:[#allocation3 + $0x1d8] sm:$0x33]  ;;  %v2879_v32 = vrot.slane %v2877_v14, 4  ;;  %vm26120_vm12 = vmmov %vm26117_vm6 }
 0x2dc   : > { %v3295_v59 = vsel %vm26110_vm1, %v22051_v25, %v3294_v30  ;;  %2067 = vst [vmem:[#allocation3 + $0xe0] sm:$0x11] %v2066_v6  ;;  %1424 = vrot.lane.b32.xlu1 %v1391_v19, %s18861_s29  ;;  %v2597_v2 = vsel %vm25796_vm13, %v2527_v36, %v2596_v28  ;;  %v2796_v5 = vrot.slane %v2794_v41, 5  ;;  %v3123_v6 = vld [vmem:[#allocation3 + $0xe0] sm:$0x88]  ;;  %v3523_v1 = vor.u32 %v3522_v33, %v3519_v9  ;;  %vm26115_vm13 = vmmov %vm26073_vm3 }
 0x2dd   : > { %v3360_v54 = vsel %vm19963_vm8, %v3295_v59, %v3359_v12  ;;  %v1468_v25 = vsel %vm26112_vm10, %v26111_v40, %v1439_v27  ;;  %v22227_v12 = vpop.permute.xlu0 %2908  ;;  %v3918_v48 = vld [vmem:[#allocation3 + $0x158] sm:$0xff]  ;;  %2598 = vst [vmem:[#allocation3 + $0xf8] sm:$0xcc] %v2597_v2  ;;  %vm26118_vm3 = vcmask 7168   ;;  %vm26123_vm1 = vmmov %vm26117_vm6  ;;  %vm26124_vm10 = vcmask 220160  }
 0x2de   : > { %3361 = vst [vmem:[#allocation3 + $0x160] sm:$0x66] %v3360_v54  ;;  %v1469_v22 = vsel %vm26113_vm14, %v22076_v49, %v1468_v25  ;;  %v2963_v13 = vrot.slane %v22227_v12, 4  ;;  %v17518_v30 = vcombine.high %v3918_v48, %v3934_v53  ;;  %v17517_v23 = vcombine.low %v3918_v48, %v3934_v53 }
 0x2df   : > { %v22230_v19 = vpop.permute.xlu1 %2353  ;;  %v26114_v49 = vrot.slane %v22102_v56, 4  ;;  %v26116_v25 = vrot.slane %v22083_v63, 4  ;;  %v2880_v53 = vor.u32 %v2879_v32, %v2796_v5  ;;  %vm26125_vm14 = vcmask 515072  }
 0x2e0   : > { %v1535_v59 = vld [vmem:[#allocation3 + $0x60] sm:$0x66]  ;;  %v2374_v36 = vrot.slane %v22230_v19, 4  ;;  %2914 = vrot.lane.b32.xlu1 %v2796_v5, %s18859_s22  ;;  %v4311_v41 = vand.u32 %v17518_v30, %v20287_v51  ;;  %v4308_v33 = vand.u32 %v17517_v23, %v20287_v51 }
 0x2e1   : > { %v1536_v28 = vsel %vm19767_vm4, %v1469_v22, %v1535_v59  ;;  %v3008_v14 = vsel %vm26115_vm13, %v26114_v49, %v2963_v13  ;;  %v22244_v9 = vpop.permute.xlu0 %3550  ;;  %v26119_v59 = vrot.slane %v22128_v52, 4  ;;  %vm26127_vm13 = vmmov %vm26123_vm1 }
 0x2e2   : > { %1537 = vst [vmem:[#allocation3 + $0x60] sm:$0x66] %v1536_v28  ;;  %v3009_v54 = vsel %vm26104_vm0, %v22102_v56, %v3008_v14  ;;  %v2403_v2 = vsel %vm26117_vm6, %v26116_v25, %v2374_v36  ;;  %v3571_v48 = vrot.slane %v22244_v9, 4  ;;  %4790 = vmatprep.subr.bf16.mxu1 %v4311_v41  ;;  %v26122_v14 = vrot.slane %v22106_v8, 4  ;;  %vm26129_vm6 = vmmov %vm26123_vm1 }
 0x2e3   : > { %v3124_v40 = vsel %vm20128_vm11, %v3009_v54, %v3123_v6  ;;  %v2468_v22 = vld [vmem:[#allocation3 + $0xe0] sm:$0x33]  ;;  %v2404_v56 = vsel %vm26118_vm3, %v22083_v63, %v2403_v2  ;;  %v22257_v30 = vpop.permute.xlu1 %1834  ;;  %4791 = vmatpush1.bf16.msra.mxu1 %v4308_v33  ;;  %vm26130_vm3 = vmmov %vm26125_vm14 }
 0x2e4   : > { %3125 = vst [vmem:[#allocation3 + $0xe0] sm:$0x88] %v3124_v40  ;;  %v2469_v23 = vsel %vm20213_vm5, %v2404_v56, %v2468_v22  ;;  %v3599_v6 = vsel %vm26120_vm12, %v26119_v59, %v3571_v48  ;;  %v1889_v28 = vrot.slane %v22257_v30, 4  ;;  %3556 = vrot.lane.b32.xlu1 %v3523_v1, %s18861_s29  ;;  %v2881_v1 = vrot.slane %v2880_v53, 4  ;;  %v3862_v53 = vld [vmem:[#allocation3 + $0x1e0] sm:$0x33]  ;;  %vm26132_vm12 = vmmov %vm26123_vm1 }
 0x2e5   : > { %2470 = vst [vmem:[#allocation3 + $0xe0] sm:$0x33] %v2469_v23  ;;  %v3664_v32 = vld [vmem:[#allocation3 + $0x160] sm:$0xcc]  ;;  %v3600_v63 = vsel %vm26121_vm9, %v22128_v52, %v3599_v6  ;;  %v22270_v5 = vpop.permute.xlu0 %2942  ;;  %v26126_v40 = vrot.slane %v22158_v20, 4  ;;  %v26128_v56 = vrot.slane %v22134_v58, 4 }
 0x2e6   : > { %v3665_v49 = vsel %vm19378_vm7, %v3600_v63, %v3664_v32  ;;  %v1934_v41 = vsel %vm26123_vm1, %v26122_v14, %v1889_v28  ;;  %v2980_v54 = vrot.slane %v22270_v5, 4  ;;  %17538 = vmatmul.mubr.msk.bf16.vlgmr.msra.gmra.mrb[44].mxu1 %vm26124_vm10, %v21769_v0  ;;  %v1230_v32 = vld [vmem:[#allocation3 + $0x68] sm:$0x33]  ;;  %vm26133_vm9 = vcmask 531456  }
 0x2e7   : > { %3666 = vst [vmem:[#allocation3 + $0x160] sm:$0xcc] %v3665_v49  ;;  %v1935_v52 = vsel %vm26125_vm14, %v22106_v8, %v1934_v41  ;;  %v22284_v33 = vpop.permute.xlu1 %3753  ;;  %4861 = vmatprep.mubr.bf16.mxu1 %v25720_v44  ;;  %vm26134_vm10 = vmmov %vm26133_vm9  ;;  %vm26135_vm14 = vcmask 220160  }
 0x2e8   : > { %2018 = vst [vmem:[#allocation3 + $0x60] sm:$0x88] %v1935_v52  ;;  %v3040_v25 = vsel %vm26127_vm13, %v26126_v40, %v2980_v54  ;;  %v3774_v2 = vrot.slane %v22284_v33, 4  ;;  %2948 = vrot.lane.b32.xlu1 %v2881_v1, %s18859_s22  ;;  %v3362_v52 = vld [vmem:[#allocation3 + $0x168] sm:$0x66]  ;;  %vm26136_vm13 = vmmov %vm26123_vm1 }
 0x2e9   : > { %v3041_v22 = vsel %vm26104_vm0, %v22158_v20, %v3040_v25  ;;  %v22296_v8 = vpop.permute.xlu0 %1119  ;;  %v26131_v20 = vrot.slane %v22164_v47, 4  ;;  %vm26137_vm0 = vmmov %vm26130_vm3 }
 0x2ea   : > { %3147 = vst [vmem:[#allocation3 + $0x160] sm:$0x11] %v3041_v22  ;;  %v3802_v23 = vsel %vm26129_vm6, %v26128_v56, %v3774_v2  ;;  %v1139_v59 = vrot.slane %v22296_v8, 4  ;;  %vm26138_vm6 = vmmov %vm26123_vm1 }
 0x2eb   : > { %v3803_v6 = vsel %vm26130_vm3, %v22134_v58, %v3802_v23  ;;  %vm26139_vm3 = vmmov %vm26137_vm0 }
 0x2ec   : > { %v3863_v63 = vsel %vm19041_vm2, %v3803_v6, %v3862_v53  ;;  %v1169_v49 = vsel %vm26132_vm12, %v26131_v20, %v1139_v59  ;;  %v3903_v25 = vld [vmem:[#allocation3 + $0xe0] sm:$0xff]  ;;  %vm26140_vm12 = vmmov %vm26123_vm1 }
 0x2ed   : > { %3864 = vst [vmem:[#allocation3 + $0x1e0] sm:$0x33] %v3863_v63  ;;  %v1170_v14 = vsel %vm26133_vm9, %v22164_v47, %v1169_v49  ;;  %v22315_v41 = vpop.permute.xlu0 %3247  ;;  %vm26141_vm9 = vcmask 523264  }
 0x2ee   : > { %v1231_v1 = vsel %vm19041_vm2, %v1170_v14, %v1230_v32  ;;  %v3267_v58 = vrot.slane %v22315_v41, 4 }
 0x2ef   : > { %1232 = vst [vmem:[#allocation3 + $0x68] sm:$0x33] %v1231_v1  ;;  %v3887_v40 = vld [vmem:[#allocation3 + $0x60] sm:$0xff] }
 0x2f0   : > { %v3296_v22 = vsel %vm26123_vm1, %v3266_v3, %v3267_v58  ;;  %v17488_v53 = vcombine.high %v3887_v40, %v3903_v25  ;;  %v17487_v56 = vcombine.low %v3887_v40, %v3903_v25 }
 0x2f1   : > { %v3297_v47 = vsel %vm26134_vm10, %v22188_v55, %v3296_v22  ;;  %v3919_v6 = vld [vmem:[#allocation3 + $0x160] sm:$0xff]  ;;  %vm26142_vm10 = vmmov %vm26123_vm1 }
 0x2f2   : > { %v3363_v23 = vsel %vm19963_vm8, %v3297_v47, %v3362_v52  ;;  %4829 = vmatprep.subr.bf16.mxu1 %v17488_v53 }
 0x2f3   : > { %3364 = vst [vmem:[#allocation3 + $0x168] sm:$0x66] %v3363_v23  ;;  %4830 = vmatpush1.bf16.msra.mxu1 %v17487_v56 }
 0x2f4   : > { %v3935_v32 = vld [vmem:[#allocation3 + $0x1e0] sm:$0x33] }
 0x2f5   : > { %v17520_v63 = vcombine.high %v3919_v6, %v3935_v32  ;;  %v17519_v20 = vcombine.low %v3919_v6, %v3935_v32 }
 0x2f7   : > { %v4317_v49 = vand.u32 %v17520_v63, %v20287_v51  ;;  %v4314_v14 = vand.u32 %v17519_v20, %v20287_v51  ;;  %v2068_v63 = vld [vmem:[#allocation3 + $0xe8] sm:$0x11] }
 0x2f9   : > { %v22331_v3 = vpop.permute.xlu1 %3942  ;;  %4831 = vmatprep.subr.bf16.mxu1 %v4317_v49 }
 0x2fa   : > { %v4618_v1 = vadd.f32 %v22141_v29, %v22331_v3  ;;  %v4620_v55 = vadd.f32 %v22149_v26, %v22331_v3  ;;  %v4372_v52 = vadd.f32 %v21731_v61, %v22331_v3  ;;  %v4374_v40 = vadd.f32 %v21737_v43, %v22331_v3  ;;  %4832 = vmatpush1.bf16.msra.mxu1 %v4314_v14 }
 0x2fb   : > { %v4413_v25 = vadd.f32 %v21809_v24, %v22331_v3  ;;  %v4415_v22 = vadd.f32 %v21820_v7, %v22331_v3  ;;  %v4454_v29 = vadd.f32 %v21849_v45, %v22331_v3  ;;  %v4456_v26 = vadd.f32 %v21851_v60, %v22331_v3 }
 0x2fc   : > { %v5005_v53 = vmax.f32 %v4618_v1, 0.0  ;;  %v5006_v56 = vmax.f32 %v4620_v55, 0.0  ;;  %v4993_v61 = vmax.f32 %v4372_v52, 0.0  ;;  %v4994_v23 = vmax.f32 %v4374_v40, 0.0 }
 0x2fd   : > { %v22351_v43 = vpop.permute.xlu1 %1870  ;;  %v4995_v6 = vmax.f32 %v4413_v25, 0.0  ;;  %v4996_v32 = vmax.f32 %v4415_v22, 0.0  ;;  %17539 = vmatmul.mubr.msk.bf16.vlgmr.msra.gmra.mrb[48].mxu1 %vm26135_vm14, %v21769_v0  ;;  %v4997_v60 = vmax.f32 %v4454_v29, 0.0  ;;  %v4998_v49 = vmax.f32 %v4456_v26, 0.0  ;;  %vm26143_vm14 = vmmov %vm26137_vm0 }
 0x2fe   : > { %v22349_v47 = vpop.permute.xlu0 %2355  ;;  %v22353_v24 = vpack.c.bf16 %v5006_v56, %v5005_v53  ;;  %v1907_v7 = vrot.slane %v22351_v43, 4  ;;  %v22358_v45 = vpack.c.bf16 %v4994_v23, %v4993_v61  ;;  %4902 = vmatprep.mubr.bf16.mxu1 %v25720_v44  ;;  %v4495_v14 = vadd.f32 %v21880_v10, %v22331_v3 }
 0x2ff   : > { %v22360_v20 = vpack.c.bf16 %v4996_v32, %v4995_v6  ;;  %v4497_v1 = vadd.f32 %v21882_v38, %v22331_v3  ;;  %v2375_v38 = vrot.slane %v22349_v47, 4  ;;  %v22391_v22 = vpack.c.bf16 %v4998_v49, %v4997_v60  ;;  %v1538_v32 = vld [vmem:[#allocation3 + $0x68] sm:$0x66]  ;;  %v3126_v49 = vld [vmem:[#allocation3 + $0xe8] sm:$0x88] }
 0x300   : > { %5159 = vst [vmem:[#allocation2 + $0x34] sm:$0xff] %v22353_v24  ;;  %v1968_v0 = vsel %vm26136_vm13, %v1906_v4, %v1907_v7  ;;  %5153 = vst [vmem:[#allocation2 + $0x4] sm:$0xff] %v22358_v45  ;;  %v4999_v29 = vmax.f32 %v4495_v14, 0.0  ;;  %v4536_v23 = vadd.f32 %v21979_v34, %v22331_v3 }
 0x301   : > { %v1969_v52 = vsel %vm26137_vm0, %v22184_v46, %v1968_v0  ;;  %v22379_v40 = vpop.permute.xlu1 %1420  ;;  %5154 = vst [vmem:[#allocation2 + $0xc] sm:$0xff] %v22360_v20  ;;  %v5000_v26 = vmax.f32 %v4497_v1, 0.0  ;;  %5155 = vst [vmem:[#allocation2 + $0x14] sm:$0xff] %v22391_v22  ;;  %vm26145_vm0 = vcmask 1039360  }
 0x302   : > { %v22373_v55 = vpop.permute.xlu0 %1836  ;;  %v2069_v25 = vsel %vm20047_vm15, %v1969_v52, %v2068_v63  ;;  %v1440_v4 = vrot.slane %v22379_v40, 4  ;;  %v3865_v63 = vld [vmem:[#allocation3 + $0x1e8] sm:$0x33]  ;;  %vm26144_vm13 = vmmov %vm26123_vm1 }
 0x303   : > { %v1890_v10 = vrot.slane %v22373_v55, 4  ;;  %2070 = vst [vmem:[#allocation3 + $0xe8] sm:$0x11] %v2069_v25  ;;  %v22415_v14 = vpack.c.bf16 %v5000_v26, %v4999_v29 }
 0x304   : > { %v1470_v56 = vsel %vm26140_vm12, %v1439_v27, %v1440_v4  ;;  %vm26148_vm12 = vmmov %vm26141_vm9 }
 0x305   : > { %v1936_v46 = vsel %vm26138_vm6, %v1889_v28, %v1890_v10  ;;  %v4538_v28 = vadd.f32 %v21981_v17, %v22331_v3  ;;  %v1471_v6 = vsel %vm26141_vm9, %v22208_v50, %v1470_v56  ;;  %v22409_v60 = vpop.permute.xlu1 %2910  ;;  %v2405_v17 = vsel %vm26123_vm1, %v2374_v36, %v2375_v38  ;;  %5156 = vst [vmem:[#allocation2 + $0x1c] sm:$0xff] %v22415_v14  ;;  %vm26151_vm9 = vmmov %vm26123_vm1 }
 0x306   : > { %v1937_v53 = vsel %vm26139_vm3, %v22257_v30, %v1936_v46  ;;  %v22400_v61 = vpop.permute.xlu0 %3755  ;;  %v1539_v27 = vsel %vm19767_vm4, %v1471_v6, %v1538_v32  ;;  %v2964_v34 = vrot.slane %v22409_v60, 4  ;;  %v4577_v56 = vadd.f32 %v22025_v21, %v22331_v3  ;;  %vm26147_vm3 = vmmov %vm26123_vm1 }
 0x307   : > { %2019 = vst [vmem:[#allocation3 + $0x68] sm:$0x88] %v1937_v53  ;;  %v3775_v30 = vrot.slane %v22400_v61, 4  ;;  %1540 = vst [vmem:[#allocation3 + $0x68] sm:$0x66] %v1539_v27  ;;  %v22427_v1 = vld [vmem:[#allocation2] sm:$0xff]  ;;  %v4579_v27 = vadd.f32 %v22028_v39, %v22331_v3 }
 0x308   : > { %v22429_v0 = vld [vmem:[#allocation2 + $0x4] sm:$0xff]  ;;  %v5822_v52 = vld [vmem:[#allocation2 + $0x34] sm:$0xff]  ;;  %v3010_v36 = vsel %vm26144_vm13, %v2963_v13, %v2964_v34  ;;  %5369 = vrot.lane.b32.xlu0 %v22427_v1, %s18861_s29  ;;  %v5002_v29 = vmax.f32 %v4538_v28, 0.0  ;;  %v5817_v26 = vld [vmem:[#allocation2 + $0xc] sm:$0xff]  ;;  %vm26146_vm6 = vcmask 7168   ;;  %vm26161_vm13 = vcmask 515072  }
 0x309   : > { %v3804_v50 = vsel %vm26142_vm10, %v3774_v2, %v3775_v30  ;;  %v22438_v46 = vld [vmem:[#allocation2 + $0x8] sm:$0xff]  ;;  %v5001_v2 = vmax.f32 %v4536_v23, 0.0  ;;  %5838 = vst [vmem:[#allocation3 + $0x230] sm:$0xff] %v5822_v52  ;;  %v3011_v53 = vsel %vm26145_vm0, %v22227_v12, %v3010_v36  ;;  %v22449_v13 = vpop.permute.xlu1 %3552  ;;  %5833 = vst [vmem:[#allocation3 + $0x208] sm:$0xff] %v5817_v26  ;;  %v2406_v23 = vsel %vm26146_vm6, %v22230_v19, %v2405_v17  ;;  %v3667_v17 = vld [vmem:[#allocation3 + $0x168] sm:$0xcc] }
 0x30a   : > { %v3805_v25 = vsel %vm26143_vm14, %v22284_v33, %v3804_v50  ;;  %5371 = vrot.lane.b32.xlu1 %v22438_v46, %s18861_s29  ;;  %v2471_v28 = vld [vmem:[#allocation3 + $0xe8] sm:$0x33]  ;;  %v3127_v6 = vsel %vm20128_vm11, %v3011_v53, %v3126_v49  ;;  %v3572_v32 = vrot.slane %v22449_v13, 4  ;;  %v5003_v52 = vmax.f32 %v4577_v56, 0.0  ;;  %vm26152_vm1 = vmmov %vm26145_vm0 }
 0x30b   : > { %v3866_v33 = vsel %vm19041_vm2, %v3805_v25, %v3865_v63  ;;  %v2472_v12 = vsel %vm20213_vm5, %v2406_v23, %v2471_v28  ;;  %3128 = vst [vmem:[#allocation3 + $0xe8] sm:$0x88] %v3127_v6  ;;  %v22467_v19 = vpack.c.bf16 %v5002_v29, %v5001_v2  ;;  %v5818_v63 = vld [vmem:[#allocation2 + $0x14] sm:$0xff]  ;;  %v26149_v36 = vld [vmem:[#allocation11_spill] sm:$0xff]  ;;  %v5004_v29 = vmax.f32 %v4579_v27, 0.0  ;;  %vm26159_vm10 = vmmov %vm26147_vm3 }
 0x30c   : > { %3867 = vst [vmem:[#allocation3 + $0x1e8] sm:$0x33] %v3866_v33  ;;  %2473 = vst [vmem:[#allocation3 + $0xe8] sm:$0x33] %v2472_v12  ;;  %v3601_v21 = vsel %vm26147_vm3, %v3571_v48, %v3572_v32  ;;  %6214 = vrot.lane.b32.xlu0 %v22358_v45, %s18861_s29  ;;  %v5186_v39 = vmul.bf16 %v22427_v1, %v26149_v36  ;;  %v5819_v26 = vld [vmem:[#allocation2 + $0x1c] sm:$0xff]  ;;  %v26153_v23 = vld [vmem:[#allocation12_spill] sm:$0xff] }
 0x30d   : > { %v3602_v49 = vsel %vm26148_vm12, %v22244_v9, %v3601_v21  ;;  %v22475_v50 = vpop.permute.xlu1 %2944  ;;  %5834 = vst [vmem:[#allocation3 + $0x210] sm:$0xff] %v5818_v63  ;;  %5157 = vst [vmem:[#allocation2 + $0x24] sm:$0xff] %v22467_v19  ;;  %v26150_v9 = vld [vmem:[#allocation13_spill] sm:$0xff]  ;;  %v22494_v56 = vpack.c.bf16 %v5004_v29, %v5003_v52  ;;  %v5501_v28 = vmul.bf16 %v22427_v1, %v26153_v23  ;;  %v26154_v6 = vld [vmem:[#allocation15_spill] sm:$0xff]  ;;  %vm26162_vm0 = vcmask 531456  }
 0x30e   : > { %6216 = vrot.lane.b32.xlu1 %v22360_v20, %s18861_s29  ;;  %v3668_v48 = vsel %vm19378_vm7, %v3602_v49, %v3667_v17  ;;  %v2981_v25 = vrot.slane %v22475_v50, 4  ;;  %v5187_v2 = vmul.bf16 %v22438_v46, %v26150_v9  ;;  %5835 = vst [vmem:[#allocation3 + $0x218] sm:$0xff] %v5819_v26  ;;  %v5502_v12 = vmul.bf16 %v22438_v46, %v26154_v6  ;;  %v3888_v21 = vld [vmem:[#allocation3 + $0x68] sm:$0xff]  ;;  %v26156_v52 = vld [vmem:[#allocation25_spill] sm:$0xff]  ;;  %vm26160_vm14 = vmmov %vm26147_vm3 }
 0x30f   : > { %3669 = vst [vmem:[#allocation3 + $0x168] sm:$0xcc] %v3668_v48  ;;  %5158 = vst [vmem:[#allocation2 + $0x2c] sm:$0xff] %v22494_v56  ;;  %v26155_v49 = vld [vmem:[#allocation24_spill] sm:$0xff]  ;;  %v5668_v48 = vmul.bf16 %v22438_v46, %v26156_v52  ;;  %v26157_v29 = vld [vmem:[#allocation21_spill] sm:$0xff]  ;;  %vm26163_vm6 = vcmask 220160  }
 0x310   : > { %v3042_v33 = vsel %vm26151_vm9, %v2980_v54, %v2981_v25  ;;  %5220 = vrot.lane.b32.xlu0 %v5186_v39, %s18857_s16  ;;  %v5667_v17 = vmul.bf16 %v22427_v1, %v26155_v49  ;;  %v5865_v26 = vmul.bf16 %v22358_v45, %v26157_v29  ;;  %v6031_v49 = vmul.bf16 %v22358_v45, %v26149_v36  ;;  %v1233_v52 = vld [vmem:[#allocation3 + $0x70] sm:$0x33]  ;;  %vm26164_vm12 = vmmov %vm26162_vm0 }
 0x311   : > { %v3043_v53 = vsel %vm26152_vm1, %v22270_v5, %v3042_v33  ;;  %vm26166_vm9 = vmmov %vm26147_vm3 }
 0x312   : > { %5222 = vrot.lane.b32.xlu1 %v5187_v2, %s18857_s16  ;;  %3148 = vst [vmem:[#allocation3 + $0x168] sm:$0x11] %v3043_v53  ;;  %vm26167_vm1 = vmmov %vm26147_vm3 }
 0x313   : > { %v3904_v27 = vld [vmem:[#allocation3 + $0xe8] sm:$0xff] }
 0x314   : > { %5535 = vrot.lane.b32.xlu0 %v5501_v28, %s18858_s18  ;;  %v17490_v54 = vcombine.high %v3888_v21, %v3904_v27  ;;  %v17489_v63 = vcombine.low %v3888_v21, %v3904_v27  ;;  %v5820_v5 = vld [vmem:[#allocation2 + $0x24] sm:$0xff]  ;;  %v3936_v2 = vld [vmem:[#allocation3 + $0x1e8] sm:$0x33] }
 0x315   : > { %5836 = vst [vmem:[#allocation3 + $0x220] sm:$0xff] %v5820_v5 }
 0x316   : > { %5537 = vrot.lane.b32.xlu1 %v5502_v12, %s18858_s18  ;;  %4870 = vmatprep.subr.bf16.mxu1 %v17490_v54  ;;  %v5821_v28 = vld [vmem:[#allocation2 + $0x2c] sm:$0xff] }
 0x317   : > { %4871 = vmatpush1.bf16.msra.mxu1 %v17489_v63  ;;  %v26158_v12 = vld [vmem:[#allocation20_spill] sm:$0xff]  ;;  %5837 = vst [vmem:[#allocation3 + $0x228] sm:$0xff] %v5821_v28 }
 0x318   : > { %5701 = vrot.lane.b32.xlu0 %v5667_v17, %s18860_s23  ;;  %v5866_v1 = vmul.bf16 %v22360_v20, %v26158_v12  ;;  %v22517_v27 = vpop.permute.xlu1 %1872  ;;  %v22519_v54 = vpop.permute.xlu0 %1121  ;;  %v2071_v17 = vld [vmem:[#allocation3 + $0xf0] sm:$0x11]  ;;  %v6347_v12 = vmul.bf16 %v22360_v20, %v26154_v6 }
 0x319   : > { %v3920_v39 = vld [vmem:[#allocation3 + $0x168] sm:$0xff]  ;;  %v1908_v63 = vrot.slane %v22517_v27, 4  ;;  %v1140_v5 = vrot.slane %v22519_v54, 4 }
 0x31a   : > { %5703 = vrot.lane.b32.xlu1 %v5668_v48, %s18860_s23  ;;  %v17522_v33 = vcombine.high %v3920_v39, %v3936_v2  ;;  %v17521_v53 = vcombine.low %v3920_v39, %v3936_v2  ;;  %v6032_v48 = vmul.bf16 %v22360_v20, %v26150_v9 }
 0x31b   : > { %v1970_v39 = vsel %vm26159_vm10, %v1907_v7, %v1908_v63  ;;  %v1171_v2 = vsel %vm26160_vm14, %v1139_v59, %v1140_v5  ;;  %vm26168_vm10 = vcmask 7168   ;;  %vm26169_vm14 = vcmask 523264  }
 0x31c   : > { %5899 = vrot.lane.b32.xlu0 %v5865_v26, %s18859_s22  ;;  %v4323_v46 = vand.u32 %v17522_v33, %v20287_v51  ;;  %v4320_v21 = vand.u32 %v17521_v53, %v20287_v51  ;;  %v1971_v36 = vsel %vm26161_vm13, %v22351_v43, %v1970_v39  ;;  %v1172_v9 = vsel %vm26162_vm0, %v22296_v8, %v1171_v2  ;;  %v22543_v29 = vpop.permute.xlu0 %3249  ;;  %v22553_v33 = vld [vmem:[%s25230_s1] sm:$0xf]  ;;  %v3365_v53 = vld [vmem:[#allocation3 + $0x170] sm:$0x66]  ;;  %vm26172_vm13 = vmmov %vm26167_vm1 }
 0x31d   : > { %v2072_v7 = vsel %vm20047_vm15, %v1971_v36, %v2071_v17  ;;  %v1234_v26 = vsel %vm19041_vm2, %v1172_v9, %v1233_v52  ;;  %v3268_v59 = vrot.slane %v22543_v29, 4  ;;  %v22557_v8 = vpop.permute.xlu1 %1422  ;;  %v6346_v43 = vmul.bf16 %v22358_v45, %v26153_v23 }
 0x31e   : > { %5901 = vrot.lane.b32.xlu1 %v5866_v1, %s18859_s22  ;;  %4872 = vmatprep.subr.bf16.mxu1 %v4323_v46  ;;  %2073 = vst [vmem:[#allocation3 + $0xf0] sm:$0x11] %v2072_v7  ;;  %1235 = vst [vmem:[#allocation3 + $0x70] sm:$0x33] %v1234_v26  ;;  %v1441_v28 = vrot.slane %v22557_v8, 4  ;;  %v5337_v1 = vld [vmem:[#allocation2 + $0x10] sm:$0xff] }
 0x31f   : > { %4873 = vmatpush1.bf16.msra.mxu1 %v4320_v21  ;;  %v3298_v46 = vsel %vm26147_vm3, %v3267_v58, %v3268_v59  ;;  %v26165_v21 = vld [vmem:[#allocation14_spill] sm:$0xff]  ;;  %vm26173_vm0 = vcmask 515072  }
 0x320   : > { %6065 = vrot.lane.b32.xlu0 %v6031_v49, %s18857_s16  ;;  %v3299_v45 = vsel %vm26164_vm12, %v22315_v41, %v3298_v46  ;;  %v22574_v23 = vpop.permute.xlu0 %2357  ;;  %v5188_v49 = vmul.bf16 %v5337_v1, %v26165_v21  ;;  %v1472_v58 = vsel %vm26166_vm9, %v1440_v4, %v1441_v28  ;;  %vm26176_vm3 = vmmov %vm26173_vm0  ;;  %vm26178_vm9 = vcmask 531456  }
 0x321   : > { %v3366_v20 = vsel %vm19963_vm8, %v3299_v45, %v3365_v53  ;;  %v2376_v6 = vrot.slane %v22574_v23, 4  ;;  %v1473_v9 = vsel %vm26169_vm14, %v22379_v40, %v1472_v58  ;;  %v26170_v53 = vld [vmem:[#allocation16_spill] sm:$0xff]  ;;  %vm26177_vm12 = vmmov %vm26167_vm1 }
 0x322   : > { %6067 = vrot.lane.b32.xlu1 %v6032_v48, %s18857_s16  ;;  %17540 = vmatmul.mubr.msk.bf16.vlgmr.msra.gmra.mrb[52].mxu1 %vm26163_vm6, %v22553_v33  ;;  %3367 = vst [vmem:[#allocation3 + $0x170] sm:$0x66] %v3366_v20  ;;  %v26171_v20 = vld [vmem:[#allocation27_spill] sm:$0xff]  ;;  %vm26175_vm6 = vmmov %vm26167_vm1 }
 0x323   : > { %4943 = vmatprep.mubr.bf16.mxu1 %v25720_v44  ;;  %v2407_v41 = vsel %vm26167_vm1, %v2375_v38, %v2376_v6  ;;  %vm26185_vm14 = vmmov %vm26173_vm0 }
 0x324   : > { %6380 = vrot.lane.b32.xlu0 %v6346_v43, %s18858_s18  ;;  %v4658_v17 = vpop.f32.mrb[28].mxu1  ;;  %v2408_v39 = vsel %vm26168_vm10, %v22349_v47, %v2407_v41  ;;  %v22596_v4 = vpop.permute.xlu0 %1838  ;;  %vm26180_vm10 = vmmov %vm26178_vm9 }
 0x325   : > { %v4659_v52 = vadd.f32 %v4658_v17, %v22331_v3  ;;  %v4660_v48 = vpop.f32.mrb[29].mxu1  ;;  %v1541_v7 = vld [vmem:[#allocation3 + $0x70] sm:$0x66]  ;;  %v1891_v43 = vrot.slane %v22596_v4, 4 }
 0x326   : > { %6382 = vrot.lane.b32.xlu1 %v6347_v12, %s18858_s18  ;;  %v4661_v2 = vadd.f32 %v4660_v48, %v22331_v3  ;;  %v4662_v36 = vpop.f32.mrb[30].mxu1  ;;  %v2474_v38 = vld [vmem:[#allocation3 + $0xf0] sm:$0x33]  ;;  %v5503_v12 = vmul.bf16 %v5337_v1, %v26170_v53  ;;  %v1542_v47 = vsel %vm19767_vm4, %v1473_v9, %v1541_v7  ;;  %v26174_v48 = vld [vmem:[#allocation23_spill] sm:$0xff] }
 0x327   : > { %v5007_v26 = vmax.f32 %v4659_v52, 0.0  ;;  %v2475_v46 = vsel %vm20213_vm5, %v2408_v39, %v2474_v38  ;;  %v4663_v17 = vpop.f32.mrb[31].mxu1  ;;  %1543 = vst [vmem:[#allocation3 + $0x70] sm:$0x66] %v1542_v47  ;;  %v1938_v40 = vsel %vm26172_vm13, %v1890_v10, %v1891_v43  ;;  %v5867_v39 = vmul.bf16 %v22391_v22, %v26174_v48  ;;  %v3868_v10 = vld [vmem:[#allocation3 + $0x1f0] sm:$0x33]  ;;  %vm26186_vm13 = vmmov %vm26167_vm1 }
 0x328   : > { %5224 = vrot.lane.b32.xlu0 %v5188_v49, %s18857_s16  ;;  %v5008_v45 = vmax.f32 %v4661_v2, 0.0  ;;  %v5669_v49 = vmul.bf16 %v5337_v1, %v26171_v20  ;;  %2476 = vst [vmem:[#allocation3 + $0xf0] sm:$0x33] %v2475_v46  ;;  %v1939_v41 = vsel %vm26173_vm0, %v22373_v55, %v1938_v40  ;;  %v22616_v52 = vpop.permute.xlu0 %3757  ;;  %v6033_v2 = vmul.bf16 %v22391_v22, %v26165_v21  ;;  %v26179_v20 = vld [vmem:[#allocation17_spill] sm:$0xff] }
 0x329   : > { %2020 = vst [vmem:[#allocation3 + $0x70] sm:$0x88] %v1939_v41  ;;  %v6348_v21 = vmul.bf16 %v22391_v22, %v26170_v53  ;;  %v3368_v17 = vld [vmem:[#allocation3 + $0x178] sm:$0x66]  ;;  %v6034_v31 = vmul.bf16 %v22415_v14, %v26179_v20  ;;  %vm26187_vm0 = vcmask 1039360  }
 0x32a   : > { %5373 = vrot.lane.b32.xlu1 %v5337_v1, %s18861_s29  ;;  %v22611_v58 = vpack.c.bf16 %v5008_v45, %v5007_v26  ;;  %v3776_v1 = vrot.slane %v22616_v52, 4  ;;  %v1236_v26 = vld [vmem:[#allocation3 + $0x78] sm:$0x33] }
 0x32b   : > { %v26181_v41 = vld [vmem:[#allocation18_spill] sm:$0xff] }
 0x32c   : > { %5539 = vrot.lane.b32.xlu0 %v5503_v12, %s18858_s18  ;;  %5160 = vst [vmem:[#allocation2 + $0x3c] sm:$0xff] %v22611_v58  ;;  %v3806_v55 = vsel %vm26175_vm6, %v3775_v30, %v3776_v1  ;;  %v1124_v9 = vpop.permute.xlu0 %1123  ;;  %v5338_v12 = vld [vmem:[#allocation2 + $0x18] sm:$0xff]  ;;  %vm26188_vm6 = vmmov %vm26167_vm1 }
 0x32d   : > { %v3807_v36 = vsel %vm26176_vm3, %v22400_v61, %v3806_v55  ;;  %v1141_v38 = vrot.slane %v1124_v9, 4  ;;  %v5189_v53 = vmul.bf16 %v5338_v12, %v26179_v20  ;;  %v5504_v48 = vmul.bf16 %v5338_v12, %v26181_v41  ;;  %v26183_v55 = vld [vmem:[#allocation22_spill] sm:$0xff] }
 0x32e   : > { %5705 = vrot.lane.b32.xlu1 %v5669_v49, %s18860_s23  ;;  %v3869_v7 = vsel %vm19041_vm2, %v3807_v36, %v3868_v10 }
 0x32f   : > { %3870 = vst [vmem:[#allocation3 + $0x1f0] sm:$0x33] %v3869_v7  ;;  %v1173_v30 = vsel %vm26177_vm12, %v1140_v5, %v1141_v38  ;;  %vm26189_vm12 = vmmov %vm26167_vm1 }
 0x330   : > { %5903 = vrot.lane.b32.xlu0 %v5867_v39, %s18859_s22  ;;  %v1174_v61 = vsel %vm26178_vm9, %v22519_v54, %v1173_v30  ;;  %v3252_v47 = vpop.permute.xlu0 %3251  ;;  %v26182_v39 = vld [vmem:[#allocation28_spill] sm:$0xff]  ;;  %vm26191_vm9 = vcmask 523264  }
 0x331   : > { %v1237_v46 = vsel %vm19041_vm2, %v1174_v61, %v1236_v26  ;;  %v3269_v45 = vrot.slane %v3252_v47, 4  ;;  %v5670_v10 = vmul.bf16 %v5338_v12, %v26182_v39  ;;  %v3129_v26 = vld [vmem:[#allocation3 + $0xf0] sm:$0x88]  ;;  %v3871_v61 = vld [vmem:[#allocation3 + $0x1f8] sm:$0x33] }
 0x332   : > { %6069 = vrot.lane.b32.xlu1 %v6033_v2, %s18857_s16  ;;  %1238 = vst [vmem:[#allocation3 + $0x78] sm:$0x33] %v1237_v46  ;;  %v5339_v46 = vld [vmem:[#allocation2 + $0x20] sm:$0xff] }
 0x333   : > { %v5823_v49 = vld [vmem:[#allocation2 + $0x3c] sm:$0xff] }
 0x334   : > { %6218 = vrot.lane.b32.xlu0 %v22391_v22, %s18861_s29  ;;  %5839 = vst [vmem:[#allocation3 + $0x238] sm:$0xff] %v5823_v49  ;;  %v3300_v22 = vsel %vm26167_vm1, %v3268_v59, %v3269_v45  ;;  %v22653_v5 = vpop.permute.xlu0 %2359 }
 0x335   : > { %v3301_v54 = vsel %vm26180_vm10, %v22543_v29, %v3300_v22  ;;  %v5868_v29 = vmul.bf16 %v22415_v14, %v26183_v55  ;;  %v26193_v55 = vld [vmem:[#allocation26_spill] sm:$0xff] }
 0x336   : > { %6384 = vrot.lane.b32.xlu1 %v6348_v21, %s18858_s18  ;;  %v3369_v40 = vsel %vm19963_vm8, %v3301_v54, %v3368_v17  ;;  %vm26184_vm8 = vmmov %vm26167_vm1 }
 0x337   : > { %3370 = vst [vmem:[#allocation3 + $0x178] sm:$0x66] %v3369_v40  ;;  %v3670_v40 = vld [vmem:[#allocation3 + $0x170] sm:$0xcc] }
 0x338   : > { %5226 = vrot.lane.b32.xlu0 %v5189_v53, %s18857_s16 }
 0x33a   : > { %5375 = vrot.lane.b32.xlu1 %v5338_v12, %s18861_s29 }
 0x33b   : > { %v1841_v59 = vpop.permute.xlu0 %1840 }
 0x33c   : > { %5541 = vrot.lane.b32.xlu0 %v5504_v48, %s18858_s18  ;;  %v1892_v2 = vrot.slane %v1841_v59, 4 }
 0x33e   : > { %5707 = vrot.lane.b32.xlu1 %v5670_v10, %s18860_s23  ;;  %v22663_v36 = vpop.permute.xlu1 %2912  ;;  %v1940_v9 = vsel %vm26184_vm8, %v1891_v43, %v1892_v2  ;;  %vm26198_vm8 = vmmov %vm26176_vm3 }
 0x33f   : > { %v2965_v7 = vrot.slane %v22663_v36, 4  ;;  %v1941_v38 = vsel %vm26185_vm14, %v22596_v4, %v1940_v9  ;;  %v3760_v21 = vpop.permute.xlu0 %3759  ;;  %v6349_v4 = vmul.bf16 %v22415_v14, %v26181_v41 }
 0x340   : > { %5905 = vrot.lane.b32.xlu0 %v5868_v29, %s18859_s22  ;;  %2021 = vst [vmem:[#allocation3 + $0x78] sm:$0x88] %v1941_v38  ;;  %v3777_v30 = vrot.slane %v3760_v21, 4  ;;  %v5505_v29 = vmul.bf16 %v5339_v46, %v26193_v55 }
 0x341   : > { %v3012_v12 = vsel %vm26186_vm13, %v2964_v34, %v2965_v7  ;;  %vm26200_vm13 = vmmov %vm26191_vm9 }
 0x342   : > { %6071 = vrot.lane.b32.xlu1 %v6034_v31, %s18857_s16  ;;  %v3013_v43 = vsel %vm26187_vm0, %v22409_v60, %v3012_v12  ;;  %v22680_v47 = vpop.permute.xlu1 %3554  ;;  %v3808_v20 = vsel %vm26188_vm6, %v3776_v1, %v3777_v30  ;;  %v3889_v30 = vld [vmem:[#allocation3 + $0x70] sm:$0xff]  ;;  %vm26205_vm6 = vcmask 7168  }
 0x343   : > { %v3130_v45 = vsel %vm20128_vm11, %v3013_v43, %v3129_v26  ;;  %v3573_v53 = vrot.slane %v22680_v47, 4  ;;  %v3809_v60 = vsel %vm26176_vm3, %v22616_v52, %v3808_v20  ;;  %v4699_v34 = vpop.f32.mrb[32].mxu1  ;;  %v26195_v26 = vld [vmem:[#allocation29_spill] sm:$0xff] }
 0x344   : > { %6220 = vrot.lane.b32.xlu0 %v22415_v14, %s18861_s29  ;;  %3131 = vst [vmem:[#allocation3 + $0xf0] sm:$0x88] %v3130_v45  ;;  %v3872_v49 = vsel %vm19041_vm2, %v3809_v60, %v3871_v61  ;;  %v4700_v17 = vadd.f32 %v4699_v34, %v22331_v3  ;;  %v4701_v22 = vpop.f32.mrb[33].mxu1  ;;  %v26190_v14 = vld [vmem:[#allocation19_spill] sm:$0xff]  ;;  %vm26192_vm2 = vmmov %vm26167_vm1  ;;  %v5671_v21 = vmul.bf16 %v5339_v46, %v26195_v26  ;;  %v2074_v61 = vld [vmem:[#allocation3 + $0xf8] sm:$0x11] }
 0x345   : > { %v3603_v1 = vsel %vm26189_vm12, %v3572_v32, %v3573_v53  ;;  %v5190_v54 = vmul.bf16 %v5339_v46, %v26190_v14  ;;  %3873 = vst [vmem:[#allocation3 + $0x1f8] sm:$0x33] %v3872_v49  ;;  %v4702_v41 = vadd.f32 %v4701_v22, %v22331_v3  ;;  %v4703_v48 = vpop.f32.mrb[34].mxu1  ;;  %vm26194_vm1 = vmmov %vm26187_vm0  ;;  %v26197_v45 = vld [vmem:[#allocation30_spill] sm:$0xff]  ;;  %v6035_v34 = vmul.bf16 %v22467_v19, %v26190_v14 }
 0x346   : > { %6386 = vrot.lane.b32.xlu1 %v6349_v4, %s18858_s18  ;;  %v3604_v52 = vsel %vm26191_vm9, %v22449_v13, %v3603_v1  ;;  %v22705_v42 = vpop.permute.xlu1 %2946  ;;  %v5009_v10 = vmax.f32 %v4700_v17, 0.0  ;;  %v4704_v59 = vpop.f32.mrb[35].mxu1  ;;  %vm26196_vm10 = vmmov %vm26192_vm2  ;;  %v5340_v17 = vld [vmem:[#allocation2 + $0x28] sm:$0xff]  ;;  %v1544_v14 = vld [vmem:[#allocation3 + $0x78] sm:$0x66] }
 0x347   : > { %v3671_v39 = vsel %vm19378_vm7, %v3604_v52, %v3670_v40  ;;  %v2982_v32 = vrot.slane %v22705_v42, 4  ;;  %v5010_v2 = vmax.f32 %v4702_v41, 0.0  ;;  %vm26199_vm14 = vmmov %vm26192_vm2  ;;  %v3937_v40 = vld [vmem:[#allocation3 + $0x1f0] sm:$0x33] }
 0x348   : > { %5228 = vrot.lane.b32.xlu0 %v5190_v54, %s18857_s16  ;;  %3672 = vst [vmem:[#allocation3 + $0x170] sm:$0xcc] %v3671_v39  ;;  %v6350_v54 = vmul.bf16 %v22467_v19, %v26193_v55  ;;  %vm26202_vm0 = vmmov %vm26192_vm2 }
 0x349   : > { %v3044_v13 = vsel %vm26192_vm2, %v2981_v25, %v2982_v32  ;;  %v22718_v31 = vpack.c.bf16 %v5010_v2, %v5009_v10  ;;  %v3132_v10 = vld [vmem:[#allocation3 + $0xf8] sm:$0x88]  ;;  %v26203_v2 = vld [vmem:[#allocation35_spill] sm:$0xff]  ;;  %vm26206_vm3 = vmmov %vm26202_vm0 }
 0x34a   : > { %5377 = vrot.lane.b32.xlu1 %v5339_v46, %s18861_s29  ;;  %v3045_v9 = vsel %vm26194_vm1, %v22475_v50, %v3044_v13  ;;  %v1875_v38 = vpop.permute.xlu1 %1874  ;;  %v5869_v46 = vmul.bf16 %v22467_v19, %v26197_v45  ;;  %vm26211_vm12 = vmmov %vm26202_vm0 }
 0x34b   : > { %3149 = vst [vmem:[#allocation3 + $0x170] sm:$0x11] %v3045_v9  ;;  %v1909_v12 = vrot.slane %v1875_v38, 4  ;;  %v3905_v43 = vld [vmem:[#allocation3 + $0xf0] sm:$0xff]  ;;  %5161 = vst [vmem:[#allocation2 + $0x44] sm:$0xff] %v22718_v31 }
 0x34c   : > { %5543 = vrot.lane.b32.xlu0 %v5505_v29, %s18858_s18  ;;  %v17492_v25 = vcombine.high %v3889_v30, %v3905_v43  ;;  %v17491_v4 = vcombine.low %v3889_v30, %v3905_v43  ;;  %v26209_v43 = vld [vmem:[#allocation34_spill] sm:$0xff] }
 0x34d   : > { %v1972_v50 = vsel %vm26196_vm10, %v1908_v63, %v1909_v12  ;;  %v2377_v63 = vrot.slane %v22653_v5, 4  ;;  %v3673_v12 = vld [vmem:[#allocation3 + $0x178] sm:$0xcc]  ;;  %vm26225_vm10 = vmmov %vm26202_vm0 }
 0x34e   : > { %5709 = vrot.lane.b32.xlu1 %v5671_v21, %s18860_s23  ;;  %v1973_v20 = vsel %vm26198_vm8, %v22517_v27, %v1972_v50  ;;  %v1425_v60 = vpop.permute.xlu1 %1424  ;;  %4911 = vmatprep.subr.bf16.mxu1 %v17492_v25  ;;  %v6036_v50 = vmul.bf16 %v22494_v56, %v26203_v2 }
 0x34f   : > { %v2075_v49 = vsel %vm20047_vm15, %v1973_v20, %v2074_v61  ;;  %v1442_v1 = vrot.slane %v1425_v60, 4  ;;  %4912 = vmatpush1.bf16.msra.mxu1 %v17491_v4  ;;  %vm26201_vm15 = vmmov %vm26192_vm2  ;;  %v5672_v61 = vmul.bf16 %v5340_v17, %v26209_v43 }
 0x350   : > { %5907 = vrot.lane.b32.xlu0 %v5869_v46, %s18859_s22  ;;  %2076 = vst [vmem:[#allocation3 + $0xf8] sm:$0x11] %v2075_v49  ;;  %vm26222_vm2 = vmmov %vm26202_vm0 }
 0x351   : > { %v1474_v27 = vsel %vm26199_vm14, %v1441_v28, %v1442_v1  ;;  %vm26227_vm14 = vmmov %vm26202_vm0 }
 0x352   : > { %6073 = vrot.lane.b32.xlu1 %v6035_v34, %s18857_s16  ;;  %v1475_v22 = vsel %vm26200_vm13, %v22557_v8, %v1474_v27  ;;  %v2915_v57 = vpop.permute.xlu1 %2914  ;;  %v3921_v52 = vld [vmem:[#allocation3 + $0x170] sm:$0xff]  ;;  %v5824_v39 = vld [vmem:[#allocation2 + $0x44] sm:$0xff]  ;;  %v2409_v8 = vsel %vm26201_vm15, %v2376_v6, %v2377_v63  ;;  %v5341_v63 = vld [vmem:[#allocation2 + $0x30] sm:$0xff]  ;;  %vm26229_vm13 = vcmask 531456  }
 0x353   : > { %v1545_v5 = vsel %vm19767_vm4, %v1475_v22, %v1544_v14  ;;  %v2966_v41 = vrot.slane %v2915_v57, 4  ;;  %v17524_v48 = vcombine.high %v3921_v52, %v3937_v40  ;;  %v17523_v28 = vcombine.low %v3921_v52, %v3937_v40  ;;  %5840 = vst [vmem:[#allocation3 + $0x240] sm:$0xff] %v5824_v39  ;;  %vm26204_vm4 = vmmov %vm26194_vm1  ;;  %v26214_v57 = vld [vmem:[#allocation37_spill] sm:$0xff] }
 0x354   : > { %6222 = vrot.lane.b32.xlu0 %v22467_v19, %s18861_s29  ;;  %1546 = vst [vmem:[#allocation3 + $0x78] sm:$0x66] %v1545_v5  ;;  %v5191_v19 = vmul.bf16 %v5340_v17, %v26203_v2  ;;  %v2410_v6 = vsel %vm26205_vm6, %v22574_v23, %v2409_v8  ;;  %v3938_v5 = vld [vmem:[#allocation3 + $0x1f8] sm:$0x33]  ;;  %vm26230_vm15 = vmmov %vm26202_vm0 }
 0x355   : > { %v3014_v62 = vsel %vm26202_vm0, %v2965_v7, %v2966_v41  ;;  %v4329_v59 = vand.u32 %v17524_v48, %v20287_v51  ;;  %v4326_v13 = vand.u32 %v17523_v28, %v20287_v51  ;;  %v26215_v28 = vld [vmem:[#allocation36_spill] sm:$0xff]  ;;  %vm26232_vm0 = vcmask 515072  }
 0x356   : > { %6388 = vrot.lane.b32.xlu1 %v6350_v54, %s18858_s18  ;;  %v3015_v55 = vsel %vm26204_vm4, %v22663_v36, %v3014_v62  ;;  %v3557_v29 = vpop.permute.xlu1 %3556  ;;  %v26207_v36 = vld [vmem:[#allocation32_spill] sm:$0xff]  ;;  %v5192_v54 = vmul.bf16 %v5341_v63, %v26214_v57  ;;  %v5507_v39 = vmul.bf16 %v5341_v63, %v26215_v28  ;;  %vm26234_vm4 = vmmov %vm26222_vm2 }
 0x357   : > { %v2477_v9 = vld [vmem:[#allocation3 + $0xf8] sm:$0x33]  ;;  %v3133_v38 = vsel %vm20128_vm11, %v3015_v55, %v3132_v10  ;;  %v3574_v26 = vrot.slane %v3557_v29, 4  ;;  %4913 = vmatprep.subr.bf16.mxu1 %v4329_v59  ;;  %v5506_v21 = vmul.bf16 %v5340_v17, %v26207_v36  ;;  %vm26208_vm11 = vmmov %vm26191_vm9  ;;  %v26216_v10 = vld [vmem:[#allocation40_spill] sm:$0xff] }
 0x358   : > { %5230 = vrot.lane.b32.xlu0 %v5191_v19, %s18857_s16  ;;  %v2478_v7 = vsel %vm20213_vm5, %v2410_v6, %v2477_v9  ;;  %3134 = vst [vmem:[#allocation3 + $0xf8] sm:$0x88] %v3133_v38  ;;  %4914 = vmatpush1.bf16.msra.mxu1 %v4326_v13  ;;  %vm26210_vm5 = vcmask 220160   ;;  %v5673_v62 = vmul.bf16 %v5341_v63, %v26216_v10  ;;  %v26217_v59 = vld [vmem:[#allocation38_spill] sm:$0xff]  ;;  %v5342_v55 = vld [vmem:[#allocation2 + $0x38] sm:$0xff] }
 0x359   : > { %2479 = vst [vmem:[#allocation3 + $0xf8] sm:$0x33] %v2478_v7  ;;  %v3605_v23 = vsel %vm26206_vm3, %v3573_v53, %v3574_v26  ;;  %v26212_v53 = vld [vmem:[#allocation31_spill] sm:$0xff]  ;;  %v5871_v2 = vmul.bf16 %v22353_v24, %v26217_v59  ;;  %v6037_v19 = vmul.bf16 %v22353_v24, %v26214_v57  ;;  %vm26218_vm9 = vmmov %vm26210_vm5  ;;  %v6352_v13 = vmul.bf16 %v22353_v24, %v26215_v28  ;;  %v26219_v29 = vld [vmem:[#allocation42_spill] sm:$0xff] }
 0x35a   : > { %5379 = vrot.lane.b32.xlu1 %v5340_v17, %s18861_s29  ;;  %v3606_v15 = vsel %vm26208_vm11, %v22680_v47, %v3605_v23  ;;  %v2949_v30 = vpop.permute.xlu1 %2948  ;;  %v5870_v4 = vmul.bf16 %v22494_v56, %v26212_v53  ;;  %v5193_v6 = vmul.bf16 %v5342_v55, %v26219_v29  ;;  %v26220_v9 = vld [vmem:[#allocation41_spill] sm:$0xff]  ;;  %v26221_v23 = vld [vmem:[#allocation43_spill] sm:$0xff]  ;;  %vm26236_vm3 = vmmov %vm26222_vm2 }
 0x35b   : > { %v3674_v11 = vsel %vm19378_vm7, %v3606_v15, %v3673_v12  ;;  %v2983_v25 = vrot.slane %v2949_v30, 4  ;;  %17541 = vmatmul.mubr.msk.bf16.vlgmr.msra.gmra.mrb[56].mxu1 %vm26210_vm5, %v22553_v33  ;;  %vm26213_vm7 = vmmov %vm26194_vm1  ;;  %v3890_v46 = vld [vmem:[#allocation3 + $0x78] sm:$0xff]  ;;  %v5508_v38 = vmul.bf16 %v5342_v55, %v26220_v9  ;;  %v26223_v12 = vld [vmem:[#allocation39_spill] sm:$0xff] }
 0x35c   : > { %5545 = vrot.lane.b32.xlu0 %v5506_v21, %s18858_s18  ;;  %3675 = vst [vmem:[#allocation3 + $0x178] sm:$0xcc] %v3674_v11  ;;  %4984 = vmatprep.mubr.bf16.mxu1 %v25720_v44  ;;  %v5872_v30 = vmul.bf16 %v22611_v58, %v26223_v12  ;;  %vm26224_vm1 = vmmov %vm26208_vm11 }
 0x35d   : > { %v3046_v47 = vsel %vm26211_vm12, %v2982_v32, %v2983_v25  ;;  %v6038_v25 = vmul.bf16 %v22611_v58, %v26219_v29  ;;  %vm26226_vm8 = vmmov %vm26224_vm1 }
 0x35e   : > { %5711 = vrot.lane.b32.xlu1 %v5672_v61, %s18860_s23  ;;  %v3047_v37 = vsel %vm26213_vm7, %v22705_v42, %v3046_v47  ;;  %v6351_v42 = vmul.bf16 %v22494_v56, %v26207_v36  ;;  %v5674_v36 = vmul.bf16 %v5342_v55, %v26221_v23  ;;  %vm26237_vm11 = vmmov %vm26213_vm7 }
 0x35f   : > { %3150 = vst [vmem:[#allocation3 + $0x178] sm:$0x11] %v3047_v37  ;;  %vm26238_vm5 = vmmov %vm26222_vm2 }
 0x360   : > { %5909 = vrot.lane.b32.xlu0 %v5870_v4, %s18859_s22  ;;  %v3906_v20 = vld [vmem:[#allocation3 + $0xf8] sm:$0xff]  ;;  %vm26239_vm12 = vmmov %vm26229_vm13 }
 0x361   : > { %v17494_v34 = vcombine.high %v3890_v46, %v3906_v20  ;;  %v17493_v49 = vcombine.low %v3890_v46, %v3906_v20  ;;  %v6353_v46 = vmul.bf16 %v22611_v58, %v26220_v9  ;;  %v5343_v20 = vld [vmem:[#allocation2 + $0x40] sm:$0xff]  ;;  %vm26240_vm7 = vmmov %vm26222_vm2 }
 0x362   : > { %6075 = vrot.lane.b32.xlu1 %v6036_v50, %s18857_s16 }
 0x363   : > { %v4740_v45 = vpop.f32.mrb[36].mxu1  ;;  %4952 = vmatprep.subr.bf16.mxu1 %v17494_v34 }
 0x364   : > { %v4741_v60 = vadd.f32 %v4740_v45, %v22331_v3  ;;  %v4742_v32 = vpop.f32.mrb[37].mxu1  ;;  %6224 = vrot.lane.b32.xlu0 %v22494_v56, %s18861_s29  ;;  %4953 = vmatpush1.bf16.msra.mxu1 %v17493_v49 }
 0x365   : > { %v4743_v1 = vadd.f32 %v4742_v32, %v22331_v3  ;;  %v4744_v27 = vpop.f32.mrb[38].mxu1 }
 0x366   : > { %v5011_v17 = vmax.f32 %v4741_v60, 0.0  ;;  %v4745_v22 = vpop.f32.mrb[39].mxu1  ;;  %6390 = vrot.lane.b32.xlu1 %v6351_v42, %s18858_s18  ;;  %v3922_v40 = vld [vmem:[#allocation3 + $0x178] sm:$0xff] }
 0x367   : > { %v5012_v14 = vmax.f32 %v4743_v1, 0.0  ;;  %v17526_v41 = vcombine.high %v3922_v40, %v3938_v5  ;;  %v17525_v48 = vcombine.low %v3922_v40, %v3938_v5 }
 0x368   : > { %5232 = vrot.lane.b32.xlu0 %v5192_v54, %s18857_s16 }
 0x369   : > { %v22804_v52 = vpack.c.bf16 %v5012_v14, %v5011_v17  ;;  %v4335_v56 = vand.u32 %v17526_v41, %v20287_v51  ;;  %v4332_v8 = vand.u32 %v17525_v48, %v20287_v51 }
 0x36a   : > { %5381 = vrot.lane.b32.xlu1 %v5341_v63, %s18861_s29  ;;  %v26228_v63 = vld [vmem:[#allocation46_spill] sm:$0xff] }
 0x36b   : > { %5162 = vst [vmem:[#allocation2 + $0x4c] sm:$0xff] %v22804_v52  ;;  %4954 = vmatprep.subr.bf16.mxu1 %v4335_v56  ;;  %v5194_v27 = vmul.bf16 %v5343_v20, %v26228_v63 }
 0x36c   : > { %5547 = vrot.lane.b32.xlu0 %v5507_v39, %s18858_s18  ;;  %4955 = vmatpush1.bf16.msra.mxu1 %v4332_v8  ;;  %v26231_v8 = vld [vmem:[#allocation44_spill] sm:$0xff] }
 0x36d   : > { %v5509_v10 = vmul.bf16 %v5343_v20, %v26231_v8 }
 0x36e   : > { %5713 = vrot.lane.b32.xlu1 %v5673_v62, %s18860_s23 }
 0x36f   : > { %17542 = vmatmul.mubr.msk.bf16.vlgmr.msra.gmra.mrb[60].mxu1 %vm26218_vm9, %v22553_v33  ;;  %vm26241_vm9 = vmmov %vm26232_vm0 }
 0x370   : > { %5911 = vrot.lane.b32.xlu0 %v5871_v2, %s18859_s22  ;;  %7499 = vmatprep.mubr.bf16.mxu1 %v25720_v44 }
 0x372   : > { %v5825_v51 = vld [vmem:[#allocation2 + $0x4c] sm:$0xff]  ;;  %6077 = vrot.lane.b32.xlu1 %v6037_v19, %s18857_s16 }
 0x373   : > { %5841 = vst [vmem:[#allocation3 + $0x248] sm:$0xff] %v5825_v51  ;;  %v26233_v51 = vld [vmem:[#allocation45_spill] sm:$0xff] }
 0x374   : > { %6226 = vrot.lane.b32.xlu0 %v22353_v24, %s18861_s29 }
 0x376   : > { %6392 = vrot.lane.b32.xlu1 %v6352_v13, %s18858_s18  ;;  %v5675_v13 = vmul.bf16 %v5343_v20, %v26233_v51 }
 0x378   : > { %5234 = vrot.lane.b32.xlu0 %v5193_v6, %s18857_s16 }
 0x37a   : > { %5383 = vrot.lane.b32.xlu1 %v5342_v55, %s18861_s29  ;;  %v5370_v33 = vpop.permute.xlu0 %5369 }
 0x37b   : > { %v5403_v7 = vrot.slane %v5370_v33, 4 }
 0x37c   : > { %v22833_v26 = vpop.permute.xlu1 %5371  ;;  %5549 = vrot.lane.b32.xlu0 %v5508_v38, %s18858_s18 }
 0x37d   : > { %v5404_v21 = vrot.slane %v22833_v26, 4 }
 0x37e   : > { %5715 = vrot.lane.b32.xlu1 %v5674_v36, %s18860_s23  ;;  %v6215_v15 = vpop.permute.xlu0 %6214  ;;  %v6039_v36 = vmul.bf16 %v22718_v31, %v26228_v63 }
 0x37f   : > { %v5420_v24 = vsel %vm26222_vm2, %v5403_v7, %v5404_v21  ;;  %v6248_v11 = vrot.slane %v6215_v15, 4 }
 0x380   : > { %v5421_v43 = vsel %vm26224_vm1, %v5370_v33, %v5420_v24  ;;  %v22845_v61 = vpop.permute.xlu1 %6216  ;;  %5913 = vrot.lane.b32.xlu0 %v5872_v30, %s18859_s22  ;;  %v4781_v32 = vpop.f32.mrb[40].mxu1  ;;  %v26235_v33 = vld [vmem:[#allocation47_spill] sm:$0xff]  ;;  %vm26243_vm1 = vmmov %vm26222_vm2 }
 0x381   : > { %5468 = vst [vmem:[#allocation3 + $0x80] sm:$0xff] %v5421_v43  ;;  %v6249_v47 = vrot.slane %v22845_v61, 4  ;;  %v4782_v49 = vadd.f32 %v4781_v32, %v22331_v3  ;;  %v4783_v1 = vpop.f32.mrb[41].mxu1  ;;  %v5873_v9 = vmul.bf16 %v22718_v31, %v26235_v33 }
 0x382   : > { %6079 = vrot.lane.b32.xlu1 %v6038_v25, %s18857_s16  ;;  %v5221_v4 = vpop.permute.xlu0 %5220  ;;  %v4784_v22 = vadd.f32 %v4783_v1, %v22331_v3  ;;  %v4785_v57 = vpop.f32.mrb[42].mxu1 }
 0x383   : > { %v6265_v53 = vsel %vm26225_vm10, %v6248_v11, %v6249_v47  ;;  %v5254_v45 = vrot.slane %v5221_v4, 4  ;;  %v5013_v54 = vmax.f32 %v4782_v49, 0.0  ;;  %v4786_v48 = vpop.f32.mrb[43].mxu1  ;;  %vm26244_vm10 = vmmov %vm26239_vm12 }
 0x384   : > { %v22856_v37 = vsel %vm26226_vm8, %v6215_v15, %v6265_v53  ;;  %v22858_v50 = vpop.permute.xlu1 %5222  ;;  %6228 = vrot.lane.b32.xlu0 %v22611_v58, %s18861_s29  ;;  %v5014_v56 = vmax.f32 %v4784_v22, 0.0  ;;  %vm26246_vm8 = vmmov %vm26243_vm1 }
 0x385   : > { %v5255_v60 = vrot.slane %v22858_v50, 4 }
 0x386   : > { %6394 = vrot.lane.b32.xlu1 %v6353_v46, %s18858_s18  ;;  %v5536_v42 = vpop.permute.xlu0 %5535  ;;  %v22882_v62 = vpack.c.bf16 %v5014_v56, %v5013_v54  ;;  %v26242_v56 = vld [vmem:[#allocation51_spill] sm:$0xff] }
 0x387   : > { %v5271_v34 = vsel %vm26227_vm14, %v5254_v45, %v5255_v60  ;;  %v5569_v58 = vrot.slane %v5536_v42, 4  ;;  %v5344_v45 = vld [vmem:[#allocation2 + $0x48] sm:$0xff]  ;;  %vm26247_vm14 = vmmov %vm26243_vm1 }
 0x388   : > { %v5272_v17 = vsel %vm26229_vm13, %v5221_v4, %v5271_v34  ;;  %v22873_v14 = vpop.permute.xlu1 %5537  ;;  %5236 = vrot.lane.b32.xlu0 %v5194_v27, %s18857_s16  ;;  %5163 = vst [vmem:[#allocation2 + $0x54] sm:$0xff] %v22882_v62  ;;  %v6354_v4 = vmul.bf16 %v22718_v31, %v26231_v8  ;;  %v5510_v54 = vmul.bf16 %v5344_v45, %v25862_v18  ;;  %vm26248_vm13 = vcmask 523264  }
 0x389   : > { %5319 = vst [vmem:[#allocation3] sm:$0xff] %v5272_v17  ;;  %v5570_v40 = vrot.slane %v22873_v14, 4  ;;  %v17559_v5 = vcombine.low %v5272_v17, %v5421_v43  ;;  %v17560_v41 = vcombine.high %v5272_v17, %v5421_v43 }
 0x38a   : > { %5385 = vrot.lane.b32.xlu1 %v5343_v20, %s18861_s29  ;;  %v5702_v39 = vpop.permute.xlu0 %5701 }
 0x38b   : > { %v5586_v28 = vsel %vm26230_vm15, %v5569_v58, %v5570_v40  ;;  %7467 = vmatprep.subr.bf16.mxu1 %v17560_v41  ;;  %v5735_v19 = vrot.slane %v5702_v39, 4  ;;  %vm7366_vm15 = vcmask 588800  }
 0x38c   : > { %v5587_v59 = vsel %vm26232_vm0, %v5536_v42, %v5586_v28  ;;  %v22885_v2 = vpop.permute.xlu1 %5703  ;;  %7468 = vmatpush1.bf16.msra.mxu1 %v17559_v5  ;;  %5551 = vrot.lane.b32.xlu0 %v5509_v10, %s18858_s18  ;;  %v5195_v42 = vmul.bf16 %v5344_v45, %v20644_v16  ;;  %v5676_v28 = vmul.bf16 %v5344_v45, %v26242_v56  ;;  %vm26249_vm0 = vmmov %vm26243_vm1 }
 0x38d   : > { %5634 = vst [vmem:[#allocation3 + $0x100] sm:$0xff] %v5587_v59  ;;  %v5736_v55 = vrot.slane %v22885_v2, 4 }
 0x38e   : > { %5717 = vrot.lane.b32.xlu1 %v5675_v13, %s18860_s23  ;;  %v5900_v6 = vpop.permute.xlu0 %5899  ;;  %v26245_v13 = vld [vmem:[#allocation52_spill] sm:$0xff] }
 0x38f   : > { %v5752_v29 = vsel %vm26234_vm4, %v5735_v19, %v5736_v55  ;;  %v5933_v23 = vrot.slane %v5900_v6, 4  ;;  %v5826_v34 = vld [vmem:[#allocation2 + $0x54] sm:$0xff]  ;;  %vm26250_vm4 = vmmov %vm26249_vm0 }
 0x390   : > { %v5753_v38 = vsel %vm26205_vm6, %v5702_v39, %v5752_v29  ;;  %v22898_v7 = vpop.permute.xlu1 %5901  ;;  %5915 = vrot.lane.b32.xlu0 %v5873_v9, %s18859_s22  ;;  %5842 = vst [vmem:[#allocation3 + $0x250] sm:$0xff] %v5826_v34  ;;  %v5874_v29 = vmul.bf16 %v22804_v52, %v26245_v13  ;;  %v22973_v9 = vld [vmem:[%s25232_s3] sm:$0xf]  ;;  %vm26251_vm6 = vmmov %vm26241_vm9 }
 0x391   : > { %5800 = vst [vmem:[#allocation3 + $0x180] sm:$0xff] %v5753_v38  ;;  %v5934_v24 = vrot.slane %v22898_v7, 4  ;;  %v17591_v15 = vcombine.low %v5587_v59, %v5753_v38  ;;  %v17592_v12 = vcombine.high %v5587_v59, %v5753_v38 }
 0x392   : > { %6081 = vrot.lane.b32.xlu1 %v6039_v36, %s18857_s16  ;;  %v6066_v43 = vpop.permute.xlu0 %6065 }
 0x393   : > { %v5950_v30 = vsel %vm26236_vm3, %v5933_v23, %v5934_v24  ;;  %7469 = vmatprep.subr.bf16.mxu1 %v17592_v12  ;;  %v6099_v53 = vrot.slane %v6066_v43, 4  ;;  %vm26252_vm3 = vcmask 7168  }
 0x394   : > { %v5951_v11 = vsel %vm26237_vm11, %v5900_v6, %v5950_v30  ;;  %v22909_v25 = vpop.permute.xlu1 %6067  ;;  %7470 = vmatpush1.bf16.msra.mxu1 %v17591_v15  ;;  %6230 = vrot.lane.b32.xlu0 %v22718_v31, %s18861_s29  ;;  %vm26253_vm11 = vmmov %vm26249_vm0 }
 0x395   : > { %v6100_v46 = vrot.slane %v22909_v25, 4  ;;  %v17623_v20 = vcombine.low %v22429_v0, %v5951_v11  ;;  %v17624_v32 = vcombine.high %v22429_v0, %v5951_v11  ;;  %v5345_v11 = vld [vmem:[#allocation2 + $0x50] sm:$0xff] }
 0x396   : > { %6396 = vrot.lane.b32.xlu1 %v6354_v4, %s18858_s18  ;;  %v6381_v1 = vpop.permute.xlu0 %6380 }
 0x397   : > { %v6116_v49 = vsel %vm26238_vm5, %v6099_v53, %v6100_v46  ;;  %7471 = vmatprep.subr.bf16.mxu1 %v17624_v32  ;;  %v6414_v31 = vrot.slane %v6381_v1, 4  ;;  %vm26254_vm5 = vmmov %vm26249_vm0 }
 0x398   : > { %v6117_v63 = vsel %vm26239_vm12, %v6066_v43, %v6116_v49  ;;  %v22924_v27 = vpop.permute.xlu1 %6382  ;;  %7472 = vmatpush1.bf16.msra.mxu1 %v17623_v20  ;;  %5238 = vrot.lane.b32.xlu0 %v5195_v42, %s18857_s16  ;;  %vm26255_vm12 = vcmask 1039360   ;;  %v5196_v20 = vmul.bf16 %v5345_v11, %v20910_v35  ;;  %v18734_v49 = vld [vmem:[#allocation3 + $0x208] sm:$0xff] }
 0x399   : > { %v6415_v0 = vrot.slane %v22924_v27, 4  ;;  %v17655_v17 = vcombine.low %v6117_v63, %v22856_v37  ;;  %v17656_v22 = vcombine.high %v6117_v63, %v22856_v37 }
 0x39a   : > { %5387 = vrot.lane.b32.xlu1 %v5344_v45, %s18861_s29  ;;  %v22934_v57 = vpop.permute.xlu0 %5224 }
 0x39b   : > { %v6431_v58 = vsel %vm26240_vm7, %v6414_v31, %v6415_v0  ;;  %7473 = vmatprep.subr.bf16.mxu1 %v17656_v22  ;;  %v5256_v48 = vrot.slane %v22934_v57, 4  ;;  %vm26256_vm7 = vmmov %vm26244_vm10 }
 0x39c   : > { %v6432_v5 = vsel %vm26241_vm9, %v6381_v1, %v6431_v58  ;;  %v22938_v41 = vpop.permute.xlu1 %5373  ;;  %7474 = vmatpush1.bf16.msra.mxu1 %v17655_v17  ;;  %5553 = vrot.lane.b32.xlu0 %v5510_v54, %s18858_s18  ;;  %vm26257_vm9 = vmmov %vm26249_vm0  ;;  %v26260_v17 = vld [vmem:[#allocation48_spill] sm:$0xff]  ;;  %v26261_v58 = vld [vmem:[#allocation50_spill] sm:$0xff] }
 0x39d   : > { %v5405_v37 = vrot.slane %v22938_v41, 4  ;;  %v17688_v39 = vcombine.high %v6432_v5, %v6432_v5  ;;  %v17687_v8 = vcombine.low %v6432_v5, %v6432_v5  ;;  %v5273_v10 = vsel %vm26222_vm2, %v5255_v60, %v5256_v48  ;;  %vm26258_vm2 = vmmov %vm26249_vm0 }
 0x39e   : > { %5719 = vrot.lane.b32.xlu1 %v5676_v28, %s18860_s23  ;;  %v5274_v19 = vsel %vm26244_vm10, %v22858_v50, %v5273_v10  ;;  %v22957_v51 = vpop.permute.xlu0 %5539  ;;  %v6040_v50 = vmul.bf16 %v22804_v52, %v20644_v16  ;;  %v5677_v22 = vmul.bf16 %v5345_v11, %v26260_v17  ;;  %v5511_v54 = vmul.bf16 %v5345_v11, %v26261_v58  ;;  %vm26262_vm10 = vmmov %vm26251_vm6 }
 0x39f   : > { %v5422_v59 = vsel %vm26243_vm1, %v5404_v21, %v5405_v37  ;;  %17719 = vmatprep.subr.msk.bf16.mxu1 %vm26246_vm8, %v17688_v39  ;;  %v7372_v60 = vsel %vm26247_vm14, %v17687_v8, 0  ;;  %5320 = vst [vmem:[#allocation3 + $0x8] sm:$0xff] %v5274_v19  ;;  %v5571_v21 = vrot.slane %v22957_v51, 4  ;;  %vm26259_vm1 = vmmov %vm26248_vm13 }
 0x3a0   : > { %v5423_v6 = vsel %vm26248_vm13, %v22833_v26, %v5422_v59  ;;  %v22965_v33 = vpop.permute.xlu1 %5705  ;;  %7476 = vmatpush1.bf16.msra.mxu1 %v7372_v60  ;;  %5917 = vrot.lane.b32.xlu0 %v5874_v29, %s18859_s22  ;;  %vm26263_vm8 = vmmov %vm26249_vm0 }
 0x3a1   : > { %5469 = vst [vmem:[#allocation3 + $0x88] sm:$0xff] %v5423_v6  ;;  %v5737_v38 = vrot.slane %v22965_v33, 4  ;;  %v17561_v26 = vcombine.low %v5274_v19, %v5423_v6  ;;  %v17562_v23 = vcombine.high %v5274_v19, %v5423_v6  ;;  %v5588_v16 = vsel %vm26249_vm0, %v5570_v40, %v5571_v21  ;;  %vm26265_vm14 = vmmov %vm26249_vm0 }
 0x3a2   : > { %6083 = vrot.lane.b32.xlu1 %v6040_v50, %s18857_s16  ;;  %v5589_v15 = vsel %vm26251_vm6, %v22873_v14, %v5588_v16  ;;  %v22990_v12 = vpop.permute.xlu0 %5903  ;;  %vm26266_vm13 = vmmov %vm26256_vm7  ;;  %v6041_v50 = vmul.bf16 %v22882_v62, %v20910_v35 }
 0x3a3   : > { %v5754_v36 = vsel %vm26250_vm4, %v5736_v55, %v5737_v38  ;;  %7508 = vmatprep.subr.bf16.mxu1 %v17562_v23  ;;  %17720 = vmatmul.mubr.msk.bf16.vlgmr.msra.gmra.mrb[64].mxu1 %vm7366_vm15, %v22973_v9  ;;  %5635 = vst [vmem:[#allocation3 + $0x108] sm:$0xff] %v5589_v15  ;;  %v5935_v43 = vrot.slane %v22990_v12, 4  ;;  %v6355_v55 = vmul.bf16 %v22804_v52, %v25862_v18  ;;  %vm26267_vm0 = vmmov %vm26259_vm1 }
 0x3a4   : > { %v5755_v40 = vsel %vm26252_vm3, %v22885_v2, %v5754_v36  ;;  %v22996_v30 = vpop.permute.xlu1 %6069  ;;  %7509 = vmatpush1.bf16.msra.mxu1 %v17561_v26  ;;  %7540 = vmatprep.mubr.bf16.mxu1 %v25720_v44  ;;  %vm26268_vm4 = vmmov %vm26258_vm2 }
 0x3a5   : > { %5801 = vst [vmem:[#allocation3 + $0x188] sm:$0xff] %v5755_v40  ;;  %v6101_v14 = vrot.slane %v22996_v30, 4  ;;  %6232 = vrot.lane.b32.xlu0 %v22804_v52, %s18861_s29  ;;  %v17593_v53 = vcombine.low %v5589_v15, %v5755_v40  ;;  %v17594_v2 = vcombine.high %v5589_v15, %v5755_v40  ;;  %v5952_v4 = vsel %vm26253_vm11, %v5934_v24, %v5935_v43  ;;  %vm26269_vm6 = vmmov %vm26258_vm2 }
 0x3a6   : > { %6398 = vrot.lane.b32.xlu1 %v6355_v55, %s18858_s18  ;;  %v5953_v45 = vsel %vm26255_vm12, %v22898_v7, %v5952_v4  ;;  %v23018_v52 = vpop.permute.xlu0 %6218  ;;  %vm26270_vm3 = vmmov %vm26258_vm2  ;;  %vm26273_vm12 = vcmask 7168   ;;  %v6356_v40 = vmul.bf16 %v22882_v62, %v26261_v58 }
 0x3a7   : > { %v6118_v18 = vsel %vm26254_vm5, %v6100_v46, %v6101_v14  ;;  %7510 = vmatprep.subr.bf16.mxu1 %v17594_v2  ;;  %v6250_v34 = vrot.slane %v23018_v52, 4  ;;  %v17625_v1 = vcombine.low %v18734_v49, %v5953_v45  ;;  %v17626_v42 = vcombine.high %v18734_v49, %v5953_v45  ;;  %vm26271_vm11 = vmmov %vm26262_vm10  ;;  %v18735_v49 = vld [vmem:[#allocation3 + $0x210] sm:$0xff] }
 0x3a8   : > { %v6119_v32 = vsel %vm26256_vm7, %v22909_v25, %v6118_v18  ;;  %v23023_v24 = vpop.permute.xlu1 %6384  ;;  %7511 = vmatpush1.bf16.msra.mxu1 %v17593_v53  ;;  %vm26272_vm5 = vmmov %vm26258_vm2 }
 0x3a9   : > { %v6416_v46 = vrot.slane %v23023_v24, 4  ;;  %5240 = vrot.lane.b32.xlu0 %v5196_v20, %s18857_s16  ;;  %v6267_v7 = vsel %vm26257_vm9, %v6249_v47, %v6250_v34  ;;  %7512 = vmatprep.subr.bf16.mxu1 %v17626_v42  ;;  %vm26274_vm7 = vmmov %vm26258_vm2 }
 0x3aa   : > { %5389 = vrot.lane.b32.xlu1 %v5345_v11, %s18861_s29  ;;  %v6268_v63 = vsel %vm26259_vm1, %v22845_v61, %v6267_v7  ;;  %v23041_v31 = vpop.permute.xlu0 %5226  ;;  %vm26275_vm9 = vmmov %vm26258_vm2 }
 0x3ab   : > { %v6433_v25 = vsel %vm26258_vm2, %v6415_v0, %v6416_v46  ;;  %v5257_v56 = vrot.slane %v23041_v31, 4  ;;  %v17657_v28 = vcombine.low %v6119_v32, %v6268_v63  ;;  %v17658_v39 = vcombine.high %v6119_v32, %v6268_v63  ;;  %vm26277_vm1 = vmmov %vm26266_vm13 }
 0x3ac   : > { %v6434_v47 = vsel %vm26262_vm10, %v22924_v27, %v6433_v25  ;;  %v23047_v5 = vpop.permute.xlu1 %5375  ;;  %7513 = vmatpush1.bf16.msra.mxu1 %v17625_v1  ;;  %v26264_v27 = vld [vmem:[#allocation53_spill] sm:$0xff]  ;;  %vm26276_vm2 = vcmask 1039360   ;;  %vm26278_vm10 = vmmov %vm26270_vm3 }
 0x3ad   : > { %v5406_v0 = vrot.slane %v23047_v5, 4  ;;  %5555 = vrot.lane.b32.xlu0 %v5511_v54, %s18858_s18  ;;  %v5275_v61 = vsel %vm26263_vm8, %v5256_v48, %v5257_v56  ;;  %v5875_v8 = vmul.bf16 %v22882_v62, %v26264_v27  ;;  %7514 = vmatprep.subr.bf16.mxu1 %v17658_v39  ;;  %v17690_v13 = vcombine.high %v6434_v47, %v6434_v47  ;;  %vm26279_vm8 = vmmov %vm26270_vm3 }
 0x3ae   : > { %5721 = vrot.lane.b32.xlu1 %v5677_v22, %s18860_s23  ;;  %v5276_v59 = vsel %vm26266_vm13, %v22934_v57, %v5275_v61  ;;  %v23067_v19 = vpop.permute.xlu0 %5541  ;;  %v17689_v29 = vcombine.low %v6434_v47, %v6434_v47  ;;  %vm26281_vm13 = vmmov %vm26271_vm11 }
 0x3af   : > { %v5424_v10 = vsel %vm26265_vm14, %v5405_v37, %v5406_v0  ;;  %5321 = vst [vmem:[#allocation3 + $0x10] sm:$0xff] %v5276_v59  ;;  %v5572_v6 = vrot.slane %v23067_v19, 4  ;;  %vm26280_vm14 = vmmov %vm26267_vm0 }
 0x3b0   : > { %v5425_v48 = vsel %vm26267_vm0, %v22938_v41, %v5424_v10  ;;  %v23071_v60 = vpop.permute.xlu1 %5707  ;;  %7515 = vmatpush1.bf16.msra.mxu1 %v17657_v28  ;;  %v7378_v23 = vsel %vm26272_vm5, %v17689_v29, 0  ;;  %vm26282_vm0 = vmmov %vm26270_vm3 }
 0x3b1   : > { %5470 = vst [vmem:[#allocation3 + $0x90] sm:$0xff] %v5425_v48  ;;  %v5738_v37 = vrot.slane %v23071_v60, 4  ;;  %5919 = vrot.lane.b32.xlu0 %v5875_v8, %s18859_s22  ;;  %17721 = vmatprep.subr.msk.bf16.mxu1 %vm26268_vm4, %v17690_v13  ;;  %v5590_v57 = vsel %vm26269_vm6, %v5571_v21, %v5572_v6  ;;  %v17564_v16 = vcombine.high %v5276_v59, %v5425_v48  ;;  %vm26283_vm4 = vmmov %vm26282_vm0 }
 0x3b2   : > { %6085 = vrot.lane.b32.xlu1 %v6041_v50, %s18857_s16  ;;  %v5591_v41 = vsel %vm26271_vm11, %v22957_v51, %v5590_v57  ;;  %v23092_v26 = vpop.permute.xlu0 %5905  ;;  %vm26284_vm6 = vmmov %vm26277_vm1 }
 0x3b3   : > { %v5756_v35 = vsel %vm26270_vm3, %v5737_v38, %v5738_v37  ;;  %5636 = vst [vmem:[#allocation3 + $0x110] sm:$0xff] %v5591_v41  ;;  %v5936_v15 = vrot.slane %v23092_v26, 4  ;;  %v17563_v38 = vcombine.low %v5276_v59, %v5425_v48  ;;  %vm26285_vm3 = vmmov %vm26280_vm14 }
 0x3b4   : > { %v5757_v36 = vsel %vm26273_vm12, %v22965_v33, %v5756_v35  ;;  %v23097_v21 = vpop.permute.xlu1 %6071  ;;  %7517 = vmatpush1.bf16.msra.mxu1 %v7378_v23  ;;  %vm26286_vm11 = vmmov %vm26282_vm0 }
 0x3b5   : > { %5802 = vst [vmem:[#allocation3 + $0x190] sm:$0xff] %v5757_v36  ;;  %v6102_v51 = vrot.slane %v23097_v21, 4  ;;  %6234 = vrot.lane.b32.xlu0 %v22882_v62, %s18861_s29  ;;  %7549 = vmatprep.subr.bf16.mxu1 %v17564_v16  ;;  %v5954_v33 = vsel %vm26274_vm7, %v5935_v43, %v5936_v15  ;;  %v17596_v53 = vcombine.high %v5591_v41, %v5757_v36  ;;  %vm26287_vm5 = vmmov %vm26282_vm0  ;;  %vm26289_vm7 = vcmask 7168  }
 0x3b6   : > { %6400 = vrot.lane.b32.xlu1 %v6356_v40, %s18858_s18  ;;  %v5955_v11 = vsel %vm26276_vm2, %v22990_v12, %v5954_v33  ;;  %v23118_v62 = vpop.permute.xlu0 %6220  ;;  %v17595_v18 = vcombine.low %v5591_v41, %v5757_v36  ;;  %vm26288_vm12 = vmmov %vm26281_vm13 }
 0x3b7   : > { %v6120_v55 = vsel %vm26275_vm9, %v6101_v14, %v6102_v51  ;;  %17722 = vmatmul.mubr.msk.bf16.vlgmr.msra.gmra.mrb[68].mxu1 %vm7366_vm15, %v22973_v9  ;;  %v6251_v4 = vrot.slane %v23118_v62, 4  ;;  %v17628_v1 = vcombine.high %v18735_v49, %v5955_v11  ;;  %v17627_v58 = vcombine.low %v18735_v49, %v5955_v11  ;;  %vm26290_vm9 = vmmov %vm26282_vm0  ;;  %v26300_v49 = vld [vmem:[#allocation55_spill] sm:$0xff] }
 0x3b8   : > { %v6121_v43 = vsel %vm26277_vm1, %v22996_v30, %v6120_v55  ;;  %v23124_v2 = vpop.permute.xlu1 %6386  ;;  %7550 = vmatpush1.bf16.msra.mxu1 %v17563_v38  ;;  %7581 = vmatprep.mubr.bf16.mxu1 %v25720_v44  ;;  %vm26291_vm2 = vmmov %vm26282_vm0 }
 0x3b9   : > { %v6417_v14 = vrot.slane %v23124_v2, 4  ;;  %7551 = vmatprep.subr.bf16.mxu1 %v17596_v53  ;;  %v6269_v12 = vsel %vm26278_vm10, %v6250_v34, %v6251_v4  ;;  %v4822_v20 = vpop.f32.mrb[44].mxu1  ;;  %vm26292_vm1 = vmmov %vm26282_vm0  ;;  %vm26293_vm10 = vcmask 1039360  }
 0x3ba   : > { %v6270_v45 = vsel %vm26280_vm14, %v23018_v52, %v6269_v12  ;;  %v23141_v32 = vpop.permute.xlu0 %5228  ;;  %v4823_v34 = vadd.f32 %v4822_v20, %v22331_v3  ;;  %v4824_v63 = vpop.f32.mrb[45].mxu1  ;;  %vm26295_vm14 = vmmov %vm26284_vm6  ;;  %v26298_v12 = vld [vmem:[#allocation49_spill] sm:$0xff] }
 0x3bb   : > { %v6435_v30 = vsel %vm26279_vm8, %v6416_v46, %v6417_v14  ;;  %v5258_v25 = vrot.slane %v23141_v32, 4  ;;  %v4825_v52 = vadd.f32 %v4824_v63, %v22331_v3  ;;  %v4826_v17 = vpop.f32.mrb[46].mxu1  ;;  %v17660_v27 = vcombine.high %v6121_v43, %v6270_v45  ;;  %vm26294_vm8 = vmmov %vm26282_vm0 }
 0x3bc   : > { %v6436_v42 = vsel %vm26281_vm13, %v23023_v24, %v6435_v30  ;;  %v23146_v7 = vpop.permute.xlu1 %5377  ;;  %7552 = vmatpush1.bf16.msra.mxu1 %v17595_v18  ;;  %v5015_v22 = vmax.f32 %v4823_v34, 0.0  ;;  %v4827_v54 = vpop.f32.mrb[47].mxu1  ;;  %v17659_v13 = vcombine.low %v6121_v43, %v6270_v45  ;;  %vm26296_vm13 = vmmov %vm26282_vm0 }
 0x3bd   : > { %v5407_v46 = vrot.slane %v23146_v7, 4  ;;  %7553 = vmatprep.subr.bf16.mxu1 %v17628_v1  ;;  %v5277_v24 = vsel %vm26282_vm0, %v5257_v56, %v5258_v25  ;;  %v5016_v39 = vmax.f32 %v4825_v52, 0.0  ;;  %v17692_v50 = vcombine.high %v6436_v42, %v6436_v42  ;;  %v26304_v52 = vld [vmem:[#allocation54_spill] sm:$0xff] }
 0x3be   : > { %v5278_v28 = vsel %vm26284_vm6, %v23041_v31, %v5277_v24  ;;  %v23163_v61 = vpop.permute.xlu0 %5543  ;;  %v17691_v57 = vcombine.low %v6436_v42, %v6436_v42  ;;  %vm26299_vm6 = vmmov %vm26288_vm12 }
 0x3bf   : > { %v5426_v47 = vsel %vm26283_vm4, %v5406_v0, %v5407_v46  ;;  %5322 = vst [vmem:[#allocation3 + $0x18] sm:$0xff] %v5278_v28  ;;  %v5573_v10 = vrot.slane %v23163_v61, 4  ;;  %v23170_v59 = vpack.c.bf16 %v5016_v39, %v5015_v22  ;;  %vm26297_vm4 = vmmov %vm26285_vm3  ;;  %v26307_v39 = vld [vmem:[#allocation56_spill] sm:$0xff] }
 0x3c0   : > { %v5427_v8 = vsel %vm26285_vm3, %v23047_v5, %v5426_v47  ;;  %v23167_v56 = vpop.permute.xlu1 %5709  ;;  %7554 = vmatpush1.bf16.msra.mxu1 %v17627_v58  ;;  %v7384_v36 = vsel %vm26294_vm8, %v17691_v57, 0  ;;  %vm26301_vm3 = vmmov %vm26282_vm0  ;;  %v18736_v58 = vld [vmem:[#allocation3 + $0x218] sm:$0xff] }
 0x3c1   : > { %5471 = vst [vmem:[#allocation3 + $0x98] sm:$0xff] %v5427_v8  ;;  %v5739_v0 = vrot.slane %v23167_v56, 4  ;;  %7555 = vmatprep.subr.bf16.mxu1 %v17660_v27  ;;  %v5592_v31 = vsel %vm26286_vm11, %v5572_v6, %v5573_v10  ;;  %5164 = vst [vmem:[#allocation2 + $0x5c] sm:$0xff] %v23170_v59  ;;  %v17566_v40 = vcombine.high %v5278_v28, %v5427_v8 }
 0x3c2   : > { %v5593_v29 = vsel %vm26288_vm12, %v23067_v19, %v5592_v31  ;;  %v23186_v48 = vpop.permute.xlu0 %5907  ;;  %v17565_v30 = vcombine.low %v5278_v28, %v5427_v8  ;;  %vm26302_vm11 = vmmov %vm26282_vm0  ;;  %v6042_v47 = vmul.bf16 %v23170_v59, %v26298_v12  ;;  %v5876_v27 = vmul.bf16 %v23170_v59, %v26307_v39 }
 0x3c3   : > { %v5758_v5 = vsel %vm26287_vm5, %v5738_v37, %v5739_v0  ;;  %5637 = vst [vmem:[#allocation3 + $0x118] sm:$0xff] %v5593_v29  ;;  %v5937_v41 = vrot.slane %v23186_v48, 4  ;;  %vm26303_vm5 = vmmov %vm26295_vm14 }
 0x3c4   : > { %v5759_v35 = vsel %vm26289_vm7, %v23071_v60, %v5758_v5  ;;  %v23190_v6 = vpop.permute.xlu1 %6073  ;;  %7556 = vmatpush1.bf16.msra.mxu1 %v17659_v13  ;;  %vm26305_vm12 = vmmov %vm26297_vm4 }
 0x3c5   : > { %5803 = vst [vmem:[#allocation3 + $0x198] sm:$0xff] %v5759_v35  ;;  %v6103_v23 = vrot.slane %v23190_v6, 4  ;;  %17723 = vmatprep.subr.msk.bf16.mxu1 %vm26290_vm9, %v17692_v50  ;;  %v5956_v19 = vsel %vm26291_vm2, %v5936_v15, %v5937_v41  ;;  %vm26306_vm7 = vmmov %vm26282_vm0 }
 0x3c6   : > { %v23207_v37 = vsel %vm26293_vm10, %v23092_v26, %v5956_v19  ;;  %v23209_v16 = vpop.permute.xlu0 %6222  ;;  %vm26308_vm9 = vmmov %vm26282_vm0 }
 0x3c7   : > { %v6122_v60 = vsel %vm26292_vm1, %v6102_v51, %v6103_v23  ;;  %v6252_v38 = vrot.slane %v23209_v16, 4  ;;  %vm26309_vm2 = vmmov %vm26299_vm6  ;;  %vm26310_vm1 = vcmask 7168  }
 0x3c8   : > { %v23214_v33 = vsel %vm26295_vm14, %v23097_v21, %v6122_v60  ;;  %v23216_v15 = vpop.permute.xlu1 %6388  ;;  %7558 = vmatpush1.bf16.msra.mxu1 %v7384_v36  ;;  %v5346_v55 = vld [vmem:[#allocation2 + $0x58] sm:$0xff]  ;;  %vm26311_vm10 = vmmov %vm26282_vm0  ;;  %vm26313_vm14 = vcmask 1039360  }
 0x3c9   : > { %v6418_v51 = vrot.slane %v23216_v15, 4  ;;  %7590 = vmatprep.subr.bf16.mxu1 %v17566_v40  ;;  %v6271_v26 = vsel %vm26296_vm13, %v6251_v4, %v6252_v38  ;;  %v5827_v11 = vld [vmem:[#allocation2 + $0x5c] sm:$0xff]  ;;  %5391 = vrot.lane.b32.xlu1 %v5346_v55, %s18861_s29  ;;  %v5197_v18 = vmul.bf16 %v5346_v55, %v26298_v12  ;;  %v5678_v1 = vmul.bf16 %v5346_v55, %v26300_v49  ;;  %vm26312_vm8 = vmmov %vm26282_vm0 }
 0x3ca   : > { %v23232_v53 = vsel %vm26297_vm4, %v23118_v62, %v6271_v26  ;;  %v23235_v43 = vpop.permute.xlu0 %5230  ;;  %5843 = vst [vmem:[#allocation3 + $0x258] sm:$0xff] %v5827_v11  ;;  %v17598_v62 = vcombine.high %v5593_v29, %v5759_v35  ;;  %v5512_v17 = vmul.bf16 %v5346_v55, %v26304_v52  ;;  %vm26314_vm13 = vmmov %vm26303_vm5 }
 0x3cb   : > { %v6437_v21 = vsel %vm26282_vm0, %v6417_v14, %v6418_v51  ;;  %v5259_v14 = vrot.slane %v23235_v43, 4  ;;  %17724 = vmatmul.mubr.msk.bf16.vlgmr.msra.gmra.mrb[72].mxu1 %vm7366_vm15, %v22973_v9  ;;  %5242 = vrot.lane.b32.xlu0 %v5197_v18, %s18857_s16  ;;  %v17661_v12 = vcombine.low %v23214_v33, %v23232_v53  ;;  %vm26315_vm4 = vmmov %vm26282_vm0 }
 0x3cc   : > { %v23240_v4 = vsel %vm26299_vm6, %v23124_v2, %v6437_v21  ;;  %v23242_v45 = vpop.permute.xlu1 %5379  ;;  %7591 = vmatpush1.bf16.msra.mxu1 %v17565_v30  ;;  %7622 = vmatprep.mubr.bf16.mxu1 %v25720_v44  ;;  %vm26316_vm6 = vmmov %vm26282_vm0 }
 0x3cd   : > { %v5408_v20 = vrot.slane %v23242_v45, 4  ;;  %v5279_v2 = vsel %vm26301_vm3, %v5258_v25, %v5259_v14  ;;  %7592 = vmatprep.subr.bf16.mxu1 %v17598_v62  ;;  %5723 = vrot.lane.b32.xlu1 %v5678_v1, %s18860_s23  ;;  %v17597_v25 = vcombine.low %v5593_v29, %v5759_v35  ;;  %v17629_v29 = vcombine.low %v18736_v58, %v23207_v37  ;;  %vm26317_vm3 = vmmov %vm26305_vm12 }
 0x3ce   : > { %v23263_v34 = vsel %vm26303_vm5, %v23141_v32, %v5279_v2  ;;  %v23266_v63 = vpop.permute.xlu0 %5545  ;;  %v17630_v32 = vcombine.high %v18736_v58, %v23207_v37  ;;  %v17662_v35 = vcombine.high %v23214_v33, %v23232_v53  ;;  %v17693_v62 = vcombine.low %v23240_v4, %v23240_v4  ;;  %vm26319_vm5 = vmmov %vm26282_vm0 }
 0x3cf   : > { %v5428_v42 = vsel %vm26302_vm11, %v5407_v46, %v5408_v20  ;;  %5323 = vst [vmem:[#allocation3 + $0x20] sm:$0xff] %v23263_v34  ;;  %v5574_v46 = vrot.slane %v23266_v63, 4  ;;  %5557 = vrot.lane.b32.xlu0 %v5512_v17, %s18858_s18  ;;  %vm26318_vm11 = vmmov %vm26309_vm2 }
 0x3d0   : > { %v23271_v22 = vsel %vm26305_vm12, %v23146_v7, %v5428_v42  ;;  %v23274_v24 = vpop.permute.xlu1 %5711  ;;  %7593 = vmatpush1.bf16.msra.mxu1 %v17597_v25  ;;  %v4863_v28 = vpop.f32.mrb[48].mxu1  ;;  %v7390_v2 = vsel %vm26319_vm5, %v17693_v62, 0  ;;  %vm26320_vm12 = vmmov %vm26282_vm0 }
 0x3d1   : > { %5472 = vst [vmem:[#allocation3 + $0xa0] sm:$0xff] %v23271_v22  ;;  %v5740_v54 = vrot.slane %v23274_v24, 4  ;;  %v5594_v7 = vsel %vm26306_vm7, %v5573_v10, %v5574_v46  ;;  %7594 = vmatprep.subr.bf16.mxu1 %v17630_v32  ;;  %v4864_v13 = vadd.f32 %v4863_v28, %v22331_v3  ;;  %v4865_v5 = vpop.f32.mrb[49].mxu1  ;;  %6087 = vrot.lane.b32.xlu1 %v6042_v47, %s18857_s16  ;;  %vm26321_vm7 = vmmov %vm26282_vm0  ;;  %v26325_v47 = vld [vmem:[#allocation59_spill] sm:$0xff] }
 0x3d2   : > { %v23297_v31 = vsel %vm26309_vm2, %v23163_v61, %v5594_v7  ;;  %v23301_v10 = vpop.permute.xlu0 %5909  ;;  %v4867_v19 = vpop.f32.mrb[50].mxu1  ;;  %v17568_v42 = vcombine.high %v23263_v34, %v23271_v22  ;;  %v17567_v25 = vcombine.low %v23263_v34, %v23271_v22  ;;  %vm26323_vm2 = vmmov %vm26317_vm3 }
 0x3d3   : > { %v5760_v8 = vsel %vm26308_vm9, %v5739_v0, %v5740_v54  ;;  %5638 = vst [vmem:[#allocation3 + $0x120] sm:$0xff] %v23297_v31  ;;  %v4866_v0 = vadd.f32 %v4865_v5, %v22331_v3  ;;  %v5938_v61 = vrot.slane %v23301_v10, 4  ;;  %v5017_v60 = vmax.f32 %v4864_v13, 0.0  ;;  %5921 = vrot.lane.b32.xlu0 %v5876_v27, %s18859_s22  ;;  %v4868_v36 = vpop.f32.mrb[51].mxu1  ;;  %vm26322_vm9 = vmmov %vm26314_vm13 }
 0x3d4   : > { %v23306_v50 = vsel %vm26310_vm1, %v23167_v56, %v5760_v8  ;;  %v23310_v57 = vpop.permute.xlu1 %6075  ;;  %v6357_v56 = vmul.bf16 %v23170_v59, %v26304_v52  ;;  %7595 = vmatpush1.bf16.msra.mxu1 %v17629_v29  ;;  %vm26324_vm1 = vmmov %vm26282_vm0  ;;  %v18737_v29 = vld [vmem:[#allocation3 + $0x220] sm:$0xff] }
 0x3d5   : > { %5804 = vst [vmem:[#allocation3 + $0x1a0] sm:$0xff] %v23306_v50  ;;  %v6104_v37 = vrot.slane %v23310_v57, 4  ;;  %v5018_v40 = vmax.f32 %v4866_v0, 0.0  ;;  %v5958_v26 = vsel %vm26311_vm10, %v5937_v41, %v5938_v61  ;;  %7596 = vmatprep.subr.bf16.mxu1 %v17662_v35  ;;  %v17694_v41 = vcombine.high %v23240_v4, %v23240_v4  ;;  %vm26326_vm10 = vmmov %vm26282_vm0 }
 0x3d6   : > { %v23332_v11 = vsel %vm26313_vm14, %v23186_v48, %v5958_v26  ;;  %6402 = vrot.lane.b32.xlu1 %v6357_v56, %s18858_s18  ;;  %v23335_v21 = vpop.permute.xlu0 %6224  ;;  %v17600_v34 = vcombine.high %v23297_v31, %v23306_v50  ;;  %vm26328_vm14 = vcmask 7168   ;;  %vm26337_vm5 = vmmov %vm26323_vm2 }
 0x3d7   : > { %v6124_v55 = vsel %vm26312_vm8, %v6103_v23, %v6104_v37  ;;  %v23341_v18 = vpack.c.bf16 %v5018_v40, %v5017_v60  ;;  %v6253_v48 = vrot.slane %v23335_v21, 4  ;;  %6236 = vrot.lane.b32.xlu0 %v23170_v59, %s18861_s29  ;;  %vm26327_vm8 = vmmov %vm26318_vm11  ;;  %v17632_v0 = vcombine.high %v18737_v29, %v23332_v11 }
 0x3d8   : > { %v23345_v30 = vsel %vm26314_vm13, %v23190_v6, %v6124_v55  ;;  %v23347_v23 = vpop.permute.xlu1 %6390  ;;  %7597 = vmatpush1.bf16.msra.mxu1 %v17661_v12  ;;  %vm26330_vm13 = vmmov %vm26282_vm0  ;;  %v17631_v36 = vcombine.low %v18737_v29, %v23332_v11  ;;  %v26335_v11 = vld [vmem:[#allocation60_spill] sm:$0xff] }
 0x3d9   : > { %v6419_v49 = vrot.slane %v23347_v23, 4  ;;  %5165 = vst [vmem:[#allocation2 + $0x64] sm:$0xff] %v23341_v18  ;;  %v6273_v6 = vsel %vm26282_vm0, %v6252_v38, %v6253_v48  ;;  %17725 = vmatprep.subr.msk.bf16.mxu1 %vm26315_vm4, %v17694_v41  ;;  %vm26332_vm4 = vcmask 1039360   ;;  %v5877_v12 = vmul.bf16 %v23341_v18, %v26335_v11 }
 0x3da   : > { %v23369_v59 = vsel %vm26317_vm3, %v23209_v16, %v6273_v6  ;;  %v23371_v53 = vpop.permute.xlu0 %5232  ;;  %vm26334_vm3 = vmmov %vm26282_vm0 }
 0x3db   : > { %v6439_v33 = vsel %vm26316_vm6, %v6418_v51, %v6419_v49  ;;  %v5260_v38 = vrot.slane %v23371_v53, 4  ;;  %vm26333_vm6 = vmmov %vm26322_vm9 }
 0x3dc   : > { %v23375_v4 = vsel %vm26318_vm11, %v23216_v15, %v6439_v33  ;;  %v23377_v1 = vpop.permute.xlu1 %5381  ;;  %7599 = vmatpush1.bf16.msra.mxu1 %v7390_v2  ;;  %vm26336_vm11 = vmmov %vm26282_vm0  ;;  %v17663_v33 = vcombine.low %v23345_v30, %v23369_v59 }
 0x3dd   : > { %v5409_v51 = vrot.slane %v23377_v1, 4  ;;  %v5281_v16 = vsel %vm26320_vm12, %v5259_v14, %v5260_v38  ;;  %7631 = vmatprep.subr.bf16.mxu1 %v17568_v42  ;;  %vm26338_vm12 = vmmov %vm26327_vm8 }
 0x3de   : > { %v23396_v52 = vsel %vm26322_vm9, %v23235_v43, %v5281_v16  ;;  %v23398_v17 = vpop.permute.xlu0 %5547  ;;  %v17695_v16 = vcombine.low %v23375_v4, %v23375_v4  ;;  %vm26340_vm9 = vmmov %vm26282_vm0 }
 0x3df   : > { %v5430_v15 = vsel %vm26321_vm7, %v5408_v20, %v5409_v51  ;;  %5324 = vst [vmem:[#allocation3 + $0x28] sm:$0xff] %v23396_v52  ;;  %v5575_v32 = vrot.slane %v23398_v17, 4  ;;  %17726 = vmatmul.mubr.msk.bf16.vlgmr.msra.gmra.mrb[76].mxu1 %vm7366_vm15, %v22973_v9  ;;  %vm26339_vm7 = vmmov %vm26282_vm0 }
 0x3e0   : > { %v23404_v58 = vsel %vm26323_vm2, %v23242_v45, %v5430_v15  ;;  %v23407_v14 = vpop.permute.xlu1 %5713  ;;  %v5347_v20 = vld [vmem:[#allocation2 + $0x60] sm:$0xff]  ;;  %7632 = vmatpush1.bf16.msra.mxu1 %v17567_v25  ;;  %7663 = vmatprep.mubr.bf16.mxu1 %v25720_v44  ;;  %vm26341_vm2 = vmmov %vm26282_vm0 }
 0x3e1   : > { %5473 = vst [vmem:[#allocation3 + $0xa8] sm:$0xff] %v23404_v58  ;;  %v5741_v43 = vrot.slane %v23407_v14, 4  ;;  %v5828_v45 = vld [vmem:[#allocation2 + $0x64] sm:$0xff]  ;;  %v5596_v22 = vsel %vm26324_vm1, %v5574_v46, %v5575_v32  ;;  %5393 = vrot.lane.b32.xlu1 %v5347_v20, %s18861_s29  ;;  %v5198_v7 = vmul.bf16 %v5347_v20, %v26325_v47  ;;  %v17599_v46 = vcombine.low %v23297_v31, %v23306_v50  ;;  %vm26342_vm1 = vmmov %vm26333_vm6 }
 0x3e2   : > { %5844 = vst [vmem:[#allocation3 + $0x260] sm:$0xff] %v5828_v45  ;;  %v23431_v39 = vsel %vm26327_vm8, %v23266_v63, %v5596_v22  ;;  %v23433_v27 = vpop.permute.xlu0 %5911  ;;  %7633 = vmatprep.subr.bf16.mxu1 %v17600_v34  ;;  %v26329_v63 = vld [vmem:[#allocation57_spill] sm:$0xff]  ;;  %v26331_v50 = vld [vmem:[#allocation58_spill] sm:$0xff]  ;;  %vm26344_vm8 = vmmov %vm26282_vm0 }
 0x3e3   : > { %v5762_v28 = vsel %vm26326_vm10, %v5740_v54, %v5741_v43  ;;  %5639 = vst [vmem:[#allocation3 + $0x128] sm:$0xff] %v23431_v39  ;;  %v5939_v54 = vrot.slane %v23433_v27, 4  ;;  %5244 = vrot.lane.b32.xlu0 %v5198_v7, %s18857_s16  ;;  %v5679_v5 = vmul.bf16 %v5347_v20, %v26329_v63  ;;  %v5513_v35 = vmul.bf16 %v5347_v20, %v26331_v50  ;;  %vm26343_vm10 = vmmov %vm26337_vm5 }
 0x3e4   : > { %v23439_v8 = vsel %vm26328_vm14, %v23274_v24, %v5762_v28  ;;  %v23442_v13 = vpop.permute.xlu1 %6077  ;;  %7634 = vmatpush1.bf16.msra.mxu1 %v17599_v46  ;;  %vm26345_vm14 = vmmov %vm26282_vm0 }
 0x3e5   : > { %5805 = vst [vmem:[#allocation3 + $0x1a8] sm:$0xff] %v23439_v8  ;;  %v6105_v31 = vrot.slane %v23442_v13, 4  ;;  %v5960_v24 = vsel %vm26330_vm13, %v5938_v61, %v5939_v54  ;;  %5725 = vrot.lane.b32.xlu1 %v5679_v5, %s18860_s23  ;;  %7635 = vmatprep.subr.bf16.mxu1 %v17632_v0  ;;  %vm26346_vm13 = vmmov %vm26282_vm0 }
 0x3e6   : > { %v23464_v60 = vsel %vm26332_vm4, %v23301_v10, %v5960_v24  ;;  %v23466_v56 = vpop.permute.xlu0 %6226  ;;  %v17664_v10 = vcombine.high %v23345_v30, %v23369_v59  ;;  %vm26348_vm4 = vcmask 7168  }
 0x3e7   : > { %v6126_v19 = vsel %vm26282_vm0, %v6104_v37, %v6105_v31  ;;  %v6254_v26 = vrot.slane %v23466_v56, 4  ;;  %5559 = vrot.lane.b32.xlu0 %v5513_v35, %s18858_s18  ;;  %v6043_v37 = vmul.bf16 %v23341_v18, %v26325_v47  ;;  %vm26347_vm0 = vmmov %vm26338_vm12  ;;  %v17569_v47 = vcombine.low %v23396_v52, %v23404_v58 }
 0x3e8   : > { %v23471_v61 = vsel %vm26333_vm6, %v23310_v57, %v6126_v19  ;;  %v23473_v40 = vpop.permute.xlu1 %6392  ;;  %7636 = vmatpush1.bf16.msra.mxu1 %v17631_v36  ;;  %vm26349_vm6 = vmmov %vm26341_vm2 }
 0x3e9   : > { %v6420_v55 = vrot.slane %v23473_v40, 4  ;;  %v6275_v57 = vsel %vm26334_vm3, %v6253_v48, %v6254_v26  ;;  %6089 = vrot.lane.b32.xlu1 %v6043_v37, %s18857_s16  ;;  %7637 = vmatprep.subr.bf16.mxu1 %v17664_v10  ;;  %v6358_v48 = vmul.bf16 %v23341_v18, %v26331_v50  ;;  %vm26350_vm3 = vmmov %vm26341_vm2 }
 0x3ea   : > { %v23497_v62 = vsel %vm26337_vm5, %v23335_v21, %v6275_v57  ;;  %v23499_v6 = vpop.permute.xlu0 %5234  ;;  %v17696_v21 = vcombine.high %v23375_v4, %v23375_v4  ;;  %vm26352_vm5 = vmmov %vm26342_vm1 }
 0x3eb   : > { %v6441_v41 = vsel %vm26336_vm11, %v6419_v49, %v6420_v55  ;;  %v5261_v49 = vrot.slane %v23499_v6, 4  ;;  %5923 = vrot.lane.b32.xlu0 %v5877_v12, %s18859_s22  ;;  %vm26351_vm11 = vcmask 1039360  }
 0x3ec   : > { %v23507_v2 = vsel %vm26338_vm12, %v23347_v23, %v6441_v41  ;;  %v23509_v42 = vpop.permute.xlu1 %5383  ;;  %7638 = vmatpush1.bf16.msra.mxu1 %v17663_v33  ;;  %vm26353_vm12 = vmmov %vm26341_vm2 }
 0x3ed   : > { %v5410_v15 = vrot.slane %v23509_v42, 4  ;;  %v5283_v30 = vsel %vm26339_vm7, %v5260_v38, %v5261_v49  ;;  %6404 = vrot.lane.b32.xlu1 %v6358_v48, %s18858_s18  ;;  %17727 = vmatprep.subr.msk.bf16.mxu1 %vm26340_vm9, %v17696_v21  ;;  %vm26354_vm7 = vmmov %vm26341_vm2 }
 0x3ee   : > { %v23532_v59 = vsel %vm26342_vm1, %v23371_v53, %v5283_v30  ;;  %v23534_v4 = vpop.permute.xlu0 %5549  ;;  %v17570_v53 = vcombine.high %v23396_v52, %v23404_v58  ;;  %vm26355_vm9 = vmmov %vm26343_vm10  ;;  %v17665_v30 = vcombine.low %v23471_v61, %v23497_v62 }
 0x3ef   : > { %v5432_v23 = vsel %vm26341_vm2, %v5409_v51, %v5410_v15  ;;  %5325 = vst [vmem:[#allocation3 + $0x30] sm:$0xff] %v23532_v59  ;;  %v5576_v20 = vrot.slane %v23534_v4, 4  ;;  %6238 = vrot.lane.b32.xlu0 %v23341_v18, %s18861_s29  ;;  %v7396_v51 = vsel %vm26344_vm8, %v17695_v16, 0  ;;  %vm26356_vm2 = vmmov %vm26347_vm0 }
 0x3f0   : > { %v23538_v25 = vsel %vm26343_vm10, %v23377_v1, %v5432_v23  ;;  %v23541_v38 = vpop.permute.xlu1 %5715  ;;  %7640 = vmatpush1.bf16.msra.mxu1 %v7396_v51  ;;  %vm26357_vm1 = vmmov %vm26350_vm3 }
 0x3f1   : > { %5474 = vst [vmem:[#allocation3 + $0xb0] sm:$0xff] %v23538_v25  ;;  %v5742_v34 = vrot.slane %v23541_v38, 4  ;;  %v5598_v1 = vsel %vm26345_vm14, %v5575_v32, %v5576_v20  ;;  %7672 = vmatprep.subr.bf16.mxu1 %v17570_v53  ;;  %vm26358_vm10 = vmmov %vm26357_vm1 }
 0x3f2   : > { %v23563_v45 = vsel %vm26347_vm0, %v23398_v17, %v5598_v1  ;;  %v23565_v22 = vpop.permute.xlu0 %5913  ;;  %v17602_v17 = vcombine.high %v23431_v39, %v23439_v8  ;;  %vm26359_vm8 = vmmov %vm26352_vm5 }
 0x3f3   : > { %v5764_v18 = vsel %vm26346_vm13, %v5741_v43, %v5742_v34  ;;  %5640 = vst [vmem:[#allocation3 + $0x130] sm:$0xff] %v23563_v45  ;;  %v5940_v28 = vrot.slane %v23565_v22, 4  ;;  %17728 = vmatmul.mubr.msk.bf16.vlgmr.msra.gmra.mrb[80].mxu1 %vm7366_vm15, %v22973_v9  ;;  %vm26360_vm14 = vmmov %vm26355_vm9 }
 0x3f4   : > { %v23571_v7 = vsel %vm26348_vm4, %v23407_v14, %v5764_v18  ;;  %v23574_v32 = vpop.permute.xlu1 %6079  ;;  %7673 = vmatpush1.bf16.msra.mxu1 %v17569_v47  ;;  %7704 = vmatprep.mubr.bf16.mxu1 %v25720_v44  ;;  %vm26361_vm13 = vmmov %vm26357_vm1 }
 0x3f5   : > { %5806 = vst [vmem:[#allocation3 + $0x1b0] sm:$0xff] %v23571_v7  ;;  %v6106_v52 = vrot.slane %v23574_v32, 4  ;;  %v5962_v58 = vsel %vm26349_vm6, %v5939_v54, %v5940_v28  ;;  %v4904_v14 = vpop.f32.mrb[52].mxu1  ;;  %7674 = vmatprep.subr.bf16.mxu1 %v17602_v17  ;;  %v17601_v54 = vcombine.low %v23431_v39, %v23439_v8  ;;  %vm26362_vm0 = vmmov %vm26357_vm1  ;;  %v17572_v17 = vcombine.high %v23532_v59, %v23538_v25 }
 0x3f6   : > { %v23596_v46 = vsel %vm26351_vm11, %v23433_v27, %v5962_v58  ;;  %v4905_v63 = vadd.f32 %v4904_v14, %v22331_v3  ;;  %v4906_v5 = vpop.f32.mrb[53].mxu1  ;;  %v23599_v29 = vpop.permute.xlu0 %6228  ;;  %v18738_v27 = vld [vmem:[#allocation3 + $0x228] sm:$0xff]  ;;  %vm26363_vm4 = vmmov %vm26362_vm0  ;;  %v26368_v14 = vld [vmem:[#allocation62_spill] sm:$0xff] }
 0x3f7   : > { %v6128_v43 = vsel %vm26350_vm3, %v6105_v31, %v6106_v52  ;;  %v4907_v24 = vadd.f32 %v4906_v5, %v22331_v3  ;;  %v6255_v31 = vrot.slane %v23599_v29, 4  ;;  %v17634_v35 = vcombine.high %v18738_v27, %v23464_v60  ;;  %v4908_v19 = vpop.f32.mrb[54].mxu1  ;;  %vm26364_vm6 = vmmov %vm26356_vm2 }
 0x3f8   : > { %v23605_v0 = vsel %vm26352_vm5, %v23442_v13, %v6128_v43  ;;  %v23608_v50 = vpop.permute.xlu1 %6394  ;;  %v5019_v36 = vmax.f32 %v4905_v63, 0.0  ;;  %7675 = vmatpush1.bf16.msra.mxu1 %v17601_v54  ;;  %v4909_v10 = vpop.f32.mrb[55].mxu1  ;;  %v17633_v12 = vcombine.low %v18738_v27, %v23464_v60  ;;  %vm26365_vm3 = vcmask 7168   ;;  %vm26366_vm11 = vmmov %vm26362_vm0 }
 0x3f9   : > { %v6421_v37 = vrot.slane %v23608_v50, 4  ;;  %v5020_v39 = vmax.f32 %v4907_v24, 0.0  ;;  %v6277_v8 = vsel %vm26353_vm12, %v6254_v26, %v6255_v31  ;;  %7676 = vmatprep.subr.bf16.mxu1 %v17634_v35  ;;  %vm26367_vm5 = vmmov %vm26362_vm0 }
 0x3fa   : > { %v23625_v57 = vsel %vm26355_vm9, %v23466_v56, %v6277_v8  ;;  %v23627_v11 = vpop.permute.xlu0 %5236  ;;  %vm26369_vm12 = vmmov %vm26362_vm0 }
 0x3fb   : > { %v6443_v13 = vsel %vm26354_vm7, %v6420_v55, %v6421_v37  ;;  %v23630_v41 = vpack.c.bf16 %v5020_v39, %v5019_v36  ;;  %v5262_v33 = vrot.slane %v23627_v11, 4  ;;  %v17666_v55 = vcombine.high %v23471_v61, %v23497_v62  ;;  %vm26371_vm9 = vmmov %vm26359_vm8 }
 0x3fc   : > { %v23634_v26 = vsel %vm26356_vm2, %v23473_v40, %v6443_v13  ;;  %v23636_v48 = vpop.permute.xlu1 %5385  ;;  %7677 = vmatpush1.bf16.msra.mxu1 %v17633_v12  ;;  %vm26370_vm7 = vcmask 1039360   ;;  %vm26373_vm2 = vmmov %vm26362_vm0 }
 0x3fd   : > { %v5411_v56 = vrot.slane %v23636_v48, 4  ;;  %5166 = vst [vmem:[#allocation2 + $0x6c] sm:$0xff] %v23630_v41  ;;  %v5285_v60 = vsel %vm26357_vm1, %v5261_v49, %v5262_v33  ;;  %7678 = vmatprep.subr.bf16.mxu1 %v17666_v55  ;;  %vm26375_vm1 = vmmov %vm26362_vm0 }
 0x3fe   : > { %v23655_v21 = vsel %vm26359_vm8, %v23499_v6, %v5285_v60  ;;  %v23657_v16 = vpop.permute.xlu0 %5551  ;;  %v17697_v6 = vcombine.low %v23507_v2, %v23507_v2  ;;  %vm26377_vm8 = vmmov %vm26364_vm6 }
 0x3ff   : > { %v5434_v40 = vsel %vm26358_vm10, %v5410_v15, %v5411_v56  ;;  %5326 = vst [vmem:[#allocation3 + $0x38] sm:$0xff] %v23655_v21  ;;  %v5577_v51 = vrot.slane %v23657_v16, 4  ;;  %v17698_v15 = vcombine.high %v23507_v2, %v23507_v2  ;;  %vm26376_vm10 = vmmov %vm26360_vm14 }
 0x400   : > { %v23663_v23 = vsel %vm26360_vm14, %v23509_v42, %v5434_v40  ;;  %v23666_v49 = vpop.permute.xlu1 %5717  ;;  %7679 = vmatpush1.bf16.msra.mxu1 %v17665_v30  ;;  %v7402_v47 = vsel %vm26366_vm11, %v17697_v6, 0  ;;  %vm26378_vm14 = vmmov %vm26362_vm0 }
 0x401   : > { %5475 = vst [vmem:[#allocation3 + $0xb8] sm:$0xff] %v23663_v23  ;;  %v5743_v61 = vrot.slane %v23666_v49, 4  ;;  %v5600_v62 = vsel %vm26361_vm13, %v5576_v20, %v5577_v51  ;;  %17729 = vmatprep.subr.msk.bf16.mxu1 %vm26362_vm0, %v17698_v15  ;;  %vm26380_vm13 = vmmov %vm26362_vm0 }
 0x402   : > { %v23688_v2 = vsel %vm26364_vm6, %v23534_v4, %v5600_v62  ;;  %v23690_v53 = vpop.permute.xlu0 %5915  ;;  %vm26381_vm0 = vmmov %vm26371_vm9 }
 0x403   : > { %v5766_v42 = vsel %vm26363_vm4, %v5742_v34, %v5743_v61  ;;  %5641 = vst [vmem:[#allocation3 + $0x138] sm:$0xff] %v23688_v2  ;;  %v5941_v18 = vrot.slane %v23690_v53, 4  ;;  %vm26382_vm4 = vmmov %vm26376_vm10 }
 0x404   : > { %v23694_v1 = vsel %vm26365_vm3, %v23541_v38, %v5766_v42  ;;  %v23697_v20 = vpop.permute.xlu1 %6081  ;;  %v5348_v4 = vld [vmem:[#allocation2 + $0x68] sm:$0xff]  ;;  %7681 = vmatpush1.bf16.msra.mxu1 %v7402_v47  ;;  %vm26383_vm6 = vmmov %vm26375_vm1 }
 0x405   : > { %5807 = vst [vmem:[#allocation3 + $0x1b8] sm:$0xff] %v23694_v1  ;;  %v6107_v34 = vrot.slane %v23697_v20, 4  ;;  %v5829_v58 = vld [vmem:[#allocation2 + $0x6c] sm:$0xff]  ;;  %v5964_v38 = vsel %vm26367_vm5, %v5940_v28, %v5941_v18  ;;  %5395 = vrot.lane.b32.xlu1 %v5348_v4, %s18861_s29  ;;  %v5199_v43 = vmul.bf16 %v5348_v4, %v26368_v14  ;;  %v17571_v28 = vcombine.low %v23532_v59, %v23538_v25  ;;  %vm26384_vm3 = vmmov %vm26375_vm1 }
 0x406   : > { %5845 = vst [vmem:[#allocation3 + $0x268] sm:$0xff] %v5829_v58  ;;  %v23719_v5 = vsel %vm26370_vm7, %v23565_v22, %v5964_v38  ;;  %v23721_v54 = vpop.permute.xlu0 %6230  ;;  %7713 = vmatprep.subr.bf16.mxu1 %v17572_v17  ;;  %v17604_v22 = vcombine.high %v23563_v45, %v23571_v7  ;;  %vm26385_vm11 = vmmov %vm26377_vm8  ;;  %v17667_v58 = vcombine.low %v23605_v0, %v23625_v57  ;;  %vm26386_vm5 = vcmask 7168  }
 0x407   : > { %v6130_v63 = vsel %vm26369_vm12, %v6106_v52, %v6107_v34  ;;  %v6256_v35 = vrot.slane %v23721_v54, 4  ;;  %5246 = vrot.lane.b32.xlu0 %v5199_v43, %s18857_s16  ;;  %v26372_v52 = vld [vmem:[#allocation64_spill] sm:$0xff]  ;;  %17730 = vmatmul.mubr.msk.bf16.vlgmr.msra.gmra.mrb[84].mxu1 %vm7366_vm15, %v22973_v9  ;;  %vm26387_vm12 = vmmov %vm26375_vm1 }
 0x408   : > { %v23727_v24 = vsel %vm26371_vm9, %v23574_v32, %v6130_v63  ;;  %v23729_v27 = vpop.permute.xlu1 %6396  ;;  %v5680_v19 = vmul.bf16 %v5348_v4, %v26372_v52  ;;  %7714 = vmatpush1.bf16.msra.mxu1 %v17571_v28  ;;  %7745 = vmatprep.mubr.bf16.mxu1 %v25720_v44  ;;  %v26374_v32 = vld [vmem:[#allocation61_spill] sm:$0xff]  ;;  %vm26388_vm7 = vmmov %vm26375_vm1  ;;  %v17574_v52 = vcombine.high %v23655_v21, %v23663_v23 }
 0x409   : > { %v6422_v59 = vrot.slane %v23729_v27, 4  ;;  %v6279_v25 = vsel %vm26373_vm2, %v6255_v31, %v6256_v35  ;;  %v5514_v36 = vmul.bf16 %v5348_v4, %v26374_v32  ;;  %7715 = vmatprep.subr.bf16.mxu1 %v17604_v22  ;;  %v17603_v31 = vcombine.low %v23563_v45, %v23571_v7  ;;  %v26379_v7 = vld [vmem:[#allocation63_spill] sm:$0xff]  ;;  %vm26389_vm9 = vmmov %vm26375_vm1 }
 0x40a   : > { %5727 = vrot.lane.b32.xlu1 %v5680_v19, %s18860_s23  ;;  %v23754_v10 = vsel %vm26376_vm10, %v23599_v29, %v6279_v25  ;;  %v23756_v39 = vpop.permute.xlu0 %5238  ;;  %v18739_v29 = vld [vmem:[#allocation3 + $0x230] sm:$0xff]  ;;  %vm26390_vm2 = vcmask 1039360   ;;  %vm26392_vm10 = vmmov %vm26384_vm3  ;;  %v17573_v25 = vcombine.low %v23655_v21, %v23663_v23 }
 0x40b   : > { %v6445_v9 = vsel %vm26375_vm1, %v6421_v37, %v6422_v59  ;;  %v5263_v12 = vrot.slane %v23756_v39, 4  ;;  %5561 = vrot.lane.b32.xlu0 %v5514_v36, %s18858_s18  ;;  %v6044_v37 = vmul.bf16 %v23630_v41, %v26368_v14  ;;  %v17636_v55 = vcombine.high %v18739_v29, %v23596_v46  ;;  %vm26391_vm1 = vmmov %vm26381_vm0 }
 0x40c   : > { %v23762_v8 = vsel %vm26377_vm8, %v23608_v50, %v6445_v9  ;;  %v23764_v13 = vpop.permute.xlu1 %5387  ;;  %7716 = vmatpush1.bf16.msra.mxu1 %v17603_v31  ;;  %v5878_v50 = vmul.bf16 %v23630_v41, %v26379_v7  ;;  %vm26393_vm8 = vmmov %vm26384_vm3 }
 0x40d   : > { %v5412_v60 = vrot.slane %v23764_v13, 4  ;;  %v5287_v45 = vsel %vm26378_vm14, %v5262_v33, %v5263_v12  ;;  %7717 = vmatprep.subr.bf16.mxu1 %v17636_v55  ;;  %v17635_v33 = vcombine.low %v18739_v29, %v23596_v46  ;;  %vm26394_vm14 = vmmov %vm26384_vm3 }
 0x40e   : > { %6091 = vrot.lane.b32.xlu1 %v6044_v37, %s18857_s16  ;;  %v23787_v30 = vsel %vm26381_vm0, %v23627_v11, %v5287_v45  ;;  %v23789_v15 = vpop.permute.xlu0 %5553  ;;  %v6359_v11 = vmul.bf16 %v23630_v41, %v26374_v32  ;;  %vm26396_vm0 = vmmov %vm26385_vm11  ;;  %v17605_v37 = vcombine.low %v23688_v2, %v23694_v1 }
 0x40f   : > { %v5436_v40 = vsel %vm26380_vm13, %v5411_v56, %v5412_v60  ;;  %5327 = vst [vmem:[#allocation3 + $0x40] sm:$0xff] %v23787_v30  ;;  %v5578_v42 = vrot.slane %v23789_v15, 4  ;;  %5925 = vrot.lane.b32.xlu0 %v5878_v50, %s18859_s22  ;;  %v17668_v56 = vcombine.high %v23605_v0, %v23625_v57  ;;  %vm26395_vm13 = vmmov %vm26382_vm4 }
 0x410   : > { %v23794_v6 = vsel %vm26382_vm4, %v23636_v48, %v5436_v40  ;;  %v23797_v62 = vpop.permute.xlu1 %5719  ;;  %7718 = vmatpush1.bf16.msra.mxu1 %v17635_v33  ;;  %vm26397_vm4 = vmmov %vm26384_vm3 }
 0x411   : > { %5476 = vst [vmem:[#allocation3 + $0xc0] sm:$0xff] %v23794_v6  ;;  %v5744_v46 = vrot.slane %v23797_v62, 4  ;;  %v5602_v48 = vsel %vm26383_vm6, %v5577_v51, %v5578_v42  ;;  %7719 = vmatprep.subr.bf16.mxu1 %v17668_v56  ;;  %vm26398_vm6 = vmmov %vm26384_vm3 }
 0x412   : > { %6406 = vrot.lane.b32.xlu1 %v6359_v11, %s18858_s18  ;;  %v23820_v4 = vsel %vm26385_vm11, %v23657_v16, %v5602_v48  ;;  %v23822_v17 = vpop.permute.xlu0 %5917  ;;  %v17700_v16 = vcombine.high %v23634_v26, %v23634_v26  ;;  %vm26400_vm11 = vmmov %vm26395_vm13  ;;  %v17670_v11 = vcombine.high %v23727_v24, %v23754_v10  ;;  %v17669_v48 = vcombine.low %v23727_v24, %v23754_v10 }
 0x413   : > { %v5768_v47 = vsel %vm26384_vm3, %v5743_v61, %v5744_v46  ;;  %5642 = vst [vmem:[#allocation3 + $0x140] sm:$0xff] %v23820_v4  ;;  %v5942_v14 = vrot.slane %v23822_v17, 4  ;;  %6240 = vrot.lane.b32.xlu0 %v23630_v41, %s18861_s29  ;;  %v17699_v61 = vcombine.low %v23634_v26, %v23634_v26  ;;  %vm26399_vm3 = vmmov %vm26391_vm1 }
 0x414   : > { %v23828_v51 = vsel %vm26386_vm5, %v23666_v49, %v5768_v47  ;;  %v23831_v38 = vpop.permute.xlu1 %6083  ;;  %7720 = vmatpush1.bf16.msra.mxu1 %v17667_v58  ;;  %vm26401_vm5 = vmmov %vm26397_vm4 }
 0x415   : > { %5808 = vst [vmem:[#allocation3 + $0x1c0] sm:$0xff] %v23828_v51  ;;  %v6108_v0 = vrot.slane %v23831_v38, 4  ;;  %v5966_v57 = vsel %vm26387_vm12, %v5941_v18, %v5942_v14  ;;  %17731 = vmatprep.subr.msk.bf16.mxu1 %vm26388_vm7, %v17700_v16  ;;  %v7408_v28 = vsel %vm26392_vm10, %v17699_v61, 0  ;;  %vm26402_vm12 = vmmov %vm26397_vm4  ;;  %vm26407_vm10 = vcmask 1039360  }
 0x416   : > { %v23853_v26 = vsel %vm26390_vm2, %v23690_v53, %v5966_v57  ;;  %vm26403_vm7 = vmmov %vm26396_vm0  ;;  %v17702_v16 = vcombine.high %v23762_v8, %v23762_v8  ;;  %v17576_v57 = vcombine.high %v23787_v30, %v23794_v6 }
 0x417   : > { %v6132_v41 = vsel %vm26389_vm9, %v6107_v34, %v6108_v0  ;;  %v23855_v49 = vpop.permute.xlu0 %6232  ;;  %vm26404_vm9 = vcmask 7168   ;;  %vm26405_vm2 = vmmov %vm26397_vm4 }
 0x418   : > { %v23859_v43 = vsel %vm26391_vm1, %v23697_v20, %v6132_v41  ;;  %v23861_v63 = vpop.permute.xlu1 %6398  ;;  %v6257_v18 = vrot.slane %v23855_v49, 4  ;;  %7722 = vmatpush1.bf16.msra.mxu1 %v7408_v28  ;;  %vm26406_vm1 = vmmov %vm26405_vm2  ;;  %v17575_v41 = vcombine.low %v23787_v30, %v23794_v6  ;;  %v17607_v30 = vcombine.low %v23820_v4, %v23828_v51 }
 0x419   : > { %v6423_v34 = vrot.slane %v23861_v63, 4  ;;  %7754 = vmatprep.subr.bf16.mxu1 %v17574_v52 }
 0x41a   : > { %v6281_v53 = vsel %vm26393_vm8, %v6256_v35, %v6257_v18  ;;  %vm26408_vm8 = vmmov %vm26399_vm3 }
 0x41b   : > { %v6447_v20 = vsel %vm26394_vm14, %v6422_v59, %v6423_v34  ;;  %v23878_v19 = vsel %vm26395_vm13, %v23721_v54, %v6281_v53  ;;  %v23880_v22 = vpop.permute.xlu0 %5240  ;;  %v23894_v59 = vld [vmem:[%s25232_s3] sm:$0xf]  ;;  %v17606_v54 = vcombine.high %v23688_v2, %v23694_v1  ;;  %vm26409_vm14 = vmmov %vm26406_vm1 }
 0x41c   : > { %v23886_v32 = vsel %vm26396_vm0, %v23729_v27, %v6447_v20  ;;  %v23888_v36 = vpop.permute.xlu1 %5389  ;;  %v5264_v35 = vrot.slane %v23880_v22, 4  ;;  %17732 = vmatmul.mubr.msk.bf16.vlgmr.msra.gmra.mrb[88].mxu1 %vm7366_vm15, %v23894_v59  ;;  %vm26410_vm13 = vmmov %vm26406_vm1 }
 0x41d   : > { %v5413_v21 = vrot.slane %v23888_v36, 4  ;;  %7755 = vmatpush1.bf16.msra.mxu1 %v17573_v25  ;;  %7786 = vmatprep.mubr.bf16.mxu1 %v25720_v44  ;;  %vm26411_vm0 = vmmov %vm26406_vm1  ;;  %v18742_v25 = vld [vmem:[#allocation3 + $0x240] sm:$0xff] }
 0x41e   : > { %v5289_v23 = vsel %vm26397_vm4, %v5263_v12, %v5264_v35  ;;  %7756 = vmatprep.subr.bf16.mxu1 %v17606_v54  ;;  %vm26412_vm4 = vmmov %vm26400_vm11  ;;  %v17640_v54 = vcombine.high %v18742_v25, %v23853_v26 }
 0x41f   : > { %v5438_v27 = vsel %vm26398_vm6, %v5412_v60, %v5413_v21  ;;  %v23914_v9 = vsel %vm26399_vm3, %v23756_v39, %v5289_v23  ;;  %v23916_v31 = vpop.permute.xlu0 %5555  ;;  %v18741_v60 = vld [vmem:[#allocation3 + $0x238] sm:$0xff]  ;;  %vm26413_vm6 = vmmov %vm26403_vm7 }
 0x420   : > { %v23922_v29 = vsel %vm26400_vm11, %v23764_v13, %v5438_v27  ;;  %5328 = vst [vmem:[#allocation3 + $0x48] sm:$0xff] %v23914_v9  ;;  %v23925_v12 = vpop.permute.xlu1 %5721  ;;  %v5579_v55 = vrot.slane %v23916_v31, 4  ;;  %v17638_v45 = vcombine.high %v18741_v60, %v23719_v5  ;;  %v17637_v50 = vcombine.low %v18741_v60, %v23719_v5  ;;  %vm26414_vm3 = vmmov %vm26411_vm0 }
 0x421   : > { %5477 = vst [vmem:[#allocation3 + $0xc8] sm:$0xff] %v23922_v29  ;;  %v5745_v39 = vrot.slane %v23925_v12, 4  ;;  %7757 = vmatpush1.bf16.msra.mxu1 %v17605_v37  ;;  %v17639_v27 = vcombine.low %v18742_v25, %v23853_v26  ;;  %v17672_v37 = vcombine.high %v23859_v43, %v23878_v19  ;;  %v17704_v60 = vcombine.high %v23886_v32, %v23886_v32  ;;  %vm26415_vm11 = vmmov %vm26411_vm0 }
 0x422   : > { %v5604_v2 = vsel %vm26401_vm5, %v5578_v42, %v5579_v55  ;;  %7758 = vmatprep.subr.bf16.mxu1 %v17638_v45  ;;  %vm26416_vm5 = vmmov %vm26411_vm0 }
 0x423   : > { %v5770_v1 = vsel %vm26402_vm12, %v5744_v46, %v5745_v39  ;;  %v23943_v13 = vsel %vm26403_vm7, %v23789_v15, %v5604_v2  ;;  %v23945_v7 = vpop.permute.xlu0 %5919  ;;  %vm26417_vm12 = vmmov %vm26411_vm0 }
 0x424   : > { %v23950_v40 = vsel %vm26404_vm9, %v23797_v62, %v5770_v1  ;;  %5643 = vst [vmem:[#allocation3 + $0x148] sm:$0xff] %v23943_v13  ;;  %v23953_v33 = vpop.permute.xlu1 %6085  ;;  %v5943_v42 = vrot.slane %v23945_v7, 4  ;;  %vm26419_vm7 = vmmov %vm26412_vm4 }
 0x425   : > { %5809 = vst [vmem:[#allocation3 + $0x1c8] sm:$0xff] %v23950_v40  ;;  %v6109_v15 = vrot.slane %v23953_v33, 4  ;;  %7759 = vmatpush1.bf16.msra.mxu1 %v17637_v50  ;;  %vm26420_vm9 = vmmov %vm26411_vm0 }
 0x426   : > { %v5968_v5 = vsel %vm26405_vm2, %v5942_v14, %v5943_v42  ;;  %7760 = vmatprep.subr.bf16.mxu1 %v17670_v11  ;;  %vm26422_vm2 = vmmov %vm26408_vm8 }
 0x427   : > { %v6134_v62 = vsel %vm26406_vm1, %v6108_v0, %v6109_v15  ;;  %v23970_v56 = vsel %vm26407_vm10, %v23822_v17, %v5968_v5  ;;  %v23972_v46 = vpop.permute.xlu0 %6234  ;;  %v17701_v17 = vcombine.low %v23762_v8, %v23762_v8  ;;  %vm26423_vm1 = vmmov %vm26411_vm0  ;;  %vm26425_vm10 = vcmask 7168  }
 0x428   : > { %v23978_v47 = vsel %vm26408_vm8, %v23831_v38, %v6134_v62  ;;  %v23980_v58 = vpop.permute.xlu1 %6400  ;;  %v6258_v14 = vrot.slane %v23972_v46, 4  ;;  %v17578_v62 = vcombine.high %v23914_v9, %v23922_v29  ;;  %vm26426_vm8 = vmmov %vm26411_vm0 }
 0x429   : > { %v6424_v61 = vrot.slane %v23980_v58, 4  ;;  %7761 = vmatpush1.bf16.msra.mxu1 %v17669_v48  ;;  %v7414_v0 = vsel %vm26414_vm3, %v17701_v17, 0  ;;  %vm26433_vm3 = vmmov %vm26423_vm1 }
 0x42a   : > { %v6283_v24 = vsel %vm26409_vm14, %v6257_v18, %v6258_v14  ;;  %17733 = vmatprep.subr.msk.bf16.mxu1 %vm26410_vm13, %v17702_v16  ;;  %vm26427_vm14 = vmmov %vm26413_vm6 }
 0x42b   : > { %v6449_v10 = vsel %vm26411_vm0, %v6423_v34, %v6424_v61  ;;  %v23999_v38 = vsel %vm26412_vm4, %v23855_v49, %v6283_v24  ;;  %v17608_v49 = vcombine.high %v23820_v4, %v23828_v51  ;;  %v17671_v4 = vcombine.low %v23859_v43, %v23878_v19  ;;  %v26421_v24 = vld [vmem:[#allocation68_spill] sm:$0xff]  ;;  %vm26428_vm13 = vmmov %vm26411_vm0 }
 0x42c   : > { %v24003_v8 = vsel %vm26413_vm6, %v23861_v63, %v6449_v10  ;;  %v17703_v51 = vcombine.low %v23886_v32, %v23886_v32  ;;  %v26418_v32 = vld [vmem:[#allocation66_spill] sm:$0xff]  ;;  %vm26430_vm0 = vmmov %vm26422_vm2  ;;  %vm26432_vm6 = vcmask 1039360  }
 0x42d   : > { %7763 = vmatpush1.bf16.msra.mxu1 %v7414_v0  ;;  %vm26431_vm4 = vmmov %vm26423_vm1 }
 0x42e   : > { %7795 = vmatprep.subr.bf16.mxu1 %v17576_v57  ;;  %v4945_v18 = vpop.f32.mrb[56].mxu1  ;;  %v7420_v50 = vsel %vm26416_vm5, %v17703_v51, 0  ;;  %v17577_v57 = vcombine.low %v23914_v9, %v23922_v29  ;;  %v17610_v9 = vcombine.high %v23943_v13, %v23950_v40  ;;  %v26429_v51 = vld [vmem:[#allocation67_spill] sm:$0xff]  ;;  %vm26435_vm5 = vmmov %vm26423_vm1 }
 0x42f   : > { %v4946_v63 = vadd.f32 %v4945_v18, %v22331_v3  ;;  %v4947_v28 = vpop.f32.mrb[57].mxu1 }
 0x430   : > { %17734 = vmatmul.mubr.msk.bf16.vlgmr.msra.gmra.mrb[92].mxu1 %vm7366_vm15, %v23894_v59  ;;  %v4948_v52 = vadd.f32 %v4947_v28, %v22331_v3  ;;  %v4949_v34 = vpop.f32.mrb[58].mxu1 }
 0x431   : > { %7796 = vmatpush1.bf16.msra.mxu1 %v17575_v41  ;;  %7827 = vmatprep.mubr.bf16.mxu1 %v25720_v44  ;;  %v5021_v53 = vmax.f32 %v4946_v63, 0.0  ;;  %v4950_v20 = vpop.f32.mrb[59].mxu1 }
 0x432   : > { %7797 = vmatprep.subr.bf16.mxu1 %v17608_v49  ;;  %v5022_v6 = vmax.f32 %v4948_v52, 0.0 }
 0x434   : > { %v24020_v23 = vpack.c.bf16 %v5022_v6, %v5021_v53 }
 0x435   : > { %7798 = vmatpush1.bf16.msra.mxu1 %v17607_v30 }
 0x436   : > { %7799 = vmatprep.subr.bf16.mxu1 %v17640_v54  ;;  %5167 = vst [vmem:[#allocation2 + $0x74] sm:$0xff] %v24020_v23  ;;  %v6045_v20 = vmul.bf16 %v24020_v23, %v26418_v32 }
 0x439   : > { %7800 = vmatpush1.bf16.msra.mxu1 %v17639_v27 }
 0x43a   : > { %7801 = vmatprep.subr.bf16.mxu1 %v17672_v37 }
 0x43b   : > { %v24032_v45 = vpop.permute.xlu1 %5391 }
 0x43c   : > { %v5414_v26 = vrot.slane %v24032_v45, 4 }
 0x43d   : > { %7802 = vmatpush1.bf16.msra.mxu1 %v17671_v4  ;;  %v24036_v2 = vpop.permute.xlu0 %5242  ;;  %v5349_v1 = vld [vmem:[#allocation2 + $0x70] sm:$0xff] }
 0x43e   : > { %17735 = vmatprep.subr.msk.bf16.mxu1 %vm26415_vm11, %v17704_v60  ;;  %v24039_v11 = vld [vmem:[#allocation2 + $0x74] sm:$0xff]  ;;  %v5440_v43 = vsel %vm26417_vm12, %v5413_v21, %v5414_v26  ;;  %v5265_v19 = vrot.slane %v24036_v2, 4  ;;  %5397 = vrot.lane.b32.xlu1 %v5349_v1, %s18861_s29  ;;  %v5200_v5 = vmul.bf16 %v5349_v1, %v26418_v32  ;;  %v5681_v10 = vmul.bf16 %v5349_v1, %v26421_v24  ;;  %vm26434_vm11 = vmmov %vm26427_vm14 }
 0x43f   : > { %v24053_v48 = vsel %vm26419_vm7, %v23888_v36, %v5440_v43  ;;  %v24055_v16 = vpop.permute.xlu1 %5723  ;;  %v5879_v60 = vmul.bf16 %v24020_v23, %v26429_v51  ;;  %vm26436_vm12 = vmmov %vm26419_vm7  ;;  %v17673_v24 = vcombine.low %v23978_v47, %v23999_v38  ;;  %v18744_v51 = vld [vmem:[#allocation3 + $0x250] sm:$0xff] }
 0x440   : > { %5478 = vst [vmem:[#allocation3 + $0xd0] sm:$0xff] %v24053_v48  ;;  %v5291_v21 = vsel %vm26420_vm9, %v5264_v35, %v5265_v19  ;;  %v5746_v17 = vrot.slane %v24055_v16, 4  ;;  %5248 = vrot.lane.b32.xlu0 %v5200_v5, %s18857_s16  ;;  %vm26437_vm7 = vmmov %vm26423_vm1 }
 0x441   : > { %7804 = vmatpush1.bf16.msra.mxu1 %v7420_v50  ;;  %v24068_v36 = vsel %vm26422_vm2, %v23880_v22, %v5291_v21  ;;  %v24070_v0 = vpop.permute.xlu0 %5557  ;;  %v26424_v22 = vld [vmem:[#allocation65_spill] sm:$0xff]  ;;  %vm26439_vm9 = vmmov %vm26423_vm1 }
 0x442   : > { %7836 = vmatprep.subr.bf16.mxu1 %v17578_v62  ;;  %5329 = vst [vmem:[#allocation3 + $0x50] sm:$0xff] %v24068_v36  ;;  %v5772_v35 = vsel %vm26423_vm1, %v5745_v39, %v5746_v17  ;;  %v5580_v41 = vrot.slane %v24070_v0, 4  ;;  %v4986_v18 = vpop.f32.mrb[60].mxu1  ;;  %5729 = vrot.lane.b32.xlu1 %v5681_v10, %s18860_s23  ;;  %v5515_v49 = vmul.bf16 %v5349_v1, %v26424_v22  ;;  %vm26441_vm2 = vmmov %vm26423_vm1 }
 0x443   : > { %v24089_v29 = vsel %vm26425_vm10, %v23925_v12, %v5772_v35  ;;  %v4987_v63 = vadd.f32 %v4986_v18, %v22331_v3  ;;  %v4988_v39 = vpop.f32.mrb[61].mxu1  ;;  %v24092_v28 = vpop.permute.xlu1 %6087  ;;  %v6360_v43 = vmul.bf16 %v24020_v23, %v26424_v22  ;;  %v17705_v10 = vcombine.low %v24003_v8, %v24003_v8  ;;  %v26440_v22 = vld [vmem:[#allocation72_spill] sm:$0xff]  ;;  %vm26442_vm1 = vmmov %vm26436_vm12 }
 0x444   : > { %17736 = vmatmul.mubr.msk.bf16.vlgmr.msra.gmra.mrb[96].mxu1 %vm7366_vm15, %v23894_v59  ;;  %5810 = vst [vmem:[#allocation3 + $0x1d0] sm:$0xff] %v24089_v29  ;;  %v5606_v52 = vsel %vm26426_vm8, %v5579_v55, %v5580_v41  ;;  %v4989_v34 = vadd.f32 %v4988_v39, %v22331_v3  ;;  %v6110_v12 = vrot.slane %v24092_v28, 4  ;;  %v4990_v53 = vpop.f32.mrb[62].mxu1  ;;  %5563 = vrot.lane.b32.xlu0 %v5515_v49, %s18858_s18  ;;  %v18743_v55 = vld [vmem:[#allocation3 + $0x248] sm:$0xff]  ;;  %vm26444_vm10 = vmmov %vm26441_vm2 }
 0x445   : > { %7837 = vmatpush1.bf16.msra.mxu1 %v17577_v57  ;;  %7868 = vmatprep.mubr.bf16.mxu1 %v25720_v44  ;;  %v24108_v30 = vsel %vm26427_vm14, %v23916_v31, %v5606_v52  ;;  %v5023_v6 = vmax.f32 %v4987_v63, 0.0  ;;  %v4991_v25 = vpop.f32.mrb[63].mxu1  ;;  %v24110_v54 = vpop.permute.xlu0 %5921  ;;  %v17609_v3 = vcombine.low %v23943_v13, %v23950_v40  ;;  %v17642_v27 = vcombine.high %v18743_v55, %v23970_v56  ;;  %v26438_v57 = vld [vmem:[#allocation74_spill] sm:$0xff]  ;;  %v26443_v53 = vld [vmem:[#allocation71_spill] sm:$0xff]  ;;  %vm26445_vm8 = vmmov %vm26430_vm0 }
 0x446   : > { %7838 = vmatprep.subr.bf16.mxu1 %v17610_v9  ;;  %5644 = vst [vmem:[#allocation3 + $0x150] sm:$0xff] %v24108_v30  ;;  %v5024_v37 = vmax.f32 %v4989_v34, 0.0  ;;  %v6136_v31 = vsel %vm26428_vm13, %v6109_v15, %v6110_v12  ;;  %v5944_v4 = vrot.slane %v24110_v54, 4  ;;  %6093 = vrot.lane.b32.xlu1 %v6045_v20, %s18857_s16  ;;  %v17641_v5 = vcombine.low %v18743_v55, %v23970_v56  ;;  %vm26446_vm14 = vmmov %vm26441_vm2 }
 0x447   : > { %v24127_v13 = vsel %vm26430_vm0, %v23953_v33, %v6136_v31  ;;  %v7426_v35 = vsel %vm26439_vm9, %v17705_v10, 0  ;;  %v17579_v39 = vcombine.low %v24068_v36, %v24053_v48  ;;  %vm26447_vm13 = vcmask 7168   ;;  %vm26449_vm0 = vmmov %vm26441_vm2 }
 0x448   : > { %v24129_v40 = vpop.permute.xlu1 %6402  ;;  %v24131_v1 = vpack.c.bf16 %v5024_v37, %v5023_v6  ;;  %v5970_v15 = vsel %vm26431_vm4, %v5943_v42, %v5944_v4  ;;  %5927 = vrot.lane.b32.xlu0 %v5879_v60, %s18859_s22  ;;  %v26448_v37 = vld [vmem:[#allocation76_spill] sm:$0xff]  ;;  %vm26450_vm4 = vmmov %vm26434_vm11 }
 0x449   : > { %7839 = vmatpush1.bf16.msra.mxu1 %v17609_v3  ;;  %v6425_v50 = vrot.slane %v24129_v40, 4  ;;  %v24144_v33 = vsel %vm26432_vm6, %v23945_v7, %v5970_v15  ;;  %v24146_v32 = vpop.permute.xlu0 %6236  ;;  %v17674_v7 = vcombine.high %v23978_v47, %v23999_v38  ;;  %v17580_v47 = vcombine.high %v24068_v36, %v24053_v48  ;;  %vm26451_vm6 = vmmov %vm26449_vm0 }
 0x44a   : > { %7840 = vmatprep.subr.bf16.mxu1 %v17642_v27  ;;  %5168 = vst [vmem:[#allocation2 + $0x7c] sm:$0xff] %v24131_v1  ;;  %v6259_v62 = vrot.slane %v24146_v32, 4  ;;  %6408 = vrot.lane.b32.xlu1 %v6360_v43, %s18858_s18  ;;  %v6046_v25 = vmul.bf16 %v24131_v1, %v26438_v57  ;;  %v5880_v31 = vmul.bf16 %v24131_v1, %v26448_v37  ;;  %vm26458_vm9 = vmmov %vm26449_vm0  ;;  %v6196_v37 = vld [vmem:[#allocation2 + $0x84] sm:$0xf] }
 0x44b   : > { %v6451_v42 = vsel %vm26433_vm3, %v6424_v61, %v6425_v50  ;;  %v17644_v60 = vcombine.high %v18744_v51, %v24144_v33  ;;  %v6361_v15 = vmul.bf16 %v24131_v1, %v26443_v53  ;;  %vm26452_vm3 = vmmov %vm26445_vm8 }
 0x44c   : > { %v24161_v21 = vsel %vm26434_vm11, %v23980_v58, %v6451_v42  ;;  %v6285_v56 = vsel %vm26435_vm5, %v6258_v14, %v6259_v62  ;;  %6242 = vrot.lane.b32.xlu0 %v24020_v23, %s18861_s29  ;;  %v17706_v58 = vcombine.high %v24003_v8, %v24003_v8  ;;  %vm26453_vm11 = vmmov %vm26449_vm0  ;;  %vm26454_vm5 = vcmask 1039360  }
 0x44d   : > { %7841 = vmatpush1.bf16.msra.mxu1 %v17641_v5  ;;  %v24172_v61 = vsel %vm26436_vm12, %v23972_v46, %v6285_v56  ;;  %vm26455_vm12 = vmmov %vm26449_vm0 }
 0x44e   : > { %7842 = vmatprep.subr.bf16.mxu1 %v17674_v7  ;;  %v17676_v7 = vcombine.high %v24127_v13, %v24172_v61 }
 0x451   : > { %7843 = vmatpush1.bf16.msra.mxu1 %v17673_v24  ;;  %v5350_v14 = vld [vmem:[#allocation2 + $0x78] sm:$0xff]  ;;  %v5351_v10 = vld [vmem:[#allocation2 + $0x80] sm:$0xf] }
 0x452   : > { %17737 = vmatprep.subr.msk.bf16.mxu1 %vm26437_vm7, %v17706_v58  ;;  %5399 = vrot.lane.b32.xlu1 %v5350_v14, %s18861_s29  ;;  %v5201_v46 = vmul.bf16 %v5350_v14, %v26438_v57  ;;  %v24188_v38 = vld [vmem:[#allocation2 + $0x7c] sm:$0xff]  ;;  %v5682_v49 = vmul.bf16 %v5350_v14, %v26440_v22  ;;  %v5516_v20 = vmul.bf16 %v5350_v14, %v26443_v53  ;;  %vm26456_vm7 = vmmov %vm26450_vm4  ;;  %v5864_v53 = vld [vmem:[#allocation2 + $0x84] sm:$0xf] }
 0x453   : > { %v24182_v23 = vpop.permute.xlu1 %5393  ;;  %v5666_v14 = vld [vmem:[#allocation2 + $0x80] sm:$0xf]  ;;  %v17675_v57 = vcombine.low %v24127_v13, %v24172_v61 }
 0x454   : > { %v5415_v18 = vrot.slane %v24182_v23, 4  ;;  %5250 = vrot.lane.b32.xlu0 %v5201_v46, %s18857_s16  ;;  %v5500_v61 = vld [vmem:[#allocation2 + $0x80] sm:$0xf] }
 0x455   : > { %7845 = vmatpush1.bf16.msra.mxu1 %v7426_v35  ;;  %v24192_v8 = vpop.permute.xlu0 %5244  ;;  %v17708_v35 = vcombine.high %v24161_v21, %v24161_v21 }
 0x456   : > { %7877 = vmatprep.subr.bf16.mxu1 %v17580_v47  ;;  %v5442_v9 = vsel %vm26441_vm2, %v5414_v26, %v5415_v18  ;;  %v5266_v63 = vrot.slane %v24192_v8, 4  ;;  %5731 = vrot.lane.b32.xlu1 %v5682_v49, %s18860_s23  ;;  %v17612_v26 = vcombine.high %v24108_v30, %v24089_v29  ;;  %vm26459_vm2 = vmmov %vm26442_vm1  ;;  %v26460_v47 = vld [vmem:[#allocation70_spill] sm:$0xff] }
 0x457   : > { %v24205_v52 = vsel %vm26442_vm1, %v24032_v45, %v5442_v9  ;;  %v24208_v34 = vpop.permute.xlu1 %5725  ;;  %v5683_v22 = vmul.bf16 %v5666_v14, %v26460_v47  ;;  %vm26461_vm1 = vmmov %vm26449_vm0  ;;  %v6030_v49 = vld [vmem:[#allocation2 + $0x84] sm:$0xf] }
 0x458   : > { %17738 = vmatmul.mubr.msk.bf16.vlgmr.msra.gmra.mrb[100].mxu1 %vm7366_vm15, %v23894_v59  ;;  %5479 = vst [vmem:[#allocation3 + $0xd8] sm:$0xff] %v24205_v52  ;;  %v5293_v45 = vsel %vm26444_vm10, %v5265_v19, %v5266_v63  ;;  %v5747_v48 = vrot.slane %v24208_v34, 4  ;;  %5565 = vrot.lane.b32.xlu0 %v5516_v20, %s18858_s18  ;;  %vm26463_vm10 = vmmov %vm26449_vm0  ;;  %v6345_v20 = vld [vmem:[#allocation2 + $0x84] sm:$0xf] }
 0x459   : > { %7878 = vmatpush1.bf16.msra.mxu1 %v17579_v39  ;;  %7909 = vmatprep.mubr.bf16.mxu1 %v25720_v44  ;;  %v24225_v36 = vsel %vm26445_vm8, %v24036_v2, %v5293_v45  ;;  %v24228_v6 = vpop.permute.xlu0 %5559  ;;  %v17611_v2 = vcombine.low %v24108_v30, %v24089_v29  ;;  %v26464_v45 = vld [vmem:[#allocation75_spill] sm:$0xff]  ;;  %vm26465_vm8 = vmmov %vm26449_vm0 }
 0x45a   : > { %7879 = vmatprep.subr.bf16.mxu1 %v17612_v26  ;;  %5330 = vst [vmem:[#allocation3 + $0x58] sm:$0xff] %v24225_v36  ;;  %v5774_v19 = vsel %vm26446_vm14, %v5746_v17, %v5747_v48  ;;  %v5581_v3 = vrot.slane %v24228_v6, 4  ;;  %6095 = vrot.lane.b32.xlu1 %v6046_v25, %s18857_s16  ;;  %v17581_v26 = vcombine.low %v24225_v36, %v24205_v52  ;;  %vm26466_vm14 = vmmov %vm26449_vm0 }
 0x45b   : > { %v24243_v55 = vsel %vm26447_vm13, %v24055_v16, %v5774_v19  ;;  %v24246_v27 = vpop.permute.xlu1 %6089  ;;  %v5881_v25 = vmul.bf16 %v5864_v53, %v26464_v45  ;;  %vm26467_vm13 = vmmov %vm26459_vm2 }
 0x45c   : > { %5811 = vst [vmem:[#allocation3 + $0x1d8] sm:$0xff] %v24243_v55  ;;  %v5608_v17 = vsel %vm26449_vm0, %v5580_v41, %v5581_v3  ;;  %v6111_v16 = vrot.slane %v24246_v27, 4  ;;  %5929 = vrot.lane.b32.xlu0 %v5880_v31, %s18859_s22 }
 0x45d   : > { %7880 = vmatpush1.bf16.msra.mxu1 %v17611_v2  ;;  %v24260_v29 = vsel %vm26450_vm4, %v24070_v0, %v5608_v17  ;;  %v24263_v30 = vpop.permute.xlu0 %5923  ;;  %v17643_v0 = vcombine.low %v18744_v51, %v24144_v33  ;;  %v5185_v33 = vld [vmem:[#allocation2 + $0x80] sm:$0xf]  ;;  %vm26468_vm4 = vmmov %vm26449_vm0 }
 0x45e   : > { %7881 = vmatprep.subr.bf16.mxu1 %v17644_v60  ;;  %5645 = vst [vmem:[#allocation3 + $0x158] sm:$0xff] %v24260_v29  ;;  %v6138_v41 = vsel %vm26451_vm6, %v6110_v12, %v6111_v16  ;;  %v5945_v43 = vrot.slane %v24263_v30, 4  ;;  %6410 = vrot.lane.b32.xlu1 %v6361_v15, %s18858_s18  ;;  %v17614_v19 = vcombine.high %v24260_v29, %v24243_v55  ;;  %v6640_v51 = vld [vmem:[%s25233_s4] sm:$0xff]  ;;  %vm26469_vm6 = vmmov %vm26452_vm3 }
 0x45f   : > { %v24277_v5 = vsel %vm26452_vm3, %v24092_v28, %v6138_v41  ;;  %v24280_v42 = vpop.permute.xlu1 %6404  ;;  %vm26470_vm3 = vmmov %vm26449_vm0 }
 0x460   : > { %v5972_v12 = vsel %vm26453_vm11, %v5944_v4, %v5945_v43  ;;  %v6426_v56 = vrot.slane %v24280_v42, 4  ;;  %6244 = vrot.lane.b32.xlu0 %v24131_v1, %s18861_s29  ;;  %v26457_v1 = vld [vmem:[#allocation73_spill] sm:$0xff]  ;;  %vm26471_vm11 = vcmask 7168  }
 0x461   : > { %7882 = vmatpush1.bf16.msra.mxu1 %v17643_v0  ;;  %v5973_v28 = vsel %vm26454_vm5, %v24110_v54, %v5972_v12  ;;  %v24294_v24 = vpop.permute.xlu0 %6238  ;;  %v5202_v46 = vmul.bf16 %v5185_v33, %v26457_v1  ;;  %vm26472_vm5 = vmmov %vm26449_vm0 }
 0x462   : > { %7883 = vmatprep.subr.bf16.mxu1 %v17676_v7  ;;  %v6453_v58 = vsel %vm26455_vm12, %v6425_v50, %v6426_v56  ;;  %v6260_v4 = vrot.slane %v24294_v24, 4  ;;  %5401 = vrot.lane.b32.xlu1 %v5351_v10, %s18861_s29  ;;  %v17707_v50 = vcombine.low %v24161_v21, %v24161_v21  ;;  %v26462_v21 = vld [vmem:[#allocation69_spill] sm:$0xff]  ;;  %vm26473_vm12 = vmmov %vm26456_vm7 }
 0x463   : > { %v24306_v54 = vsel %vm26456_vm7, %v24129_v40, %v6453_v58  ;;  %v5517_v9 = vmul.bf16 %v5500_v61, %v26462_v21  ;;  %v6362_v2 = vmul.bf16 %v6345_v20, %v26462_v21  ;;  %vm26474_vm7 = vmmov %vm26449_vm0  ;;  %v18746_v20 = vld [vmem:[#allocation3 + $0x260] sm:$0xff] }
 0x464   : > { %v6287_v13 = vsel %vm26458_vm9, %v6259_v62, %v6260_v4  ;;  %5252 = vrot.lane.b32.xlu0 %v5202_v46, %s18857_s16  ;;  %v7432_v39 = vsel %vm26463_vm10, %v17707_v50, 0  ;;  %v17582_v62 = vcombine.high %v24225_v36, %v24205_v52  ;;  %v17613_v52 = vcombine.low %v24260_v29, %v24243_v55  ;;  %v18745_v36 = vld [vmem:[#allocation3 + $0x258] sm:$0xff]  ;;  %vm26475_vm9 = vmmov %vm26469_vm6 }
 0x465   : > { %7884 = vmatpush1.bf16.msra.mxu1 %v17675_v57  ;;  %v6288_v40 = vsel %vm26459_vm2, %v24146_v32, %v6287_v13  ;;  %v6047_v32 = vmul.bf16 %v6030_v49, %v26457_v1  ;;  %v17646_v31 = vcombine.high %v18745_v36, %v5973_v28  ;;  %v17645_v60 = vcombine.low %v18745_v36, %v5973_v28  ;;  %vm26476_vm2 = vmmov %vm26449_vm0 }
 0x466   : > { %17739 = vmatprep.subr.msk.bf16.mxu1 %vm26461_vm1, %v17708_v35  ;;  %5733 = vrot.lane.b32.xlu1 %v5683_v22, %s18860_s23  ;;  %v17678_v17 = vcombine.high %v24277_v5, %v6288_v40  ;;  %v17677_v55 = vcombine.low %v24277_v5, %v6288_v40  ;;  %v17710_v0 = vcombine.high %v24306_v54, %v24306_v54  ;;  %vm26477_vm1 = vcmask 1039360   ;;  %vm26478_vm10 = vmmov %vm26449_vm0 }
 0x467   : > { %v17709_v7 = vcombine.low %v24306_v54, %v24306_v54 }
 0x468   : > { %5567 = vrot.lane.b32.xlu0 %v5517_v9, %s18858_s18 }
 0x469   : > { %7886 = vmatpush1.bf16.msra.mxu1 %v7432_v39  ;;  %v7438_v54 = vsel %vm26449_vm0, %v17709_v7, 0 }
 0x46a   : > { %7918 = vmatprep.subr.bf16.mxu1 %v17582_v62  ;;  %6097 = vrot.lane.b32.xlu1 %v6047_v32, %s18857_s16  ;;  %s18864_s16 = smov [#allocation8]  }
 0x46b   : > { %s18788_s23 = sshll.u32 %s18864_s16, 4  ;;  %s18789_s23 = int_to_ptr.vmem [resolvable:$false] %s18788_s23 }
 0x46c   : > { %17740 = vmatmul.mubr.msk.bf16.vlgmr.msra.gmra.mrb[104].mxu1 %vm7366_vm15, %v23894_v59  ;;  %5931 = vrot.lane.b32.xlu0 %v5881_v25, %s18859_s22 }
 0x46d   : > { %7919 = vmatpush1.bf16.msra.mxu1 %v17581_v26  ;;  %7950 = vmatprep.mubr.bf16.mxu1 %v25720_v44 }
 0x46e   : > { %7920 = vmatprep.subr.bf16.mxu1 %v17614_v19  ;;  %6412 = vrot.lane.b32.xlu1 %v6362_v2, %s18858_s18  ;;  %s18790_s18 = scalar_lea.vmem %s18789_s23, 32 }
 0x470   : > { %6246 = vrot.lane.b32.xlu0 %v6196_v37, %s18861_s29  ;;  %s284_s29 = sand.u32 1, %s18842_s25  }
 0x471   : > { %7921 = vmatpush1.bf16.msra.mxu1 %v17613_v52  ;;  %s285_s21 = scalar_lea.vmem [#allocation8], %s284_s29  ;;  %s17264_s28 = scalar_lea.sflag [#allocation7], %s284_s29 }
 0x472   : > { %7922 = vmatprep.subr.bf16.mxu1 %v17646_v31  ;;  %s17276_s8 = sshll.u32 %s285_s21, 4  ;;  %s25189_s8 = int_to_ptr.vmem [resolvable:$true] %s17276_s8 }
 0x473   : > { %s18784_s13 = scalar_lea.vmem %s25189_s8, 16  ;;  %p18791_p2 = scmp.lt.s32.totalorder %s25189_s8, %s18789_s23 }
 0x474   : > { %6643 = vperm.xlu0 %18700, %v6640_v51   ;;  %v8784_v51 = vld [vmem:[#allocation5 + $0x120] sm:$0xff]  ;;  %p18785_p6 = scmp.ne.s32.totalorder %s25189_s8, %s18784_s13  ;;  %p18792_p3 = scmp.lt.s32.totalorder %s18790_s18, %s18784_s13 }
 0x475   : > { %7923 = vmatpush1.bf16.msra.mxu1 %v17645_v60  ;;  %v8912_v60 = vld [vmem:[#allocation5 + $0x520] sm:$0x11] }
 0x476   : > { %7924 = vmatprep.subr.bf16.mxu1 %v17678_v17  ;;  %v24350_v15 = vpop.f32.mrb[64].mxu1  ;;  %p18786_p10 = pnand %p18785_p6, %p26537_p9  ;;  %p18793_p4 = por %p18792_p3, %p18791_p2 }
 0x477   : > { %v24353_v29 = vpop.f32.mrb[65].mxu1  ;;  %v24355_v41 = vpop.permute.xlu1 %5395 }
 0x478   : > { %v7505_v12 = vpop.f32.mrb[66].mxu1  ;;  %v5416_v33 = vrot.slane %v24355_v41, 4  ;;  %p18787_p12 = pneg %p18786_p10 }
 0x479   : > { %7925 = vmatpush1.bf16.msra.mxu1 %v17677_v55  ;;  %v7506_v28 = vpop.f32.mrb[67].mxu1  ;;  %v24362_v58 = vpop.permute.xlu0 %5246  ;;  %v17856_v55 = vcombine.high %v8784_v51, %v8912_v60 }
 0x47a   : > { %17741 = vmatprep.subr.msk.bf16.mxu1 %vm26465_vm8, %v17710_v0  ;;  %v5444_v5 = vsel %vm26466_vm14, %v5415_v18, %v5416_v33  ;;  %v5267_v10 = vrot.slane %v24362_v58, 4  ;;  %vm26479_vm8 = vmmov %vm26473_vm12  ;;  %v17855_v0 = vcombine.low %v8784_v51, %v8912_v60  ;;  %v24457_v28 = vld [vmem:[#allocation5 + $0x128] sm:$0xff]  ;;  %p18794_p7 = pnand %p18793_p4, %p18787_p12 }
 0x47b   : > { %v5445_v14 = vsel %vm26467_vm13, %v24182_v23, %v5444_v5  ;;  %vm26480_vm14 = vmmov %vm26449_vm0  ;;  %13581 = vmatprep.subr.bf16.mxu0 %v17856_v55  ;;  %v24459_v5 = vld [vmem:[#allocation5 + $0x528] sm:$0x11] }
 0x47c   : > { %v24373_v57 = vpop.permute.xlu1 %5727  ;;  %5480 = vst [vmem:[#allocation3 + $0xe0] sm:$0xff] %v5445_v14  ;;  %v5295_v1 = vsel %vm26468_vm4, %v5266_v63, %v5267_v10  ;;  %vm26481_vm4 = vmmov %vm26449_vm0  ;;  %13582 = vmatpush1.bf16.xpose.msra.mxu0 %v17855_v0 }
 0x47d   : > { %v5748_v46 = vrot.slane %v24373_v57, 4  ;;  %7927 = vmatpush1.bf16.msra.mxu1 %v7438_v54  ;;  %v5296_v18 = vsel %vm26469_vm6, %v24192_v8, %v5295_v1  ;;  %v24384_v35 = vpop.permute.xlu0 %5561  ;;  %v17858_v54 = vcombine.high %v24457_v28, %v24459_v5  ;;  %vm26482_vm6 = vmmov %vm26449_vm0 }
 0x47e   : > { %5331 = vst [vmem:[#allocation3 + $0x60] sm:$0xff] %v5296_v18  ;;  %v5582_v50 = vrot.slane %v24384_v35, 4  ;;  %v17583_v13 = vcombine.low %v5296_v18, %v5445_v14  ;;  %v17584_v61 = vcombine.high %v5296_v18, %v5445_v14  ;;  %v17857_v14 = vcombine.low %v24457_v28, %v24459_v5 }
 0x47f   : > { %v5776_v23 = vsel %vm26470_vm3, %v5747_v48, %v5748_v46  ;;  %13621 = vmatprep.subr.bf16.mxu0 %v17858_v54  ;;  %vm26483_vm3 = vmmov %vm26467_vm13 }
 0x480   : > { %v5777_v63 = vsel %vm26471_vm11, %v24208_v34, %v5776_v23  ;;  %v24394_v40 = vpop.permute.xlu1 %6091  ;;  %17742 = vmatmul.mubr.msk.bf16.vlgmr.msra.gmra.mrb[108].mxu1 %vm7366_vm15, %v23894_v59  ;;  %v5610_v8 = vsel %vm26472_vm5, %v5581_v3, %v5582_v50  ;;  %7959 = vmatprep.subr.bf16.mxu1 %v17584_v61  ;;  %vm26484_vm11 = vmmov %vm26449_vm0 }
 0x481   : > { %5812 = vst [vmem:[#allocation3 + $0x1e0] sm:$0xff] %v5777_v63  ;;  %v6112_v48 = vrot.slane %v24394_v40, 4  ;;  %7991 = vmatprep.mubr.bf16.mxu1 %v25720_v44  ;;  %v5611_v34 = vsel %vm26473_vm12, %v24228_v6, %v5610_v8  ;;  %v24407_v47 = vpop.permute.xlu0 %5925  ;;  %7960 = vmatpush1.bf16.msra.mxu1 %v17583_v13  ;;  %vm26485_vm5 = vmmov %vm26475_vm9 }
 0x482   : > { %5646 = vst [vmem:[#allocation3 + $0x160] sm:$0xff] %v5611_v34  ;;  %v5946_v3 = vrot.slane %v24407_v47, 4  ;;  %v17615_v49 = vcombine.low %v5611_v34, %v5777_v63  ;;  %v17616_v21 = vcombine.high %v5611_v34, %v5777_v63  ;;  %vm26486_vm12 = vmmov %vm26449_vm0 }
 0x483   : > { %v6140_v22 = vsel %vm26474_vm7, %v6111_v16, %v6112_v48  ;;  %vm26487_vm7 = vcmask 7168  }
 0x484   : > { %v6141_v9 = vsel %vm26475_vm9, %v24246_v27, %v6140_v22  ;;  %v24417_v39 = vpop.permute.xlu1 %6406  ;;  %v5974_v6 = vsel %vm26476_vm2, %v5945_v43, %v5946_v3  ;;  %7961 = vmatprep.subr.bf16.mxu1 %v17616_v21  ;;  %vm26488_vm9 = vmmov %vm26449_vm0 }
 0x485   : > { %v6427_v62 = vrot.slane %v24417_v39, 4  ;;  %v5975_v16 = vsel %vm26477_vm1, %v24263_v30, %v5974_v6  ;;  %v24427_v53 = vpop.permute.xlu0 %6240  ;;  %7962 = vmatpush1.bf16.msra.mxu1 %v17615_v49  ;;  %vm26489_vm2 = vmmov %vm26479_vm8 }
 0x486   : > { %v6261_v32 = vrot.slane %v24427_v53, 4  ;;  %v17647_v26 = vcombine.low %v18746_v20, %v5975_v16  ;;  %v17648_v43 = vcombine.high %v18746_v20, %v5975_v16  ;;  %vm26490_vm1 = vmmov %vm26449_vm0 }
 0x487   : > { %v6455_v27 = vsel %vm26478_vm10, %v6426_v56, %v6427_v62  ;;  %vm26491_vm10 = vmmov %vm26485_vm5 }
 0x488   : > { %v6456_v45 = vsel %vm26479_vm8, %v24280_v42, %v6455_v27  ;;  %v6289_v30 = vsel %vm26480_vm14, %v6260_v4, %v6261_v32  ;;  %7963 = vmatprep.subr.bf16.mxu1 %v17648_v43  ;;  %vm26492_vm8 = vmmov %vm26449_vm0  ;;  %vm26493_vm14 = vcmask 1039360  }
 0x489   : > { %v6290_v25 = vsel %vm26467_vm13, %v24294_v24, %v6289_v30  ;;  %7964 = vmatpush1.bf16.msra.mxu1 %v17647_v26  ;;  %v17712_v42 = vcombine.high %v6456_v45, %v6456_v45  ;;  %v17711_v36 = vcombine.low %v6456_v45, %v6456_v45  ;;  %vm26494_vm13 = vmmov %vm26449_vm0 }
 0x48a   : > { %v24444_v56 = vpop.f32.mrb[68].mxu1  ;;  %v17679_v19 = vcombine.low %v6141_v9, %v6290_v25  ;;  %v17680_v2 = vcombine.high %v6141_v9, %v6290_v25 }
 0x48b   : > { %v24446_v37 = vpop.f32.mrb[69].mxu1  ;;  %v7444_v4 = vsel %vm26481_vm4, %v17711_v36, 0  ;;  %vm26496_vm4 = vmmov %vm26490_vm1 }
 0x48c   : > { %v7546_v52 = vpop.f32.mrb[70].mxu1  ;;  %7965 = vmatprep.subr.bf16.mxu1 %v17680_v2 }
 0x48d   : > { %v7547_v31 = vpop.f32.mrb[71].mxu1  ;;  %7966 = vmatpush1.bf16.msra.mxu1 %v17679_v19 }
 0x48e   : > { %17743 = vmatprep.subr.msk.bf16.mxu1 %vm26449_vm0, %v17712_v42  ;;  %vm26495_vm0 = vmmov %vm26489_vm2 }
 0x491   : > { %7968 = vmatpush1.bf16.msra.mxu1 %v7444_v4  ;;  %v18747_v4 = vld [vmem:[#allocation3 + $0x268] sm:$0xff] }
 0x494   : > { %17744 = vmatmul.mubr.msk.bf16.vlgmr.msra.gmra.mrb[112].mxu1 %vm7366_vm15, %v23894_v59 }
 0x495   : > { %8032 = vmatprep.mubr.bf16.mxu1 %v25720_v44 }
 0x49e   : > { %v24453_v24 = vpop.f32.mrb[72].mxu1 }
 0x49f   : > { %v24455_v17 = vpop.f32.mrb[73].mxu1 }
 0x4a0   : > { %v7587_v7 = vpop.f32.mrb[74].mxu1 }
 0x4a1   : > { %v7588_v12 = vpop.f32.mrb[75].mxu1 }
 0x4b0   : > { %v24465_v1 = vpop.permute.xlu1 %5397 }
 0x4b1   : > { %v5417_v18 = vrot.slane %v24465_v1, 4 }
 0x4b2   : > { %v24468_v23 = vpop.f32.mrb[76].mxu1  ;;  %v24470_v13 = vpop.permute.xlu0 %5248 }
 0x4b3   : > { %v24472_v61 = vpop.f32.mrb[77].mxu1  ;;  %v5446_v63 = vsel %vm26482_vm6, %v5416_v33, %v5417_v18  ;;  %v5268_v8 = vrot.slane %v24470_v13, 4  ;;  %vm26497_vm6 = vmmov %vm26483_vm3 }
 0x4b4   : > { %v7628_v34 = vpop.f32.mrb[78].mxu1  ;;  %v5447_v22 = vsel %vm26483_vm3, %v24355_v41, %v5446_v63  ;;  %v24482_v49 = vpop.permute.xlu1 %5729  ;;  %vm26498_vm3 = vmmov %vm26490_vm1 }
 0x4b5   : > { %v7629_v21 = vpop.f32.mrb[79].mxu1  ;;  %5481 = vst [vmem:[#allocation3 + $0xe8] sm:$0xff] %v5447_v22  ;;  %v5297_v9 = vsel %vm26484_vm11, %v5267_v10, %v5268_v8  ;;  %v5749_v6 = vrot.slane %v24482_v49, 4  ;;  %vm26499_vm11 = vmmov %vm26490_vm1 }
 0x4b6   : > { %v5298_v33 = vsel %vm26485_vm5, %v24362_v58, %v5297_v9  ;;  %v24492_v16 = vpop.permute.xlu0 %5563  ;;  %vm26500_vm5 = vmmov %vm26497_vm6 }
 0x4b7   : > { %5332 = vst [vmem:[#allocation3 + $0x68] sm:$0xff] %v5298_v33  ;;  %v5778_v41 = vsel %vm26486_vm12, %v5748_v46, %v5749_v6  ;;  %v5583_v27 = vrot.slane %v24492_v16, 4  ;;  %v17585_v20 = vcombine.low %v5298_v33, %v5447_v22  ;;  %v17586_v26 = vcombine.high %v5298_v33, %v5447_v22  ;;  %vm26501_vm12 = vmmov %vm26490_vm1 }
 0x4b8   : > { %v5779_v10 = vsel %vm26487_vm7, %v24373_v57, %v5778_v41  ;;  %v24502_v43 = vpop.permute.xlu1 %6093  ;;  %vm26502_vm7 = vmmov %vm26490_vm1 }
 0x4b9   : > { %5813 = vst [vmem:[#allocation3 + $0x1e8] sm:$0xff] %v5779_v10  ;;  %v5612_v58 = vsel %vm26488_vm9, %v5582_v50, %v5583_v27  ;;  %v6113_v45 = vrot.slane %v24502_v43, 4  ;;  %8000 = vmatprep.subr.bf16.mxu1 %v17586_v26  ;;  %vm26503_vm9 = vmmov %vm26491_vm10 }
 0x4ba   : > { %v5613_v46 = vsel %vm26489_vm2, %v24384_v35, %v5612_v58  ;;  %v24512_v30 = vpop.permute.xlu0 %5927  ;;  %8001 = vmatpush1.bf16.msra.mxu1 %v17585_v20  ;;  %vm26504_vm2 = vmmov %vm26490_vm1 }
 0x4bb   : > { %5647 = vst [vmem:[#allocation3 + $0x168] sm:$0xff] %v5613_v46  ;;  %v6142_v57 = vsel %vm26490_vm1, %v6112_v48, %v6113_v45  ;;  %v5947_v25 = vrot.slane %v24512_v30, 4  ;;  %v17617_v19 = vcombine.low %v5613_v46, %v5779_v10  ;;  %v17618_v50 = vcombine.high %v5613_v46, %v5779_v10 }
 0x4bc   : > { %v6143_v2 = vsel %vm26491_vm10, %v24394_v40, %v6142_v57  ;;  %v24522_v52 = vpop.permute.xlu1 %6408  ;;  %vm26505_vm1 = vcmask 7168   ;;  %vm26506_vm10 = vmmov %vm26504_vm2 }
 0x4bd   : > { %v5976_v35 = vsel %vm26492_vm8, %v5946_v3, %v5947_v25  ;;  %v6428_v42 = vrot.slane %v24522_v52, 4  ;;  %8002 = vmatprep.subr.bf16.mxu1 %v17618_v50  ;;  %vm26507_vm8 = vmmov %vm26495_vm0 }
 0x4be   : > { %v5977_v48 = vsel %vm26493_vm14, %v24407_v47, %v5976_v35  ;;  %v24532_v36 = vpop.permute.xlu0 %6242  ;;  %8003 = vmatpush1.bf16.msra.mxu1 %v17617_v19  ;;  %vm26508_vm14 = vmmov %vm26504_vm2 }
 0x4bf   : > { %v6457_v40 = vsel %vm26494_vm13, %v6427_v62, %v6428_v42  ;;  %v6262_v31 = vrot.slane %v24532_v36, 4  ;;  %v17649_v51 = vcombine.low %v18747_v4, %v5977_v48  ;;  %v17650_v3 = vcombine.high %v18747_v4, %v5977_v48  ;;  %vm26509_vm13 = vmmov %vm26503_vm9 }
 0x4c0   : > { %v6458_v60 = vsel %vm26495_vm0, %v24417_v39, %v6457_v40  ;;  %vm26510_vm0 = vmmov %vm26504_vm2 }
 0x4c1   : > { %v6291_v47 = vsel %vm26496_vm4, %v6261_v32, %v6262_v31  ;;  %8004 = vmatprep.subr.bf16.mxu1 %v17650_v3  ;;  %v17714_v54 = vcombine.high %v6458_v60, %v6458_v60  ;;  %v17713_v39 = vcombine.low %v6458_v60, %v6458_v60  ;;  %vm26511_vm4 = vcmask 1039360  }
 0x4c2   : > { %v6292_v55 = vsel %vm26497_vm6, %v24427_v53, %v6291_v47  ;;  %8005 = vmatpush1.bf16.msra.mxu1 %v17649_v51  ;;  %vm26512_vm6 = vmmov %vm26510_vm0 }
 0x4c3   : > { %v17681_v62 = vcombine.low %v6143_v2, %v6292_v55  ;;  %v17682_v0 = vcombine.high %v6143_v2, %v6292_v55 }
 0x4c4   : > { %v24549_v7 = vpop.permute.xlu1 %5399 }
 0x4c5   : > { %v5418_v12 = vrot.slane %v24549_v7, 4  ;;  %8006 = vmatprep.subr.bf16.mxu1 %v17682_v0 }
 0x4c6   : > { %v24552_v63 = vpop.f32.mrb[80].mxu1  ;;  %v24554_v34 = vpop.permute.xlu0 %5250  ;;  %8007 = vmatpush1.bf16.msra.mxu1 %v17681_v62 }
 0x4c7   : > { %v24556_v32 = vpop.f32.mrb[81].mxu1  ;;  %v5448_v53 = vsel %vm26498_vm3, %v5417_v18, %v5418_v12  ;;  %v5269_v22 = vrot.slane %v24554_v34, 4  ;;  %17745 = vmatprep.subr.msk.bf16.mxu1 %vm26499_vm11, %v17714_v54  ;;  %v7450_v18 = vsel %vm26502_vm7, %v17713_v39, 0  ;;  %vm26513_vm3 = vmmov %vm26507_vm8 }
 0x4c8   : > { %v7669_v21 = vpop.f32.mrb[82].mxu1  ;;  %v5449_v9 = vsel %vm26500_vm5, %v24465_v1, %v5448_v53  ;;  %v24567_v33 = vpop.permute.xlu1 %5731  ;;  %vm26514_vm11 = vmmov %vm26510_vm0 }
 0x4c9   : > { %v7670_v41 = vpop.f32.mrb[83].mxu1  ;;  %5482 = vst [vmem:[#allocation3 + $0xf0] sm:$0xff] %v5449_v9  ;;  %v5299_v20 = vsel %vm26501_vm12, %v5268_v8, %v5269_v22  ;;  %v5750_v26 = vrot.slane %v24567_v33, 4  ;;  %vm26515_vm12 = vmmov %vm26510_vm0 }
 0x4ca   : > { %v5300_v10 = vsel %vm26503_vm9, %v24470_v13, %v5299_v20  ;;  %v24576_v58 = vpop.permute.xlu0 %5565  ;;  %8009 = vmatpush1.bf16.msra.mxu1 %v7450_v18  ;;  %vm26516_vm7 = vmmov %vm26500_vm5 }
 0x4cb   : > { %5333 = vst [vmem:[#allocation3 + $0x70] sm:$0xff] %v5300_v10  ;;  %v5780_v1 = vsel %vm26504_vm2, %v5749_v6, %v5750_v26  ;;  %v5584_v46 = vrot.slane %v24576_v58, 4  ;;  %v17587_v8 = vcombine.low %v5300_v10, %v5449_v9  ;;  %v17588_v57 = vcombine.high %v5300_v10, %v5449_v9  ;;  %vm26517_vm9 = vmmov %vm26510_vm0 }
 0x4cc   : > { %v5781_v19 = vsel %vm26505_vm1, %v24482_v49, %v5780_v1  ;;  %v24586_v50 = vpop.permute.xlu1 %6095  ;;  %vm26518_vm2 = vmmov %vm26509_vm13 }
 0x4cd   : > { %5814 = vst [vmem:[#allocation3 + $0x1f0] sm:$0xff] %v5781_v19  ;;  %v5614_v13 = vsel %vm26506_vm10, %v5583_v27, %v5584_v46  ;;  %v6114_v2 = vrot.slane %v24586_v50, 4  ;;  %17746 = vmatmul.mubr.msk.bf16.vlgmr.msra.gmra.mrb[116].mxu1 %vm7366_vm15, %v23894_v59  ;;  %8041 = vmatprep.subr.bf16.mxu1 %v17588_v57  ;;  %vm26519_vm1 = vmmov %vm26510_vm0 }
 0x4ce   : > { %v5615_v6 = vsel %vm26507_vm8, %v24492_v16, %v5614_v13  ;;  %v24598_v35 = vpop.permute.xlu0 %5929  ;;  %8042 = vmatpush1.bf16.msra.mxu1 %v17587_v8  ;;  %8073 = vmatprep.mubr.bf16.mxu1 %v25720_v44  ;;  %vm26520_vm10 = vmmov %vm26510_vm0  ;;  %vm26521_vm8 = vcmask 7168  }
 0x4cf   : > { %5648 = vst [vmem:[#allocation3 + $0x170] sm:$0xff] %v5615_v6  ;;  %v6144_v49 = vsel %vm26508_vm14, %v6113_v45, %v6114_v2  ;;  %v5948_v27 = vrot.slane %v24598_v35, 4  ;;  %v17619_v48 = vcombine.low %v5615_v6, %v5781_v19  ;;  %v17620_v59 = vcombine.high %v5615_v6, %v5781_v19  ;;  %vm26522_vm14 = vmmov %vm26510_vm0 }
 0x4d0   : > { %v6145_v40 = vsel %vm26509_vm13, %v24502_v43, %v6144_v49  ;;  %v24609_v16 = vpop.permute.xlu1 %6410  ;;  %vm26523_vm13 = vmmov %vm26510_vm0 }
 0x4d1   : > { %v5978_v4 = vsel %vm26510_vm0, %v5947_v25, %v5948_v27  ;;  %v6429_v51 = vrot.slane %v24609_v16, 4  ;;  %8043 = vmatprep.subr.bf16.mxu1 %v17620_v59  ;;  %vm26524_vm0 = vmmov %vm26513_vm3 }
 0x4d2   : > { %v5979_v45 = vsel %vm26511_vm4, %v24512_v30, %v5978_v4  ;;  %v24619_v3 = vpop.permute.xlu0 %6244  ;;  %8044 = vmatpush1.bf16.msra.mxu1 %v17619_v48  ;;  %vm26525_vm4 = vmmov %vm26519_vm1 }
 0x4d3   : > { %v6459_v43 = vsel %vm26512_vm6, %v6428_v42, %v6429_v51  ;;  %v6263_v60 = vrot.slane %v24619_v3, 4  ;;  %v17651_v47 = vcombine.low %v24039_v11, %v5979_v45  ;;  %v17652_v25 = vcombine.high %v24039_v11, %v5979_v45  ;;  %vm26526_vm6 = vmmov %vm26518_vm2 }
 0x4d4   : > { %v6460_v55 = vsel %vm26513_vm3, %v24522_v52, %v6459_v43  ;;  %v5402_v62 = vpop.permute.xlu1 %5401  ;;  %vm26527_vm3 = vmmov %vm26519_vm1 }
 0x4d5   : > { %v6293_v30 = vsel %vm26514_vm11, %v6262_v31, %v6263_v60  ;;  %v5419_v0 = vrot.slane %v5402_v62, 4  ;;  %8045 = vmatprep.subr.bf16.mxu1 %v17652_v25  ;;  %v17716_v20 = vcombine.high %v6460_v55, %v6460_v55  ;;  %vm26528_vm11 = vcmask 1039360  }
 0x4d6   : > { %v6294_v42 = vsel %vm26500_vm5, %v24532_v36, %v6293_v30  ;;  %v5253_v54 = vpop.permute.xlu0 %5252  ;;  %8046 = vmatpush1.bf16.msra.mxu1 %v17651_v47  ;;  %v17715_v36 = vcombine.low %v6460_v55, %v6460_v55  ;;  %vm26529_vm5 = vmmov %vm26519_vm1 }
 0x4d7   : > { %v5450_v11 = vsel %vm26515_vm12, %v5418_v12, %v5419_v0  ;;  %v5270_v39 = vrot.slane %v5253_v54, 4  ;;  %v17683_v52 = vcombine.low %v6145_v40, %v6294_v42  ;;  %v17684_v53 = vcombine.high %v6145_v40, %v6294_v42  ;;  %vm26530_vm12 = vmmov %vm26524_vm0 }
 0x4d8   : > { %v5451_v21 = vsel %vm26516_vm7, %v24549_v7, %v5450_v11  ;;  %v5734_v9 = vpop.permute.xlu1 %5733  ;;  %v7456_v49 = vsel %vm26523_vm13, %v17715_v36, 0  ;;  %vm26531_vm7 = vmmov %vm26519_vm1  ;;  %v18863_v54 = vmov 1966171168  }
 0x4d9   : > { %5483 = vst [vmem:[#allocation3 + $0xf8] sm:$0xff] %v5451_v21  ;;  %v5301_v31 = vsel %vm26517_vm9, %v5269_v22, %v5270_v39  ;;  %v5751_v41 = vrot.slane %v5734_v9, 4  ;;  %8047 = vmatprep.subr.bf16.mxu1 %v17684_v53  ;;  %vm26532_vm9 = vcmask 523264   ;;  %v8224_v11 = vunpack.c.l.s4 %v18863_v54  ;;  %v8748_v39 = vld [vmem:[#allocation5] sm:$0xff] }
 0x4da   : > { %v24644_v18 = vpop.f32.mrb[84].mxu1  ;;  %v5302_v10 = vsel %vm26518_vm2, %v24554_v34, %v5301_v31  ;;  %v5568_v12 = vpop.permute.xlu0 %5567  ;;  %8048 = vmatpush1.bf16.msra.mxu1 %v17683_v52  ;;  %v8876_v52 = vld [vmem:[#allocation5 + $0x400] sm:$0x11]  ;;  %vm26534_vm2 = vmmov %vm26519_vm1 }
 0x4db   : > { %v24648_v1 = vpop.f32.mrb[85].mxu1  ;;  %5334 = vst [vmem:[#allocation3 + $0x78] sm:$0xff] %v5302_v10  ;;  %v5782_v7 = vsel %vm26519_vm1, %v5750_v26, %v5751_v41  ;;  %v5585_v8 = vrot.slane %v5568_v12, 4  ;;  %17747 = vmatprep.subr.msk.bf16.mxu1 %vm26520_vm10, %v17716_v20  ;;  %v17590_v48 = vcombine.high %v5302_v10, %v5451_v21  ;;  %v17589_v45 = vcombine.low %v5302_v10, %v5451_v21  ;;  %v24691_v10 = vld [vmem:[#allocation5 + $0x8] sm:$0xff] }
 0x4dc   : > { %v7710_v22 = vpop.f32.mrb[86].mxu1  ;;  %v5783_v57 = vsel %vm26521_vm8, %v24567_v33, %v5782_v7  ;;  %v6098_v19 = vpop.permute.xlu1 %6097  ;;  %v8225_v31 = vunpack.c.0.s8 %v8224_v11  ;;  %v26533_v41 = vlaneseq  ;;  %v24693_v12 = vld [vmem:[#allocation5 + $0x408] sm:$0x11]  ;;  %vm17261_vm10 = vcmask 73728  }
 0x4dd   : > { %v7711_v13 = vpop.f32.mrb[87].mxu1  ;;  %5815 = vst [vmem:[#allocation3 + $0x1f8] sm:$0xff] %v5783_v57  ;;  %v5616_v34 = vsel %vm26522_vm14, %v5584_v46, %v5585_v8  ;;  %v6115_v6 = vrot.slane %v6098_v19, 4  ;;  %v17786_v19 = vcombine.high %v24691_v10, %v24693_v12 }
 0x4de   : > { %v5617_v26 = vsel %vm26524_vm0, %v24576_v58, %v5616_v34  ;;  %v5932_v59 = vpop.permute.xlu0 %5931  ;;  %8050 = vmatpush1.bf16.msra.mxu1 %v7456_v49  ;;  %v18748_v58 = vld [vmem:[%s25232_s3] sm:$0xf] }
 0x4df   : > { %5649 = vst [vmem:[#allocation3 + $0x178] sm:$0xff] %v5617_v26  ;;  %v6146_v33 = vsel %vm26525_vm4, %v6114_v2, %v6115_v6  ;;  %v5949_v40 = vrot.slane %v5932_v59, 4  ;;  %8082 = vmatprep.subr.bf16.mxu1 %v17590_v48  ;;  %v17622_v25 = vcombine.high %v5617_v26, %v5783_v57  ;;  %v17621_v30 = vcombine.low %v5617_v26, %v5783_v57 }
 0x4e0   : > { %v6147_v4 = vsel %vm26526_vm6, %v24586_v50, %v6146_v33  ;;  %v6413_v46 = vpop.permute.xlu1 %6412  ;;  %v17783_v57 = vcombine.low %v8748_v39, %v8876_v52 }
 0x4e1   : > { %v5980_v43 = vsel %vm26527_vm3, %v5948_v27, %v5949_v40  ;;  %v6430_v47 = vrot.slane %v6413_v46, 4  ;;  %17748 = vmatmul.mubr.msk.bf16.vlgmr.msra.gmra.mrb[120].mxu1 %vm7366_vm15, %v18748_v58 }
 0x4e2   : > { %v5981_v2 = vsel %vm26528_vm11, %v24598_v35, %v5980_v43  ;;  %v6247_v55 = vpop.permute.xlu0 %6246  ;;  %8083 = vmatpush1.bf16.msra.mxu1 %v17589_v45  ;;  %8114 = vmatprep.mubr.bf16.mxu1 %v25720_v44 }
 0x4e3   : > { %v6461_v50 = vsel %vm26529_vm5, %v6429_v51, %v6430_v47  ;;  %v6264_v27 = vrot.slane %v6247_v55, 4  ;;  %8084 = vmatprep.subr.bf16.mxu1 %v17622_v25  ;;  %v17654_v35 = vcombine.high %v24188_v38, %v5981_v2  ;;  %v17653_v44 = vcombine.low %v24188_v38, %v5981_v2 }
 0x4e4   : > { %v6462_v62 = vsel %vm26530_vm12, %v24609_v16, %v6461_v50  ;;  %v17784_v38 = vcombine.high %v8748_v39, %v8876_v52 }
 0x4e5   : > { %v6295_v0 = vsel %vm26531_vm7, %v6263_v60, %v6264_v27  ;;  %v17718_v53 = vcombine.high %v6462_v62, %v6462_v62  ;;  %v17717_v21 = vcombine.low %v6462_v62, %v6462_v62 }
 0x4e6   : > { %v6296_v42 = vsel %vm26532_vm9, %v24619_v3, %v6295_v0  ;;  %8085 = vmatpush1.bf16.msra.mxu1 %v17621_v30  ;;  %v8227_v3 = vshrl.u32 %v26533_v41, 7 }
 0x4e7   : > { %8086 = vmatprep.subr.bf16.mxu1 %v17654_v35  ;;  %v17686_v51 = vcombine.high %v6147_v4, %v6296_v42  ;;  %v17685_v16 = vcombine.low %v6147_v4, %v6296_v42  ;;  %v7462_v7 = vsel %vm26519_vm1, %v17717_v21, 0 }
 0x4e8   : > { %v24696_v8 = vsub.s32 %v8225_v31, %v8227_v3 }
 0x4ea   : > { %8087 = vmatpush1.bf16.msra.mxu1 %v17653_v44 }
 0x4eb   : > { %8088 = vmatprep.subr.bf16.mxu1 %v17686_v51 }
 0x4ee   : > { %8089 = vmatpush1.bf16.msra.mxu1 %v17685_v16 }
 0x4ef   : > { %v7747_v60 = vpop.f32.mrb[88].mxu1  ;;  %17749 = vmatprep.subr.msk.bf16.mxu1 %vm26534_vm2, %v17718_v53 }
 0x4f0   : > { %v7749_v9 = vpop.f32.mrb[89].mxu1 }
 0x4f1   : > { %v7751_v20 = vpop.f32.mrb[90].mxu1 }
 0x4f2   : > { %v7752_v36 = vpop.f32.mrb[91].mxu1  ;;  %8091 = vmatpush1.bf16.msra.mxu1 %v7462_v7 }
 0x4f3   : > { %v24698_v22 = vpop.permute.xlu0 %6643  ;;  %12141 = vmatprep.subr.bf16.mxu1 %v17784_v38 }
 0x4f4   : > { %v7707_v13 = vadd.f32 %v24644_v18, %v24698_v22  ;;  %v7666_v34 = vadd.f32 %v24552_v63, %v24698_v22  ;;  %v7668_v6 = vadd.f32 %v24556_v32, %v24698_v22  ;;  %v7709_v49 = vadd.f32 %v24648_v1, %v24698_v22 }
 0x4f5   : > { %17750 = vmatmul.mubr.msk.bf16.vlgmr.msra.gmra.mrb[124].mxu1 %vm7366_vm15, %v18748_v58  ;;  %v7748_v48 = vadd.f32 %v7747_v60, %v24698_v22  ;;  %v7750_v26 = vadd.f32 %v7749_v9, %v24698_v22  ;;  %v7502_v59 = vadd.f32 %v24350_v15, %v24698_v22  ;;  %v7504_v18 = vadd.f32 %v24353_v29, %v24698_v22 }
 0x4f6   : > { %v8133_v33 = vmax.f32 %v7707_v13, 0.0  ;;  %v8131_v63 = vmax.f32 %v7666_v34, 0.0  ;;  %v8132_v40 = vmax.f32 %v7668_v6, 0.0  ;;  %v8134_v4 = vmax.f32 %v7709_v49, 0.0  ;;  %v8436_v6 = vld [vmem:[#allocation4] sm:$0xff] }
 0x4f7   : > { %v8135_v32 = vmax.f32 %v7748_v48, 0.0  ;;  %v8136_v46 = vmax.f32 %v7750_v26, 0.0  ;;  %v7543_v1 = vadd.f32 %v24444_v56, %v24698_v22  ;;  %v7545_v45 = vadd.f32 %v24446_v37, %v24698_v22  ;;  %v8556_v49 = vld [vmem:[#allocation4 + $0x40] sm:$0xff] }
 0x4f8   : > { %v17755_v43 = vpack.c.bf16 %v8132_v40, %v8131_v63  ;;  %v17756_v47 = vpack.c.bf16 %v8134_v4, %v8133_v33  ;;  %v7584_v15 = vadd.f32 %v24453_v24, %v24698_v22  ;;  %v7586_v29 = vadd.f32 %v24455_v17, %v24698_v22  ;;  %v8472_v40 = vld [vmem:[#allocation4 + $0x20] sm:$0xff] }
 0x4f9   : > { %v17757_v58 = vpack.c.bf16 %v8136_v46, %v8135_v32  ;;  %v7625_v25 = vadd.f32 %v24468_v23, %v24698_v22  ;;  %v7627_v2 = vadd.f32 %v24472_v61, %v24698_v22  ;;  %v8123_v55 = vmax.f32 %v7502_v59, 0.0  ;;  %v8592_v4 = vld [vmem:[#allocation4 + $0x60] sm:$0xff]  ;;  %v26535_v32 = vld [vmem:[#allocation33_spill] sm:$0xff] }
 0x4fa   : > { %v24730_v56 = vrot.slane %v17755_v43, %v24696_v8  ;;  %v24733_v37 = vrot.slane %v17756_v47, %v24696_v8  ;;  %v8124_v50 = vmax.f32 %v7504_v18, 0.0  ;;  %v8125_v27 = vmax.f32 %v7543_v1, 0.0 }
 0x4fb   : > { %12142 = vmatpush1.bf16.xpose.msra.mxu1 %v17783_v57  ;;  %v8126_v24 = vmax.f32 %v7545_v45, 0.0  ;;  %v8127_v62 = vmax.f32 %v7584_v15, 0.0  ;;  %v8128_v17 = vmax.f32 %v7586_v29, 0.0  ;;  %v8129_v61 = vmax.f32 %v7625_v25, 0.0 }
 0x4fc   : > { %v8300_v30 = vcombine.low %v24730_v56, %v24733_v37  ;;  %v8501_v23 = vcombine.high %v24730_v56, %v24733_v37  ;;  %v8130_v0 = vmax.f32 %v7627_v2, 0.0  ;;  %12181 = vmatprep.subr.bf16.mxu1 %v17786_v19  ;;  %v17751_v35 = vpack.c.bf16 %v8124_v50, %v8123_v55  ;;  %v24768_v56 = vld [vmem:[#allocation5 + $0x10] sm:$0xff] }
 0x4fd   : > { %v17752_v42 = vpack.c.bf16 %v8126_v24, %v8125_v27  ;;  %v17753_v44 = vpack.c.bf16 %v8128_v17, %v8127_v62  ;;  %v8292_v33 = vrot.slane %v17757_v58, %v24696_v8  ;;  %vm26536_vm15 = vnez %v26535_v32  ;;  %v24770_v37 = vld [vmem:[#allocation5 + $0x410] sm:$0x11] }
 0x4fe   : > { %v17754_v51 = vpack.c.bf16 %v8130_v0, %v8129_v61  ;;  %v8229_v54 = vrot.slane %v17751_v35, %v24696_v8  ;;  %v8308_v50 = vrot.slane %v8300_v30, %v24696_v8  ;;  %v17785_v27 = vcombine.low %v24691_v10, %v24693_v12  ;;  %v8439_v0 = vld [vmem:[#allocation4 + $0x8] sm:$0xff] }
 0x4ff   : > { %v8236_v11 = vrot.slane %v17752_v42, %v24696_v8  ;;  %v8243_v16 = vrot.slane %v17753_v44, %v24696_v8  ;;  %v8509_v24 = vrot.slane %v8501_v23, %v24696_v8  ;;  %v8559_v35 = vld [vmem:[#allocation4 + $0x48] sm:$0xff]  ;;  %v17788_v30 = vcombine.high %v24768_v56, %v24770_v37 }
 0x500   : > { %v8250_v39 = vrot.slane %v17754_v51, %v24696_v8  ;;  %v8615_v12 = vld [vmem:[#allocation4 + $0x88] sm:$0xff] }
 0x501   : > { %v8251_v53 = vcombine.low %v8229_v54, %v8236_v11  ;;  %v8484_v21 = vcombine.high %v8229_v54, %v8236_v11  ;;  %v8671_v11 = vld [vmem:[#allocation4 + $0xc8] sm:$0xff] }
 0x502   : > { %v8252_v31 = vcombine.low %v8243_v16, %v8250_v39  ;;  %v8485_v41 = vcombine.high %v8243_v16, %v8250_v39  ;;  %v8475_v16 = vld [vmem:[#allocation4 + $0x28] sm:$0xff] }
 0x503   : > { %v7788_v52 = vpop.f32.mrb[92].mxu1  ;;  %v8259_v20 = vrot.slane %v8251_v53, %v24696_v8  ;;  %v8492_v36 = vrot.slane %v8484_v21, %v24696_v8  ;;  %v8595_v39 = vld [vmem:[#allocation4 + $0x68] sm:$0xff] }
 0x504   : > { %v7789_v60 = vadd.f32 %v7788_v52, %v24698_v22  ;;  %v7790_v9 = vpop.f32.mrb[93].mxu1  ;;  %v8266_v57 = vrot.slane %v8252_v31, %v24696_v8  ;;  %v8499_v13 = vrot.slane %v8485_v41, %v24696_v8  ;;  %v8651_v31 = vld [vmem:[#allocation4 + $0xa8] sm:$0xff] }
 0x505   : > { %v7791_v3 = vadd.f32 %v7790_v9, %v24698_v22  ;;  %v7792_v38 = vpop.f32.mrb[94].mxu1  ;;  %v8707_v41 = vld [vmem:[#allocation4 + $0xe8] sm:$0xff] }
 0x506   : > { %v8137_v7 = vmax.f32 %v7789_v60, 0.0  ;;  %v7793_v19 = vpop.f32.mrb[95].mxu1  ;;  %v8267_v48 = vcombine.low %v8259_v20, %v8266_v57  ;;  %v8500_v26 = vcombine.low %v8492_v36, %v8499_v13  ;;  %v24749_v59 = vcombine.high %v8259_v20, %v8266_v57 }
 0x507   : > { %v8138_v34 = vmax.f32 %v7791_v3, 0.0  ;;  %v24751_v18 = vcombine.high %v8492_v36, %v8499_v13 }
 0x508   : > { %v8437_v46 = vsel %vm26536_vm15, %v8267_v48, %v8436_v6  ;;  %v8449_v1 = vshrl.u32 %v8267_v48, 16  ;;  %v8569_v45 = vshrl.u32 %v8500_v26, 16  ;;  %v8557_v43 = vsel %vm26536_vm15, %v8500_v26, %v8556_v49  ;;  %v8786_v48 = vld [vmem:[#allocation5 + $0x130] sm:$0xff] }
 0x509   : > { %v17758_v63 = vpack.c.bf16 %v8138_v34, %v8137_v7  ;;  %8438 = vst [vmem:[#allocation4] sm:$0xff] %v8437_v46  ;;  %v9044_v15 = vrot.slane %v8437_v46, %v24696_v8  ;;  %8558 = vst [vmem:[#allocation4 + $0x40] sm:$0xff] %v8557_v43  ;;  %v9037_v44 = vcombine.high %v8437_v46, %v8437_v46  ;;  %v8914_v26 = vld [vmem:[#allocation5 + $0x530] sm:$0x11] }
 0x50a   : > { %v24762_v29 = vsel %vm26536_vm15, %v8449_v1, %v8472_v40  ;;  %v24766_v58 = vsel %vm26536_vm15, %v8569_v45, %v8592_v4  ;;  %v8751_v1 = vld [vmem:[#allocation5 + $0x18] sm:$0xff] }
 0x50b   : > { %v8299_v47 = vrot.slane %v17758_v63, %v24696_v8  ;;  %v9052_v55 = vcombine.high %v9044_v15, %v9044_v15  ;;  %8474 = vst [vmem:[#allocation4 + $0x20] sm:$0xff] %v24762_v29  ;;  %8594 = vst [vmem:[#allocation4 + $0x60] sm:$0xff] %v24766_v58  ;;  %v24782_v42 = vrot.slane %v9044_v15, %v24696_v8  ;;  %v8879_v45 = vld [vmem:[#allocation5 + $0x418] sm:$0x11] }
 0x50c   : > { %v9051_v19 = vrot.slane %v9037_v44, %v24696_v8  ;;  %v17860_v15 = vcombine.high %v8786_v48, %v8914_v26  ;;  %v8915_v44 = vld [vmem:[#allocation5 + $0x538] sm:$0x11] }
 0x50d   : > { %v8301_v25 = vcombine.low %v8292_v33, %v8299_v47  ;;  %v8502_v2 = vcombine.high %v8292_v33, %v8299_v47  ;;  %v9074_v61 = vrot.slane %v9052_v55, %v24696_v8 }
 0x50e   : > { %v9053_v4 = vcombine.high %v9051_v19, %v9051_v19  ;;  %v9067_v5 = vrot.slane %v9051_v19, %v24696_v8  ;;  %v8916_v19 = vld [vmem:[#allocation5 + $0x540] sm:$0x11] }
 0x50f   : > { %v8315_v62 = vrot.slane %v8301_v25, %v24696_v8  ;;  %v8516_v17 = vrot.slane %v8502_v2, %v24696_v8  ;;  %12173 = vmatprep.mubr.bf16.mxu1 %v9074_v61  ;;  %v9084_v52 = vcombine.high %v9074_v61, %v9074_v61 }
 0x510   : > { %12174 = vmatmul.mubr.bf16.vlgmr.msra.gmra.mrb[128].mxu1 %v24782_v42 }
 0x511   : > { %v8316_v51 = vcombine.low %v8308_v50, %v8315_v62  ;;  %v8517_v54 = vcombine.low %v8509_v24, %v8516_v17  ;;  %v8605_v10 = vcombine.high %v8308_v50, %v8315_v62  ;;  %v8661_v23 = vcombine.high %v8509_v24, %v8516_v17  ;;  %12182 = vmatpush1.bf16.xpose.msra.mxu1 %v17785_v27 }
 0x512   : > { %12213 = vmatprep.mubr.bf16.mxu1 %v9084_v52  ;;  %12221 = vmatprep.subr.bf16.mxu1 %v17788_v30  ;;  %v17787_v50 = vcombine.low %v24768_v56, %v24770_v37  ;;  %v9082_v62 = vcombine.high %v24782_v42, %v24782_v42  ;;  %v17790_v17 = vcombine.high %v8751_v1, %v8879_v45  ;;  %v8787_v42 = vld [vmem:[#allocation5 + $0x138] sm:$0xff] }
 0x513   : > { %v24789_v53 = vsel %vm26536_vm15, %v8316_v51, %v8439_v0  ;;  %v8454_v21 = vshrl.u32 %v8316_v51, 16  ;;  %v8560_v60 = vsel %vm26536_vm15, %v8517_v54, %v8559_v35  ;;  %v8574_v9 = vshrl.u32 %v8517_v54, 16  ;;  %v8752_v51 = vld [vmem:[#allocation5 + $0x20] sm:$0xff] }
 0x514   : > { %8441 = vst [vmem:[#allocation4 + $0x8] sm:$0xff] %v24789_v53  ;;  %8561 = vst [vmem:[#allocation4 + $0x48] sm:$0xff] %v8560_v60  ;;  %v8616_v3 = vsel %vm26536_vm15, %v8605_v10, %v8615_v12  ;;  %v8630_v20 = vshrl.u32 %v8605_v10, 16  ;;  %v8672_v38 = vsel %vm26536_vm15, %v8661_v23, %v8671_v11  ;;  %v8686_v36 = vshrl.u32 %v8661_v23, 16  ;;  %v8880_v54 = vld [vmem:[#allocation5 + $0x420] sm:$0x11] }
 0x515   : > { %v8476_v7 = vsel %vm26536_vm15, %v8454_v21, %v8475_v16  ;;  %v8596_v57 = vsel %vm26536_vm15, %v8574_v9, %v8595_v39  ;;  %8617 = vst [vmem:[#allocation4 + $0x88] sm:$0xff] %v8616_v3  ;;  %8673 = vst [vmem:[#allocation4 + $0xc8] sm:$0xff] %v8672_v38  ;;  %v9485_v13 = vrot.slane %v8560_v60, %v24696_v8  ;;  %v8612_v23 = vld [vmem:[#allocation4 + $0x80] sm:$0xff]  ;;  %v8625_v9 = vshrl.u32 %v24749_v59, 16 }
 0x516   : > { %8477 = vst [vmem:[#allocation4 + $0x28] sm:$0xff] %v8476_v7  ;;  %8597 = vst [vmem:[#allocation4 + $0x68] sm:$0xff] %v8596_v57  ;;  %v8652_v34 = vsel %vm26536_vm15, %v8630_v20, %v8651_v31  ;;  %v8708_v6 = vsel %vm26536_vm15, %v8686_v36, %v8707_v41  ;;  %v9478_v27 = vcombine.high %v8560_v60, %v8560_v60  ;;  %v8648_v20 = vld [vmem:[#allocation4 + $0xa0] sm:$0xff] }
 0x517   : > { %8653 = vst [vmem:[#allocation4 + $0xa8] sm:$0xff] %v8652_v34  ;;  %8709 = vst [vmem:[#allocation4 + $0xe8] sm:$0xff] %v8708_v6  ;;  %v9493_v49 = vcombine.high %v9485_v13, %v9485_v13  ;;  %v7829_v33 = vpop.f32.mrb[96].mxu1  ;;  %v9501_v47 = vrot.slane %v9485_v13, %v24696_v8  ;;  %v9081_v0 = vrot.slane %v9053_v4, %v24696_v8  ;;  %v8788_v57 = vld [vmem:[#allocation5 + $0x140] sm:$0xff] }
 0x518   : > { %v7830_v63 = vadd.f32 %v7829_v33, %v24698_v22  ;;  %v7831_v40 = vpop.f32.mrb[97].mxu1  ;;  %v9492_v56 = vrot.slane %v9478_v27, %v24696_v8  ;;  %v17859_v30 = vcombine.low %v8786_v48, %v8914_v26  ;;  %v17862_v12 = vcombine.high %v8787_v42, %v8915_v44  ;;  %v8753_v48 = vld [vmem:[#allocation5 + $0x28] sm:$0xff]  ;;  %v8754_v27 = vld [vmem:[#allocation5 + $0x30] sm:$0xff] }
 0x519   : > { %v9515_v46 = vrot.slane %v9493_v49, %v24696_v8  ;;  %v7833_v43 = vpop.f32.mrb[98].mxu1  ;;  %v7832_v2 = vadd.f32 %v7831_v40, %v24698_v22  ;;  %v9523_v10 = vcombine.high %v9501_v47, %v9501_v47  ;;  %v17789_v11 = vcombine.low %v8751_v1, %v8879_v45  ;;  %v8881_v26 = vld [vmem:[#allocation5 + $0x428] sm:$0x11] }
 0x51a   : > { %v8139_v25 = vmax.f32 %v7830_v63, 0.0  ;;  %v7834_v55 = vpop.f32.mrb[99].mxu1  ;;  %v9494_v37 = vcombine.high %v9492_v56, %v9492_v56  ;;  %v9085_v16 = vcombine.high %v9081_v0, %v9081_v0  ;;  %v8613_v39 = vsel %vm26536_vm15, %v24749_v59, %v8612_v23  ;;  %v8704_v23 = vld [vmem:[#allocation4 + $0xe0] sm:$0xff] }
 0x51b   : > { %v9525_v24 = vcombine.high %v9515_v46, %v9515_v46  ;;  %13613 = vmatprep.mubr.bf16.mxu0 %v9515_v46  ;;  %v8140_v61 = vmax.f32 %v7832_v2, 0.0  ;;  %8614 = vst [vmem:[#allocation4 + $0x80] sm:$0xff] %v8613_v39  ;;  %v9093_v31 = vrot.slane %v24789_v53, %v24696_v8  ;;  %v8649_v13 = vsel %vm26536_vm15, %v8625_v9, %v8648_v20  ;;  %v24848_v55 = vld [vmem:[#allocation5 + $0x148] sm:$0xff]  ;;  %v8755_v39 = vld [vmem:[#allocation5 + $0x38] sm:$0xff] }
 0x51c   : > { %13614 = vmatmul.mubr.bf16.vlgmr.msra.gmra.mrb[0].mxu0 %v9501_v47  ;;  %12214 = vmatmul.mubr.bf16.vlgmr.msra.gmra.mrb[128].mxu1 %v9082_v62  ;;  %v9522_v28 = vrot.slane %v9494_v37, %v24696_v8  ;;  %v17861_v59 = vcombine.low %v8787_v42, %v8915_v44  ;;  %8650 = vst [vmem:[#allocation4 + $0xa0] sm:$0xff] %v8649_v13 }
 0x51d   : > { %13653 = vmatprep.mubr.bf16.mxu0 %v9525_v24  ;;  %13622 = vmatpush1.bf16.xpose.msra.mxu0 %v17857_v14  ;;  %v17759_v35 = vpack.c.bf16 %v8140_v61, %v8139_v25  ;;  %v17792_v14 = vcombine.high %v8752_v51, %v8880_v54  ;;  %v9101_v34 = vcombine.high %v9093_v31, %v9093_v31  ;;  %v8668_v25 = vld [vmem:[#allocation4 + $0xc0] sm:$0xff]  ;;  %v8882_v24 = vld [vmem:[#allocation5 + $0x430] sm:$0x11] }
 0x51e   : > { %13661 = vmatprep.subr.bf16.mxu0 %v17860_v15  ;;  %12253 = vmatprep.mubr.bf16.mxu1 %v9081_v0  ;;  %v9508_v33 = vrot.slane %v9492_v56, %v24696_v8  ;;  %v17864_v63 = vcombine.high %v8788_v57, %v8916_v19  ;;  %v17791_v40 = vcombine.low %v8752_v51, %v8880_v54 }
 0x51f   : > { %12222 = vmatpush1.bf16.xpose.msra.mxu1 %v17787_v50  ;;  %v24834_v6 = vrot.slane %v17759_v35, %v24696_v8  ;;  %v9526_v4 = vcombine.high %v9522_v28, %v9522_v28  ;;  %v9083_v1 = vcombine.high %v9067_v5, %v9067_v5  ;;  %v17794_v45 = vcombine.high %v8753_v48, %v8881_v26  ;;  %v24850_v50 = vld [vmem:[#allocation5 + $0x548] sm:$0x11] }
 0x520   : > { %12261 = vmatprep.subr.bf16.mxu1 %v17790_v17  ;;  %v9123_v43 = vrot.slane %v9101_v34, %v24696_v8  ;;  %v8669_v2 = vsel %vm26536_vm15, %v24751_v18, %v8668_v25  ;;  %v17863_v62 = vcombine.low %v8788_v57, %v8916_v19  ;;  %v9524_v17 = vcombine.high %v9508_v33, %v9508_v33  ;;  %v24868_v57 = vld [vmem:[#allocation5 + $0x440] sm:$0x11] }
 0x521   : > { %8670 = vst [vmem:[#allocation4 + $0xc0] sm:$0xff] %v8669_v2  ;;  %v17866_v61 = vcombine.high %v24848_v55, %v24850_v50  ;;  %v17793_v0 = vcombine.low %v8753_v48, %v8881_v26  ;;  %v9109_v56 = vrot.slane %v9093_v31, %v24696_v8  ;;  %v17796_v37 = vcombine.high %v8754_v27, %v8882_v24 }
 0x522   : > { %v9133_v51 = vcombine.high %v9123_v43, %v9123_v43  ;;  %v9086_v54 = vcombine.high %v24789_v53, %v24789_v53 }
 0x528   : > { %13654 = vmatmul.mubr.bf16.vlgmr.msra.gmra.mrb[0].mxu0 %v9523_v10  ;;  %12254 = vmatmul.mubr.bf16.vlgmr.msra.gmra.mrb[128].mxu1 %v9067_v5 }
 0x529   : > { %13693 = vmatprep.mubr.bf16.mxu0 %v9522_v28  ;;  %13662 = vmatpush1.bf16.xpose.msra.mxu0 %v17859_v30  ;;  %v8681_v30 = vshrl.u32 %v24751_v18, 16 }
 0x52a   : > { %13701 = vmatprep.subr.bf16.mxu0 %v17862_v12  ;;  %12293 = vmatprep.mubr.bf16.mxu1 %v9085_v16 }
 0x52b   : > { %12262 = vmatpush1.bf16.xpose.msra.mxu1 %v17789_v11  ;;  %v7870_v52 = vpop.f32.mrb[100].mxu1  ;;  %v8705_v18 = vsel %vm26536_vm15, %v8681_v30, %v8704_v23  ;;  %v8710_v23 = vld [vmem:[#allocation4 + $0xf0] sm:$0xff] }
 0x52c   : > { %12301 = vmatprep.subr.bf16.mxu1 %v17792_v14  ;;  %v7871_v21 = vadd.f32 %v7870_v52, %v24698_v22  ;;  %v7872_v60 = vpop.f32.mrb[101].mxu1  ;;  %v9100_v14 = vrot.slane %v9086_v54, %v24696_v8  ;;  %8706 = vst [vmem:[#allocation4 + $0xe0] sm:$0xff] %v8705_v18  ;;  %v8883_v52 = vld [vmem:[#allocation5 + $0x438] sm:$0x11] }
 0x52d   : > { %v7873_v41 = vadd.f32 %v7872_v60, %v24698_v22  ;;  %v7874_v3 = vpop.f32.mrb[102].mxu1  ;;  %v9131_v60 = vcombine.high %v9109_v56, %v9109_v56  ;;  %v17798_v9 = vcombine.high %v8755_v39, %v8883_v52 }
 0x52e   : > { %v8141_v38 = vmax.f32 %v7871_v21, 0.0  ;;  %v7875_v36 = vpop.f32.mrb[103].mxu1  ;;  %v9102_v53 = vcombine.high %v9100_v14, %v9100_v14  ;;  %v17795_v21 = vcombine.low %v8754_v27, %v8882_v24  ;;  %v24885_v27 = vld [vmem:[#allocation5 + $0x48] sm:$0xff] }
 0x52f   : > { %v8142_v7 = vmax.f32 %v7873_v41, 0.0  ;;  %v24887_v24 = vld [vmem:[#allocation5 + $0x448] sm:$0x11] }
 0x530   : > { %v9130_v31 = vrot.slane %v9102_v53, %v24696_v8 }
 0x531   : > { %v17760_v49 = vpack.c.bf16 %v8142_v7, %v8141_v38  ;;  %v24866_v7 = vld [vmem:[#allocation5 + $0x40] sm:$0xff] }
 0x532   : > { %v17800_v48 = vcombine.high %v24866_v7, %v24868_v57 }
 0x533   : > { %v24838_v46 = vrot.slane %v17760_v49, %v24696_v8  ;;  %v9116_v49 = vrot.slane %v9100_v14, %v24696_v8 }
 0x534   : > { %13694 = vmatmul.mubr.bf16.vlgmr.msra.gmra.mrb[0].mxu0 %v9508_v33  ;;  %12294 = vmatmul.mubr.bf16.vlgmr.msra.gmra.mrb[128].mxu1 %v9083_v1 }
 0x535   : > { %13733 = vmatprep.mubr.bf16.mxu0 %v9526_v4  ;;  %13702 = vmatpush1.bf16.xpose.msra.mxu0 %v17861_v59  ;;  %v8349_v47 = vcombine.low %v24834_v6, %v24838_v46  ;;  %v8518_v15 = vcombine.high %v24834_v6, %v24838_v46  ;;  %v17797_v59 = vcombine.low %v8755_v39, %v8883_v52  ;;  %v24915_v52 = vld [vmem:[#allocation5 + $0x168] sm:$0xff] }
 0x536   : > { %13741 = vmatprep.subr.bf16.mxu0 %v17864_v63  ;;  %12333 = vmatprep.mubr.bf16.mxu1 %v9123_v43  ;;  %v9134_v63 = vcombine.high %v9130_v31, %v9130_v31  ;;  %v9132_v6 = vcombine.high %v9116_v49, %v9116_v49  ;;  %v17799_v46 = vcombine.low %v24866_v7, %v24868_v57 }
 0x537   : > { %12302 = vmatpush1.bf16.xpose.msra.mxu1 %v17791_v40  ;;  %v8526_v43 = vrot.slane %v8518_v15, %v24696_v8  ;;  %v17802_v15 = vcombine.high %v24885_v27, %v24887_v24 }
 0x538   : > { %12341 = vmatprep.subr.bf16.mxu1 %v17794_v45  ;;  %v8357_v45 = vrot.slane %v8349_v47, %v24696_v8 }
 0x53f   : > { %v7911_v35 = vpop.f32.mrb[104].mxu1 }
 0x540   : > { %13734 = vmatmul.mubr.bf16.vlgmr.msra.gmra.mrb[0].mxu0 %v9524_v17  ;;  %v7912_v42 = vadd.f32 %v7911_v35, %v24698_v22  ;;  %v7913_v44 = vpop.f32.mrb[105].mxu1  ;;  %12334 = vmatmul.mubr.bf16.vlgmr.msra.gmra.mrb[128].mxu1 %v9109_v56  ;;  %v8562_v17 = vld [vmem:[#allocation4 + $0x50] sm:$0xff] }
 0x541   : > { %v7914_v10 = vadd.f32 %v7913_v44, %v24698_v22  ;;  %v7915_v12 = vpop.f32.mrb[106].mxu1  ;;  %13742 = vmatpush1.bf16.xpose.msra.mxu0 %v17863_v62  ;;  %12373 = vmatprep.mubr.bf16.mxu1 %v9133_v51  ;;  %v8442_v62 = vld [vmem:[#allocation4 + $0x10] sm:$0xff] }
 0x542   : > { %v8143_v11 = vmax.f32 %v7912_v42, 0.0  ;;  %v7916_v28 = vpop.f32.mrb[107].mxu1  ;;  %13781 = vmatprep.subr.bf16.mxu0 %v17866_v61  ;;  %12342 = vmatpush1.bf16.xpose.msra.mxu1 %v17793_v0  ;;  %v8618_v56 = vld [vmem:[#allocation4 + $0x90] sm:$0xff] }
 0x543   : > { %v8144_v5 = vmax.f32 %v7914_v10, 0.0  ;;  %12381 = vmatprep.subr.bf16.mxu1 %v17796_v37  ;;  %v8674_v37 = vld [vmem:[#allocation4 + $0xd0] sm:$0xff] }
 0x544   : > { %v8478_v42 = vld [vmem:[#allocation4 + $0x30] sm:$0xff] }
 0x545   : > { %v17761_v16 = vpack.c.bf16 %v8144_v5, %v8143_v11  ;;  %v8598_v44 = vld [vmem:[#allocation4 + $0x70] sm:$0xff] }
 0x546   : > { %v8654_v12 = vld [vmem:[#allocation4 + $0xb0] sm:$0xff] }
 0x547   : > { %v8341_v26 = vrot.slane %v17761_v16, %v24696_v8 }
 0x54c   : > { %12374 = vmatmul.mubr.bf16.vlgmr.msra.gmra.mrb[128].mxu1 %v9131_v60 }
 0x54d   : > { %12413 = vmatprep.mubr.bf16.mxu1 %v9130_v31  ;;  %12382 = vmatpush1.bf16.xpose.msra.mxu1 %v17795_v21  ;;  %v24917_v21 = vld [vmem:[#allocation5 + $0x568] sm:$0x11] }
 0x54e   : > { %12421 = vmatprep.subr.bf16.mxu1 %v17798_v9 }
 0x553   : > { %v7952_v41 = vpop.f32.mrb[108].mxu1 }
 0x554   : > { %v7953_v3 = vadd.f32 %v7952_v41, %v24698_v22  ;;  %v7954_v20 = vpop.f32.mrb[109].mxu1 }
 0x555   : > { %v7955_v38 = vadd.f32 %v7954_v20, %v24698_v22  ;;  %v7956_v36 = vpop.f32.mrb[110].mxu1  ;;  %v8918_v20 = vld [vmem:[#allocation5 + $0x550] sm:$0x11] }
 0x556   : > { %v8145_v19 = vmax.f32 %v7953_v3, 0.0  ;;  %v7957_v13 = vpop.f32.mrb[111].mxu1  ;;  %v8790_v3 = vld [vmem:[#allocation5 + $0x150] sm:$0xff]  ;;  %v17873_v36 = vcombine.low %v24915_v52, %v24917_v21 }
 0x557   : > { %v8146_v34 = vmax.f32 %v7955_v38, 0.0 }
 0x558   : > { %12414 = vmatmul.mubr.bf16.vlgmr.msra.gmra.mrb[128].mxu1 %v9116_v49 }
 0x559   : > { %v17762_v33 = vpack.c.bf16 %v8146_v34, %v8145_v19  ;;  %12453 = vmatprep.mubr.bf16.mxu1 %v9134_v63  ;;  %12422 = vmatpush1.bf16.xpose.msra.mxu1 %v17797_v59  ;;  %v17865_v34 = vcombine.low %v24848_v55, %v24850_v50  ;;  %v24936_v63 = vld [vmem:[#allocation5 + $0x468] sm:$0x11]  ;;  %v8758_v55 = vld [vmem:[#allocation5 + $0x50] sm:$0xff] }
 0x55a   : > { %12461 = vmatprep.subr.bf16.mxu1 %v17800_v48  ;;  %v17868_v48 = vcombine.high %v8790_v3, %v8918_v20  ;;  %v8886_v50 = vld [vmem:[#allocation5 + $0x450] sm:$0x11] }
 0x55b   : > { %v8348_v40 = vrot.slane %v17762_v33, %v24696_v8  ;;  %v24934_v33 = vld [vmem:[#allocation5 + $0x68] sm:$0xff] }
 0x55d   : > { %v8350_v4 = vcombine.low %v8341_v26, %v8348_v40  ;;  %v8519_v1 = vcombine.high %v8341_v26, %v8348_v40 }
 0x55f   : > { %v8364_v25 = vrot.slane %v8350_v4, %v24696_v8  ;;  %v8533_v2 = vrot.slane %v8519_v1, %v24696_v8 }
 0x561   : > { %v8365_v61 = vcombine.low %v8357_v45, %v8364_v25  ;;  %v8534_v0 = vcombine.low %v8526_v43, %v8533_v2  ;;  %v8606_v35 = vcombine.high %v8357_v45, %v8364_v25  ;;  %v8662_v47 = vcombine.high %v8526_v43, %v8533_v2 }
 0x562   : > { %v17809_v25 = vcombine.low %v24934_v33, %v24936_v63 }
 0x563   : > { %v24895_v30 = vsel %vm26536_vm15, %v8365_v61, %v8442_v62  ;;  %v8459_v51 = vshrl.u32 %v8365_v61, 16  ;;  %v8563_v54 = vsel %vm26536_vm15, %v8534_v0, %v8562_v17  ;;  %v8579_v10 = vshrl.u32 %v8534_v0, 16 }
 0x564   : > { %8444 = vst [vmem:[#allocation4 + $0x10] sm:$0xff] %v24895_v30  ;;  %8564 = vst [vmem:[#allocation4 + $0x50] sm:$0xff] %v8563_v54  ;;  %v8619_v11 = vsel %vm26536_vm15, %v8606_v35, %v8618_v56  ;;  %v8635_v28 = vshrl.u32 %v8606_v35, 16  ;;  %v8675_v5 = vsel %vm26536_vm15, %v8662_v47, %v8674_v37  ;;  %v8691_v18 = vshrl.u32 %v8662_v47, 16  ;;  %12454 = vmatmul.mubr.bf16.vlgmr.msra.gmra.mrb[128].mxu1 %v9132_v6  ;;  %v8791_v37 = vld [vmem:[#allocation5 + $0x158] sm:$0xff] }
 0x565   : > { %v24906_v14 = vsel %vm26536_vm15, %v8459_v51, %v8478_v42  ;;  %v24910_v16 = vsel %vm26536_vm15, %v8579_v10, %v8598_v44  ;;  %8620 = vst [vmem:[#allocation4 + $0x90] sm:$0xff] %v8619_v11  ;;  %8676 = vst [vmem:[#allocation4 + $0xd0] sm:$0xff] %v8675_v5  ;;  %v9142_v53 = vrot.slane %v24895_v30, %v24696_v8  ;;  %12462 = vmatpush1.bf16.xpose.msra.mxu1 %v17799_v46  ;;  %v8919_v42 = vld [vmem:[#allocation5 + $0x558] sm:$0x11]  ;;  %v8792_v11 = vld [vmem:[#allocation5 + $0x160] sm:$0xff] }
 0x566   : > { %v9534_v39 = vrot.slane %v8563_v54, %v24696_v8  ;;  %8480 = vst [vmem:[#allocation4 + $0x30] sm:$0xff] %v24906_v14  ;;  %8600 = vst [vmem:[#allocation4 + $0x70] sm:$0xff] %v24910_v16  ;;  %v8655_v60 = vsel %vm26536_vm15, %v8635_v28, %v8654_v12  ;;  %v8711_v9 = vsel %vm26536_vm15, %v8691_v18, %v8710_v23  ;;  %12501 = vmatprep.subr.bf16.mxu1 %v17802_v15  ;;  %v8759_v51 = vld [vmem:[#allocation5 + $0x58] sm:$0xff]  ;;  %v8920_v28 = vld [vmem:[#allocation5 + $0x560] sm:$0x11] }
 0x567   : > { %8656 = vst [vmem:[#allocation4 + $0xb0] sm:$0xff] %v8655_v60  ;;  %8712 = vst [vmem:[#allocation4 + $0xf0] sm:$0xff] %v8711_v9  ;;  %v9150_v31 = vcombine.high %v9142_v53, %v9142_v53  ;;  %v7993_v38 = vpop.f32.mrb[112].mxu1  ;;  %v9527_v1 = vcombine.high %v8563_v54, %v8563_v54  ;;  %v17801_v62 = vcombine.low %v24885_v27, %v24887_v24  ;;  %v8760_v60 = vld [vmem:[#allocation5 + $0x60] sm:$0xff] }
 0x568   : > { %v9542_v41 = vcombine.high %v9534_v39, %v9534_v39  ;;  %v7994_v7 = vadd.f32 %v7993_v38, %v24698_v22  ;;  %v7995_v57 = vpop.f32.mrb[113].mxu1  ;;  %v9550_v49 = vrot.slane %v9534_v39, %v24696_v8  ;;  %v9158_v61 = vrot.slane %v9142_v53, %v24696_v8  ;;  %v8888_v9 = vld [vmem:[#allocation5 + $0x460] sm:$0x11] }
 0x569   : > { %v9172_v19 = vrot.slane %v9150_v31, %v24696_v8  ;;  %v7996_v59 = vadd.f32 %v7995_v57, %v24698_v22  ;;  %v7997_v26 = vpop.f32.mrb[114].mxu1  ;;  %v9541_v17 = vrot.slane %v9527_v1, %v24696_v8  ;;  %v17804_v0 = vcombine.high %v8758_v55, %v8886_v50 }
 0x56a   : > { %v9564_v13 = vrot.slane %v9542_v41, %v24696_v8  ;;  %v8147_v40 = vmax.f32 %v7994_v7, 0.0  ;;  %v7998_v45 = vpop.f32.mrb[115].mxu1  ;;  %v9135_v56 = vcombine.high %v24895_v30, %v24895_v30  ;;  %v17867_v6 = vcombine.low %v8790_v3, %v8918_v20  ;;  %v8887_v30 = vld [vmem:[#allocation5 + $0x458] sm:$0x11] }
 0x56b   : > { %12493 = vmatprep.mubr.bf16.mxu1 %v9172_v19  ;;  %v8148_v43 = vmax.f32 %v7996_v59, 0.0  ;;  %v9182_v35 = vcombine.high %v9172_v19, %v9172_v19  ;;  %v9543_v47 = vcombine.high %v9541_v17, %v9541_v17  ;;  %v9572_v27 = vcombine.high %v9550_v49, %v9550_v49 }
 0x56c   : > { %13773 = vmatprep.mubr.bf16.mxu0 %v9564_v13  ;;  %v9574_v4 = vcombine.high %v9564_v13, %v9564_v13  ;;  %v9149_v44 = vrot.slane %v9135_v56, %v24696_v8  ;;  %v17870_v24 = vcombine.high %v8791_v37, %v8919_v42  ;;  %v17803_v54 = vcombine.low %v8758_v55, %v8886_v50 }
 0x56d   : > { %13774 = vmatmul.mubr.bf16.vlgmr.msra.gmra.mrb[0].mxu0 %v9550_v49  ;;  %v24940_v2 = vpack.c.bf16 %v8148_v43, %v8147_v40  ;;  %v9571_v46 = vrot.slane %v9543_v47, %v24696_v8  ;;  %v9180_v10 = vcombine.high %v9158_v61, %v9158_v61  ;;  %v17806_v12 = vcombine.high %v8759_v51, %v8887_v30 }
 0x56e   : > { %13813 = vmatprep.mubr.bf16.mxu0 %v9574_v4  ;;  %13782 = vmatpush1.bf16.xpose.msra.mxu0 %v17865_v34  ;;  %v9151_v15 = vcombine.high %v9149_v44, %v9149_v44  ;;  %v17869_v5 = vcombine.low %v8791_v37, %v8919_v42  ;;  %v9557_v18 = vrot.slane %v9541_v17, %v24696_v8 }
 0x56f   : > { %13821 = vmatprep.subr.bf16.mxu0 %v17868_v48  ;;  %v17872_v53 = vcombine.high %v8792_v11, %v8920_v28  ;;  %v9575_v39 = vcombine.high %v9571_v46, %v9571_v46  ;;  %v17805_v31 = vcombine.low %v8759_v51, %v8887_v30  ;;  %v9165_v41 = vrot.slane %v9149_v44, %v24696_v8 }
 0x570   : > { %12494 = vmatmul.mubr.bf16.vlgmr.msra.gmra.mrb[128].mxu1 %v9158_v61  ;;  %v9179_v23 = vrot.slane %v9151_v15, %v24696_v8  ;;  %v17808_v3 = vcombine.high %v8760_v60, %v8888_v9  ;;  %v17871_v38 = vcombine.low %v8792_v11, %v8920_v28  ;;  %v9573_v7 = vcombine.high %v9557_v18, %v9557_v18 }
 0x571   : > { %12533 = vmatprep.mubr.bf16.mxu1 %v9182_v35  ;;  %12502 = vmatpush1.bf16.xpose.msra.mxu1 %v17801_v62  ;;  %v17874_v57 = vcombine.high %v24915_v52, %v24917_v21  ;;  %v17807_v19 = vcombine.low %v8760_v60, %v8888_v9  ;;  %v9181_v13 = vcombine.high %v9165_v41, %v9165_v41  ;;  %v8565_v60 = vld [vmem:[#allocation4 + $0x58] sm:$0xff] }
 0x572   : > { %12541 = vmatprep.subr.bf16.mxu1 %v17804_v0  ;;  %v9183_v20 = vcombine.high %v9179_v23, %v9179_v23  ;;  %v17810_v34 = vcombine.high %v24934_v33, %v24936_v63  ;;  %v8376_v55 = vrot.slane %v24940_v2, %v24696_v8 }
 0x579   : > { %13814 = vmatmul.mubr.bf16.vlgmr.msra.gmra.mrb[0].mxu0 %v9572_v27 }
 0x57a   : > { %13853 = vmatprep.mubr.bf16.mxu0 %v9571_v46  ;;  %13822 = vmatpush1.bf16.xpose.msra.mxu0 %v17867_v6 }
 0x57b   : > { %13861 = vmatprep.subr.bf16.mxu0 %v17870_v24 }
 0x57c   : > { %12534 = vmatmul.mubr.bf16.vlgmr.msra.gmra.mrb[128].mxu1 %v9180_v10 }
 0x57d   : > { %12573 = vmatprep.mubr.bf16.mxu1 %v9179_v23  ;;  %12542 = vmatpush1.bf16.xpose.msra.mxu1 %v17803_v54 }
 0x57e   : > { %12581 = vmatprep.subr.bf16.mxu1 %v17806_v12 }
 0x585   : > { %13854 = vmatmul.mubr.bf16.vlgmr.msra.gmra.mrb[0].mxu0 %v9557_v18 }
 0x586   : > { %13893 = vmatprep.mubr.bf16.mxu0 %v9575_v39  ;;  %13862 = vmatpush1.bf16.xpose.msra.mxu0 %v17869_v5 }
 0x587   : > { %13901 = vmatprep.subr.bf16.mxu0 %v17872_v53 }
 0x588   : > { %12574 = vmatmul.mubr.bf16.vlgmr.msra.gmra.mrb[128].mxu1 %v9165_v41 }
 0x589   : > { %12613 = vmatprep.mubr.bf16.mxu1 %v9183_v20  ;;  %12582 = vmatpush1.bf16.xpose.msra.mxu1 %v17805_v31 }
 0x58a   : > { %12621 = vmatprep.subr.bf16.mxu1 %v17808_v3  ;;  %v8621_v3 = vld [vmem:[#allocation4 + $0x98] sm:$0xff] }
 0x591   : > { %13894 = vmatmul.mubr.bf16.vlgmr.msra.gmra.mrb[0].mxu0 %v9573_v7  ;;  %v8481_v7 = vld [vmem:[#allocation4 + $0x38] sm:$0xff] }
 0x592   : > { %13902 = vmatpush1.bf16.xpose.msra.mxu0 %v17871_v38  ;;  %v8677_v38 = vld [vmem:[#allocation4 + $0xd8] sm:$0xff] }
 0x593   : > { %13941 = vmatprep.subr.bf16.mxu0 %v17874_v57  ;;  %v8601_v57 = vld [vmem:[#allocation4 + $0x78] sm:$0xff] }
 0x594   : > { %12614 = vmatmul.mubr.bf16.vlgmr.msra.gmra.mrb[128].mxu1 %v9181_v13 }
 0x595   : > { %12622 = vmatpush1.bf16.xpose.msra.mxu1 %v17807_v19 }
 0x596   : > { %12661 = vmatprep.subr.bf16.mxu1 %v17810_v34 }
 0x5a0   : > { %v8034_v59 = vpop.f32.mrb[116].mxu1 }
 0x5a1   : > { %v8035_v49 = vadd.f32 %v8034_v59, %v24698_v22  ;;  %v8036_v48 = vpop.f32.mrb[117].mxu1 }
 0x5a2   : > { %v8037_v26 = vadd.f32 %v8036_v48, %v24698_v22  ;;  %v8038_v40 = vpop.f32.mrb[118].mxu1  ;;  %v8713_v48 = vld [vmem:[#allocation4 + $0xf8] sm:$0xff] }
 0x5a3   : > { %v8149_v4 = vmax.f32 %v8035_v49, 0.0  ;;  %v8039_v1 = vpop.f32.mrb[119].mxu1  ;;  %v8657_v49 = vld [vmem:[#allocation4 + $0xb8] sm:$0xff] }
 0x5a4   : > { %v8150_v45 = vmax.f32 %v8037_v26, 0.0 }
 0x5a6   : > { %v17764_v43 = vpack.c.bf16 %v8150_v45, %v8149_v4 }
 0x5a8   : > { %v8383_v50 = vrot.slane %v17764_v43, %v24696_v8 }
 0x5aa   : > { %v8398_v62 = vcombine.low %v8376_v55, %v8383_v50  ;;  %v8535_v17 = vcombine.high %v8376_v55, %v8383_v50 }
 0x5ac   : > { %v8406_v5 = vrot.slane %v8398_v62, %v24696_v8  ;;  %v8543_v18 = vrot.slane %v8535_v17, %v24696_v8 }
 0x5b4   : > { %v8075_v61 = vpop.f32.mrb[120].mxu1 }
 0x5b5   : > { %v8076_v0 = vadd.f32 %v8075_v61, %v24698_v22  ;;  %v8077_v35 = vpop.f32.mrb[121].mxu1  ;;  %v8794_v61 = vld [vmem:[#allocation5 + $0x170] sm:$0xff] }
 0x5b6   : > { %v8078_v56 = vadd.f32 %v8077_v35, %v24698_v22  ;;  %v8079_v47 = vpop.f32.mrb[122].mxu1 }
 0x5b7   : > { %v8151_v37 = vmax.f32 %v8076_v0, 0.0  ;;  %v8080_v42 = vpop.f32.mrb[123].mxu1  ;;  %v8762_v47 = vld [vmem:[#allocation5 + $0x70] sm:$0xff] }
 0x5b8   : > { %v8152_v44 = vmax.f32 %v8078_v56, 0.0  ;;  %v8922_v56 = vld [vmem:[#allocation5 + $0x570] sm:$0x11] }
 0x5ba   : > { %v17765_v6 = vpack.c.bf16 %v8152_v44, %v8151_v37  ;;  %v8890_v37 = vld [vmem:[#allocation5 + $0x470] sm:$0x11] }
 0x5bc   : > { %v8390_v12 = vrot.slane %v17765_v6, %v24696_v8 }
 0x5c8   : > { %v8116_v27 = vpop.f32.mrb[124].mxu1 }
 0x5c9   : > { %v8117_v24 = vadd.f32 %v8116_v27, %v24698_v22  ;;  %v8118_v46 = vpop.f32.mrb[125].mxu1 }
 0x5ca   : > { %v8119_v2 = vadd.f32 %v8118_v46, %v24698_v22  ;;  %v8120_v15 = vpop.f32.mrb[126].mxu1  ;;  %v8445_v22 = vld [vmem:[#allocation4 + $0x18] sm:$0xff]  ;;  %v17812_v46 = vcombine.high %v8762_v47, %v8890_v37 }
 0x5cb   : > { %v8153_v51 = vmax.f32 %v8117_v24, 0.0  ;;  %v8121_v30 = vpop.f32.mrb[127].mxu1  ;;  %v17876_v24 = vcombine.high %v8794_v61, %v8922_v56 }
 0x5cc   : > { %v8154_v54 = vmax.f32 %v8119_v2, 0.0 }
 0x5ce   : > { %v17766_v10 = vpack.c.bf16 %v8154_v54, %v8153_v51 }
 0x5d0   : > { %v8397_v23 = vrot.slane %v17766_v10, %v24696_v8 }
 0x5d2   : > { %v8399_v11 = vcombine.low %v8390_v12, %v8397_v23  ;;  %v8536_v28 = vcombine.high %v8390_v12, %v8397_v23  ;;  %v8795_v12 = vld [vmem:[#allocation5 + $0x178] sm:$0xff] }
 0x5d4   : > { %v8413_v53 = vrot.slane %v8399_v11, %v24696_v8  ;;  %v8550_v39 = vrot.slane %v8536_v28, %v24696_v8  ;;  %v8923_v11 = vld [vmem:[#allocation5 + $0x578] sm:$0x11] }
 0x5d5   : > { %v8763_v28 = vld [vmem:[#allocation5 + $0x78] sm:$0xff]  ;;  %v17878_v33 = vcombine.high %v8795_v12, %v8923_v11 }
 0x5d6   : > { %v8414_v9 = vcombine.low %v8406_v5, %v8413_v53  ;;  %v8551_v31 = vcombine.low %v8543_v18, %v8550_v39  ;;  %v8607_v41 = vcombine.high %v8406_v5, %v8413_v53  ;;  %v8663_v20 = vcombine.high %v8543_v18, %v8550_v39  ;;  %v8891_v5 = vld [vmem:[#allocation5 + $0x478] sm:$0x11]  ;;  %v8796_v39 = vld [vmem:[#allocation5 + $0x180] sm:$0xff] }
 0x5d7   : > { %v17875_v18 = vcombine.low %v8794_v61, %v8922_v56  ;;  %v17814_v63 = vcombine.high %v8763_v28, %v8891_v5  ;;  %v8766_v56 = vld [vmem:[#allocation5 + $0x90] sm:$0xff] }
 0x5d8   : > { %v8446_v19 = vsel %vm26536_vm15, %v8414_v9, %v8445_v22  ;;  %v8464_v13 = vshrl.u32 %v8414_v9, 16  ;;  %v8566_v34 = vsel %vm26536_vm15, %v8551_v31, %v8565_v60  ;;  %v8584_v59 = vshrl.u32 %v8551_v31, 16  ;;  %v8924_v22 = vld [vmem:[#allocation5 + $0x580] sm:$0x11] }
 0x5d9   : > { %8447 = vst [vmem:[#allocation4 + $0x18] sm:$0xff] %v8446_v19  ;;  %8567 = vst [vmem:[#allocation4 + $0x58] sm:$0xff] %v8566_v34  ;;  %v8622_v26 = vsel %vm26536_vm15, %v8607_v41, %v8621_v3  ;;  %v8640_v40 = vshrl.u32 %v8607_v41, 16  ;;  %v8678_v4 = vsel %vm26536_vm15, %v8663_v20, %v8677_v38  ;;  %v8696_v1 = vshrl.u32 %v8663_v20, 16  ;;  %v8764_v60 = vld [vmem:[#allocation5 + $0x80] sm:$0xff] }
 0x5da   : > { %v24982_v45 = vsel %vm26536_vm15, %v8464_v13, %v8481_v7  ;;  %v24986_v43 = vsel %vm26536_vm15, %v8584_v59, %v8601_v57  ;;  %8623 = vst [vmem:[#allocation4 + $0x98] sm:$0xff] %v8622_v26  ;;  %8679 = vst [vmem:[#allocation4 + $0xd8] sm:$0xff] %v8678_v4  ;;  %v9191_v55 = vrot.slane %v8446_v19, %v24696_v8  ;;  %v8892_v9 = vld [vmem:[#allocation5 + $0x480] sm:$0x11]  ;;  %v8925_v26 = vld [vmem:[#allocation5 + $0x588] sm:$0x11] }
 0x5db   : > { %v9583_v50 = vrot.slane %v8566_v34, %v24696_v8  ;;  %8483 = vst [vmem:[#allocation4 + $0x38] sm:$0xff] %v24982_v45  ;;  %8603 = vst [vmem:[#allocation4 + $0x78] sm:$0xff] %v24986_v43  ;;  %v8658_v62 = vsel %vm26536_vm15, %v8640_v40, %v8657_v49  ;;  %v8714_v17 = vsel %vm26536_vm15, %v8696_v1, %v8713_v48  ;;  %v8797_v49 = vld [vmem:[#allocation5 + $0x188] sm:$0xff] }
 0x5dc   : > { %8659 = vst [vmem:[#allocation4 + $0xb8] sm:$0xff] %v8658_v62  ;;  %8715 = vst [vmem:[#allocation4 + $0xf8] sm:$0xff] %v8714_v17  ;;  %v9199_v0 = vcombine.high %v9191_v55, %v9191_v55  ;;  %v9207_v6 = vrot.slane %v9191_v55, %v24696_v8  ;;  %v9184_v15 = vcombine.high %v8446_v19, %v8446_v19  ;;  %v8765_v40 = vld [vmem:[#allocation5 + $0x88] sm:$0xff] }
 0x5dd   : > { %v9591_v35 = vcombine.high %v9583_v50, %v9583_v50  ;;  %v9599_v27 = vrot.slane %v9583_v50, %v24696_v8  ;;  %v9576_v51 = vcombine.high %v8566_v34, %v8566_v34  ;;  %v17877_v31 = vcombine.low %v8795_v12, %v8923_v11  ;;  %v8893_v4 = vld [vmem:[#allocation5 + $0x488] sm:$0x11] }
 0x5de   : > { %v9221_v42 = vrot.slane %v9199_v0, %v24696_v8  ;;  %v9198_v30 = vrot.slane %v9184_v15, %v24696_v8  ;;  %v9229_v52 = vcombine.high %v9207_v6, %v9207_v6  ;;  %v17813_v20 = vcombine.low %v8763_v28, %v8891_v5  ;;  %v8927_v28 = vld [vmem:[#allocation5 + $0x598] sm:$0x11] }
 0x5df   : > { %v9613_v44 = vrot.slane %v9591_v35, %v24696_v8  ;;  %v9590_v54 = vrot.slane %v9576_v51, %v24696_v8  ;;  %v9621_v21 = vcombine.high %v9599_v27, %v9599_v27  ;;  %v17880_v7 = vcombine.high %v8796_v39, %v8924_v22  ;;  %v8926_v35 = vld [vmem:[#allocation5 + $0x590] sm:$0x11]  ;;  %v18750_v51 = vld [vmem:[#allocation4 + $0x60] sm:$0xff]  ;;  %v8767_v5 = vld [vmem:[#allocation5 + $0x98] sm:$0xff] }
 0x5e0   : > { %12653 = vmatprep.mubr.bf16.mxu1 %v9221_v42  ;;  %v9231_v32 = vcombine.high %v9221_v42, %v9221_v42  ;;  %v9200_v10 = vcombine.high %v9198_v30, %v9198_v30  ;;  %v9214_v41 = vrot.slane %v9198_v30, %v24696_v8  ;;  %v17816_v57 = vcombine.high %v8764_v60, %v8892_v9 }
 0x5e1   : > { %13933 = vmatprep.mubr.bf16.mxu0 %v9613_v44  ;;  %v9623_v2 = vcombine.high %v9613_v44, %v9613_v44  ;;  %12654 = vmatmul.mubr.bf16.vlgmr.msra.gmra.mrb[128].mxu1 %v9207_v6  ;;  %v9592_v23 = vcombine.high %v9590_v54, %v9590_v54  ;;  %v9606_v3 = vrot.slane %v9590_v54, %v24696_v8 }
 0x5e2   : > { %13934 = vmatmul.mubr.bf16.vlgmr.msra.gmra.mrb[0].mxu0 %v9599_v27  ;;  %12693 = vmatprep.mubr.bf16.mxu1 %v9231_v32  ;;  %v9228_v53 = vrot.slane %v9200_v10, %v24696_v8  ;;  %v9240_v13 = vrot.slane %v24762_v29, %v24696_v8  ;;  %v9632_v34 = vrot.slane %v24766_v58, %v24696_v8  ;;  %v8798_v58 = vld [vmem:[#allocation5 + $0x190] sm:$0xff] }
 0x5e3   : > { %13942 = vmatpush1.bf16.xpose.msra.mxu0 %v17873_v36  ;;  %13973 = vmatprep.mubr.bf16.mxu0 %v9623_v2  ;;  %v17811_v36 = vcombine.low %v8762_v47, %v8890_v37  ;;  %v17879_v1 = vcombine.low %v8796_v39, %v8924_v22  ;;  %v9230_v55 = vcombine.high %v9214_v41, %v9214_v41  ;;  %v8894_v47 = vld [vmem:[#allocation5 + $0x490] sm:$0x11]  ;;  %v8800_v22 = vld [vmem:[#allocation5 + $0x1a0] sm:$0xff] }
 0x5e4   : > { %12662 = vmatpush1.bf16.xpose.msra.mxu1 %v17809_v25  ;;  %13981 = vmatprep.subr.bf16.mxu0 %v17876_v24  ;;  %v9620_v25 = vrot.slane %v9592_v23, %v24696_v8  ;;  %v9232_v38 = vcombine.high %v9228_v53, %v9228_v53  ;;  %v9248_v59 = vcombine.high %v9240_v13, %v9240_v13  ;;  %v8799_v23 = vld [vmem:[#allocation5 + $0x198] sm:$0xff] }
 0x5e5   : > { %12701 = vmatprep.subr.bf16.mxu1 %v17812_v46  ;;  %v9640_v48 = vcombine.high %v9632_v34, %v9632_v34  ;;  %v9622_v50 = vcombine.high %v9606_v3, %v9606_v3  ;;  %v17815_v62 = vcombine.low %v8764_v60, %v8892_v9  ;;  %v17882_v61 = vcombine.high %v8797_v49, %v8925_v26  ;;  %v18749_v46 = vld [vmem:[#allocation4 + $0x20] sm:$0xff] }
 0x5e6   : > { %v9624_v19 = vcombine.high %v9620_v25, %v9620_v25  ;;  %v9270_v17 = vrot.slane %v9248_v59, %v24696_v8  ;;  %v17818_v0 = vcombine.high %v8765_v40, %v8893_v4  ;;  %v17881_v37 = vcombine.low %v8797_v49, %v8925_v26  ;;  %v8928_v60 = vld [vmem:[#allocation5 + $0x5a0] sm:$0x11]  ;;  %v8729_v59 = vld [vmem:[#allocation4 + $0x68] sm:$0xff] }
 0x5e7   : > { %v9662_v29 = vrot.slane %v9640_v48, %v24696_v8  ;;  %v9256_v42 = vrot.slane %v9240_v13, %v24696_v8  ;;  %v9648_v44 = vrot.slane %v9632_v34, %v24696_v8  ;;  %v17817_v6 = vcombine.low %v8765_v40, %v8893_v4  ;;  %v8768_v9 = vld [vmem:[#allocation5 + $0xa0] sm:$0xff]  ;;  %v8721_v34 = vld [vmem:[#allocation4 + $0x28] sm:$0xff] }
 0x5e8   : > { %v9280_v27 = vcombine.high %v9270_v17, %v9270_v17  ;;  %v17884_v24 = vcombine.high %v8798_v58, %v8926_v35  ;;  %v9233_v32 = vcombine.high %v18749_v46, %v18749_v46  ;;  %v17820_v2 = vcombine.high %v8766_v56, %v8894_v47  ;;  %v8801_v40 = vld [vmem:[#allocation5 + $0x1a8] sm:$0xff] }
 0x5e9   : > { %v9672_v15 = vcombine.high %v9662_v29, %v9662_v29  ;;  %v9625_v30 = vcombine.high %v18750_v51, %v18750_v51  ;;  %v9289_v49 = vrot.slane %v8721_v34, %v24696_v8  ;;  %v9681_v48 = vrot.slane %v8729_v59, %v24696_v8 }
 0x5ea   : > { %v9247_v54 = vrot.slane %v9233_v32, %v24696_v8 }
 0x5eb   : > { %v9639_v10 = vrot.slane %v9625_v30, %v24696_v8  ;;  %v9297_v26 = vcombine.high %v9289_v49, %v9289_v49  ;;  %v9689_v4 = vcombine.high %v9681_v48, %v9681_v48 }
 0x5ec   : > { %v9249_v12 = vcombine.high %v9247_v54, %v9247_v54 }
 0x5ed   : > { %12694 = vmatmul.mubr.bf16.vlgmr.msra.gmra.mrb[128].mxu1 %v9229_v52  ;;  %v9641_v11 = vcombine.high %v9639_v10, %v9639_v10  ;;  %v17883_v52 = vcombine.low %v8798_v58, %v8926_v35 }
 0x5ee   : > { %13974 = vmatmul.mubr.bf16.vlgmr.msra.gmra.mrb[0].mxu0 %v9621_v21  ;;  %12733 = vmatprep.mubr.bf16.mxu1 %v9228_v53  ;;  %v9278_v21 = vcombine.high %v9256_v42, %v9256_v42  ;;  %v17819_v53 = vcombine.low %v8766_v56, %v8894_v47  ;;  %v9711_v56 = vrot.slane %v9689_v4, %v24696_v8  ;;  %v8802_v47 = vld [vmem:[#allocation5 + $0x1b0] sm:$0xff]  ;;  %v8933_v4 = vld [vmem:[#allocation5 + $0x5c8] sm:$0x11] }
 0x5ef   : > { %13982 = vmatpush1.bf16.xpose.msra.mxu0 %v17875_v18  ;;  %14013 = vmatprep.mubr.bf16.mxu0 %v9620_v25  ;;  %v8895_v18 = vld [vmem:[#allocation5 + $0x498] sm:$0x11]  ;;  %v9669_v39 = vrot.slane %v9641_v11, %v24696_v8 }
 0x5f0   : > { %12702 = vmatpush1.bf16.xpose.msra.mxu1 %v17811_v36  ;;  %14021 = vmatprep.subr.bf16.mxu0 %v17878_v33  ;;  %v9670_v36 = vcombine.high %v9648_v44, %v9648_v44  ;;  %v9277_v33 = vrot.slane %v9249_v12, %v24696_v8  ;;  %v17822_v25 = vcombine.high %v8767_v5, %v8895_v18  ;;  %v8803_v11 = vld [vmem:[#allocation5 + $0x1b8] sm:$0xff] }
 0x5f1   : > { %12741 = vmatprep.subr.bf16.mxu1 %v17814_v63  ;;  %v17886_v63 = vcombine.high %v8799_v23, %v8927_v28  ;;  %v9673_v13 = vcombine.high %v9669_v39, %v9669_v39  ;;  %v9721_v30 = vcombine.high %v9711_v56, %v9711_v56 }
 0x5f9   : > { %12734 = vmatmul.mubr.bf16.vlgmr.msra.gmra.mrb[128].mxu1 %v9214_v41  ;;  %v17885_v41 = vcombine.low %v8799_v23, %v8927_v28 }
 0x5fa   : > { %14014 = vmatmul.mubr.bf16.vlgmr.msra.gmra.mrb[0].mxu0 %v9606_v3  ;;  %12773 = vmatprep.mubr.bf16.mxu1 %v9232_v38  ;;  %v9263_v3 = vrot.slane %v9247_v54, %v24696_v8  ;;  %v17821_v38 = vcombine.low %v8767_v5, %v8895_v18  ;;  %v9674_v54 = vcombine.high %v8729_v59, %v8729_v59  ;;  %v8931_v5 = vld [vmem:[#allocation5 + $0x5b8] sm:$0x11] }
 0x5fb   : > { %14022 = vmatpush1.bf16.xpose.msra.mxu0 %v17877_v31  ;;  %14053 = vmatprep.mubr.bf16.mxu0 %v9624_v19  ;;  %v8896_v31 = vld [vmem:[#allocation5 + $0x4a0] sm:$0x11]  ;;  %v8771_v18 = vld [vmem:[#allocation5 + $0xb8] sm:$0xff]  ;;  %v9338_v59 = vrot.slane %v24906_v14, %v24696_v8 }
 0x5fc   : > { %12742 = vmatpush1.bf16.xpose.msra.mxu1 %v17813_v20  ;;  %14061 = vmatprep.subr.bf16.mxu0 %v17880_v7  ;;  %v9655_v20 = vrot.slane %v9639_v10, %v24696_v8  ;;  %v9281_v7 = vcombine.high %v9277_v33, %v9277_v33  ;;  %v17824_v19 = vcombine.high %v8768_v9, %v8896_v31 }
 0x5fd   : > { %12781 = vmatprep.subr.bf16.mxu1 %v17816_v57  ;;  %v17888_v57 = vcombine.high %v8800_v22, %v8928_v60  ;;  %v9688_v12 = vrot.slane %v9674_v54, %v24696_v8 }
 0x5ff   : > { %v9690_v28 = vcombine.high %v9688_v12, %v9688_v12 }
 0x605   : > { %12774 = vmatmul.mubr.bf16.vlgmr.msra.gmra.mrb[128].mxu1 %v9230_v55  ;;  %v8769_v55 = vld [vmem:[#allocation5 + $0xa8] sm:$0xff] }
 0x606   : > { %14054 = vmatmul.mubr.bf16.vlgmr.msra.gmra.mrb[0].mxu0 %v9622_v50  ;;  %12813 = vmatprep.mubr.bf16.mxu1 %v9270_v17  ;;  %v8897_v50 = vld [vmem:[#allocation5 + $0x4a8] sm:$0x11]  ;;  %v9279_v17 = vcombine.high %v9263_v3, %v9263_v3 }
 0x607   : > { %14062 = vmatpush1.bf16.xpose.msra.mxu0 %v17879_v1  ;;  %14093 = vmatprep.mubr.bf16.mxu0 %v9662_v29  ;;  %v8929_v1 = vld [vmem:[#allocation5 + $0x5a8] sm:$0x11]  ;;  %v9319_v29 = vrot.slane %v9297_v26, %v24696_v8  ;;  %v17826_v35 = vcombine.high %v8769_v55, %v8897_v50  ;;  %v17825_v46 = vcombine.low %v8769_v55, %v8897_v50 }
 0x608   : > { %12782 = vmatpush1.bf16.xpose.msra.mxu1 %v17815_v62  ;;  %14101 = vmatprep.subr.bf16.mxu0 %v17882_v61  ;;  %v17887_v62 = vcombine.low %v8800_v22, %v8928_v60  ;;  %v9671_v61 = vcombine.high %v9655_v20, %v9655_v20  ;;  %v17890_v58 = vcombine.high %v8801_v40, %v8929_v1  ;;  %v8804_v60 = vld [vmem:[#allocation5 + $0x1c0] sm:$0xff]  ;;  %v8805_v26 = vld [vmem:[#allocation5 + $0x1c8] sm:$0xff] }
 0x609   : > { %12821 = vmatprep.subr.bf16.mxu1 %v17818_v0  ;;  %v17823_v0 = vcombine.low %v8768_v9, %v8896_v31  ;;  %v9329_v32 = vcombine.high %v9319_v29, %v9319_v29  ;;  %v9718_v22 = vrot.slane %v9690_v28, %v24696_v8  ;;  %v8932_v9 = vld [vmem:[#allocation5 + $0x5c0] sm:$0x11]  ;;  %v8901_v55 = vld [vmem:[#allocation5 + $0x4c8] sm:$0x11]  ;;  %v8775_v28 = vld [vmem:[#allocation5 + $0xd8] sm:$0xff] }
 0x60a   : > { %v8772_v31 = vld [vmem:[#allocation5 + $0xc0] sm:$0xff]  ;;  %v17895_v50 = vcombine.low %v8804_v60, %v8932_v9 }
 0x611   : > { %12814 = vmatmul.mubr.bf16.vlgmr.msra.gmra.mrb[128].mxu1 %v9256_v42  ;;  %v8770_v42 = vld [vmem:[#allocation5 + $0xb0] sm:$0xff] }
 0x612   : > { %14094 = vmatmul.mubr.bf16.vlgmr.msra.gmra.mrb[0].mxu0 %v9648_v44  ;;  %12853 = vmatprep.mubr.bf16.mxu1 %v9280_v27  ;;  %v8898_v44 = vld [vmem:[#allocation5 + $0x4b0] sm:$0x11]  ;;  %v9305_v27 = vrot.slane %v9289_v49, %v24696_v8  ;;  %v9730_v49 = vrot.slane %v24910_v16, %v24696_v8 }
 0x613   : > { %14102 = vmatpush1.bf16.xpose.msra.mxu0 %v17881_v37  ;;  %14133 = vmatprep.mubr.bf16.mxu0 %v9672_v15  ;;  %v8930_v37 = vld [vmem:[#allocation5 + $0x5b0] sm:$0x11]  ;;  %v9282_v15 = vcombine.high %v8721_v34, %v8721_v34  ;;  %v17828_v51 = vcombine.high %v8770_v42, %v8898_v44  ;;  %v9722_v34 = vcombine.high %v9718_v22, %v9718_v22 }
 0x614   : > { %12822 = vmatpush1.bf16.xpose.msra.mxu1 %v17817_v6  ;;  %14141 = vmatprep.subr.bf16.mxu0 %v17884_v24  ;;  %v17889_v6 = vcombine.low %v8801_v40, %v8929_v1  ;;  %v9697_v24 = vrot.slane %v9681_v48, %v24696_v8  ;;  %v9346_v48 = vcombine.high %v9338_v59, %v9338_v59  ;;  %v8773_v1 = vld [vmem:[#allocation5 + $0xc8] sm:$0xff] }
 0x615   : > { %12861 = vmatprep.subr.bf16.mxu1 %v17820_v2  ;;  %v17892_v2 = vcombine.high %v8802_v47, %v8930_v37  ;;  %v9296_v10 = vrot.slane %v9282_v15, %v24696_v8  ;;  %v9738_v40 = vcombine.high %v9730_v49, %v9730_v49 }
 0x617   : > { %v9298_v23 = vcombine.high %v9296_v10, %v9296_v10 }
 0x61d   : > { %12854 = vmatmul.mubr.bf16.vlgmr.msra.gmra.mrb[128].mxu1 %v9278_v21  ;;  %v17891_v21 = vcombine.low %v8802_v47, %v8930_v37  ;;  %v8934_v47 = vld [vmem:[#allocation5 + $0x5d0] sm:$0x11] }
 0x61e   : > { %14134 = vmatmul.mubr.bf16.vlgmr.msra.gmra.mrb[0].mxu0 %v9670_v36  ;;  %12893 = vmatprep.mubr.bf16.mxu1 %v9277_v33  ;;  %v9327_v36 = vcombine.high %v9305_v27, %v9305_v27  ;;  %v17827_v33 = vcombine.low %v8770_v42, %v8898_v44  ;;  %v8774_v37 = vld [vmem:[#allocation5 + $0xd0] sm:$0xff]  ;;  %v17897_v44 = vcombine.low %v8805_v26, %v8933_v4 }
 0x61f   : > { %14142 = vmatpush1.bf16.xpose.msra.mxu0 %v17883_v52  ;;  %14173 = vmatprep.mubr.bf16.mxu0 %v9669_v39  ;;  %v8899_v52 = vld [vmem:[#allocation5 + $0x4b8] sm:$0x11]  ;;  %v8902_v42 = vld [vmem:[#allocation5 + $0x4d0] sm:$0x11] }
 0x620   : > { %12862 = vmatpush1.bf16.xpose.msra.mxu1 %v17819_v53  ;;  %14181 = vmatprep.subr.bf16.mxu0 %v17886_v63  ;;  %v9719_v53 = vcombine.high %v9697_v24, %v9697_v24  ;;  %v9326_v63 = vrot.slane %v9298_v23, %v24696_v8  ;;  %v17830_v39 = vcombine.high %v8771_v18, %v8899_v52  ;;  %v8807_v23 = vld [vmem:[#allocation5 + $0x1d8] sm:$0xff] }
 0x621   : > { %12901 = vmatprep.subr.bf16.mxu1 %v17822_v25  ;;  %v17894_v25 = vcombine.high %v8803_v11, %v8931_v5  ;;  %v17836_v15 = vcombine.high %v8774_v37, %v8902_v42 }
 0x629   : > { %12894 = vmatmul.mubr.bf16.vlgmr.msra.gmra.mrb[128].mxu1 %v9263_v3  ;;  %v17893_v3 = vcombine.low %v8803_v11, %v8931_v5  ;;  %v8935_v11 = vld [vmem:[#allocation5 + $0x5d8] sm:$0x11] }
 0x62a   : > { %14174 = vmatmul.mubr.bf16.vlgmr.msra.gmra.mrb[0].mxu0 %v9655_v20  ;;  %12933 = vmatprep.mubr.bf16.mxu1 %v9281_v7  ;;  %v9312_v20 = vrot.slane %v9296_v10, %v24696_v8  ;;  %v17829_v7 = vcombine.low %v8771_v18, %v8899_v52  ;;  %v8903_v5 = vld [vmem:[#allocation5 + $0x4d8] sm:$0x11] }
 0x62b   : > { %14182 = vmatpush1.bf16.xpose.msra.mxu0 %v17885_v41  ;;  %14213 = vmatprep.mubr.bf16.mxu0 %v9673_v13  ;;  %v8900_v41 = vld [vmem:[#allocation5 + $0x4c0] sm:$0x11] }
 0x62c   : > { %12902 = vmatpush1.bf16.xpose.msra.mxu1 %v17821_v38  ;;  %14221 = vmatprep.subr.bf16.mxu0 %v17888_v57  ;;  %v9704_v38 = vrot.slane %v9688_v12, %v24696_v8  ;;  %v9330_v57 = vcombine.high %v9326_v63, %v9326_v63  ;;  %v17832_v13 = vcombine.high %v8772_v31, %v8900_v41 }
 0x62d   : > { %12941 = vmatprep.subr.bf16.mxu1 %v17824_v19  ;;  %v17896_v19 = vcombine.high %v8804_v60, %v8932_v9  ;;  %v8904_v60 = vld [vmem:[#allocation5 + $0x4e0] sm:$0x11]  ;;  %v17901_v9 = vcombine.low %v8807_v23, %v8935_v11 }
 0x635   : > { %12934 = vmatmul.mubr.bf16.vlgmr.msra.gmra.mrb[128].mxu1 %v9279_v17  ;;  %v9720_v17 = vcombine.high %v9704_v38, %v9704_v38 }
 0x636   : > { %14214 = vmatmul.mubr.bf16.vlgmr.msra.gmra.mrb[0].mxu0 %v9671_v61  ;;  %12973 = vmatprep.mubr.bf16.mxu1 %v9319_v29  ;;  %v17831_v61 = vcombine.low %v8772_v31, %v8900_v41  ;;  %v17898_v29 = vcombine.high %v8805_v26, %v8933_v4  ;;  %v8777_v26 = vld [vmem:[#allocation5 + $0xe8] sm:$0xff] }
 0x637   : > { %14222 = vmatpush1.bf16.xpose.msra.mxu0 %v17887_v62  ;;  %14253 = vmatprep.mubr.bf16.mxu0 %v9711_v56  ;;  %v9328_v62 = vcombine.high %v9312_v20, %v9312_v20  ;;  %v8806_v56 = vld [vmem:[#allocation5 + $0x1d0] sm:$0xff] }
 0x638   : > { %12942 = vmatpush1.bf16.xpose.msra.mxu1 %v17823_v0  ;;  %14261 = vmatprep.subr.bf16.mxu0 %v17890_v58  ;;  %v9368_v0 = vrot.slane %v9346_v48, %v24696_v8  ;;  %v17834_v58 = vcombine.high %v8773_v1, %v8901_v55  ;;  %v17899_v18 = vcombine.low %v8806_v56, %v8934_v47  ;;  %v8937_v48 = vld [vmem:[#allocation5 + $0x5e8] sm:$0x11] }
 0x639   : > { %12981 = vmatprep.subr.bf16.mxu1 %v17826_v35  ;;  %v9760_v35 = vrot.slane %v9738_v40, %v24696_v8  ;;  %v8905_v40 = vld [vmem:[#allocation5 + $0x4e8] sm:$0x11] }
 0x641   : > { %12974 = vmatmul.mubr.bf16.vlgmr.msra.gmra.mrb[128].mxu1 %v9305_v27  ;;  %v9746_v27 = vrot.slane %v9730_v49, %v24696_v8 }
 0x642   : > { %14254 = vmatmul.mubr.bf16.vlgmr.msra.gmra.mrb[0].mxu0 %v9697_v24  ;;  %13013 = vmatprep.mubr.bf16.mxu1 %v9329_v32  ;;  %v17833_v24 = vcombine.low %v8773_v1, %v8901_v55  ;;  %v17900_v32 = vcombine.high %v8806_v56, %v8934_v47  ;;  %v8906_v56 = vld [vmem:[#allocation5 + $0x4f0] sm:$0x11] }
 0x643   : > { %14262 = vmatpush1.bf16.xpose.msra.mxu0 %v17889_v6  ;;  %14293 = vmatprep.mubr.bf16.mxu0 %v9721_v30  ;;  %v9354_v6 = vrot.slane %v9338_v59, %v24696_v8  ;;  %v9723_v30 = vcombine.high %v24910_v16, %v24910_v16  ;;  %v17835_v16 = vcombine.low %v8774_v37, %v8902_v42  ;;  %v8809_v59 = vld [vmem:[#allocation5 + $0x1e8] sm:$0xff] }
 0x644   : > { %12982 = vmatpush1.bf16.xpose.msra.mxu1 %v17825_v46  ;;  %14301 = vmatprep.subr.bf16.mxu0 %v17892_v2  ;;  %v9378_v46 = vcombine.high %v9368_v0, %v9368_v0  ;;  %v9331_v2 = vcombine.high %v24906_v14, %v24906_v14  ;;  %v17905_v47 = vcombine.low %v8809_v59, %v8937_v48 }
 0x645   : > { %13021 = vmatprep.subr.bf16.mxu1 %v17828_v51  ;;  %v9770_v51 = vcombine.high %v9760_v35, %v9760_v35  ;;  %v9737_v10 = vrot.slane %v9723_v30, %v24696_v8  ;;  %v9376_v52 = vcombine.high %v9354_v6, %v9354_v6 }
 0x646   : > { %v9345_v54 = vrot.slane %v9331_v2, %v24696_v8  ;;  %v9772_v2 = vcombine.high %v24986_v43, %v24986_v43 }
 0x647   : > { %v9739_v14 = vcombine.high %v9737_v10, %v9737_v10  ;;  %v9753_v41 = vrot.slane %v9737_v10, %v24696_v8  ;;  %v8939_v10 = vld [vmem:[#allocation5 + $0x5f8] sm:$0x11] }
 0x648   : > { %v9347_v12 = vcombine.high %v9345_v54, %v9345_v54  ;;  %v9361_v31 = vrot.slane %v9345_v54, %v24696_v8  ;;  %v8811_v54 = vld [vmem:[#allocation5 + $0x1f8] sm:$0xff] }
 0x649   : > { %v9769_v55 = vcombine.high %v9753_v41, %v9753_v41 }
 0x64a   : > { %v9377_v1 = vcombine.high %v9361_v31, %v9361_v31 }
 0x64d   : > { %13014 = vmatmul.mubr.bf16.vlgmr.msra.gmra.mrb[128].mxu1 %v9327_v36  ;;  %v9375_v36 = vrot.slane %v9347_v12, %v24696_v8  ;;  %v8779_v12 = vld [vmem:[#allocation5 + $0xf8] sm:$0xff] }
 0x64e   : > { %14294 = vmatmul.mubr.bf16.vlgmr.msra.gmra.mrb[0].mxu0 %v9719_v53  ;;  %13053 = vmatprep.mubr.bf16.mxu1 %v9326_v63  ;;  %v17902_v53 = vcombine.high %v8807_v23, %v8935_v11  ;;  %v9767_v63 = vrot.slane %v9739_v14, %v24696_v8  ;;  %v8907_v23 = vld [vmem:[#allocation5 + $0x4f8] sm:$0x11] }
 0x64f   : > { %14302 = vmatpush1.bf16.xpose.msra.mxu0 %v17891_v21  ;;  %14333 = vmatprep.mubr.bf16.mxu0 %v9718_v22  ;;  %v9768_v21 = vcombine.high %v9746_v27, %v9746_v27  ;;  %v8776_v22 = vld [vmem:[#allocation5 + $0xe0] sm:$0xff] }
 0x650   : > { %13022 = vmatpush1.bf16.xpose.msra.mxu1 %v17827_v33  ;;  %14341 = vmatprep.subr.bf16.mxu0 %v17894_v25  ;;  %v17838_v33 = vcombine.high %v8775_v28, %v8903_v5  ;;  %v8808_v25 = vld [vmem:[#allocation5 + $0x1e0] sm:$0xff] }
 0x651   : > { %13061 = vmatprep.subr.bf16.mxu1 %v17830_v39  ;;  %v8936_v39 = vld [vmem:[#allocation5 + $0x5e0] sm:$0x11] }
 0x652   : > { %v17903_v4 = vcombine.low %v8808_v25, %v8936_v39 }
 0x659   : > { %13054 = vmatmul.mubr.bf16.vlgmr.msra.gmra.mrb[128].mxu1 %v9312_v20  ;;  %v9379_v20 = vcombine.high %v9375_v36, %v9375_v36 }
 0x65a   : > { %14334 = vmatmul.mubr.bf16.vlgmr.msra.gmra.mrb[0].mxu0 %v9704_v38  ;;  %13093 = vmatprep.mubr.bf16.mxu1 %v9330_v57  ;;  %v17904_v38 = vcombine.high %v8808_v25, %v8936_v39  ;;  %v9771_v57 = vcombine.high %v9767_v63, %v9767_v63 }
 0x65b   : > { %14342 = vmatpush1.bf16.xpose.msra.mxu0 %v17893_v3  ;;  %14373 = vmatprep.mubr.bf16.mxu0 %v9722_v34  ;;  %v17837_v3 = vcombine.low %v8775_v28, %v8903_v5 }
 0x65c   : > { %13062 = vmatpush1.bf16.xpose.msra.mxu1 %v17829_v7  ;;  %14381 = vmatprep.subr.bf16.mxu0 %v17896_v19  ;;  %v17840_v7 = vcombine.high %v8776_v22, %v8904_v60  ;;  %v9387_v19 = vrot.slane %v24982_v45, %v24696_v8 }
 0x65d   : > { %13101 = vmatprep.subr.bf16.mxu1 %v17832_v13  ;;  %v9779_v13 = vrot.slane %v24986_v43, %v24696_v8 }
 0x65e   : > { %v9395_v34 = vcombine.high %v9387_v19, %v9387_v19  ;;  %v9403_v37 = vrot.slane %v9387_v19, %v24696_v8  ;;  %v8813_v19 = vld [vmem:[#allocation5 + $0x208] sm:$0xff] }
 0x65f   : > { %v9787_v49 = vcombine.high %v9779_v13, %v9779_v13  ;;  %v9795_v42 = vrot.slane %v9779_v13, %v24696_v8 }
 0x660   : > { %v9425_v11 = vcombine.high %v9403_v37, %v9403_v37 }
 0x661   : > { %v9817_v28 = vcombine.high %v9795_v42, %v9795_v42 }
 0x665   : > { %13094 = vmatmul.mubr.bf16.vlgmr.msra.gmra.mrb[128].mxu1 %v9328_v62  ;;  %v9417_v62 = vrot.slane %v9395_v34, %v24696_v8  ;;  %v8941_v34 = vld [vmem:[#allocation5 + $0x608] sm:$0x11] }
 0x666   : > { %14374 = vmatmul.mubr.bf16.vlgmr.msra.gmra.mrb[0].mxu0 %v9720_v17  ;;  %13133 = vmatprep.mubr.bf16.mxu1 %v9368_v0  ;;  %v17906_v17 = vcombine.high %v8809_v59, %v8937_v48  ;;  %v9809_v0 = vrot.slane %v9787_v49, %v24696_v8  ;;  %v8781_v59 = vld [vmem:[#allocation5 + $0x108] sm:$0xff] }
 0x667   : > { %14382 = vmatpush1.bf16.xpose.msra.mxu0 %v17895_v50  ;;  %14413 = vmatprep.mubr.bf16.mxu0 %v9760_v35  ;;  %v17839_v50 = vcombine.low %v8776_v22, %v8904_v60  ;;  %v8778_v35 = vld [vmem:[#allocation5 + $0xf0] sm:$0xff]  ;;  %v17845_v22 = vcombine.low %v8779_v12, %v8907_v23  ;;  %v8909_v49 = vld [vmem:[#allocation5 + $0x508] sm:$0x11] }
 0x668   : > { %13102 = vmatpush1.bf16.xpose.msra.mxu1 %v17831_v61  ;;  %14421 = vmatprep.subr.bf16.mxu0 %v17898_v29  ;;  %v17842_v61 = vcombine.high %v8777_v26, %v8905_v40  ;;  %v8810_v29 = vld [vmem:[#allocation5 + $0x1f0] sm:$0xff]  ;;  %v17843_v43 = vcombine.low %v8778_v35, %v8906_v56 }
 0x669   : > { %13141 = vmatprep.subr.bf16.mxu1 %v17834_v58  ;;  %v8938_v58 = vld [vmem:[#allocation5 + $0x5f0] sm:$0x11] }
 0x66a   : > { %v17907_v14 = vcombine.low %v8810_v29, %v8938_v58 }
 0x671   : > { %13134 = vmatmul.mubr.bf16.vlgmr.msra.gmra.mrb[128].mxu1 %v9354_v6  ;;  %v9427_v6 = vcombine.high %v9417_v62, %v9417_v62 }
 0x672   : > { %14414 = vmatmul.mubr.bf16.vlgmr.msra.gmra.mrb[0].mxu0 %v9746_v27  ;;  %13173 = vmatprep.mubr.bf16.mxu1 %v9378_v46  ;;  %v17908_v27 = vcombine.high %v8810_v29, %v8938_v58  ;;  %v17844_v46 = vcombine.high %v8778_v35, %v8906_v56  ;;  %v8910_v29 = vld [vmem:[#allocation5 + $0x510] sm:$0x11]  ;;  %v17913_v58 = vcombine.low %v8813_v19, %v8941_v34 }
 0x673   : > { %14422 = vmatpush1.bf16.xpose.msra.mxu0 %v17897_v44  ;;  %14453 = vmatprep.mubr.bf16.mxu0 %v9770_v51  ;;  %v17841_v44 = vcombine.low %v8777_v26, %v8905_v40  ;;  %v9786_v51 = vrot.slane %v9772_v2, %v24696_v8 }
 0x674   : > { %13142 = vmatpush1.bf16.xpose.msra.mxu1 %v17833_v24  ;;  %14461 = vmatprep.subr.bf16.mxu0 %v17900_v32  ;;  %v9380_v24 = vcombine.high %v24982_v45, %v24982_v45  ;;  %v9819_v32 = vcombine.high %v9809_v0, %v9809_v0 }
 0x675   : > { %13181 = vmatprep.subr.bf16.mxu1 %v17836_v15  ;;  %v9788_v45 = vcombine.high %v9786_v51, %v9786_v51  ;;  %v9802_v39 = vrot.slane %v9786_v51, %v24696_v8 }
 0x676   : > { %v9394_v15 = vrot.slane %v9380_v24, %v24696_v8 }
 0x677   : > { %v9818_v40 = vcombine.high %v9802_v39, %v9802_v39 }
 0x678   : > { %v9396_v30 = vcombine.high %v9394_v15, %v9394_v15  ;;  %v9410_v25 = vrot.slane %v9394_v15, %v24696_v8  ;;  %v8815_v15 = vld [vmem:[#allocation5 + $0x218] sm:$0xff] }
 0x67a   : > { %v9424_v5 = vrot.slane %v9396_v30, %v24696_v8  ;;  %v9426_v26 = vcombine.high %v9410_v25, %v9410_v25  ;;  %v8943_v30 = vld [vmem:[#allocation5 + $0x618] sm:$0x11] }
 0x67c   : > { %v9428_v60 = vcombine.high %v9424_v5, %v9424_v5 }
 0x67d   : > { %13174 = vmatmul.mubr.bf16.vlgmr.msra.gmra.mrb[128].mxu1 %v9376_v52  ;;  %v17846_v52 = vcombine.high %v8779_v12, %v8907_v23 }
 0x67e   : > { %14454 = vmatmul.mubr.bf16.vlgmr.msra.gmra.mrb[0].mxu0 %v9768_v21  ;;  %13213 = vmatprep.mubr.bf16.mxu1 %v9375_v36  ;;  %v9816_v21 = vrot.slane %v9788_v45, %v24696_v8  ;;  %v8940_v36 = vld [vmem:[#allocation5 + $0x600] sm:$0x11]  ;;  %v8911_v45 = vld [vmem:[#allocation5 + $0x518] sm:$0x11] }
 0x67f   : > { %14462 = vmatpush1.bf16.xpose.msra.mxu0 %v17899_v18  ;;  %14493 = vmatprep.mubr.bf16.mxu0 %v9767_v63  ;;  %v17910_v18 = vcombine.high %v8811_v54, %v8939_v10  ;;  %v17909_v63 = vcombine.low %v8811_v54, %v8939_v10  ;;  %v8783_v54 = vld [vmem:[#allocation5 + $0x118] sm:$0xff] }
 0x680   : > { %13182 = vmatpush1.bf16.xpose.msra.mxu1 %v17835_v16  ;;  %14501 = vmatprep.subr.bf16.mxu0 %v17902_v53  ;;  %v8812_v16 = vld [vmem:[#allocation5 + $0x200] sm:$0xff] }
 0x681   : > { %13221 = vmatprep.subr.bf16.mxu1 %v17838_v33  ;;  %v8780_v53 = vld [vmem:[#allocation5 + $0x100] sm:$0xff]  ;;  %v17911_v48 = vcombine.low %v8812_v16, %v8940_v36 }
 0x682   : > { %v8908_v33 = vld [vmem:[#allocation5 + $0x500] sm:$0x11] }
 0x689   : > { %13214 = vmatmul.mubr.bf16.vlgmr.msra.gmra.mrb[128].mxu1 %v9361_v31  ;;  %v17848_v31 = vcombine.high %v8780_v53, %v8908_v33 }
 0x68a   : > { %14494 = vmatmul.mubr.bf16.vlgmr.msra.gmra.mrb[0].mxu0 %v9753_v41  ;;  %13253 = vmatprep.mubr.bf16.mxu1 %v9379_v20  ;;  %v9820_v41 = vcombine.high %v9816_v21, %v9816_v21 }
 0x68b   : > { %14502 = vmatpush1.bf16.xpose.msra.mxu0 %v17901_v9  ;;  %14533 = vmatprep.mubr.bf16.mxu0 %v9771_v57  ;;  %v17912_v9 = vcombine.high %v8812_v16, %v8940_v36 }
 0x68c   : > { %13222 = vmatpush1.bf16.xpose.msra.mxu1 %v17837_v3  ;;  %14541 = vmatprep.subr.bf16.mxu0 %v17904_v38  ;;  %v18751_v3 = vld [vmem:[#allocation4 + $0x40] sm:$0xff] }
 0x68d   : > { %13261 = vmatprep.subr.bf16.mxu1 %v17840_v7  ;;  %v9436_v20 = vrot.slane %v18751_v3, %v24696_v8  ;;  %v18752_v38 = vld [vmem:[#allocation4 + $0x80] sm:$0xff] }
 0x68e   : > { %v9828_v7 = vrot.slane %v18752_v38, %v24696_v8  ;;  %v9821_v24 = vcombine.high %v18752_v38, %v18752_v38 }
 0x68f   : > { %v9444_v57 = vcombine.high %v9436_v20, %v9436_v20  ;;  %v9452_v35 = vrot.slane %v9436_v20, %v24696_v8 }
 0x690   : > { %v9836_v13 = vcombine.high %v9828_v7, %v9828_v7  ;;  %v9844_v56 = vrot.slane %v9828_v7, %v24696_v8 }
 0x691   : > { %v9474_v12 = vcombine.high %v9452_v35, %v9452_v35 }
 0x692   : > { %v9866_v23 = vcombine.high %v9844_v56, %v9844_v56 }
 0x695   : > { %13254 = vmatmul.mubr.bf16.vlgmr.msra.gmra.mrb[128].mxu1 %v9377_v1  ;;  %v9466_v1 = vrot.slane %v9444_v57, %v24696_v8  ;;  %v8818_v57 = vld [vmem:[#allocation5 + $0x230] sm:$0xff] }
 0x696   : > { %14534 = vmatmul.mubr.bf16.vlgmr.msra.gmra.mrb[0].mxu0 %v9769_v55  ;;  %13293 = vmatprep.mubr.bf16.mxu1 %v9417_v62  ;;  %v17914_v55 = vcombine.high %v8813_v19, %v8941_v34  ;;  %v9858_v62 = vrot.slane %v9836_v13, %v24696_v8  ;;  %v8946_v19 = vld [vmem:[#allocation5 + $0x630] sm:$0x11] }
 0x697   : > { %14542 = vmatpush1.bf16.xpose.msra.mxu0 %v17903_v4  ;;  %14573 = vmatprep.mubr.bf16.mxu0 %v9809_v0  ;;  %v17847_v4 = vcombine.low %v8780_v53, %v8908_v33  ;;  %v8782_v0 = vld [vmem:[#allocation5 + $0x110] sm:$0xff]  ;;  %v17853_v53 = vcombine.low %v8783_v54, %v8911_v45 }
 0x698   : > { %13262 = vmatpush1.bf16.xpose.msra.mxu1 %v17839_v50  ;;  %14581 = vmatprep.subr.bf16.mxu0 %v17906_v17  ;;  %v17850_v50 = vcombine.high %v8781_v59, %v8909_v49  ;;  %v8814_v17 = vld [vmem:[#allocation5 + $0x210] sm:$0xff] }
 0x699   : > { %13301 = vmatprep.subr.bf16.mxu1 %v17842_v61  ;;  %v8942_v61 = vld [vmem:[#allocation5 + $0x610] sm:$0x11] }
 0x69a   : > { %v17915_v10 = vcombine.low %v8814_v17, %v8942_v61 }
 0x6a1   : > { %13294 = vmatmul.mubr.bf16.vlgmr.msra.gmra.mrb[128].mxu1 %v9403_v37  ;;  %v9476_v37 = vcombine.high %v9466_v1, %v9466_v1 }
 0x6a2   : > { %14574 = vmatmul.mubr.bf16.vlgmr.msra.gmra.mrb[0].mxu0 %v9795_v42  ;;  %13333 = vmatprep.mubr.bf16.mxu1 %v9427_v6  ;;  %v17916_v42 = vcombine.high %v8814_v17, %v8942_v61  ;;  %v17852_v6 = vcombine.high %v8782_v0, %v8910_v29  ;;  %v8820_v61 = vld [vmem:[#allocation5 + $0x240] sm:$0xff] }
 0x6a3   : > { %14582 = vmatpush1.bf16.xpose.msra.mxu0 %v17905_v47  ;;  %14613 = vmatprep.mubr.bf16.mxu0 %v9819_v32  ;;  %v17849_v47 = vcombine.low %v8781_v59, %v8909_v49  ;;  %v9835_v32 = vrot.slane %v9821_v24, %v24696_v8  ;;  %v17924_v59 = vcombine.high %v8818_v57, %v8946_v19 }
 0x6a4   : > { %13302 = vmatpush1.bf16.xpose.msra.mxu1 %v17841_v44  ;;  %14621 = vmatprep.subr.bf16.mxu0 %v17908_v27  ;;  %v9429_v44 = vcombine.high %v18751_v3, %v18751_v3  ;;  %v9868_v27 = vcombine.high %v9858_v62, %v9858_v62 }
 0x6a5   : > { %13341 = vmatprep.subr.bf16.mxu1 %v17844_v46  ;;  %v9837_v51 = vcombine.high %v9835_v32, %v9835_v32  ;;  %v9851_v36 = vrot.slane %v9835_v32, %v24696_v8 }
 0x6a6   : > { %v9443_v46 = vrot.slane %v9429_v44, %v24696_v8  ;;  %v8821_v44 = vld [vmem:[#allocation5 + $0x248] sm:$0xff] }
 0x6a7   : > { %v9867_v20 = vcombine.high %v9851_v36, %v9851_v36 }
 0x6a8   : > { %v9445_v2 = vcombine.high %v9443_v46, %v9443_v46  ;;  %v9459_v16 = vrot.slane %v9443_v46, %v24696_v8 }
 0x6aa   : > { %v9475_v3 = vcombine.high %v9459_v16, %v9459_v16 }
 0x6ad   : > { %13334 = vmatmul.mubr.bf16.vlgmr.msra.gmra.mrb[128].mxu1 %v9425_v11  ;;  %v9473_v11 = vrot.slane %v9445_v2, %v24696_v8  ;;  %v8822_v2 = vld [vmem:[#allocation5 + $0x250] sm:$0xff] }
 0x6ae   : > { %14614 = vmatmul.mubr.bf16.vlgmr.msra.gmra.mrb[0].mxu0 %v9817_v28  ;;  %13373 = vmatprep.mubr.bf16.mxu1 %v9424_v5  ;;  %v17918_v28 = vcombine.high %v8815_v15, %v8943_v30  ;;  %v9865_v5 = vrot.slane %v9837_v51, %v24696_v8 }
 0x6af   : > { %14622 = vmatpush1.bf16.xpose.msra.mxu0 %v17907_v14  ;;  %14653 = vmatprep.mubr.bf16.mxu0 %v9816_v21  ;;  %v17851_v14 = vcombine.low %v8782_v0, %v8910_v29  ;;  %v17917_v21 = vcombine.low %v8815_v15, %v8943_v30  ;;  %v9477_v33 = vcombine.high %v9473_v11, %v9473_v11  ;;  %v8948_v0 = vld [vmem:[#allocation5 + $0x640] sm:$0x11]  ;;  %v8950_v15 = vld [vmem:[#allocation5 + $0x650] sm:$0x11] }
 0x6b0   : > { %13342 = vmatpush1.bf16.xpose.msra.mxu1 %v17843_v43  ;;  %14661 = vmatprep.subr.bf16.mxu0 %v17910_v18  ;;  %v17854_v43 = vcombine.high %v8783_v54, %v8911_v45  ;;  %v8816_v18 = vld [vmem:[#allocation5 + $0x220] sm:$0xff]  ;;  %v17932_v54 = vcombine.high %v8822_v2, %v8950_v15 }
 0x6b1   : > { %13381 = vmatprep.subr.bf16.mxu1 %v17846_v52  ;;  %v8944_v52 = vld [vmem:[#allocation5 + $0x620] sm:$0x11] }
 0x6b9   : > { %13374 = vmatmul.mubr.bf16.vlgmr.msra.gmra.mrb[128].mxu1 %v9410_v25  ;;  %v9869_v25 = vcombine.high %v9865_v5, %v9865_v5 }
 0x6ba   : > { %14654 = vmatmul.mubr.bf16.vlgmr.msra.gmra.mrb[0].mxu0 %v9802_v39  ;;  %13413 = vmatprep.mubr.bf16.mxu1 %v9428_v60  ;;  %v8733_v39 = vld [vmem:[#allocation4 + $0x88] sm:$0xff] }
 0x6bb   : > { %14662 = vmatpush1.bf16.xpose.msra.mxu0 %v17909_v63  ;;  %14693 = vmatprep.mubr.bf16.mxu0 %v9820_v41  ;;  %v17920_v63 = vcombine.high %v8816_v18, %v8944_v52  ;;  %v17919_v41 = vcombine.low %v8816_v18, %v8944_v52  ;;  %v8824_v52 = vld [vmem:[#allocation5 + $0x260] sm:$0xff] }
 0x6bc   : > { %13382 = vmatpush1.bf16.xpose.msra.mxu1 %v17845_v22  ;;  %14701 = vmatprep.subr.bf16.mxu0 %v17912_v9  ;;  %v9877_v22 = vrot.slane %v8733_v39, %v24696_v8  ;;  %v8817_v9 = vld [vmem:[#allocation5 + $0x228] sm:$0xff] }
 0x6bd   : > { %13421 = vmatprep.subr.bf16.mxu1 %v17848_v31  ;;  %v8945_v31 = vld [vmem:[#allocation5 + $0x628] sm:$0x11] }
 0x6be   : > { %v9885_v60 = vcombine.high %v9877_v22, %v9877_v22  ;;  %v17922_v38 = vcombine.high %v8817_v9, %v8945_v31  ;;  %v17921_v13 = vcombine.low %v8817_v9, %v8945_v31  ;;  %v9893_v34 = vrot.slane %v9877_v22, %v24696_v8  ;;  %v8825_v22 = vld [vmem:[#allocation5 + $0x268] sm:$0xff] }
 0x6c0   : > { %v9907_v7 = vrot.slane %v9885_v60, %v24696_v8  ;;  %v8953_v60 = vld [vmem:[#allocation5 + $0x668] sm:$0x11] }
 0x6c2   : > { %v9917_v49 = vcombine.high %v9907_v7, %v9907_v7 }
 0x6c5   : > { %13414 = vmatmul.mubr.bf16.vlgmr.msra.gmra.mrb[128].mxu1 %v9426_v26 }
 0x6c6   : > { %14694 = vmatmul.mubr.bf16.vlgmr.msra.gmra.mrb[0].mxu0 %v9818_v40  ;;  %13453 = vmatprep.mubr.bf16.mxu1 %v9466_v1  ;;  %v8947_v1 = vld [vmem:[#allocation5 + $0x638] sm:$0x11] }
 0x6c7   : > { %14702 = vmatpush1.bf16.xpose.msra.mxu0 %v17911_v48  ;;  %14733 = vmatprep.mubr.bf16.mxu0 %v9858_v62  ;;  %v9870_v48 = vcombine.high %v8733_v39, %v8733_v39 }
 0x6c8   : > { %13422 = vmatpush1.bf16.xpose.msra.mxu1 %v17847_v4  ;;  %14741 = vmatprep.subr.bf16.mxu0 %v17914_v55  ;;  %v8819_v4 = vld [vmem:[#allocation5 + $0x238] sm:$0xff]  ;;  %v17923_v55 = vcombine.low %v8818_v57, %v8946_v19 }
 0x6c9   : > { %13461 = vmatprep.subr.bf16.mxu1 %v17850_v50  ;;  %v9884_v26 = vrot.slane %v9870_v48, %v24696_v8  ;;  %v9915_v50 = vcombine.high %v9893_v34, %v9893_v34  ;;  %v17926_v62 = vcombine.high %v8819_v4, %v8947_v1  ;;  %v17925_v29 = vcombine.low %v8819_v4, %v8947_v1  ;;  %v8827_v48 = vld [vmem:[#allocation5 + $0x278] sm:$0xff] }
 0x6cb   : > { %v9886_v40 = vcombine.high %v9884_v26, %v9884_v26 }
 0x6cd   : > { %v9914_v17 = vrot.slane %v9886_v40, %v24696_v8 }
 0x6d1   : > { %13454 = vmatmul.mubr.bf16.vlgmr.msra.gmra.mrb[128].mxu1 %v9452_v35  ;;  %v17928_v35 = vcombine.high %v8820_v61, %v8948_v0 }
 0x6d2   : > { %14734 = vmatmul.mubr.bf16.vlgmr.msra.gmra.mrb[0].mxu0 %v9844_v56  ;;  %13493 = vmatprep.mubr.bf16.mxu1 %v9476_v37  ;;  %v9918_v56 = vcombine.high %v9914_v17, %v9914_v17 }
 0x6d3   : > { %14742 = vmatpush1.bf16.xpose.msra.mxu0 %v17913_v58  ;;  %14773 = vmatprep.mubr.bf16.mxu0 %v9868_v27  ;;  %v9900_v58 = vrot.slane %v9884_v26, %v24696_v8  ;;  %v17927_v27 = vcombine.low %v8820_v61, %v8948_v0  ;;  %v8955_v26 = vld [vmem:[#allocation5 + $0x678] sm:$0x11] }
 0x6d4   : > { %13462 = vmatpush1.bf16.xpose.msra.mxu1 %v17849_v47  ;;  %14781 = vmatprep.subr.bf16.mxu0 %v17916_v42  ;;  %v8734_v47 = vld [vmem:[#allocation4 + $0x90] sm:$0xff]  ;;  %v17942_v1 = vcombine.high %v8827_v48, %v8955_v26 }
 0x6d5   : > { %13501 = vmatprep.subr.bf16.mxu1 %v17852_v6  ;;  %v9926_v37 = vrot.slane %v8734_v47, %v24696_v8  ;;  %v8949_v6 = vld [vmem:[#allocation5 + $0x648] sm:$0x11]  ;;  %v9916_v24 = vcombine.high %v9900_v58, %v9900_v58 }
 0x6d6   : > { %v17930_v46 = vcombine.high %v8821_v44, %v8949_v6  ;;  %v17929_v51 = vcombine.low %v8821_v44, %v8949_v6 }
 0x6d7   : > { %v9934_v42 = vcombine.high %v9926_v37, %v9926_v37  ;;  %v9942_v30 = vrot.slane %v9926_v37, %v24696_v8  ;;  %v8957_v37 = vld [vmem:[#allocation5 + $0x688] sm:$0x11] }
 0x6d9   : > { %v9956_v32 = vrot.slane %v9934_v42, %v24696_v8 }
 0x6db   : > { %v9966_v45 = vcombine.high %v9956_v32, %v9956_v32 }
 0x6dd   : > { %13494 = vmatmul.mubr.bf16.vlgmr.msra.gmra.mrb[128].mxu1 %v9474_v12 }
 0x6de   : > { %14774 = vmatmul.mubr.bf16.vlgmr.msra.gmra.mrb[0].mxu0 %v9866_v23  ;;  %13533 = vmatprep.mubr.bf16.mxu1 %v9473_v11  ;;  %v8951_v11 = vld [vmem:[#allocation5 + $0x658] sm:$0x11] }
 0x6df   : > { %14782 = vmatpush1.bf16.xpose.msra.mxu0 %v17915_v10  ;;  %14813 = vmatprep.mubr.bf16.mxu0 %v9865_v5  ;;  %v9919_v10 = vcombine.high %v8734_v47, %v8734_v47  ;;  %v8829_v47 = vld [vmem:[#allocation5 + $0x288] sm:$0xff] }
 0x6e0   : > { %13502 = vmatpush1.bf16.xpose.msra.mxu1 %v17851_v14  ;;  %14821 = vmatprep.subr.bf16.mxu0 %v17918_v28  ;;  %v8823_v14 = vld [vmem:[#allocation5 + $0x258] sm:$0xff]  ;;  %v17931_v28 = vcombine.low %v8822_v2, %v8950_v15  ;;  %v17946_v6 = vcombine.high %v8829_v47, %v8957_v37 }
 0x6e1   : > { %13541 = vmatprep.subr.bf16.mxu1 %v17854_v43  ;;  %v9933_v12 = vrot.slane %v9919_v10, %v24696_v8  ;;  %v9964_v43 = vcombine.high %v9942_v30, %v9942_v30  ;;  %v17934_v5 = vcombine.high %v8823_v14, %v8951_v11  ;;  %v8831_v10 = vld [vmem:[#allocation5 + $0x298] sm:$0xff] }
 0x6e3   : > { %v9935_v23 = vcombine.high %v9933_v12, %v9933_v12 }
 0x6e5   : > { %v9963_v18 = vrot.slane %v9935_v23, %v24696_v8 }
 0x6e9   : > { %13534 = vmatmul.mubr.bf16.vlgmr.msra.gmra.mrb[128].mxu1 %v9459_v16  ;;  %v17933_v16 = vcombine.low %v8823_v14, %v8951_v11 }
 0x6ea   : > { %14814 = vmatmul.mubr.bf16.vlgmr.msra.gmra.mrb[0].mxu0 %v9851_v36  ;;  %13573 = vmatprep.mubr.bf16.mxu1 %v9477_v33  ;;  %v9949_v36 = vrot.slane %v9933_v12, %v24696_v8  ;;  %v9967_v33 = vcombine.high %v9963_v18, %v9963_v18  ;;  %v8959_v12 = vld [vmem:[#allocation5 + $0x698] sm:$0x11] }
 0x6eb   : > { %14822 = vmatpush1.bf16.xpose.msra.mxu0 %v17917_v21  ;;  %14853 = vmatprep.mubr.bf16.mxu0 %v9869_v25  ;;  %v8952_v21 = vld [vmem:[#allocation5 + $0x660] sm:$0x11]  ;;  %v17950_v11 = vcombine.high %v8831_v10, %v8959_v12 }
 0x6ec   : > { %13542 = vmatpush1.bf16.xpose.msra.mxu1 %v17853_v53  ;;  %14861 = vmatprep.subr.bf16.mxu0 %v17920_v63  ;;  %v17936_v53 = vcombine.high %v8824_v52, %v8952_v21  ;;  %v8735_v63 = vld [vmem:[#allocation4 + $0x98] sm:$0xff]  ;;  %v17935_v9 = vcombine.low %v8824_v52, %v8952_v21  ;;  %v9965_v31 = vcombine.high %v9949_v36, %v9949_v36 }
 0x6ed   : > { %v9975_v25 = vrot.slane %v8735_v63, %v24696_v8 }
 0x6ef   : > { %v9983_v39 = vcombine.high %v9975_v25, %v9975_v25  ;;  %v9991_v57 = vrot.slane %v9975_v25, %v24696_v8  ;;  %v8961_v25 = vld [vmem:[#allocation5 + $0x6a8] sm:$0x11] }
 0x6f1   : > { %v10013_v4 = vcombine.high %v9991_v57, %v9991_v57 }
 0x6f5   : > { %13574 = vmatmul.mubr.bf16.vlgmr.msra.gmra.mrb[128].mxu1 %v9475_v3  ;;  %v10005_v3 = vrot.slane %v9983_v39, %v24696_v8 }
 0x6f6   : > { %14854 = vmatmul.mubr.bf16.vlgmr.msra.gmra.mrb[0].mxu0 %v9867_v20  ;;  %v8826_v20 = vld [vmem:[#allocation5 + $0x270] sm:$0xff] }
 0x6f7   : > { %14862 = vmatpush1.bf16.xpose.msra.mxu0 %v17919_v41  ;;  %14893 = vmatprep.mubr.bf16.mxu0 %v9907_v7  ;;  %v17938_v41 = vcombine.high %v8825_v22, %v8953_v60  ;;  %v17937_v7 = vcombine.low %v8825_v22, %v8953_v60 }
 0x6f8   : > { %14901 = vmatprep.subr.bf16.mxu0 %v17922_v38  ;;  %v8954_v38 = vld [vmem:[#allocation5 + $0x670] sm:$0x11] }
 0x6f9   : > { %v17940_v19 = vcombine.high %v8826_v20, %v8954_v38  ;;  %v17939_v40 = vcombine.low %v8826_v20, %v8954_v38 }
 0x702   : > { %14894 = vmatmul.mubr.bf16.vlgmr.msra.gmra.mrb[0].mxu0 %v9893_v34  ;;  %v9968_v34 = vcombine.high %v8735_v63, %v8735_v63  ;;  %v8833_v63 = vld [vmem:[#allocation5 + $0x2a8] sm:$0xff] }
 0x703   : > { %14902 = vmatpush1.bf16.xpose.msra.mxu0 %v17921_v13  ;;  %14933 = vmatprep.mubr.bf16.mxu0 %v9917_v49  ;;  %v10015_v13 = vcombine.high %v10005_v3, %v10005_v3  ;;  %v17954_v60 = vcombine.high %v8833_v63, %v8961_v25 }
 0x704   : > { %14941 = vmatprep.subr.bf16.mxu0 %v17924_v59  ;;  %v9982_v59 = vrot.slane %v9968_v34, %v24696_v8 }
 0x706   : > { %v9984_v49 = vcombine.high %v9982_v59, %v9982_v59  ;;  %v9998_v61 = vrot.slane %v9982_v59, %v24696_v8  ;;  %v8835_v59 = vld [vmem:[#allocation5 + $0x2b8] sm:$0xff] }
 0x708   : > { %v10014_v44 = vcombine.high %v9998_v61, %v9998_v61 }
 0x70e   : > { %14934 = vmatmul.mubr.bf16.vlgmr.msra.gmra.mrb[0].mxu0 %v9915_v50  ;;  %v8828_v50 = vld [vmem:[#allocation5 + $0x280] sm:$0xff] }
 0x70f   : > { %14942 = vmatpush1.bf16.xpose.msra.mxu0 %v17923_v55  ;;  %14973 = vmatprep.mubr.bf16.mxu0 %v9914_v17  ;;  %v10012_v55 = vrot.slane %v9984_v49, %v24696_v8  ;;  %v17941_v17 = vcombine.low %v8827_v48, %v8955_v26  ;;  %v8963_v49 = vld [vmem:[#allocation5 + $0x6b8] sm:$0x11] }
 0x710   : > { %14981 = vmatprep.subr.bf16.mxu0 %v17926_v62  ;;  %v8956_v62 = vld [vmem:[#allocation5 + $0x680] sm:$0x11] }
 0x711   : > { %v17944_v0 = vcombine.high %v8828_v50, %v8956_v62  ;;  %v17943_v42 = vcombine.low %v8828_v50, %v8956_v62  ;;  %v8836_v62 = vld [vmem:[#allocation5 + $0x2c0] sm:$0xff] }
 0x71a   : > { %14974 = vmatmul.mubr.bf16.vlgmr.msra.gmra.mrb[0].mxu0 %v9900_v58  ;;  %v18753_v58 = vld [vmem:[#allocation4 + $0xa0] sm:$0xff] }
 0x71b   : > { %14982 = vmatpush1.bf16.xpose.msra.mxu0 %v17925_v29  ;;  %15013 = vmatprep.mubr.bf16.mxu0 %v9918_v56  ;;  %v10016_v29 = vcombine.high %v10012_v55, %v10012_v55 }
 0x71c   : > { %15021 = vmatprep.subr.bf16.mxu0 %v17928_v35  ;;  %v10024_v35 = vrot.slane %v18753_v58, %v24696_v8 }
 0x71e   : > { %v10032_v56 = vcombine.high %v10024_v35, %v10024_v35  ;;  %v10040_v2 = vrot.slane %v10024_v35, %v24696_v8  ;;  %v8738_v35 = vld [vmem:[#allocation4 + $0xb0] sm:$0xff] }
 0x720   : > { %v10062_v14 = vcombine.high %v10040_v2, %v10040_v2 }
 0x726   : > { %15014 = vmatmul.mubr.bf16.vlgmr.msra.gmra.mrb[0].mxu0 %v9916_v24  ;;  %v8830_v24 = vld [vmem:[#allocation5 + $0x290] sm:$0xff] }
 0x727   : > { %15022 = vmatpush1.bf16.xpose.msra.mxu0 %v17927_v27  ;;  %15053 = vmatprep.mubr.bf16.mxu0 %v9956_v32  ;;  %v10054_v27 = vrot.slane %v10032_v56, %v24696_v8  ;;  %v17945_v32 = vcombine.low %v8829_v47, %v8957_v37  ;;  %v10122_v56 = vrot.slane %v8738_v35, %v24696_v8  ;;  %v8837_v37 = vld [vmem:[#allocation5 + $0x2c8] sm:$0xff] }
 0x728   : > { %15061 = vmatprep.subr.bf16.mxu0 %v17930_v46  ;;  %v8958_v46 = vld [vmem:[#allocation5 + $0x690] sm:$0x11] }
 0x729   : > { %v17948_v15 = vcombine.high %v8830_v24, %v8958_v46  ;;  %v17947_v23 = vcombine.low %v8830_v24, %v8958_v46  ;;  %v10130_v47 = vcombine.high %v10122_v56, %v10122_v56  ;;  %v8838_v46 = vld [vmem:[#allocation5 + $0x2d0] sm:$0xff] }
 0x72b   : > { %v10152_v24 = vrot.slane %v10130_v47, %v24696_v8  ;;  %v8973_v47 = vld [vmem:[#allocation5 + $0x708] sm:$0x11] }
 0x732   : > { %15054 = vmatmul.mubr.bf16.vlgmr.msra.gmra.mrb[0].mxu0 %v9942_v30  ;;  %v10017_v30 = vcombine.high %v18753_v58, %v18753_v58 }
 0x733   : > { %15062 = vmatpush1.bf16.xpose.msra.mxu0 %v17929_v51  ;;  %15093 = vmatprep.mubr.bf16.mxu0 %v9966_v45  ;;  %v10064_v51 = vcombine.high %v10054_v27, %v10054_v27 }
 0x734   : > { %15101 = vmatprep.subr.bf16.mxu0 %v17932_v54  ;;  %v10031_v54 = vrot.slane %v10017_v30, %v24696_v8  ;;  %v10162_v30 = vcombine.high %v10152_v24, %v10152_v24 }
 0x736   : > { %v10033_v45 = vcombine.high %v10031_v54, %v10031_v54  ;;  %v10047_v52 = vrot.slane %v10031_v54, %v24696_v8  ;;  %v10115_v54 = vcombine.high %v8738_v35, %v8738_v35 }
 0x738   : > { %v10063_v22 = vcombine.high %v10047_v52, %v10047_v52 }
 0x73e   : > { %15094 = vmatmul.mubr.bf16.vlgmr.msra.gmra.mrb[0].mxu0 %v9964_v43  ;;  %v8832_v43 = vld [vmem:[#allocation5 + $0x2a0] sm:$0xff] }
 0x73f   : > { %15102 = vmatpush1.bf16.xpose.msra.mxu0 %v17931_v28  ;;  %15133 = vmatprep.mubr.bf16.mxu0 %v9963_v18  ;;  %v10061_v28 = vrot.slane %v10033_v45, %v24696_v8  ;;  %v17949_v18 = vcombine.low %v8831_v10, %v8959_v12  ;;  %v10129_v45 = vrot.slane %v10115_v54, %v24696_v8  ;;  %v8839_v12 = vld [vmem:[#allocation5 + $0x2d8] sm:$0xff] }
 0x740   : > { %15141 = vmatprep.subr.bf16.mxu0 %v17934_v5  ;;  %v8960_v5 = vld [vmem:[#allocation5 + $0x6a0] sm:$0x11] }
 0x741   : > { %v17952_v21 = vcombine.high %v8832_v43, %v8960_v5  ;;  %v17951_v39 = vcombine.low %v8832_v43, %v8960_v5  ;;  %v10131_v10 = vcombine.high %v10129_v45, %v10129_v45  ;;  %v8840_v5 = vld [vmem:[#allocation5 + $0x2e0] sm:$0xff] }
 0x743   : > { %v10159_v43 = vrot.slane %v10131_v10, %v24696_v8  ;;  %v8975_v10 = vld [vmem:[#allocation5 + $0x718] sm:$0x11] }
 0x74a   : > { %15134 = vmatmul.mubr.bf16.vlgmr.msra.gmra.mrb[0].mxu0 %v9949_v36  ;;  %v8737_v36 = vld [vmem:[#allocation4 + $0xa8] sm:$0xff] }
 0x74b   : > { %15142 = vmatpush1.bf16.xpose.msra.mxu0 %v17933_v16  ;;  %15173 = vmatprep.mubr.bf16.mxu0 %v9967_v33  ;;  %v10065_v16 = vcombine.high %v10061_v28, %v10061_v28 }
 0x74c   : > { %15181 = vmatprep.subr.bf16.mxu0 %v17936_v53  ;;  %v10073_v53 = vrot.slane %v8737_v36, %v24696_v8 }
 0x74e   : > { %v10081_v33 = vcombine.high %v10073_v53, %v10073_v53  ;;  %v10089_v20 = vrot.slane %v10073_v53, %v24696_v8  ;;  %v8739_v53 = vld [vmem:[#allocation4 + $0xb8] sm:$0xff] }
 0x756   : > { %15174 = vmatmul.mubr.bf16.vlgmr.msra.gmra.mrb[0].mxu0 %v9965_v31  ;;  %v8834_v31 = vld [vmem:[#allocation5 + $0x2b0] sm:$0xff] }
 0x757   : > { %15182 = vmatpush1.bf16.xpose.msra.mxu0 %v17935_v9  ;;  %15213 = vmatprep.mubr.bf16.mxu0 %v10005_v3  ;;  %v10103_v9 = vrot.slane %v10081_v33, %v24696_v8  ;;  %v17953_v3 = vcombine.low %v8833_v63, %v8961_v25  ;;  %v10171_v33 = vrot.slane %v8739_v53, %v24696_v8  ;;  %v8841_v25 = vld [vmem:[#allocation5 + $0x2e8] sm:$0xff] }
 0x758   : > { %15221 = vmatprep.subr.bf16.mxu0 %v17938_v41  ;;  %v8962_v41 = vld [vmem:[#allocation5 + $0x6b0] sm:$0x11] }
 0x759   : > { %v17956_v38 = vcombine.high %v8834_v31, %v8962_v41  ;;  %v10179_v63 = vcombine.high %v10171_v33, %v10171_v33 }
 0x762   : > { %15214 = vmatmul.mubr.bf16.vlgmr.msra.gmra.mrb[0].mxu0 %v9991_v57  ;;  %v10066_v57 = vcombine.high %v8737_v36, %v8737_v36  ;;  %v10163_v36 = vcombine.high %v10159_v43, %v10159_v43 }
 0x763   : > { %15222 = vmatpush1.bf16.xpose.msra.mxu0 %v17937_v7  ;;  %15253 = vmatprep.mubr.bf16.mxu0 %v10015_v13  ;;  %v10113_v7 = vcombine.high %v10103_v9, %v10103_v9 }
 0x764   : > { %15261 = vmatprep.subr.bf16.mxu0 %v17940_v19  ;;  %v10080_v19 = vrot.slane %v10066_v57, %v24696_v8 }
 0x766   : > { %v10082_v34 = vcombine.high %v10080_v19, %v10080_v19 }
 0x768   : > { %v10110_v50 = vrot.slane %v10082_v34, %v24696_v8 }
 0x76a   : > { %v10114_v58 = vcombine.high %v10110_v50, %v10110_v50 }
 0x76e   : > { %15254 = vmatmul.mubr.bf16.vlgmr.msra.gmra.mrb[0].mxu0 %v10013_v4 }
 0x76f   : > { %15262 = vmatpush1.bf16.xpose.msra.mxu0 %v17939_v40  ;;  %15293 = vmatprep.mubr.bf16.mxu0 %v10012_v55  ;;  %v17955_v40 = vcombine.low %v8834_v31, %v8962_v41  ;;  %v17958_v55 = vcombine.high %v8835_v59, %v8963_v49  ;;  %v10201_v31 = vrot.slane %v10179_v63, %v24696_v8  ;;  %v8842_v41 = vld [vmem:[#allocation5 + $0x2f0] sm:$0xff]  ;;  %v8977_v63 = vld [vmem:[#allocation5 + $0x728] sm:$0x11] }
 0x770   : > { %15301 = vmatprep.subr.bf16.mxu0 %v17942_v1  ;;  %v10111_v1 = vcombine.high %v10089_v20, %v10089_v20 }
 0x771   : > { %v10211_v57 = vcombine.high %v10201_v31, %v10201_v31 }
 0x77a   : > { %15294 = vmatmul.mubr.bf16.vlgmr.msra.gmra.mrb[0].mxu0 %v9998_v61  ;;  %v17957_v61 = vcombine.low %v8835_v59, %v8963_v49  ;;  %v8843_v49 = vld [vmem:[#allocation5 + $0x2f8] sm:$0xff] }
 0x77b   : > { %15302 = vmatpush1.bf16.xpose.msra.mxu0 %v17941_v17  ;;  %15333 = vmatprep.mubr.bf16.mxu0 %v10016_v29  ;;  %v8964_v17 = vld [vmem:[#allocation5 + $0x6c0] sm:$0x11] }
 0x77c   : > { %15341 = vmatprep.subr.bf16.mxu0 %v17944_v0  ;;  %v10096_v0 = vrot.slane %v10080_v19, %v24696_v8  ;;  %v17960_v29 = vcombine.high %v8836_v62, %v8964_v17  ;;  %v10164_v19 = vcombine.high %v8739_v53, %v8739_v53 }
 0x77e   : > { %v10178_v34 = vrot.slane %v10164_v19, %v24696_v8 }
 0x780   : > { %v10180_v59 = vcombine.high %v10178_v34, %v10178_v34 }
 0x786   : > { %15334 = vmatmul.mubr.bf16.vlgmr.msra.gmra.mrb[0].mxu0 %v10014_v44  ;;  %v17959_v44 = vcombine.low %v8836_v62, %v8964_v17  ;;  %v10194_v17 = vrot.slane %v10178_v34, %v24696_v8  ;;  %v8851_v34 = vld [vmem:[#allocation5 + $0x338] sm:$0xff] }
 0x787   : > { %15342 = vmatpush1.bf16.xpose.msra.mxu0 %v17943_v42  ;;  %15373 = vmatprep.mubr.bf16.mxu0 %v10054_v27  ;;  %v8965_v42 = vld [vmem:[#allocation5 + $0x6c8] sm:$0x11] }
 0x788   : > { %15381 = vmatprep.subr.bf16.mxu0 %v17946_v6  ;;  %v10112_v6 = vcombine.high %v10096_v0, %v10096_v0  ;;  %v17962_v27 = vcombine.high %v8837_v37, %v8965_v42 }
 0x792   : > { %15374 = vmatmul.mubr.bf16.vlgmr.msra.gmra.mrb[0].mxu0 %v10040_v2  ;;  %v17961_v2 = vcombine.low %v8837_v37, %v8965_v42  ;;  %v10210_v42 = vcombine.high %v10194_v17, %v10194_v17 }
 0x793   : > { %15382 = vmatpush1.bf16.xpose.msra.mxu0 %v17945_v32  ;;  %15413 = vmatprep.mubr.bf16.mxu0 %v10064_v51  ;;  %v8966_v32 = vld [vmem:[#allocation5 + $0x6d0] sm:$0x11] }
 0x794   : > { %15421 = vmatprep.subr.bf16.mxu0 %v17948_v15  ;;  %v10138_v15 = vrot.slane %v10122_v56, %v24696_v8  ;;  %v17964_v51 = vcombine.high %v8838_v46, %v8966_v32  ;;  %v8845_v56 = vld [vmem:[#allocation5 + $0x308] sm:$0xff] }
 0x79e   : > { %15414 = vmatmul.mubr.bf16.vlgmr.msra.gmra.mrb[0].mxu0 %v10062_v14  ;;  %v17963_v14 = vcombine.low %v8838_v46, %v8966_v32  ;;  %v17977_v46 = vcombine.low %v8845_v56, %v8973_v47 }
 0x79f   : > { %15422 = vmatpush1.bf16.xpose.msra.mxu0 %v17947_v23  ;;  %15453 = vmatprep.mubr.bf16.mxu0 %v10061_v28  ;;  %v8967_v23 = vld [vmem:[#allocation5 + $0x6d8] sm:$0x11] }
 0x7a0   : > { %15461 = vmatprep.subr.bf16.mxu0 %v17950_v11  ;;  %v10160_v11 = vcombine.high %v10138_v15, %v10138_v15  ;;  %v17966_v28 = vcombine.high %v8839_v12, %v8967_v23 }
 0x7aa   : > { %15454 = vmatmul.mubr.bf16.vlgmr.msra.gmra.mrb[0].mxu0 %v10047_v52  ;;  %v17965_v52 = vcombine.low %v8839_v12, %v8967_v23 }
 0x7ab   : > { %15462 = vmatpush1.bf16.xpose.msra.mxu0 %v17949_v18  ;;  %15493 = vmatprep.mubr.bf16.mxu0 %v10065_v16  ;;  %v8968_v18 = vld [vmem:[#allocation5 + $0x6e0] sm:$0x11] }
 0x7ac   : > { %15501 = vmatprep.subr.bf16.mxu0 %v17952_v21  ;;  %v10145_v21 = vrot.slane %v10129_v45, %v24696_v8  ;;  %v17968_v16 = vcombine.high %v8840_v5, %v8968_v18  ;;  %v8847_v45 = vld [vmem:[#allocation5 + $0x318] sm:$0xff] }
 0x7b6   : > { %15494 = vmatmul.mubr.bf16.vlgmr.msra.gmra.mrb[0].mxu0 %v10063_v22  ;;  %v17967_v22 = vcombine.low %v8840_v5, %v8968_v18  ;;  %v17981_v5 = vcombine.low %v8847_v45, %v8975_v10 }
 0x7b7   : > { %15502 = vmatpush1.bf16.xpose.msra.mxu0 %v17951_v39  ;;  %15533 = vmatprep.mubr.bf16.mxu0 %v10103_v9  ;;  %v8969_v39 = vld [vmem:[#allocation5 + $0x6e8] sm:$0x11] }
 0x7b8   : > { %15541 = vmatprep.subr.bf16.mxu0 %v17954_v60  ;;  %v10161_v60 = vcombine.high %v10145_v21, %v10145_v21  ;;  %v17970_v9 = vcombine.high %v8841_v25, %v8969_v39 }
 0x7c2   : > { %15534 = vmatmul.mubr.bf16.vlgmr.msra.gmra.mrb[0].mxu0 %v10089_v20  ;;  %v17969_v20 = vcombine.low %v8841_v25, %v8969_v39 }
 0x7c3   : > { %15542 = vmatpush1.bf16.xpose.msra.mxu0 %v17953_v3  ;;  %15573 = vmatprep.mubr.bf16.mxu0 %v10113_v7  ;;  %v8970_v3 = vld [vmem:[#allocation5 + $0x6f0] sm:$0x11] }
 0x7c4   : > { %15581 = vmatprep.subr.bf16.mxu0 %v17956_v38  ;;  %v10187_v38 = vrot.slane %v10171_v33, %v24696_v8  ;;  %v17972_v7 = vcombine.high %v8842_v41, %v8970_v3  ;;  %v8849_v33 = vld [vmem:[#allocation5 + $0x328] sm:$0xff] }
 0x7c8   : > { %v25114_v13 = vpop.f32.mrb[128].mxu1 }
 0x7c9   : > { %v13577_v48 = vpop.f32.mrb[129].mxu1 }
 0x7ca   : > { %v13578_v26 = vpop.f32.mrb[130].mxu1  ;;  %v8971_v48 = vld [vmem:[#allocation5 + $0x6f8] sm:$0x11] }
 0x7cb   : > { %v13579_v4 = vpop.f32.mrb[131].mxu1  ;;  %v17971_v26 = vcombine.low %v8842_v41, %v8970_v3  ;;  %v17973_v62 = vcombine.low %v8843_v49, %v8971_v48  ;;  %v17985_v41 = vcombine.low %v8849_v33, %v8977_v63 }
 0x7cc   : > { %v17974_v4 = vcombine.high %v8843_v49, %v8971_v48 }
 0x7ce   : > { %15574 = vmatmul.mubr.bf16.vlgmr.msra.gmra.mrb[0].mxu0 %v10111_v1  ;;  %v10208_v1 = vrot.slane %v10180_v59, %v24696_v8  ;;  %v8979_v59 = vld [vmem:[#allocation5 + $0x738] sm:$0x11] }
 0x7cf   : > { %15582 = vmatpush1.bf16.xpose.msra.mxu0 %v17955_v40  ;;  %15613 = vmatprep.mubr.bf16.mxu0 %v10110_v50  ;;  %v10209_v40 = vcombine.high %v10187_v38, %v10187_v38  ;;  %v8972_v50 = vld [vmem:[#allocation5 + $0x700] sm:$0x11] }
 0x7d0   : > { %15621 = vmatprep.subr.bf16.mxu0 %v17958_v55  ;;  %v8844_v55 = vld [vmem:[#allocation5 + $0x300] sm:$0xff] }
 0x7d1   : > { %v17975_v37 = vcombine.low %v8844_v55, %v8972_v50 }
 0x7da   : > { %15614 = vmatmul.mubr.bf16.vlgmr.msra.gmra.mrb[0].mxu0 %v10096_v0  ;;  %v10212_v0 = vcombine.high %v10208_v1, %v10208_v1 }
 0x7db   : > { %15622 = vmatpush1.bf16.xpose.msra.mxu0 %v17957_v61  ;;  %15653 = vmatprep.mubr.bf16.mxu0 %v10114_v58  ;;  %v17976_v61 = vcombine.high %v8844_v55, %v8972_v50  ;;  %v17989_v55 = vcombine.low %v8851_v34, %v8979_v59 }
 0x7dc   : > { %15661 = vmatprep.subr.bf16.mxu0 %v17960_v29  ;;  %v18754_v29 = vld [vmem:[#allocation4 + $0xc0] sm:$0xff] }
 0x7dd   : > { %v10220_v58 = vrot.slane %v18754_v29, %v24696_v8 }
 0x7df   : > { %v10228_v35 = vcombine.high %v10220_v58, %v10220_v58  ;;  %v10236_v32 = vrot.slane %v10220_v58, %v24696_v8  ;;  %v8853_v58 = vld [vmem:[#allocation5 + $0x348] sm:$0xff] }
 0x7e1   : > { %v10258_v23 = vcombine.high %v10236_v32, %v10236_v32 }
 0x7e6   : > { %15654 = vmatmul.mubr.bf16.vlgmr.msra.gmra.mrb[0].mxu0 %v10112_v6  ;;  %v10250_v6 = vrot.slane %v10228_v35, %v24696_v8  ;;  %v8981_v35 = vld [vmem:[#allocation5 + $0x748] sm:$0x11] }
 0x7e7   : > { %15662 = vmatpush1.bf16.xpose.msra.mxu0 %v17959_v44  ;;  %15693 = vmatprep.mubr.bf16.mxu0 %v10152_v24  ;;  %v17978_v44 = vcombine.high %v8845_v56, %v8973_v47  ;;  %v8974_v24 = vld [vmem:[#allocation5 + $0x710] sm:$0x11] }
 0x7e8   : > { %15701 = vmatprep.subr.bf16.mxu0 %v17962_v27  ;;  %v8846_v27 = vld [vmem:[#allocation5 + $0x310] sm:$0xff] }
 0x7e9   : > { %v17979_v12 = vcombine.low %v8846_v27, %v8974_v24 }
 0x7f2   : > { %15694 = vmatmul.mubr.bf16.vlgmr.msra.gmra.mrb[0].mxu0 %v10138_v15  ;;  %v10260_v15 = vcombine.high %v10250_v6, %v10250_v6 }
 0x7f3   : > { %15702 = vmatpush1.bf16.xpose.msra.mxu0 %v17961_v2  ;;  %15733 = vmatprep.mubr.bf16.mxu0 %v10162_v30  ;;  %v17980_v2 = vcombine.high %v8846_v27, %v8974_v24  ;;  %v17993_v27 = vcombine.low %v8853_v58, %v8981_v35 }
 0x7f4   : > { %15741 = vmatprep.subr.bf16.mxu0 %v17964_v51  ;;  %v10213_v51 = vcombine.high %v18754_v29, %v18754_v29 }
 0x7f6   : > { %v10227_v30 = vrot.slane %v10213_v51, %v24696_v8 }
 0x7f8   : > { %v10229_v54 = vcombine.high %v10227_v30, %v10227_v30  ;;  %v10243_v18 = vrot.slane %v10227_v30, %v24696_v8  ;;  %v8855_v30 = vld [vmem:[#allocation5 + $0x358] sm:$0xff] }
 0x7fa   : > { %v10259_v39 = vcombine.high %v10243_v18, %v10243_v18 }
 0x7fe   : > { %15734 = vmatmul.mubr.bf16.vlgmr.msra.gmra.mrb[0].mxu0 %v10160_v11  ;;  %v10257_v11 = vrot.slane %v10229_v54, %v24696_v8  ;;  %v8983_v54 = vld [vmem:[#allocation5 + $0x758] sm:$0x11] }
 0x7ff   : > { %15742 = vmatpush1.bf16.xpose.msra.mxu0 %v17963_v14  ;;  %15773 = vmatprep.mubr.bf16.mxu0 %v10159_v43  ;;  %v17982_v14 = vcombine.high %v8847_v45, %v8975_v10  ;;  %v8976_v43 = vld [vmem:[#allocation5 + $0x720] sm:$0x11] }
 0x800   : > { %15781 = vmatprep.subr.bf16.mxu0 %v17966_v28  ;;  %v8848_v28 = vld [vmem:[#allocation5 + $0x320] sm:$0xff] }
 0x801   : > { %v17983_v25 = vcombine.low %v8848_v28, %v8976_v43 }
 0x80a   : > { %15774 = vmatmul.mubr.bf16.vlgmr.msra.gmra.mrb[0].mxu0 %v10145_v21  ;;  %v10261_v21 = vcombine.high %v10257_v11, %v10257_v11 }
 0x80b   : > { %15782 = vmatpush1.bf16.xpose.msra.mxu0 %v17965_v52  ;;  %15813 = vmatprep.mubr.bf16.mxu0 %v10163_v36  ;;  %v17984_v52 = vcombine.high %v8848_v28, %v8976_v43  ;;  %v17997_v28 = vcombine.low %v8855_v30, %v8983_v54 }
 0x80c   : > { %15821 = vmatprep.subr.bf16.mxu0 %v17968_v16  ;;  %v8741_v16 = vld [vmem:[#allocation4 + $0xc8] sm:$0xff] }
 0x80d   : > { %v10269_v36 = vrot.slane %v8741_v16, %v24696_v8 }
 0x80f   : > { %v10277_v53 = vcombine.high %v10269_v36, %v10269_v36  ;;  %v10285_v3 = vrot.slane %v10269_v36, %v24696_v8  ;;  %v8857_v36 = vld [vmem:[#allocation5 + $0x368] sm:$0xff] }
 0x811   : > { %v10307_v48 = vcombine.high %v10285_v3, %v10285_v3 }
 0x816   : > { %15814 = vmatmul.mubr.bf16.vlgmr.msra.gmra.mrb[0].mxu0 %v10161_v60  ;;  %v10299_v60 = vrot.slane %v10277_v53, %v24696_v8  ;;  %v8985_v53 = vld [vmem:[#allocation5 + $0x768] sm:$0x11] }
 0x817   : > { %15822 = vmatpush1.bf16.xpose.msra.mxu0 %v17967_v22  ;;  %15853 = vmatprep.mubr.bf16.mxu0 %v10201_v31  ;;  %v17986_v22 = vcombine.high %v8849_v33, %v8977_v63  ;;  %v8978_v31 = vld [vmem:[#allocation5 + $0x730] sm:$0x11] }
 0x818   : > { %15861 = vmatprep.subr.bf16.mxu0 %v17970_v9  ;;  %v8850_v9 = vld [vmem:[#allocation5 + $0x330] sm:$0xff] }
 0x819   : > { %v17987_v49 = vcombine.low %v8850_v9, %v8978_v31 }
 0x822   : > { %15854 = vmatmul.mubr.bf16.vlgmr.msra.gmra.mrb[0].mxu0 %v10187_v38  ;;  %v10309_v38 = vcombine.high %v10299_v60, %v10299_v60 }
 0x823   : > { %15862 = vmatpush1.bf16.xpose.msra.mxu0 %v17969_v20  ;;  %15893 = vmatprep.mubr.bf16.mxu0 %v10211_v57  ;;  %v17988_v20 = vcombine.high %v8850_v9, %v8978_v31  ;;  %v18001_v9 = vcombine.low %v8857_v36, %v8985_v53 }
 0x824   : > { %15901 = vmatprep.subr.bf16.mxu0 %v17972_v7  ;;  %v10262_v7 = vcombine.high %v8741_v16, %v8741_v16 }
 0x826   : > { %v10276_v57 = vrot.slane %v10262_v7, %v24696_v8 }
 0x828   : > { %v10278_v19 = vcombine.high %v10276_v57, %v10276_v57  ;;  %v10292_v50 = vrot.slane %v10276_v57, %v24696_v8  ;;  %v8859_v57 = vld [vmem:[#allocation5 + $0x378] sm:$0xff] }
 0x82a   : > { %v10308_v47 = vcombine.high %v10292_v50, %v10292_v50 }
 0x82e   : > { %15894 = vmatmul.mubr.bf16.vlgmr.msra.gmra.mrb[0].mxu0 %v10209_v40  ;;  %v10306_v40 = vrot.slane %v10278_v19, %v24696_v8  ;;  %v8987_v19 = vld [vmem:[#allocation5 + $0x778] sm:$0x11] }
 0x82f   : > { %15902 = vmatpush1.bf16.xpose.msra.mxu0 %v17971_v26  ;;  %15933 = vmatprep.mubr.bf16.mxu0 %v10208_v1  ;;  %v17990_v26 = vcombine.high %v8851_v34, %v8979_v59  ;;  %v8980_v1 = vld [vmem:[#allocation5 + $0x740] sm:$0x11] }
 0x830   : > { %15941 = vmatprep.subr.bf16.mxu0 %v17974_v4  ;;  %v8852_v4 = vld [vmem:[#allocation5 + $0x340] sm:$0xff] }
 0x831   : > { %v17991_v56 = vcombine.low %v8852_v4, %v8980_v1 }
 0x83a   : > { %15934 = vmatmul.mubr.bf16.vlgmr.msra.gmra.mrb[0].mxu0 %v10194_v17  ;;  %v10310_v17 = vcombine.high %v10306_v40, %v10306_v40 }
 0x83b   : > { %15942 = vmatpush1.bf16.xpose.msra.mxu0 %v17973_v62  ;;  %15973 = vmatprep.mubr.bf16.mxu0 %v10212_v0  ;;  %v17992_v62 = vcombine.high %v8852_v4, %v8980_v1  ;;  %v18005_v4 = vcombine.low %v8859_v57, %v8987_v19 }
 0x83c   : > { %15981 = vmatprep.subr.bf16.mxu0 %v17976_v61  ;;  %v8742_v61 = vld [vmem:[#allocation4 + $0xd0] sm:$0xff] }
 0x83d   : > { %v10318_v0 = vrot.slane %v8742_v61, %v24696_v8 }
 0x83f   : > { %v10326_v29 = vcombine.high %v10318_v0, %v10318_v0  ;;  %v10334_v24 = vrot.slane %v10318_v0, %v24696_v8  ;;  %v8861_v0 = vld [vmem:[#allocation5 + $0x388] sm:$0xff] }
 0x841   : > { %v10356_v10 = vcombine.high %v10334_v24, %v10334_v24 }
 0x846   : > { %15974 = vmatmul.mubr.bf16.vlgmr.msra.gmra.mrb[0].mxu0 %v10210_v42  ;;  %v10348_v42 = vrot.slane %v10326_v29, %v24696_v8  ;;  %v8989_v29 = vld [vmem:[#allocation5 + $0x788] sm:$0x11] }
 0x847   : > { %15982 = vmatpush1.bf16.xpose.msra.mxu0 %v17975_v37  ;;  %16013 = vmatprep.mubr.bf16.mxu0 %v10250_v6  ;;  %v17994_v37 = vcombine.high %v8853_v58, %v8981_v35  ;;  %v8982_v6 = vld [vmem:[#allocation5 + $0x750] sm:$0x11] }
 0x848   : > { %16021 = vmatprep.subr.bf16.mxu0 %v17978_v44  ;;  %v8854_v44 = vld [vmem:[#allocation5 + $0x350] sm:$0xff] }
 0x849   : > { %v17995_v45 = vcombine.low %v8854_v44, %v8982_v6 }
 0x852   : > { %16014 = vmatmul.mubr.bf16.vlgmr.msra.gmra.mrb[0].mxu0 %v10236_v32  ;;  %v10358_v32 = vcombine.high %v10348_v42, %v10348_v42 }
 0x853   : > { %16022 = vmatpush1.bf16.xpose.msra.mxu0 %v17977_v46  ;;  %16053 = vmatprep.mubr.bf16.mxu0 %v10260_v15  ;;  %v17996_v46 = vcombine.high %v8854_v44, %v8982_v6  ;;  %v18009_v44 = vcombine.low %v8861_v0, %v8989_v29 }
 0x854   : > { %16061 = vmatprep.subr.bf16.mxu0 %v17980_v2  ;;  %v10311_v2 = vcombine.high %v8742_v61, %v8742_v61 }
 0x856   : > { %v10325_v15 = vrot.slane %v10311_v2, %v24696_v8 }
 0x858   : > { %v10327_v51 = vcombine.high %v10325_v15, %v10325_v15  ;;  %v10341_v43 = vrot.slane %v10325_v15, %v24696_v8  ;;  %v8863_v15 = vld [vmem:[#allocation5 + $0x398] sm:$0xff] }
 0x85a   : > { %v10357_v63 = vcombine.high %v10341_v43, %v10341_v43 }
 0x85e   : > { %16054 = vmatmul.mubr.bf16.vlgmr.msra.gmra.mrb[0].mxu0 %v10258_v23  ;;  %v10355_v23 = vrot.slane %v10327_v51, %v24696_v8  ;;  %v8991_v51 = vld [vmem:[#allocation5 + $0x798] sm:$0x11] }
 0x85f   : > { %16062 = vmatpush1.bf16.xpose.msra.mxu0 %v17979_v12  ;;  %16093 = vmatprep.mubr.bf16.mxu0 %v10257_v11  ;;  %v17998_v12 = vcombine.high %v8855_v30, %v8983_v54  ;;  %v8984_v11 = vld [vmem:[#allocation5 + $0x760] sm:$0x11] }
 0x860   : > { %16101 = vmatprep.subr.bf16.mxu0 %v17982_v14  ;;  %v8856_v14 = vld [vmem:[#allocation5 + $0x360] sm:$0xff] }
 0x861   : > { %v17999_v33 = vcombine.low %v8856_v14, %v8984_v11 }
 0x86a   : > { %16094 = vmatmul.mubr.bf16.vlgmr.msra.gmra.mrb[0].mxu0 %v10243_v18  ;;  %v10359_v18 = vcombine.high %v10355_v23, %v10355_v23 }
 0x86b   : > { %16102 = vmatpush1.bf16.xpose.msra.mxu0 %v17981_v5  ;;  %16133 = vmatprep.mubr.bf16.mxu0 %v10261_v21  ;;  %v18000_v5 = vcombine.high %v8856_v14, %v8984_v11  ;;  %v18013_v14 = vcombine.low %v8863_v15, %v8991_v51 }
 0x86c   : > { %16141 = vmatprep.subr.bf16.mxu0 %v17984_v52  ;;  %v8743_v52 = vld [vmem:[#allocation4 + $0xd8] sm:$0xff] }
 0x86d   : > { %v10367_v21 = vrot.slane %v8743_v52, %v24696_v8 }
 0x86f   : > { %v10375_v16 = vcombine.high %v10367_v21, %v10367_v21  ;;  %v10383_v31 = vrot.slane %v10367_v21, %v24696_v8  ;;  %v8865_v21 = vld [vmem:[#allocation5 + $0x3a8] sm:$0xff] }
 0x871   : > { %v10405_v59 = vcombine.high %v10383_v31, %v10383_v31 }
 0x876   : > { %16134 = vmatmul.mubr.bf16.vlgmr.msra.gmra.mrb[0].mxu0 %v10259_v39  ;;  %v10397_v39 = vrot.slane %v10375_v16, %v24696_v8  ;;  %v8993_v16 = vld [vmem:[#allocation5 + $0x7a8] sm:$0x11] }
 0x877   : > { %16142 = vmatpush1.bf16.xpose.msra.mxu0 %v17983_v25  ;;  %16173 = vmatprep.mubr.bf16.mxu0 %v10299_v60  ;;  %v18002_v25 = vcombine.high %v8857_v36, %v8985_v53  ;;  %v8986_v60 = vld [vmem:[#allocation5 + $0x770] sm:$0x11] }
 0x878   : > { %16181 = vmatprep.subr.bf16.mxu0 %v17986_v22  ;;  %v8858_v22 = vld [vmem:[#allocation5 + $0x370] sm:$0xff] }
 0x879   : > { %v18003_v34 = vcombine.low %v8858_v22, %v8986_v60 }
 0x882   : > { %16174 = vmatmul.mubr.bf16.vlgmr.msra.gmra.mrb[0].mxu0 %v10285_v3  ;;  %v10407_v3 = vcombine.high %v10397_v39, %v10397_v39 }
 0x883   : > { %16182 = vmatpush1.bf16.xpose.msra.mxu0 %v17985_v41  ;;  %16213 = vmatprep.mubr.bf16.mxu0 %v10309_v38  ;;  %v18004_v41 = vcombine.high %v8858_v22, %v8986_v60  ;;  %v18017_v22 = vcombine.low %v8865_v21, %v8993_v16 }
 0x884   : > { %16221 = vmatprep.subr.bf16.mxu0 %v17988_v20  ;;  %v10360_v20 = vcombine.high %v8743_v52, %v8743_v52 }
 0x886   : > { %v10374_v38 = vrot.slane %v10360_v20, %v24696_v8 }
 0x888   : > { %v10376_v7 = vcombine.high %v10374_v38, %v10374_v38  ;;  %v10390_v1 = vrot.slane %v10374_v38, %v24696_v8  ;;  %v8867_v38 = vld [vmem:[#allocation5 + $0x3b8] sm:$0xff] }
 0x88a   : > { %v10406_v35 = vcombine.high %v10390_v1, %v10390_v1 }
 0x88e   : > { %16214 = vmatmul.mubr.bf16.vlgmr.msra.gmra.mrb[0].mxu0 %v10307_v48  ;;  %v10404_v48 = vrot.slane %v10376_v7, %v24696_v8  ;;  %v8995_v7 = vld [vmem:[#allocation5 + $0x7b8] sm:$0x11] }
 0x88f   : > { %16222 = vmatpush1.bf16.xpose.msra.mxu0 %v17987_v49  ;;  %16253 = vmatprep.mubr.bf16.mxu0 %v10306_v40  ;;  %v18006_v49 = vcombine.high %v8859_v57, %v8987_v19  ;;  %v8988_v40 = vld [vmem:[#allocation5 + $0x780] sm:$0x11] }
 0x890   : > { %16261 = vmatprep.subr.bf16.mxu0 %v17990_v26  ;;  %v8860_v26 = vld [vmem:[#allocation5 + $0x380] sm:$0xff] }
 0x891   : > { %v18007_v58 = vcombine.low %v8860_v26, %v8988_v40 }
 0x89a   : > { %16254 = vmatmul.mubr.bf16.vlgmr.msra.gmra.mrb[0].mxu0 %v10292_v50  ;;  %v10408_v50 = vcombine.high %v10404_v48, %v10404_v48 }
 0x89b   : > { %16262 = vmatpush1.bf16.xpose.msra.mxu0 %v17989_v55  ;;  %16293 = vmatprep.mubr.bf16.mxu0 %v10310_v17  ;;  %v18008_v55 = vcombine.high %v8860_v26, %v8988_v40  ;;  %v18021_v26 = vcombine.low %v8867_v38, %v8995_v7 }
 0x89c   : > { %16301 = vmatprep.subr.bf16.mxu0 %v17992_v62  ;;  %v18755_v62 = vld [vmem:[#allocation4 + $0xe0] sm:$0xff] }
 0x89d   : > { %v10416_v17 = vrot.slane %v18755_v62, %v24696_v8 }
 0x89f   : > { %v10424_v61 = vcombine.high %v10416_v17, %v10416_v17  ;;  %v10432_v6 = vrot.slane %v10416_v17, %v24696_v8  ;;  %v8869_v17 = vld [vmem:[#allocation5 + $0x3c8] sm:$0xff] }
 0x8a1   : > { %v10454_v54 = vcombine.high %v10432_v6, %v10432_v6 }
 0x8a6   : > { %16294 = vmatmul.mubr.bf16.vlgmr.msra.gmra.mrb[0].mxu0 %v10308_v47  ;;  %v10446_v47 = vrot.slane %v10424_v61, %v24696_v8  ;;  %v8997_v61 = vld [vmem:[#allocation5 + $0x7c8] sm:$0x11] }
 0x8a7   : > { %16302 = vmatpush1.bf16.xpose.msra.mxu0 %v17991_v56  ;;  %16333 = vmatprep.mubr.bf16.mxu0 %v10348_v42  ;;  %v18010_v56 = vcombine.high %v8861_v0, %v8989_v29  ;;  %v8990_v42 = vld [vmem:[#allocation5 + $0x790] sm:$0x11] }
 0x8a8   : > { %16341 = vmatprep.subr.bf16.mxu0 %v17994_v37  ;;  %v8862_v37 = vld [vmem:[#allocation5 + $0x390] sm:$0xff] }
 0x8a9   : > { %v18011_v30 = vcombine.low %v8862_v37, %v8990_v42 }
 0x8b2   : > { %16334 = vmatmul.mubr.bf16.vlgmr.msra.gmra.mrb[0].mxu0 %v10334_v24  ;;  %v10456_v24 = vcombine.high %v10446_v47, %v10446_v47 }
 0x8b3   : > { %16342 = vmatpush1.bf16.xpose.msra.mxu0 %v17993_v27  ;;  %16373 = vmatprep.mubr.bf16.mxu0 %v10358_v32  ;;  %v18012_v27 = vcombine.high %v8862_v37, %v8990_v42  ;;  %v18025_v37 = vcombine.low %v8869_v17, %v8997_v61 }
 0x8b4   : > { %16381 = vmatprep.subr.bf16.mxu0 %v17996_v46  ;;  %v10409_v46 = vcombine.high %v18755_v62, %v18755_v62 }
 0x8b6   : > { %v10423_v32 = vrot.slane %v10409_v46, %v24696_v8 }
 0x8b8   : > { %v10425_v2 = vcombine.high %v10423_v32, %v10423_v32  ;;  %v10439_v11 = vrot.slane %v10423_v32, %v24696_v8  ;;  %v8871_v32 = vld [vmem:[#allocation5 + $0x3d8] sm:$0xff] }
 0x8ba   : > { %v10455_v53 = vcombine.high %v10439_v11, %v10439_v11 }
 0x8be   : > { %16374 = vmatmul.mubr.bf16.vlgmr.msra.gmra.mrb[0].mxu0 %v10356_v10  ;;  %v10453_v10 = vrot.slane %v10425_v2, %v24696_v8  ;;  %v8999_v2 = vld [vmem:[#allocation5 + $0x7d8] sm:$0x11] }
 0x8bf   : > { %16382 = vmatpush1.bf16.xpose.msra.mxu0 %v17995_v45  ;;  %16413 = vmatprep.mubr.bf16.mxu0 %v10355_v23  ;;  %v18014_v45 = vcombine.high %v8863_v15, %v8991_v51  ;;  %v8992_v23 = vld [vmem:[#allocation5 + $0x7a0] sm:$0x11] }
 0x8c0   : > { %16421 = vmatprep.subr.bf16.mxu0 %v17998_v12  ;;  %v8864_v12 = vld [vmem:[#allocation5 + $0x3a0] sm:$0xff] }
 0x8c1   : > { %v18015_v36 = vcombine.low %v8864_v12, %v8992_v23 }
 0x8ca   : > { %16414 = vmatmul.mubr.bf16.vlgmr.msra.gmra.mrb[0].mxu0 %v10341_v43  ;;  %v10457_v43 = vcombine.high %v10453_v10, %v10453_v10 }
 0x8cb   : > { %16422 = vmatpush1.bf16.xpose.msra.mxu0 %v17997_v28  ;;  %16453 = vmatprep.mubr.bf16.mxu0 %v10359_v18  ;;  %v18016_v28 = vcombine.high %v8864_v12, %v8992_v23  ;;  %v18029_v12 = vcombine.low %v8871_v32, %v8999_v2 }
 0x8cc   : > { %16461 = vmatprep.subr.bf16.mxu0 %v18000_v5  ;;  %v8745_v5 = vld [vmem:[#allocation4 + $0xe8] sm:$0xff] }
 0x8cd   : > { %v10465_v18 = vrot.slane %v8745_v5, %v24696_v8 }
 0x8cf   : > { %v10473_v52 = vcombine.high %v10465_v18, %v10465_v18  ;;  %v10481_v60 = vrot.slane %v10465_v18, %v24696_v8  ;;  %v8873_v18 = vld [vmem:[#allocation5 + $0x3e8] sm:$0xff] }
 0x8d1   : > { %v10503_v19 = vcombine.high %v10481_v60, %v10481_v60 }
 0x8d6   : > { %16454 = vmatmul.mubr.bf16.vlgmr.msra.gmra.mrb[0].mxu0 %v10357_v63  ;;  %v10495_v63 = vrot.slane %v10473_v52, %v24696_v8  ;;  %v9001_v52 = vld [vmem:[#allocation5 + $0x7e8] sm:$0x11] }
 0x8d7   : > { %16462 = vmatpush1.bf16.xpose.msra.mxu0 %v17999_v33  ;;  %16493 = vmatprep.mubr.bf16.mxu0 %v10397_v39  ;;  %v18018_v33 = vcombine.high %v8865_v21, %v8993_v16  ;;  %v8994_v39 = vld [vmem:[#allocation5 + $0x7b0] sm:$0x11] }
 0x8d8   : > { %16501 = vmatprep.subr.bf16.mxu0 %v18002_v25  ;;  %v8866_v25 = vld [vmem:[#allocation5 + $0x3b0] sm:$0xff] }
 0x8d9   : > { %v18019_v57 = vcombine.low %v8866_v25, %v8994_v39 }
 0x8e2   : > { %16494 = vmatmul.mubr.bf16.vlgmr.msra.gmra.mrb[0].mxu0 %v10383_v31  ;;  %v10505_v31 = vcombine.high %v10495_v63, %v10495_v63 }
 0x8e3   : > { %16502 = vmatpush1.bf16.xpose.msra.mxu0 %v18001_v9  ;;  %16533 = vmatprep.mubr.bf16.mxu0 %v10407_v3  ;;  %v18020_v9 = vcombine.high %v8866_v25, %v8994_v39  ;;  %v18033_v25 = vcombine.low %v8873_v18, %v9001_v52 }
 0x8e4   : > { %16541 = vmatprep.subr.bf16.mxu0 %v18004_v41  ;;  %v10458_v41 = vcombine.high %v8745_v5, %v8745_v5 }
 0x8e6   : > { %v10472_v3 = vrot.slane %v10458_v41, %v24696_v8 }
 0x8e8   : > { %v10474_v20 = vcombine.high %v10472_v3, %v10472_v3  ;;  %v10488_v40 = vrot.slane %v10472_v3, %v24696_v8  ;;  %v8875_v3 = vld [vmem:[#allocation5 + $0x3f8] sm:$0xff] }
 0x8ea   : > { %v10504_v29 = vcombine.high %v10488_v40, %v10488_v40 }
 0x8ee   : > { %16534 = vmatmul.mubr.bf16.vlgmr.msra.gmra.mrb[0].mxu0 %v10405_v59  ;;  %v10502_v59 = vrot.slane %v10474_v20, %v24696_v8  ;;  %v9003_v20 = vld [vmem:[#allocation5 + $0x7f8] sm:$0x11] }
 0x8ef   : > { %16542 = vmatpush1.bf16.xpose.msra.mxu0 %v18003_v34  ;;  %16573 = vmatprep.mubr.bf16.mxu0 %v10404_v48  ;;  %v18022_v34 = vcombine.high %v8867_v38, %v8995_v7  ;;  %v8996_v48 = vld [vmem:[#allocation5 + $0x7c0] sm:$0x11] }
 0x8f0   : > { %16581 = vmatprep.subr.bf16.mxu0 %v18006_v49  ;;  %v8868_v49 = vld [vmem:[#allocation5 + $0x3c0] sm:$0xff] }
 0x8f1   : > { %v18023_v0 = vcombine.low %v8868_v49, %v8996_v48 }
 0x8fa   : > { %16574 = vmatmul.mubr.bf16.vlgmr.msra.gmra.mrb[0].mxu0 %v10390_v1  ;;  %v10506_v1 = vcombine.high %v10502_v59, %v10502_v59 }
 0x8fb   : > { %16582 = vmatpush1.bf16.xpose.msra.mxu0 %v18005_v4  ;;  %16613 = vmatprep.mubr.bf16.mxu0 %v10408_v50  ;;  %v18024_v4 = vcombine.high %v8868_v49, %v8996_v48 }
 0x8fc   : > { %16621 = vmatprep.subr.bf16.mxu0 %v18008_v55  ;;  %v8746_v55 = vld [vmem:[#allocation4 + $0xf0] sm:$0xff] }
 0x8fd   : > { %v10514_v50 = vrot.slane %v8746_v55, %v24696_v8 }
 0x8ff   : > { %v10522_v62 = vcombine.high %v10514_v50, %v10514_v50  ;;  %v10530_v42 = vrot.slane %v10514_v50, %v24696_v8 }
 0x901   : > { %v10552_v51 = vcombine.high %v10530_v42, %v10530_v42 }
 0x906   : > { %16614 = vmatmul.mubr.bf16.vlgmr.msra.gmra.mrb[0].mxu0 %v10406_v35  ;;  %v10544_v35 = vrot.slane %v10522_v62, %v24696_v8 }
 0x907   : > { %16622 = vmatpush1.bf16.xpose.msra.mxu0 %v18007_v58  ;;  %16653 = vmatprep.mubr.bf16.mxu0 %v10446_v47  ;;  %v18026_v58 = vcombine.high %v8869_v17, %v8997_v61  ;;  %v8998_v47 = vld [vmem:[#allocation5 + $0x7d0] sm:$0x11] }
 0x908   : > { %16661 = vmatprep.subr.bf16.mxu0 %v18010_v56  ;;  %v8870_v56 = vld [vmem:[#allocation5 + $0x3d0] sm:$0xff] }
 0x909   : > { %v18027_v15 = vcombine.low %v8870_v56, %v8998_v47 }
 0x912   : > { %16654 = vmatmul.mubr.bf16.vlgmr.msra.gmra.mrb[0].mxu0 %v10432_v6  ;;  %v10554_v6 = vcombine.high %v10544_v35, %v10544_v35 }
 0x913   : > { %16662 = vmatpush1.bf16.xpose.msra.mxu0 %v18009_v44  ;;  %16693 = vmatprep.mubr.bf16.mxu0 %v10456_v24  ;;  %v18028_v44 = vcombine.high %v8870_v56, %v8998_v47 }
 0x914   : > { %16701 = vmatprep.subr.bf16.mxu0 %v18012_v27  ;;  %v10507_v27 = vcombine.high %v8746_v55, %v8746_v55 }
 0x916   : > { %v10521_v24 = vrot.slane %v10507_v27, %v24696_v8 }
 0x918   : > { %v10523_v46 = vcombine.high %v10521_v24, %v10521_v24  ;;  %v10537_v23 = vrot.slane %v10521_v24, %v24696_v8 }
 0x91a   : > { %v10553_v16 = vcombine.high %v10537_v23, %v10537_v23 }
 0x91e   : > { %16694 = vmatmul.mubr.bf16.vlgmr.msra.gmra.mrb[0].mxu0 %v10454_v54  ;;  %v10551_v54 = vrot.slane %v10523_v46, %v24696_v8 }
 0x91f   : > { %16702 = vmatpush1.bf16.xpose.msra.mxu0 %v18011_v30  ;;  %16733 = vmatprep.mubr.bf16.mxu0 %v10453_v10  ;;  %v18030_v30 = vcombine.high %v8871_v32, %v8999_v2  ;;  %v9000_v10 = vld [vmem:[#allocation5 + $0x7e0] sm:$0x11] }
 0x920   : > { %16741 = vmatprep.subr.bf16.mxu0 %v18014_v45  ;;  %v8872_v45 = vld [vmem:[#allocation5 + $0x3e0] sm:$0xff] }
 0x921   : > { %v18031_v21 = vcombine.low %v8872_v45, %v9000_v10 }
 0x92a   : > { %16734 = vmatmul.mubr.bf16.vlgmr.msra.gmra.mrb[0].mxu0 %v10439_v11  ;;  %v10555_v11 = vcombine.high %v10551_v54, %v10551_v54 }
 0x92b   : > { %16742 = vmatpush1.bf16.xpose.msra.mxu0 %v18013_v14  ;;  %16773 = vmatprep.mubr.bf16.mxu0 %v10457_v43  ;;  %v18032_v14 = vcombine.high %v8872_v45, %v9000_v10 }
 0x92c   : > { %16781 = vmatprep.subr.bf16.mxu0 %v18016_v28  ;;  %v8747_v28 = vld [vmem:[#allocation4 + $0xf8] sm:$0xff] }
 0x92d   : > { %v10563_v43 = vrot.slane %v8747_v28, %v24696_v8 }
 0x92f   : > { %v10571_v5 = vcombine.high %v10563_v43, %v10563_v43  ;;  %v10579_v39 = vrot.slane %v10563_v43, %v24696_v8 }
 0x931   : > { %v10601_v7 = vcombine.high %v10579_v39, %v10579_v39 }
 0x936   : > { %16774 = vmatmul.mubr.bf16.vlgmr.msra.gmra.mrb[0].mxu0 %v10455_v53  ;;  %v10593_v53 = vrot.slane %v10571_v5, %v24696_v8 }
 0x937   : > { %16782 = vmatpush1.bf16.xpose.msra.mxu0 %v18015_v36  ;;  %16813 = vmatprep.mubr.bf16.mxu0 %v10495_v63  ;;  %v18034_v36 = vcombine.high %v8873_v18, %v9001_v52  ;;  %v9002_v63 = vld [vmem:[#allocation5 + $0x7f0] sm:$0x11] }
 0x938   : > { %16821 = vmatprep.subr.bf16.mxu0 %v18018_v33  ;;  %v8874_v33 = vld [vmem:[#allocation5 + $0x3f0] sm:$0xff] }
 0x939   : > { %v18035_v38 = vcombine.low %v8874_v33, %v9002_v63 }
 0x942   : > { %16814 = vmatmul.mubr.bf16.vlgmr.msra.gmra.mrb[0].mxu0 %v10481_v60  ;;  %v10603_v60 = vcombine.high %v10593_v53, %v10593_v53 }
 0x943   : > { %16822 = vmatpush1.bf16.xpose.msra.mxu0 %v18017_v22  ;;  %16853 = vmatprep.mubr.bf16.mxu0 %v10505_v31  ;;  %v18036_v22 = vcombine.high %v8874_v33, %v9002_v63 }
 0x944   : > { %16861 = vmatprep.subr.bf16.mxu0 %v18020_v9  ;;  %v10556_v9 = vcombine.high %v8747_v28, %v8747_v28 }
 0x946   : > { %v10570_v31 = vrot.slane %v10556_v9, %v24696_v8 }
 0x948   : > { %v10572_v41 = vcombine.high %v10570_v31, %v10570_v31 }
 0x94e   : > { %16854 = vmatmul.mubr.bf16.vlgmr.msra.gmra.mrb[0].mxu0 %v10503_v19  ;;  %v10600_v19 = vrot.slane %v10572_v41, %v24696_v8 }
 0x94f   : > { %16862 = vmatpush1.bf16.xpose.msra.mxu0 %v18019_v57  ;;  %16893 = vmatprep.mubr.bf16.mxu0 %v10502_v59  ;;  %v18038_v57 = vcombine.high %v8875_v3, %v9003_v20  ;;  %v10586_v59 = vrot.slane %v10570_v31, %v24696_v8 }
 0x950   : > { %16901 = vmatprep.subr.bf16.mxu0 %v18022_v34  ;;  %v18037_v34 = vcombine.low %v8875_v3, %v9003_v20  ;;  %v10604_v49 = vcombine.high %v10600_v19, %v10600_v19 }
 0x951   : > { %v10602_v48 = vcombine.high %v10586_v59, %v10586_v59 }
 0x95a   : > { %16894 = vmatmul.mubr.bf16.vlgmr.msra.gmra.mrb[0].mxu0 %v10488_v40 }
 0x95b   : > { %16902 = vmatpush1.bf16.xpose.msra.mxu0 %v18021_v26  ;;  %16933 = vmatprep.mubr.bf16.mxu0 %v10506_v1  ;;  %v9004_v26 = vld [vmem:[%s25235_s6] sm:$0x1] }
 0x95c   : > { %16941 = vmatprep.subr.bf16.mxu0 %v18024_v4  ;;  %v18107_v40 = vadd.f32 %v25114_v13, %v9004_v26 }
 0x966   : > { %16934 = vmatmul.mubr.bf16.vlgmr.msra.gmra.mrb[0].mxu0 %v10504_v29 }
 0x967   : > { %16942 = vmatpush1.bf16.xpose.msra.mxu0 %v18023_v0  ;;  %16973 = vmatprep.mubr.bf16.mxu0 %v10544_v35 }
 0x968   : > { %16981 = vmatprep.subr.bf16.mxu0 %v18026_v58 }
 0x972   : > { %16974 = vmatmul.mubr.bf16.vlgmr.msra.gmra.mrb[0].mxu0 %v10530_v42 }
 0x973   : > { %16982 = vmatpush1.bf16.xpose.msra.mxu0 %v18025_v37  ;;  %17013 = vmatprep.mubr.bf16.mxu0 %v10554_v6 }
 0x974   : > { %17021 = vmatprep.subr.bf16.mxu0 %v18028_v44 }
 0x97e   : > { %17014 = vmatmul.mubr.bf16.vlgmr.msra.gmra.mrb[0].mxu0 %v10552_v51 }
 0x97f   : > { %17022 = vmatpush1.bf16.xpose.msra.mxu0 %v18027_v15  ;;  %17053 = vmatprep.mubr.bf16.mxu0 %v10551_v54 }
 0x980   : > { %17061 = vmatprep.subr.bf16.mxu0 %v18030_v30 }
 0x98a   : > { %17054 = vmatmul.mubr.bf16.vlgmr.msra.gmra.mrb[0].mxu0 %v10537_v23 }
 0x98b   : > { %17062 = vmatpush1.bf16.xpose.msra.mxu0 %v18029_v12  ;;  %17093 = vmatprep.mubr.bf16.mxu0 %v10555_v11 }
 0x98c   : > { %17101 = vmatprep.subr.bf16.mxu0 %v18032_v14 }
 0x996   : > { %17094 = vmatmul.mubr.bf16.vlgmr.msra.gmra.mrb[0].mxu0 %v10553_v16 }
 0x997   : > { %17102 = vmatpush1.bf16.xpose.msra.mxu0 %v18031_v21  ;;  %17133 = vmatprep.mubr.bf16.mxu0 %v10593_v53 }
 0x998   : > { %17141 = vmatprep.subr.bf16.mxu0 %v18034_v36 }
 0x9a2   : > { %17134 = vmatmul.mubr.bf16.vlgmr.msra.gmra.mrb[0].mxu0 %v10579_v39 }
 0x9a3   : > { %17142 = vmatpush1.bf16.xpose.msra.mxu0 %v18033_v25  ;;  %17173 = vmatprep.mubr.bf16.mxu0 %v10603_v60 }
 0x9a4   : > { %17181 = vmatprep.subr.bf16.mxu0 %v18036_v22 }
 0x9ae   : > { %17174 = vmatmul.mubr.bf16.vlgmr.msra.gmra.mrb[0].mxu0 %v10601_v7 }
 0x9af   : > { %17182 = vmatpush1.bf16.xpose.msra.mxu0 %v18035_v38  ;;  %17213 = vmatprep.mubr.bf16.mxu0 %v10600_v19 }
 0x9b0   : > { %17221 = vmatprep.subr.bf16.mxu0 %v18038_v57 }
 0x9ba   : > { %17214 = vmatmul.mubr.bf16.vlgmr.msra.gmra.mrb[0].mxu0 %v10586_v59 }
 0x9bb   : > { %17222 = vmatpush1.bf16.xpose.msra.mxu0 %v18037_v34  ;;  %17253 = vmatprep.mubr.bf16.mxu0 %v10604_v49 }
 0x9c6   : > { %17254 = vmatmul.mubr.bf16.vlgmr.msra.gmra.mrb[0].mxu0 %v10602_v48 }
 0xa99   : > { %v17255_v4 = vpop.f32.mrb[0].mxu0 }
 0xa9a   : > { %v18108_v8 = vadd.f32 %v18107_v40, %v17255_v4  ;;  %v17257_v1 = vpop.f32.mrb[1].mxu0 }
 0xa9b   : > { %v17258_v55 = vpop.f32.mrb[2].mxu0 }
 0xa9c   : > { %v17259_v50 = vpop.f32.mrb[3].mxu0  ;;  %17262 = vst.msk [vmem:[%s285_s21] sm:$0x1] %vm17261_vm10, %v18108_v8 }
 0xa9d   : > { %18797 = shalt.err (!%p18794_p7)
}
 0xa9e   : > { %s18798_s22 = scalar_lea.hbm %s25187_s17, 16  ;;  %s18802_s19 = scalar_lea.hbm %s25236_s7, 32 }
 0xa9f   : > { %p18799_p8 = scmp.ne.s32.totalorder %s25187_s17, %s18798_s22  ;;  %p18803_p0 = scmp.lt.u32.totalorder %s25187_s17, %s25236_s7 }
 0xaa0   : > { %p18804_p1 = scmp.lt.u32.totalorder %s18802_s19, %s18798_s22  ;;  %p18806_p6 = scmp.lt.u32.totalorder %s18798_s22, %s25187_s17 }
 0xaa1   : > { %p18800_p11 = pnand %p18799_p8, %p26537_p9 }
 0xaa2   : > { %p18805_p5 = por %p18804_p1, %p18803_p0 }
 0xaa3   : > { %p18801_p13 = pneg %p18800_p11 }
 0xaa4   : > { %p18807_p10 = por %p18806_p6, %p18805_p5 }
 0xaa6   : > { %p18808_p12 = pnand %p18807_p10, %p18801_p13 }
 0xaa8   : > { %18811 = shalt.err (!%p18808_p12)
}
 0xaa9   : > { %18617 = dma.vmem_to_hbm [thread:$0]  (%p26537_p9), %s25189_s8, 16, %s25187_s17, %s17264_s28  }
 0xaaa PF: > { %p18629_p2 = scmp.ge.s32.totalorder %s18850_s27, 2  ;;  %s17288_s9 = sand.u32 1, %s18838_s24  }
 0xaab   : > { %p26538_p3 = scmp.ne.s32.totalorder %s25485_s12, 0  ;;  %s17289_s14 = scalar_lea.sflag [#allocation7], %s17288_s9 }
 0xaad   : > { %p18624_p4 = pnand %p18629_p2, %p26538_p3 }
 0xaaf   : > { %18833 = dma.done.wait (!%p18624_p4), %s17289_s14, 16  }
 0xab0   : > { %18835 = vsyncadd (!%p18624_p4), %s17289_s14, 4294967280  ;;  %p18_p7 = scmp.ge.s32.totalorder %s18930_s30, 4   ;;  %s26539_s24 = smov %s18842_s25 }
 0xab1   : > { %s26540_s25 = smov %s18846_s26  ;;  %s26541_s26 = smov %s18941_s10 }
 0xab2   : > { %s26542_s27 = smov %s18930_s30  ;;  %20 = sbr.rel (!%p18_p7) target bundleno = 4 (0x4), region = 88 }
 0xab9   :  { %17293 = vsyncpa [#allocation6], 1 }
 0xaba   :  { %17295 = vsyncpa [#allocation6 + $0x1], 1 }
 0xabb   :  { %17296 = vsyncpa [#allocation7], 1 }
 0xabc   :  { %17298 = vsyncpa [#allocation7 + $0x1], 1 }

</bundles_post_ra>
